<compile_context>
chip_gen: v6e
topology: v6e:2x2x1
jax: 0.10.0
libtpu: 0.0.40
codegen_flags: <defaults>
</compile_context>

<pallas_src>
import functools

import jax
import jax.numpy as jnp
import numpy as np
from jax import lax
from jax.experimental import pallas as pl
from jax.experimental.pallas import tpu as pltpu

EPS = 1e-5


def _round_up(a, b):
    return (a + b - 1) // b * b


# ----------------------------------------------------------------------------
# In-kernel GroupNorm + ReLU on a lane-dense (Cout, W) accumulator.
# ----------------------------------------------------------------------------
def _gn_relu(acc, mask, gamma, beta, bias, *, G, nvox):
    """acc: (Cout, W) f32 conv output (non-interior lanes may hold garbage).
    mask: (1, W) f32 {0,1} interior-voxel mask. gamma/beta/bias: (Cout, 1).
    Returns relu(GN(acc)) WITHOUT re-masking (caller decides)."""
    Cout = acc.shape[0]
    cg = Cout // G
    if cg != 1:
        # General grouping: the bias does not cancel within a group.
        acc = acc + bias
    # cg == 1: one channel per group -> per-channel conv bias is exactly
    # cancelled by GroupNorm's mean subtraction; skip the broadcast-add.
    am = acc * mask
    s1 = jnp.sum(am, axis=1, keepdims=True)                 # (Cout, 1)
    s2 = jnp.sum(am * am, axis=1, keepdims=True)            # (Cout, 1)
    if cg == 1:
        cnt = float(nvox)
        mean = s1 / cnt
        var = s2 / cnt - mean * mean
    else:
        # TODO(synk): cg > 1 (channels-per-group > 1) path is not exercised
        # by the test below; validate separately before relying on it.
        chan = lax.broadcasted_iota(jnp.int32, (Cout, G), 0)
        grp = lax.broadcasted_iota(jnp.int32, (Cout, G), 1)
        onehot = (chan // cg == grp).astype(jnp.float32)    # (Cout, G)
        cnt = float(nvox * cg)
        mean_g = jnp.dot(onehot.T, s1, preferred_element_type=jnp.float32) / cnt
        ex2_g = jnp.dot(onehot.T, s2, preferred_element_type=jnp.float32) / cnt
        mean = jnp.dot(onehot, mean_g, preferred_element_type=jnp.float32)
        var = jnp.dot(onehot, ex2_g, preferred_element_type=jnp.float32) - mean * mean
    var = jnp.maximum(var, 0.0)              # guard one-pass variance cancellation
    scale = gamma * lax.rsqrt(var + EPS)
    shift = beta - mean * scale
    return jnp.maximum(acc * scale + shift, 0.0)


# ----------------------------------------------------------------------------
# Fused DoubleConv kernel: one grid step = one batch sample.
# ----------------------------------------------------------------------------
def _up_double_conv_kernel(x_ref, w_ref, aff_ref, mask_ref, o_ref, *,
                           Cin, Cout, W1, W2, offs, G, nvox, mm_dtype):
    # x_ref:   (Cin, L_in)  mm_dtype, lanes = flattened (d, h_pad, w_pad) grid
    #          with zero borders / slack; interior data starts at lane 2*M.
    # w_ref:   (2, Cout, 27*Cmax) mm_dtype, row (kd,kh,kw,c)-ordered conv cols.
    # aff_ref: (Cout, 6) f32 columns = [b1, g1, be1, b2, g2, be2].
    # mask_ref:(2, W1) f32 interior masks for layer-1 / layer-2 windows.
    # o_ref:   (Cout, W2) f32, lane-dense (W2 % 128 == 0) unmasked store.
    src = x_ref[...].astype(jnp.float32)                     # (Cin, L_in)
    w_all = w_ref[...]
    w1 = w_all[0, :, :27 * Cin]                              # (Cout, 27*Cin)
    w2 = w_all[1, :, :27 * Cout]                             # (Cout, 27*Cout)
    aff = aff_ref[...]
    mask = mask_ref[...]
    m1 = mask[0:1, :]                                        # (1, W1)
    m2 = mask[1:2, :W2]                                      # (1, W2)

    # ---- layer 1: Conv3d(3^3, pad=1) as ONE MXU dot (K = 27*Cin) ----------
    # The 27 taps are static lane-offset slices (the lane axis already carries
    # the D / H / W zero padding), folded into the contraction dimension.
    col1 = jnp.concatenate([src[:, s:s + W1] for s in offs], axis=0)
    acc1 = jnp.dot(w1, col1.astype(mm_dtype),
                   preferred_element_type=jnp.float32)       # (Cout, W1)
    h1 = _gn_relu(acc1, m1, aff[:, 1:2], aff[:, 2:3], aff[:, 0:1],
                  G=G, nvox=nvox) * m1                       # re-zero halo lanes

    # ---- layer 2 -----------------------------------------------------------
    col2 = jnp.concatenate([h1[:, s:s + W2] for s in offs], axis=0)
    acc2 = jnp.dot(w2, col2.astype(mm_dtype),
                   preferred_element_type=jnp.float32)       # (Cout, W2)
    out = _gn_relu(acc2, m2, aff[:, 4:5], aff[:, 5:6], aff[:, 3:4],
                   G=G, nvox=nvox)
    o_ref[...] = out.astype(o_ref.dtype)                     # full-width vst


# ----------------------------------------------------------------------------
# Host wrapper: layout prep + single fused pallas_call.
# ----------------------------------------------------------------------------
def _interior_mask(width, start, *, D, H, W, L_plane, Wp, M):
    g = np.arange(width, dtype=np.int64) + start
    t = g - 2 * M
    d = t // L_plane
    r = t - d * L_plane
    hp = r // Wp
    wp = r - hp * Wp
    ok = (t >= 0) & (d < D) & (hp >= 1) & (hp <= H) & (wp >= 1) & (wp <= W)
    return ok.astype(np.float32)


def up_double_conv(x, params, num_groups=8, mm_dtype=jnp.bfloat16):
    """x: (N, Cin, D, H, W) f32 -> (N, Cout, D, H, W) f32 (DoubleConv)."""
    N, Cin, D, H, W = x.shape
    Cout = params["w1"].shape[0]
    Hp, Wp = H + 2, W + 2
    L_plane = Hp * Wp
    M = L_plane + Wp + 1                    # max |tap lane shift|
    W2 = _round_up(D * L_plane, 128)        # layer-2 (output) lane width
    W1 = _round_up(W2 + 2 * M, 128)         # layer-1 lane width
    L_in = W1 + 2 * M
    Cmax = max(Cin, Cout)

    # Lane-dense input layout (one fused XLA pass, host-cast to mm_dtype):
    # channels on sublanes, (d, h_pad, w_pad) flattened onto lanes, interior
    # data starting at lane 2*M with zero slack on both sides.
    xk = jnp.pad(x, ((0, 0), (0, 0), (0, 0), (1, 1), (1, 1)))
    xk = xk.reshape(N, Cin, D * L_plane)
    xk = jnp.pad(xk, ((0, 0), (0, 0), (2 * M, L_in - 2 * M - D * L_plane)))
    xk = xk.astype(mm_dtype)

    def to_col(w, pad_to):                  # PyTorch (O, I, 3,3,3) -> (O, 27*I)
        O, I = w.shape[:2]
        wc = jnp.transpose(w, (0, 2, 3, 4, 1)).reshape(O, 27 * I)
        if 27 * I < pad_to:
            wc = jnp.pad(wc, ((0, 0), (0, pad_to - 27 * I)))
        return wc

    wk = jnp.stack([to_col(params["w1"], 27 * Cmax),
                    to_col(params["w2"], 27 * Cmax)], axis=0).astype(mm_dtype)
    aff = jnp.stack([params["b1"], params["g1"], params["be1"],
                     params["b2"], params["g2"], params["be2"]],
                    axis=1).astype(jnp.float32)              # (Cout, 6)

    mask_np = np.zeros((2, W1), np.float32)
    mask_np[0, :W1] = _interior_mask(W1, M, D=D, H=H, W=W,
                                     L_plane=L_plane, Wp=Wp, M=M)
    mask_np[1, :W2] = _interior_mask(W2, 2 * M, D=D, H=H, W=W,
                                     L_plane=L_plane, Wp=Wp, M=M)
    mask = jnp.asarray(mask_np)

    # Static tap lane offsets, shared by both layers.
    offs = tuple(M + (kd - 1) * L_plane + (kh - 1) * Wp + (kw - 1)
                 for kd in range(3) for kh in range(3) for kw in range(3))

    kernel = functools.partial(_up_double_conv_kernel, Cin=Cin, Cout=Cout,
                               W1=W1, W2=W2, offs=offs, G=num_groups,
                               nvox=D * H * W, mm_dtype=mm_dtype)

    out = pl.pallas_call(
        kernel,
        out_shape=jax.ShapeDtypeStruct((N, Cout, W2), jnp.float32),
        grid_spec=pltpu.PrefetchScalarGridSpec(
            num_scalar_prefetch=0,
            grid=(N,),   # one sample per step; GN needs the full volume per block
            in_specs=[
                pl.BlockSpec((None, Cin, L_in), lambda n: (n, 0, 0)),
                pl.BlockSpec((2, Cout, 27 * Cmax), lambda n: (0, 0, 0)),
                pl.BlockSpec((Cout, 6), lambda n: (0, 0)),
                pl.BlockSpec((2, W1), lambda n: (0, 0)),
            ],
            out_specs=pl.BlockSpec((None, Cout, W2), lambda n: (n, 0, 0)),
        ),
        compiler_params=pltpu.CompilerParams(dimension_semantics=("parallel",)),
    )(xk, wk, aff, mask)

    # (N, Cout, W2) lane-dense -> NCDHW interior; cheap fused XLA slice/reshape.
    out = out[:, :, :D * L_plane].reshape(N, Cout, D, Hp, Wp)
    return out[:, :, :, 1:1 + H, 1:1 + W]


def upsample_trilinear_align_corners(x, scale=(2, 2, 1)):
    """x: (N, C, D, H, W); matches nn.Upsample(mode='trilinear', align_corners=True)."""
    def interp_axis(x, axis, out_size):
        in_size = x.shape[axis]
        if out_size == in_size:
            return x
        if in_size == 1:
            return jnp.repeat(x, out_size, axis=axis)
        pos = jnp.arange(out_size, dtype=jnp.float32) * (in_size - 1) / (out_size - 1)
        i0 = jnp.clip(jnp.floor(pos).astype(jnp.int32), 0, in_size - 2)
        i1 = i0 + 1
        wgt = pos - i0.astype(jnp.float32)
        x0 = jnp.take(x, i0, axis=axis)
        x1 = jnp.take(x, i1, axis=axis)
        shape = [1] * x.ndim
        shape[axis] = out_size
        return x0 * (1.0 - wgt.reshape(shape)) + x1 * wgt.reshape(shape)

    N, C, D, H, W = x.shape
    x = interp_axis(x, 2, D * scale[0])
    x = interp_axis(x, 3, H * scale[1])
    x = interp_axis(x, 4, W * scale[2])
    return x


def _build_concat_input(x1, x2):
    x1u = upsample_trilinear_align_corners(x1, scale=(2, 2, 1))
    diffZ = x2.shape[2] - x1u.shape[2]
    diffY = x2.shape[3] - x1u.shape[3]
    diffX = x2.shape[4] - x1u.shape[4]
    x1p = jnp.pad(x1u, ((0, 0), (0, 0),
                        (diffZ // 2, diffZ - diffZ // 2),
                        (diffY // 2, diffY - diffY // 2),
                        (diffX // 2, diffX - diffX // 2)))
    # Skip-connection concat stays in the wrapper: it fuses into the single
    # XLA input-prep pass that also builds the kernel's lane-dense layout.
    return jnp.concatenate([x2, x1p], axis=1)


def up_forward(x1, x2, params, num_groups=8, mm_dtype=jnp.bfloat16):
    """x1, x2: NCDHW f32 -> NCDHW f32 (matches Up.forward)."""
    x = _build_concat_input(x1, x2)
    return up_double_conv(x, params, num_groups, mm_dtype)


# ----------------------------------------------------------------------------
# Pure-JAX reference (correctness check only).  mm_dtype quantizes the conv
# operands the same way the kernel does (bf16 operands, f32 accumulation).
# ----------------------------------------------------------------------------
def _q(v, dt):
    return v if jnp.dtype(dt) == jnp.dtype(jnp.float32) else v.astype(dt).astype(jnp.float32)


def _conv3d_ref(x, w, b):
    y = lax.conv_general_dilated(x, w, window_strides=(1, 1, 1), padding="SAME",
                                 dimension_numbers=("NCDHW", "OIDHW", "NCDHW"))
    return y + b.reshape(1, -1, 1, 1, 1)


def _group_norm_ref(x, gamma, beta, G, eps=EPS):
    N, C = x.shape[:2]
    xg = x.reshape(N, G, C // G, *x.shape[2:])
    mean = xg.mean(axis=(2, 3, 4, 5), keepdims=True)
    var = ((xg - mean) ** 2).mean(axis=(2, 3, 4, 5), keepdims=True)
    y = ((xg - mean) * lax.rsqrt(var + eps)).reshape(x.shape)
    return y * gamma.reshape(1, -1, 1, 1, 1) + beta.reshape(1, -1, 1, 1, 1)


def up_forward_ref(x1, x2, params, num_groups=8, mm_dtype=jnp.bfloat16):
    x = _build_concat_input(x1, x2)
    h = _conv3d_ref(_q(x, mm_dtype), _q(params["w1"], mm_dtype), params["b1"])
    h = jnp.maximum(_group_norm_ref(h, params["g1"], params["be1"], num_groups), 0.0)
    h = _conv3d_ref(_q(h, mm_dtype), _q(params["w2"], mm_dtype), params["b2"])
    h = jnp.maximum(_group_norm_ref(h, params["g2"], params["be2"], num_groups), 0.0)
    return h


# ----------------------------------------------------------------------------
# Main
# ----------------------------------------------------------------------------
if __name__ == "__main__":
    key = jax.random.PRNGKey(0)
    N = 2
    C1, C2 = 4, 4                        # x1 / x2 (skip) channels
    in_channels = C1 + C2                # channels after concat
    out_channels = 8                     # divisible by num_groups
    num_groups = 8
    mm_dtype = jnp.bfloat16              # MXU-native operands; f32 accumulation

    keys = jax.random.split(key, 10)
    # x1 comes from the deeper level: half spatial resolution in D and H.
    x1 = jax.random.normal(keys[0], (N, C1, 4, 8, 8), dtype=jnp.float32)
    x2 = jax.random.normal(keys[1], (N, C2, 9, 17, 8), dtype=jnp.float32)

    params = {
        # PyTorch Conv3d layout: (out_channels, in_channels, kD, kH, kW)
        "w1": 0.1 * jax.random.normal(keys[2], (out_channels, in_channels, 3, 3, 3), jnp.float32),
        "b1": 0.05 * jax.random.normal(keys[3], (out_channels,), jnp.float32),
        "g1": 1.0 + 0.1 * jax.random.normal(keys[4], (out_channels,), jnp.float32),
        "be1": 0.1 * jax.random.normal(keys[5], (out_channels,), jnp.float32),
        "w2": 0.1 * jax.random.normal(keys[6], (out_channels, out_channels, 3, 3, 3), jnp.float32),
        "b2": 0.05 * jax.random.normal(keys[7], (out_channels,), jnp.float32),
        "g2": 1.0 + 0.1 * jax.random.normal(keys[8], (out_channels,), jnp.float32),
        "be2": 0.1 * jax.random.normal(keys[9], (out_channels,), jnp.float32),
    }

    up_fn = jax.jit(lambda a, b, p: up_forward(a, b, p, num_groups=num_groups,
                                               mm_dtype=mm_dtype))
    out = jax.block_until_ready(up_fn(x1, x2, params))

    ref = jax.block_until_ready(
        up_forward_ref(x1, x2, params, num_groups, mm_dtype=mm_dtype))
    assert out.shape == (N, out_channels, 9, 17, 8), out.shape
    assert np.allclose(np.asarray(out), np.asarray(ref), atol=2e-3, rtol=2e-3), (
        "mismatch vs pure-JAX reference"
    )
    print("KERNEL_OK")
</pallas_src>

<mosaic_0001>
module attributes {stable_mosaic.version = 11 : i64} {
  func.func @_up_double_conv_kernel(%arg0: i32, %arg1: memref<1x8x2706xbf16, #tpu.memory_space<vmem>>, %arg2: memref<2x8x216xbf16, #tpu.memory_space<vmem>>, %arg3: memref<8x6xf32, #tpu.memory_space<vmem>>, %arg4: memref<2x2304xf32, #tpu.memory_space<vmem>>, %arg5: memref<1x8x1792xf32, #tpu.memory_space<vmem>>) attributes {dimension_semantics = [#tpu.dimension_semantics<parallel>], iteration_bounds = array<i64: 2>, scalar_prefetch = 0 : i64, scratch_operands = 0 : i64, tpu.core_type = #tpu.core_type<tc>, window_params = [{transform_indices = @transform_0, window_bounds = array<i64: 1, 8, 2706>}, {pipeline_mode = #tpu.pipeline_mode<synchronous>, transform_indices = @transform_1, window_bounds = array<i64: 2, 8, 216>}, {pipeline_mode = #tpu.pipeline_mode<synchronous>, transform_indices = @transform_2, window_bounds = array<i64: 8, 6>}, {pipeline_mode = #tpu.pipeline_mode<synchronous>, transform_indices = @transform_3, window_bounds = array<i64: 2, 2304>}, {transform_indices = @transform_4, window_bounds = array<i64: 1, 8, 1792>}]} {
    %c0 = arith.constant 0 : index
    %c0_0 = arith.constant 0 : index
    %c0_1 = arith.constant 0 : index
    %0 = vector.load %arg1[%c0, %c0_0, %c0_1] : memref<1x8x2706xbf16, #tpu.memory_space<vmem>>, vector<1x8x2706xbf16>
    %1 = vector.shape_cast %0 : vector<1x8x2706xbf16> to vector<8x2706xbf16>
    %2 = arith.extf %1 : vector<8x2706xbf16> to vector<8x2706xf32>
    %c0_2 = arith.constant 0 : index
    %c0_3 = arith.constant 0 : index
    %c0_4 = arith.constant 0 : index
    %3 = vector.load %arg2[%c0_2, %c0_3, %c0_4] : memref<2x8x216xbf16, #tpu.memory_space<vmem>>, vector<2x8x216xbf16>
    %4 = vector.extract_strided_slice %3 {offsets = [0, 0, 0], sizes = [1, 8, 216], strides = [1, 1, 1]} : vector<2x8x216xbf16> to vector<1x8x216xbf16>
    %5 = vector.shape_cast %4 : vector<1x8x216xbf16> to vector<8x216xbf16>
    %6 = vector.extract_strided_slice %3 {offsets = [1, 0, 0], sizes = [1, 8, 216], strides = [1, 1, 1]} : vector<2x8x216xbf16> to vector<1x8x216xbf16>
    %7 = vector.shape_cast %6 : vector<1x8x216xbf16> to vector<8x216xbf16>
    %c0_5 = arith.constant 0 : index
    %c0_6 = arith.constant 0 : index
    %8 = vector.load %arg3[%c0_5, %c0_6] : memref<8x6xf32, #tpu.memory_space<vmem>>, vector<8x6xf32>
    %c0_7 = arith.constant 0 : index
    %c0_8 = arith.constant 0 : index
    %9 = vector.load %arg4[%c0_7, %c0_8] : memref<2x2304xf32, #tpu.memory_space<vmem>>, vector<2x2304xf32>
    %10 = vector.extract_strided_slice %9 {offsets = [0, 0], sizes = [1, 2304], strides = [1, 1]} : vector<2x2304xf32> to vector<1x2304xf32>
    %11 = vector.extract_strided_slice %9 {offsets = [1, 0], sizes = [1, 1792], strides = [1, 1]} : vector<2x2304xf32> to vector<1x1792xf32>
    %12 = vector.extract_strided_slice %2 {offsets = [0, 0], sizes = [8, 2304], strides = [1, 1]} : vector<8x2706xf32> to vector<8x2304xf32>
    %13 = vector.extract_strided_slice %2 {offsets = [0, 1], sizes = [8, 2304], strides = [1, 1]} : vector<8x2706xf32> to vector<8x2304xf32>
    %14 = vector.extract_strided_slice %2 {offsets = [0, 2], sizes = [8, 2304], strides = [1, 1]} : vector<8x2706xf32> to vector<8x2304xf32>
    %15 = vector.extract_strided_slice %2 {offsets = [0, 10], sizes = [8, 2304], strides = [1, 1]} : vector<8x2706xf32> to vector<8x2304xf32>
    %16 = vector.extract_strided_slice %2 {offsets = [0, 11], sizes = [8, 2304], strides = [1, 1]} : vector<8x2706xf32> to vector<8x2304xf32>
    %17 = vector.extract_strided_slice %2 {offsets = [0, 12], sizes = [8, 2304], strides = [1, 1]} : vector<8x2706xf32> to vector<8x2304xf32>
    %18 = vector.extract_strided_slice %2 {offsets = [0, 20], sizes = [8, 2304], strides = [1, 1]} : vector<8x2706xf32> to vector<8x2304xf32>
    %19 = vector.extract_strided_slice %2 {offsets = [0, 21], sizes = [8, 2304], strides = [1, 1]} : vector<8x2706xf32> to vector<8x2304xf32>
    %20 = vector.extract_strided_slice %2 {offsets = [0, 22], sizes = [8, 2304], strides = [1, 1]} : vector<8x2706xf32> to vector<8x2304xf32>
    %21 = vector.extract_strided_slice %2 {offsets = [0, 190], sizes = [8, 2304], strides = [1, 1]} : vector<8x2706xf32> to vector<8x2304xf32>
    %22 = vector.extract_strided_slice %2 {offsets = [0, 191], sizes = [8, 2304], strides = [1, 1]} : vector<8x2706xf32> to vector<8x2304xf32>
    %23 = vector.extract_strided_slice %2 {offsets = [0, 192], sizes = [8, 2304], strides = [1, 1]} : vector<8x2706xf32> to vector<8x2304xf32>
    %24 = vector.extract_strided_slice %2 {offsets = [0, 200], sizes = [8, 2304], strides = [1, 1]} : vector<8x2706xf32> to vector<8x2304xf32>
    %25 = vector.extract_strided_slice %2 {offsets = [0, 201], sizes = [8, 2304], strides = [1, 1]} : vector<8x2706xf32> to vector<8x2304xf32>
    %26 = vector.extract_strided_slice %2 {offsets = [0, 202], sizes = [8, 2304], strides = [1, 1]} : vector<8x2706xf32> to vector<8x2304xf32>
    %27 = vector.extract_strided_slice %2 {offsets = [0, 210], sizes = [8, 2304], strides = [1, 1]} : vector<8x2706xf32> to vector<8x2304xf32>
    %28 = vector.extract_strided_slice %2 {offsets = [0, 211], sizes = [8, 2304], strides = [1, 1]} : vector<8x2706xf32> to vector<8x2304xf32>
    %29 = vector.extract_strided_slice %2 {offsets = [0, 212], sizes = [8, 2304], strides = [1, 1]} : vector<8x2706xf32> to vector<8x2304xf32>
    %30 = vector.extract_strided_slice %2 {offsets = [0, 380], sizes = [8, 2304], strides = [1, 1]} : vector<8x2706xf32> to vector<8x2304xf32>
    %31 = vector.extract_strided_slice %2 {offsets = [0, 381], sizes = [8, 2304], strides = [1, 1]} : vector<8x2706xf32> to vector<8x2304xf32>
    %32 = vector.extract_strided_slice %2 {offsets = [0, 382], sizes = [8, 2304], strides = [1, 1]} : vector<8x2706xf32> to vector<8x2304xf32>
    %33 = vector.extract_strided_slice %2 {offsets = [0, 390], sizes = [8, 2304], strides = [1, 1]} : vector<8x2706xf32> to vector<8x2304xf32>
    %34 = vector.extract_strided_slice %2 {offsets = [0, 391], sizes = [8, 2304], strides = [1, 1]} : vector<8x2706xf32> to vector<8x2304xf32>
    %35 = vector.extract_strided_slice %2 {offsets = [0, 392], sizes = [8, 2304], strides = [1, 1]} : vector<8x2706xf32> to vector<8x2304xf32>
    %36 = vector.extract_strided_slice %2 {offsets = [0, 400], sizes = [8, 2304], strides = [1, 1]} : vector<8x2706xf32> to vector<8x2304xf32>
    %37 = vector.extract_strided_slice %2 {offsets = [0, 401], sizes = [8, 2304], strides = [1, 1]} : vector<8x2706xf32> to vector<8x2304xf32>
    %38 = vector.extract_strided_slice %2 {offsets = [0, 402], sizes = [8, 2304], strides = [1, 1]} : vector<8x2706xf32> to vector<8x2304xf32>
    %39 = tpu.concatenate %12, %13, %14, %15, %16, %17, %18, %19, %20, %21, %22, %23, %24, %25, %26, %27 in 0 : vector<8x2304xf32>, vector<8x2304xf32>, vector<8x2304xf32>, vector<8x2304xf32>, vector<8x2304xf32>, vector<8x2304xf32>, vector<8x2304xf32>, vector<8x2304xf32>, vector<8x2304xf32>, vector<8x2304xf32>, vector<8x2304xf32>, vector<8x2304xf32>, vector<8x2304xf32>, vector<8x2304xf32>, vector<8x2304xf32>, vector<8x2304xf32> -> vector<128x2304xf32>
    %40 = tpu.concatenate %28, %29, %30, %31, %32, %33, %34, %35, %36, %37, %38 in 0 : vector<8x2304xf32>, vector<8x2304xf32>, vector<8x2304xf32>, vector<8x2304xf32>, vector<8x2304xf32>, vector<8x2304xf32>, vector<8x2304xf32>, vector<8x2304xf32>, vector<8x2304xf32>, vector<8x2304xf32>, vector<8x2304xf32> -> vector<88x2304xf32>
    %41 = tpu.concatenate %39, %40 in 0 : vector<128x2304xf32>, vector<88x2304xf32> -> vector<216x2304xf32>
    %42 = arith.truncf %41 : vector<216x2304xf32> to vector<216x2304xbf16>
    %cst = arith.constant dense<0.000000e+00> : vector<8x2304xf32>
    %43 = tpu.matmul %5, %42, %cst {dimension_numbers = #tpu.dot_dimension_numbers<[1], [0], [0], [1], [0, 0, 1, 1], [], []>} : vector<8x216xbf16>, vector<216x2304xbf16>, vector<8x2304xf32> -> vector<8x2304xf32>
    %44 = vector.extract_strided_slice %8 {offsets = [0, 1], sizes = [8, 1], strides = [1, 1]} : vector<8x6xf32> to vector<8x1xf32>
    %45 = vector.extract_strided_slice %8 {offsets = [0, 2], sizes = [8, 1], strides = [1, 1]} : vector<8x6xf32> to vector<8x1xf32>
    %46 = vector.broadcast %10 : vector<1x2304xf32> to vector<8x2304xf32>
    %47 = arith.mulf %43, %46 : vector<8x2304xf32>
    %cst_9 = arith.constant dense<0.000000e+00> : vector<8xf32>
    %48 = vector.multi_reduction <add>, %47, %cst_9 [1] : vector<8x2304xf32> to vector<8xf32>
    %49 = vector.shape_cast %48 : vector<8xf32> to vector<8x1xf32>
    %50 = arith.mulf %47, %47 : vector<8x2304xf32>
    %cst_10 = arith.constant dense<0.000000e+00> : vector<8xf32>
    %51 = vector.multi_reduction <add>, %50, %cst_10 [1] : vector<8x2304xf32> to vector<8xf32>
    %52 = vector.shape_cast %51 : vector<8xf32> to vector<8x1xf32>
    %cst_11 = arith.constant 1.224000e+03 : f32
    %53 = vector.broadcast %cst_11 : f32 to vector<8x1xf32>
    %54 = arith.divf %49, %53 : vector<8x1xf32>
    %cst_12 = arith.constant 1.224000e+03 : f32
    %55 = vector.broadcast %cst_12 : f32 to vector<8x1xf32>
    %56 = arith.divf %52, %55 : vector<8x1xf32>
    %57 = arith.mulf %54, %54 : vector<8x1xf32>
    %58 = arith.subf %56, %57 : vector<8x1xf32>
    %cst_13 = arith.constant 0.000000e+00 : f32
    %59 = vector.broadcast %cst_13 : f32 to vector<8x1xf32>
    %60 = arith.maximumf %58, %59 : vector<8x1xf32>
    %cst_14 = arith.constant 9.99999974E-6 : f32
    %61 = vector.broadcast %cst_14 : f32 to vector<8x1xf32>
    %62 = arith.addf %60, %61 : vector<8x1xf32>
    %63 = math.rsqrt %62 : vector<8x1xf32>
    %64 = arith.mulf %44, %63 : vector<8x1xf32>
    %65 = arith.mulf %54, %64 : vector<8x1xf32>
    %66 = arith.subf %45, %65 : vector<8x1xf32>
    %67 = vector.broadcast %64 : vector<8x1xf32> to vector<8x2304xf32>
    %68 = arith.mulf %43, %67 : vector<8x2304xf32>
    %69 = vector.broadcast %66 : vector<8x1xf32> to vector<8x2304xf32>
    %70 = arith.addf %68, %69 : vector<8x2304xf32>
    %cst_15 = arith.constant 0.000000e+00 : f32
    %71 = vector.broadcast %cst_15 : f32 to vector<8x2304xf32>
    %72 = arith.maximumf %70, %71 : vector<8x2304xf32>
    %73 = vector.broadcast %10 : vector<1x2304xf32> to vector<8x2304xf32>
    %74 = arith.mulf %72, %73 : vector<8x2304xf32>
    %75 = vector.extract_strided_slice %74 {offsets = [0, 0], sizes = [8, 1792], strides = [1, 1]} : vector<8x2304xf32> to vector<8x1792xf32>
    %76 = vector.extract_strided_slice %74 {offsets = [0, 1], sizes = [8, 1792], strides = [1, 1]} : vector<8x2304xf32> to vector<8x1792xf32>
    %77 = vector.extract_strided_slice %74 {offsets = [0, 2], sizes = [8, 1792], strides = [1, 1]} : vector<8x2304xf32> to vector<8x1792xf32>
    %78 = vector.extract_strided_slice %74 {offsets = [0, 10], sizes = [8, 1792], strides = [1, 1]} : vector<8x2304xf32> to vector<8x1792xf32>
    %79 = vector.extract_strided_slice %74 {offsets = [0, 11], sizes = [8, 1792], strides = [1, 1]} : vector<8x2304xf32> to vector<8x1792xf32>
    %80 = vector.extract_strided_slice %74 {offsets = [0, 12], sizes = [8, 1792], strides = [1, 1]} : vector<8x2304xf32> to vector<8x1792xf32>
    %81 = vector.extract_strided_slice %74 {offsets = [0, 20], sizes = [8, 1792], strides = [1, 1]} : vector<8x2304xf32> to vector<8x1792xf32>
    %82 = vector.extract_strided_slice %74 {offsets = [0, 21], sizes = [8, 1792], strides = [1, 1]} : vector<8x2304xf32> to vector<8x1792xf32>
    %83 = vector.extract_strided_slice %74 {offsets = [0, 22], sizes = [8, 1792], strides = [1, 1]} : vector<8x2304xf32> to vector<8x1792xf32>
    %84 = vector.extract_strided_slice %74 {offsets = [0, 190], sizes = [8, 1792], strides = [1, 1]} : vector<8x2304xf32> to vector<8x1792xf32>
    %85 = vector.extract_strided_slice %74 {offsets = [0, 191], sizes = [8, 1792], strides = [1, 1]} : vector<8x2304xf32> to vector<8x1792xf32>
    %86 = vector.extract_strided_slice %74 {offsets = [0, 192], sizes = [8, 1792], strides = [1, 1]} : vector<8x2304xf32> to vector<8x1792xf32>
    %87 = vector.extract_strided_slice %74 {offsets = [0, 200], sizes = [8, 1792], strides = [1, 1]} : vector<8x2304xf32> to vector<8x1792xf32>
    %88 = vector.extract_strided_slice %74 {offsets = [0, 201], sizes = [8, 1792], strides = [1, 1]} : vector<8x2304xf32> to vector<8x1792xf32>
    %89 = vector.extract_strided_slice %74 {offsets = [0, 202], sizes = [8, 1792], strides = [1, 1]} : vector<8x2304xf32> to vector<8x1792xf32>
    %90 = vector.extract_strided_slice %74 {offsets = [0, 210], sizes = [8, 1792], strides = [1, 1]} : vector<8x2304xf32> to vector<8x1792xf32>
    %91 = vector.extract_strided_slice %74 {offsets = [0, 211], sizes = [8, 1792], strides = [1, 1]} : vector<8x2304xf32> to vector<8x1792xf32>
    %92 = vector.extract_strided_slice %74 {offsets = [0, 212], sizes = [8, 1792], strides = [1, 1]} : vector<8x2304xf32> to vector<8x1792xf32>
    %93 = vector.extract_strided_slice %74 {offsets = [0, 380], sizes = [8, 1792], strides = [1, 1]} : vector<8x2304xf32> to vector<8x1792xf32>
    %94 = vector.extract_strided_slice %74 {offsets = [0, 381], sizes = [8, 1792], strides = [1, 1]} : vector<8x2304xf32> to vector<8x1792xf32>
    %95 = vector.extract_strided_slice %74 {offsets = [0, 382], sizes = [8, 1792], strides = [1, 1]} : vector<8x2304xf32> to vector<8x1792xf32>
    %96 = vector.extract_strided_slice %74 {offsets = [0, 390], sizes = [8, 1792], strides = [1, 1]} : vector<8x2304xf32> to vector<8x1792xf32>
    %97 = vector.extract_strided_slice %74 {offsets = [0, 391], sizes = [8, 1792], strides = [1, 1]} : vector<8x2304xf32> to vector<8x1792xf32>
    %98 = vector.extract_strided_slice %74 {offsets = [0, 392], sizes = [8, 1792], strides = [1, 1]} : vector<8x2304xf32> to vector<8x1792xf32>
    %99 = vector.extract_strided_slice %74 {offsets = [0, 400], sizes = [8, 1792], strides = [1, 1]} : vector<8x2304xf32> to vector<8x1792xf32>
    %100 = vector.extract_strided_slice %74 {offsets = [0, 401], sizes = [8, 1792], strides = [1, 1]} : vector<8x2304xf32> to vector<8x1792xf32>
    %101 = vector.extract_strided_slice %74 {offsets = [0, 402], sizes = [8, 1792], strides = [1, 1]} : vector<8x2304xf32> to vector<8x1792xf32>
    %102 = tpu.concatenate %75, %76, %77, %78, %79, %80, %81, %82, %83, %84, %85, %86, %87, %88, %89, %90 in 0 : vector<8x1792xf32>, vector<8x1792xf32>, vector<8x1792xf32>, vector<8x1792xf32>, vector<8x1792xf32>, vector<8x1792xf32>, vector<8x1792xf32>, vector<8x1792xf32>, vector<8x1792xf32>, vector<8x1792xf32>, vector<8x1792xf32>, vector<8x1792xf32>, vector<8x1792xf32>, vector<8x1792xf32>, vector<8x1792xf32>, vector<8x1792xf32> -> vector<128x1792xf32>
    %103 = tpu.concatenate %91, %92, %93, %94, %95, %96, %97, %98, %99, %100, %101 in 0 : vector<8x1792xf32>, vector<8x1792xf32>, vector<8x1792xf32>, vector<8x1792xf32>, vector<8x1792xf32>, vector<8x1792xf32>, vector<8x1792xf32>, vector<8x1792xf32>, vector<8x1792xf32>, vector<8x1792xf32>, vector<8x1792xf32> -> vector<88x1792xf32>
    %104 = tpu.concatenate %102, %103 in 0 : vector<128x1792xf32>, vector<88x1792xf32> -> vector<216x1792xf32>
    %105 = arith.truncf %104 : vector<216x1792xf32> to vector<216x1792xbf16>
    %cst_16 = arith.constant dense<0.000000e+00> : vector<8x1792xf32>
    %106 = tpu.matmul %7, %105, %cst_16 {dimension_numbers = #tpu.dot_dimension_numbers<[1], [0], [0], [1], [0, 0, 1, 1], [], []>} : vector<8x216xbf16>, vector<216x1792xbf16>, vector<8x1792xf32> -> vector<8x1792xf32>
    %107 = vector.extract_strided_slice %8 {offsets = [0, 4], sizes = [8, 1], strides = [1, 1]} : vector<8x6xf32> to vector<8x1xf32>
    %108 = vector.extract_strided_slice %8 {offsets = [0, 5], sizes = [8, 1], strides = [1, 1]} : vector<8x6xf32> to vector<8x1xf32>
    %109 = vector.broadcast %11 : vector<1x1792xf32> to vector<8x1792xf32>
    %110 = arith.mulf %106, %109 : vector<8x1792xf32>
    %cst_17 = arith.constant dense<0.000000e+00> : vector<8xf32>
    %111 = vector.multi_reduction <add>, %110, %cst_17 [1] : vector<8x1792xf32> to vector<8xf32>
    %112 = vector.shape_cast %111 : vector<8xf32> to vector<8x1xf32>
    %113 = arith.mulf %110, %110 : vector<8x1792xf32>
    %cst_18 = arith.constant dense<0.000000e+00> : vector<8xf32>
    %114 = vector.multi_reduction <add>, %113, %cst_18 [1] : vector<8x1792xf32> to vector<8xf32>
    %115 = vector.shape_cast %114 : vector<8xf32> to vector<8x1xf32>
    %cst_19 = arith.constant 1.224000e+03 : f32
    %116 = vector.broadcast %cst_19 : f32 to vector<8x1xf32>
    %117 = arith.divf %112, %116 : vector<8x1xf32>
    %cst_20 = arith.constant 1.224000e+03 : f32
    %118 = vector.broadcast %cst_20 : f32 to vector<8x1xf32>
    %119 = arith.divf %115, %118 : vector<8x1xf32>
    %120 = arith.mulf %117, %117 : vector<8x1xf32>
    %121 = arith.subf %119, %120 : vector<8x1xf32>
    %cst_21 = arith.constant 0.000000e+00 : f32
    %122 = vector.broadcast %cst_21 : f32 to vector<8x1xf32>
    %123 = arith.maximumf %121, %122 : vector<8x1xf32>
    %cst_22 = arith.constant 9.99999974E-6 : f32
    %124 = vector.broadcast %cst_22 : f32 to vector<8x1xf32>
    %125 = arith.addf %123, %124 : vector<8x1xf32>
    %126 = math.rsqrt %125 : vector<8x1xf32>
    %127 = arith.mulf %107, %126 : vector<8x1xf32>
    %128 = arith.mulf %117, %127 : vector<8x1xf32>
    %129 = arith.subf %108, %128 : vector<8x1xf32>
    %130 = vector.broadcast %127 : vector<8x1xf32> to vector<8x1792xf32>
    %131 = arith.mulf %106, %130 : vector<8x1792xf32>
    %132 = vector.broadcast %129 : vector<8x1xf32> to vector<8x1792xf32>
    %133 = arith.addf %131, %132 : vector<8x1792xf32>
    %cst_23 = arith.constant 0.000000e+00 : f32
    %134 = vector.broadcast %cst_23 : f32 to vector<8x1792xf32>
    %135 = arith.maximumf %133, %134 : vector<8x1792xf32>
    %c0_24 = arith.constant 0 : index
    %c0_25 = arith.constant 0 : index
    %c0_26 = arith.constant 0 : index
    %136 = vector.load %arg5[%c0_24, %c0_25, %c0_26] : memref<1x8x1792xf32, #tpu.memory_space<vmem>>, vector<1x8x1792xf32>
    %137 = vector.shape_cast %136 : vector<1x8x1792xf32> to vector<8x1792xf32>
    %138 = vector.shape_cast %135 : vector<8x1792xf32> to vector<1x8x1792xf32>
    tpu.vector_store %arg5[%c0_24, %c0_25, %c0_26], %138 {strides = array<i32>} : memref<1x8x1792xf32, #tpu.memory_space<vmem>>, vector<1x8x1792xf32>,
    return
  }
  func.func @transform_0(%arg0: i32) -> (i32, i32, i32) {
    %c0_i32 = arith.constant 0 : i32
    %c0_i32_0 = arith.constant 0 : i32
    %c0_i32_1 = arith.constant 0 : i32
    return %arg0, %c0_i32, %c0_i32_0 : i32, i32, i32
  }
  func.func @transform_1(%arg0: i32) -> (i32, i32, i32) {
    %c0_i32 = arith.constant 0 : i32
    %c0_i32_0 = arith.constant 0 : i32
    %c0_i32_1 = arith.constant 0 : i32
    %c0_i32_2 = arith.constant 0 : i32
    return %c0_i32, %c0_i32_0, %c0_i32_1 : i32, i32, i32
  }
  func.func @transform_2(%arg0: i32) -> (i32, i32) {
    %c0_i32 = arith.constant 0 : i32
    %c0_i32_0 = arith.constant 0 : i32
    %c0_i32_1 = arith.constant 0 : i32
    return %c0_i32, %c0_i32_0 : i32, i32
  }
  func.func @transform_3(%arg0: i32) -> (i32, i32) {
    %c0_i32 = arith.constant 0 : i32
    %c0_i32_0 = arith.constant 0 : i32
    %c0_i32_1 = arith.constant 0 : i32
    return %c0_i32, %c0_i32_0 : i32, i32
  }
  func.func @transform_4(%arg0: i32) -> (i32, i32, i32) {
    %c0_i32 = arith.constant 0 : i32
    %c0_i32_0 = arith.constant 0 : i32
    %c0_i32_1 = arith.constant 0 : i32
    return %arg0, %c0_i32, %c0_i32_0 : i32, i32, i32
  }
}

</mosaic_0001>

<bundles_post_ra>
// kernel: _lambda_.1
= control target key start
LH: loop header
LB: loop body
LE: loop exit
PB: predicated region body
PF: predicated region fallthrough
CT: control target
= control target key end

     0   :  { %s9226_s15 = smov 0   ;;  %s17278_s0 = inlined_call_operand.vmem [shape: bf16[2,8,2706], index: 0, kind: input, shape index: {}]   ;;  %s17279_s1 = inlined_call_operand.vmem [shape: bf16[2,8,216], index: 1, kind: input, shape index: {}]   ;;  %s17280_s2 = inlined_call_operand.vmem [shape: f32[8,6], index: 2, kind: input, shape index: {}]   ;;  %s17281_s3 = inlined_call_operand.vmem [shape: f32[2,2304], index: 3, kind: input, shape index: {}]   ;;  %s17282_s4 = inlined_call_operand.vmem [shape: f32[2,8,1792], index: 4, kind: output, shape index: {}]  }
   0x1 LB: > { %s6342_s16 = sadd.s32 4294967295, %s9171_s15   ;;  %p6346_p0 = scmp.ge.s32.totalorder %s9171_s15, 1  ;;  %s9171_s15 = sphi %s9226_s15, %s14_s15  }
   0x2   : > { %p162_p1 = scmp.lt.s32.totalorder %s9171_s15, 3 }
   0x4   : > { %p163_p2 = pnand %p6346_p0, %p162_p1 }
   0x6   : > { %166 = sbr.rel (%p163_p2) target bundleno = 2956 (0xb8c), region = 36 }
   0xb   : > { %p188_p3 = scmp.lt.s32.totalorder %s6342_s16, 1  ;;  %s9173_s21 = smov 127   ;;  %vm17625_vm0 = vcmask 1039360   ;;  %vm447_vm1 = vcmask 965632   ;;  %vm17626_vm2 = vcmask 1031168   ;;  %vm17488_vm3 = vcmask 949248  }
   0xc   : > { %s9174_s22 = smov 126   ;;  %s9175_s23 = smov 118   ;;  %vm17512_vm4 = vcmask 957440   ;;  %vm17497_vm5 = vcmask 875520   ;;  %vm17502_vm6 = vcmask 883712   ;;  %vm17658_vm7 = vcmask 531456  }
   0xd   : > { %s20133_s16 = smov (!%p188_p3, %s6342_s16), 1  ;;  %s9176_s24 = smov 117   ;;  %vm1048_vm8 = vcmask 523264   ;;  %vm17513_vm9 = vcmask 457728   ;;  %vm1198_vm10 = vcmask 449536   ;;  %vm17507_vm11 = vcmask 867328  }
   0xe   : > { %s6387_s17 = smul.u32 88, %s20133_s16  ;;  %s9177_s25 = smov 116   ;;  %vm898_vm12 = vcmask 539648   ;;  %vm17544_vm13 = vcmask 441344   ;;  %vm17531_vm14 = vcmask 375808   ;;  %vm1656_vm15 = vcmask 621568  }
   0xf   : > { %s9178_s26 = smov 108   ;;  %s9179_s27 = smov 107  }
  0x10   : > { %s9240_s20 = scalar_lea.vmem %s17278_s0, %s6387_s17  ;;  %s9180_s28 = smov 106  }
  0x11   : > { %v201_v0 = vld [vmem:[%s9240_s20 + $0x10] sm:$0xff]  ;;  %v9244_v1 = vld [vmem:[%s9240_s20] sm:$0xff]  ;;  %v202_v2 = vld [vmem:[%s9240_s20 + $0x18] sm:$0xff]  ;;  %s9181_s29 = smov 66   ;;  %s9182_s30 = smov 65  }
  0x12   : > { %18028 = vst [vmem:[#allocation2_spill] sm:$0xff] %v9244_v1  ;;  %v9247_v3 = vunpack.c.l.bf16 %v201_v0  ;;  %v9249_v4 = vunpack.c.h.bf16 %v201_v0  ;;  %v17284_v5 = vunpack.c.l.bf16 %v9244_v1  ;;  %v9253_v6 = vunpack.c.h.bf16 %v9244_v1  ;;  %v200_v7 = vld [vmem:[%s9240_s20 + $0x8] sm:$0xff]  ;;  %v203_v13 = vld [vmem:[%s9240_s20 + $0x20] sm:$0xff]  ;;  %v206_v22 = vld [vmem:[%s9240_s20 + $0x38] sm:$0xff]  ;;  %s9183_s5 = smov 64   ;;  %s17528_s6 = smov 56  }
  0x13   : > { %v204_v8 = vld [vmem:[%s9240_s20 + $0x28] sm:$0xff]  ;;  %v9257_v9 = vunpack.c.l.bf16 %v202_v2  ;;  %v9259_v10 = vunpack.c.h.bf16 %v202_v2  ;;  %v9261_v11 = vunpack.c.l.bf16 %v200_v7  ;;  %v9263_v12 = vunpack.c.h.bf16 %v200_v7  ;;  %v205_v23 = vld [vmem:[%s9240_s20 + $0x30] sm:$0xff]  ;;  %v207_v31 = vld [vmem:[%s9240_s20 + $0x40] sm:$0xff]  ;;  %s9185_s7 = smov 55   ;;  %s9186_s8 = smov 54  }
  0x14   : > { %18029 = vst [vmem:[#allocation3_spill] sm:$0xff] %v9247_v3  ;;  %18030 = vst [vmem:[#allocation4_spill] sm:$0xff] %v9249_v4  ;;  %v9268_v14 = vpack.i.bf16 %v9249_v4, %v9247_v3  ;;  %v9273_v15 = vpack.i.bf16 %v9253_v6, %v17284_v5  ;;  %v9275_v16 = vunpack.c.l.bf16 %v204_v8  ;;  %v9277_v17 = vunpack.c.h.bf16 %v204_v8  ;;  %v208_v30 = vld [vmem:[%s9240_s20 + $0x48] sm:$0xff]  ;;  %s9187_s9 = smov 46   ;;  %s9188_s10 = smov 87  }
  0x15   : > { %18031 = vst [vmem:[#allocation5_spill] sm:$0xff] %v9253_v6  ;;  %18032 = vst [vmem:[#allocation6_spill] sm:$0xff] %v9257_v9  ;;  %v9285_v18 = vpack.i.bf16 %v9259_v10, %v9257_v9  ;;  %v9289_v19 = vpack.i.bf16 %v9263_v12, %v9261_v11  ;;  %v9291_v20 = vunpack.c.l.bf16 %v203_v13  ;;  %v9293_v21 = vunpack.c.h.bf16 %v203_v13  ;;  %s9189_s11 = smov 86   ;;  %s9190_s12 = smov 85  }
  0x16   : > { %18033 = vst [vmem:[#allocation7_spill] sm:$0xff] %v9259_v10  ;;  %18034 = vst [vmem:[#allocation8_spill] sm:$0xff] %v9261_v11  ;;  %6436 = vrot.lane.b32.xlu1 %v9268_v14, %s9173_s21  ;;  %6426 = vrot.lane.b32.xlu0 %v9273_v15, %s9173_s21  ;;  %v9299_v24 = vpack.i.bf16 %v9277_v17, %v9275_v16  ;;  %v9301_v25 = vunpack.c.l.bf16 %v206_v22  ;;  %v9311_v27 = vunpack.c.h.bf16 %v206_v22  ;;  %v9313_v28 = vunpack.c.l.bf16 %v205_v23  ;;  %s9191_s13 = smov 77   ;;  %s9192_s14 = smov 76  }
  0x17   : > { %18035 = vst [vmem:[#allocation9_spill] sm:$0xff] %v9263_v12  ;;  %18036 = vst [vmem:[#allocation10_spill] sm:$0xff] %v9275_v16  ;;  %v9309_v26 = vpack.i.bf16 %v9293_v21, %v9291_v20  ;;  %v9315_v29 = vunpack.c.h.bf16 %v205_v23  ;;  %v9319_v32 = vunpack.c.l.bf16 %v208_v30  ;;  %v9321_v33 = vunpack.c.h.bf16 %v208_v30  ;;  %s9193_s17 = smov 75   ;;  %s9194_s18 = smov 67  }
  0x18   : > { %18037 = vst [vmem:[#allocation11_spill] sm:$0xff] %v9277_v17  ;;  %18038 = vst [vmem:[#allocation12_spill] sm:$0xff] %v9291_v20  ;;  %v9329_v34 = vpack.i.bf16 %v9311_v27, %v9301_v25  ;;  %v9335_v36 = vunpack.c.l.bf16 %v207_v31  ;;  %v9337_v37 = vunpack.c.h.bf16 %v207_v31  ;;  %v9556_v13 = vpack.i.bf16 %v9247_v3, %v9263_v12  ;;  %s17741_s19 = smov 45  }
  0x19   : > { %18039 = vst [vmem:[#allocation13_spill] sm:$0xff] %v9293_v21  ;;  %18040 = vst [vmem:[#allocation14_spill] sm:$0xff] %v9301_v25  ;;  %v9333_v35 = vpack.i.bf16 %v9315_v29, %v9313_v28  ;;  %v9345_v38 = vpack.i.bf16 %v9321_v33, %v9319_v32  ;;  %v9576_v53 = vpack.i.bf16 %v9291_v20, %v9259_v10 }
  0x1a   : > { %6441 = vrot.lane.b32.xlu1 %v9285_v18, %s9173_s21  ;;  %6431 = vrot.lane.b32.xlu0 %v9289_v19, %s9173_s21  ;;  %18041 = vst [vmem:[#allocation15_spill] sm:$0xff] %v9311_v27  ;;  %18042 = vst [vmem:[#allocation16_spill] sm:$0xff] %v9313_v28  ;;  %v9349_v39 = vpack.i.bf16 %v9337_v37, %v9335_v36  ;;  %v9580_v5 = vpack.i.bf16 %v9257_v9, %v9249_v4 }
  0x1b   : > { %18043 = vst [vmem:[#allocation17_spill] sm:$0xff] %v9315_v29  ;;  %18044 = vst [vmem:[#allocation18_spill] sm:$0xff] %v9319_v32 }
  0x1c   : > { %18045 = vst [vmem:[#allocation19_spill] sm:$0xff] %v9321_v33  ;;  %18046 = vst [vmem:[#allocation20_spill] sm:$0xff] %v9335_v36 }
  0x1d   : > { %18047 = vst [vmem:[#allocation21_spill] sm:$0xff] %v9337_v37 }
  0x1e   : > { %6451 = vrot.lane.b32.xlu1 %v9299_v24, %s9173_s21  ;;  %6446 = vrot.lane.b32.xlu0 %v9309_v26, %s9173_s21 }
  0x22   : > { %6461 = vrot.lane.b32.xlu1 %v9329_v34, %s9173_s21  ;;  %6456 = vrot.lane.b32.xlu0 %v9333_v35, %s9173_s21 }
  0x26   : > { %6471 = vrot.lane.b32.xlu1 %v9345_v38, %s9173_s21  ;;  %6466 = vrot.lane.b32.xlu0 %v9349_v39, %s9173_s21 }
  0x2a   : > { %6481 = vrot.lane.b32.xlu1 %v9289_v19, %s9174_s22  ;;  %6476 = vrot.lane.b32.xlu0 %v9273_v15, %s9174_s22 }
  0x2e   : > { %6491 = vrot.lane.b32.xlu1 %v9285_v18, %s9174_s22  ;;  %6486 = vrot.lane.b32.xlu0 %v9268_v14, %s9174_s22 }
  0x32   : > { %6501 = vrot.lane.b32.xlu1 %v9299_v24, %s9174_s22  ;;  %6496 = vrot.lane.b32.xlu0 %v9309_v26, %s9174_s22 }
  0x36   : > { %6511 = vrot.lane.b32.xlu1 %v9329_v34, %s9174_s22  ;;  %6506 = vrot.lane.b32.xlu0 %v9333_v35, %s9174_s22 }
  0x3a   : > { %370 = vrot.lane.b32.xlu1 %v9319_v32, %s9174_s22  ;;  %6516 = vrot.lane.b32.xlu0 %v9349_v39, %s9174_s22 }
  0x3e   : > { %6526 = vrot.lane.b32.xlu1 %v9289_v19, %s9175_s23  ;;  %6521 = vrot.lane.b32.xlu0 %v9273_v15, %s9175_s23 }
  0x42   : > { %6536 = vrot.lane.b32.xlu1 %v9285_v18, %s9175_s23  ;;  %6531 = vrot.lane.b32.xlu0 %v9268_v14, %s9175_s23 }
  0x46   : > { %6546 = vrot.lane.b32.xlu1 %v9299_v24, %s9175_s23  ;;  %6541 = vrot.lane.b32.xlu0 %v9309_v26, %s9175_s23 }
  0x4a   : > { %6556 = vrot.lane.b32.xlu1 %v9329_v34, %s9175_s23  ;;  %6551 = vrot.lane.b32.xlu0 %v9333_v35, %s9175_s23 }
  0x4e   : > { %445 = vrot.lane.b32.xlu1 %v9319_v32, %s9175_s23  ;;  %6561 = vrot.lane.b32.xlu0 %v9349_v39, %s9175_s23 }
  0x52   : > { %6571 = vrot.lane.b32.xlu1 %v9289_v19, %s9176_s24  ;;  %6566 = vrot.lane.b32.xlu0 %v9273_v15, %s9176_s24 }
  0x56   : > { %6581 = vrot.lane.b32.xlu1 %v9285_v18, %s9176_s24  ;;  %6576 = vrot.lane.b32.xlu0 %v9268_v14, %s9176_s24 }
  0x5a   : > { %6591 = vrot.lane.b32.xlu1 %v9299_v24, %s9176_s24  ;;  %6586 = vrot.lane.b32.xlu0 %v9309_v26, %s9176_s24 }
  0x5e   : > { %6601 = vrot.lane.b32.xlu1 %v9329_v34, %s9176_s24  ;;  %6596 = vrot.lane.b32.xlu0 %v9333_v35, %s9176_s24 }
  0x62   : > { %520 = vrot.lane.b32.xlu1 %v9319_v32, %s9176_s24  ;;  %6606 = vrot.lane.b32.xlu0 %v9349_v39, %s9176_s24 }
  0x66   : > { %6616 = vrot.lane.b32.xlu1 %v9289_v19, %s9177_s25  ;;  %6611 = vrot.lane.b32.xlu0 %v9273_v15, %s9177_s25 }
  0x6a   : > { %6626 = vrot.lane.b32.xlu1 %v9285_v18, %s9177_s25  ;;  %6621 = vrot.lane.b32.xlu0 %v9268_v14, %s9177_s25 }
  0x6e   : > { %6636 = vrot.lane.b32.xlu1 %v9299_v24, %s9177_s25  ;;  %6631 = vrot.lane.b32.xlu0 %v9309_v26, %s9177_s25 }
  0x72   : > { %6646 = vrot.lane.b32.xlu1 %v9329_v34, %s9177_s25  ;;  %6641 = vrot.lane.b32.xlu0 %v9333_v35, %s9177_s25 }
  0x76   : > { %595 = vrot.lane.b32.xlu1 %v9319_v32, %s9177_s25  ;;  %6651 = vrot.lane.b32.xlu0 %v9349_v39, %s9177_s25 }
  0x7a   : > { %6661 = vrot.lane.b32.xlu1 %v9289_v19, %s9178_s26  ;;  %6656 = vrot.lane.b32.xlu0 %v9273_v15, %s9178_s26 }
  0x7e   : > { %6671 = vrot.lane.b32.xlu1 %v9285_v18, %s9178_s26  ;;  %6666 = vrot.lane.b32.xlu0 %v9268_v14, %s9178_s26 }
  0x82   : > { %6681 = vrot.lane.b32.xlu1 %v9299_v24, %s9178_s26  ;;  %6676 = vrot.lane.b32.xlu0 %v9309_v26, %s9178_s26 }
  0x86   : > { %6691 = vrot.lane.b32.xlu1 %v9329_v34, %s9178_s26  ;;  %6686 = vrot.lane.b32.xlu0 %v9333_v35, %s9178_s26 }
  0x88   : > { %v9451_v40 = vpop.permute.xlu1 %6436  ;;  %v9453_v41 = vpop.permute.xlu0 %6426 }
  0x89   : > { %18048 = vst [vmem:[#allocation22_spill] sm:$0xff] %v9451_v40  ;;  %18049 = vst [vmem:[#allocation23_spill] sm:$0xff] %v9453_v41  ;;  %v17283_v46 = vunpack.i.l.bf16 %v9451_v40 }
  0x8a   : > { %670 = vrot.lane.b32.xlu1 %v9319_v32, %s9178_s26  ;;  %6696 = vrot.lane.b32.xlu0 %v9349_v39, %s9178_s26 }
  0x8c   : > { %v9459_v42 = vpop.permute.xlu1 %6441  ;;  %v9461_v43 = vpop.permute.xlu0 %6431 }
  0x8d   : > { %18050 = vst [vmem:[#allocation24_spill] sm:$0xff] %v9459_v42  ;;  %18051 = vst [vmem:[#allocation25_spill] sm:$0xff] %v9461_v43  ;;  %v6434_v44 = vunpack.i.h.bf16 %v9461_v43  ;;  %v17285_v45 = vunpack.i.l.bf16 %v9461_v43 }
  0x8e   : > { %6706 = vrot.lane.b32.xlu1 %v9289_v19, %s9179_s27  ;;  %6701 = vrot.lane.b32.xlu0 %v9273_v15, %s9179_s27 }
  0x8f   : > { %v9477_v49 = vsel %vm17625_vm0, %v6434_v44, %v17283_v46  ;;  %v9486_v50 = vsel %vm17625_vm0, %v17285_v45, %v6434_v44 }
  0x90   : > { %v9470_v47 = vpop.permute.xlu1 %6451  ;;  %v9472_v48 = vpop.permute.xlu0 %6446  ;;  %18054 = vst [vmem:[#allocation28_spill] sm:$0xff] %v9477_v49  ;;  %18055 = vst [vmem:[#allocation29_spill] sm:$0xff] %v9486_v50 }
  0x91   : > { %18052 = vst [vmem:[#allocation26_spill] sm:$0xff] %v9470_v47  ;;  %18053 = vst [vmem:[#allocation27_spill] sm:$0xff] %v9472_v48 }
  0x92   : > { %6716 = vrot.lane.b32.xlu1 %v9285_v18, %s9179_s27  ;;  %6711 = vrot.lane.b32.xlu0 %v9268_v14, %s9179_s27 }
  0x94   : > { %v9488_v51 = vpop.permute.xlu1 %6461  ;;  %v9490_v52 = vpop.permute.xlu0 %6456 }
  0x95   : > { %18056 = vst [vmem:[#allocation30_spill] sm:$0xff] %v9488_v51  ;;  %18057 = vst [vmem:[#allocation31_spill] sm:$0xff] %v9490_v52 }
  0x96   : > { %6726 = vrot.lane.b32.xlu1 %v9299_v24, %s9179_s27  ;;  %6721 = vrot.lane.b32.xlu0 %v9309_v26, %s9179_s27 }
  0x98   : > { %v9498_v54 = vpop.permute.xlu1 %6471  ;;  %v9500_v55 = vpop.permute.xlu0 %6466 }
  0x99   : > { %18058 = vst [vmem:[#allocation32_spill] sm:$0xff] %v9498_v54  ;;  %18059 = vst [vmem:[#allocation33_spill] sm:$0xff] %v9500_v55 }
  0x9a   : > { %6736 = vrot.lane.b32.xlu1 %v9329_v34, %s9179_s27  ;;  %6731 = vrot.lane.b32.xlu0 %v9333_v35, %s9179_s27 }
  0x9c   : > { %v9506_v56 = vpop.permute.xlu1 %6481  ;;  %v9508_v57 = vpop.permute.xlu0 %6476 }
  0x9d   : > { %18060 = vst [vmem:[#allocation34_spill] sm:$0xff] %v9506_v56  ;;  %18061 = vst [vmem:[#allocation35_spill] sm:$0xff] %v9508_v57 }
  0x9e   : > { %745 = vrot.lane.b32.xlu1 %v9319_v32, %s9179_s27  ;;  %6741 = vrot.lane.b32.xlu0 %v9349_v39, %s9179_s27 }
  0xa0   : > { %v9514_v58 = vpop.permute.xlu1 %6491  ;;  %v9516_v59 = vpop.permute.xlu0 %6486 }
  0xa1   : > { %18062 = vst [vmem:[#allocation36_spill] sm:$0xff] %v9514_v58  ;;  %18063 = vst [vmem:[#allocation37_spill] sm:$0xff] %v9516_v59 }
  0xa2   : > { %6751 = vrot.lane.b32.xlu1 %v9289_v19, %s9180_s28  ;;  %6746 = vrot.lane.b32.xlu0 %v9273_v15, %s9180_s28  ;;  %v9560_v15 = vpack.i.bf16 %v9261_v11, %v9253_v6 }
  0xa4   : > { %v9522_v60 = vpop.permute.xlu1 %6501  ;;  %v9524_v61 = vpop.permute.xlu0 %6496  ;;  %18071 = vst [vmem:[#allocation45_spill] sm:$0xff] %v9560_v15 }
  0xa5   : > { %18064 = vst [vmem:[#allocation38_spill] sm:$0xff] %v9522_v60  ;;  %18065 = vst [vmem:[#allocation39_spill] sm:$0xff] %v9524_v61 }
  0xa6   : > { %6761 = vrot.lane.b32.xlu1 %v9285_v18, %s9180_s28  ;;  %6756 = vrot.lane.b32.xlu0 %v9268_v14, %s9180_s28 }
  0xa8   : > { %v9530_v62 = vpop.permute.xlu1 %6511  ;;  %v9532_v63 = vpop.permute.xlu0 %6506 }
  0xa9   : > { %18066 = vst [vmem:[#allocation40_spill] sm:$0xff] %v9530_v62  ;;  %18067 = vst [vmem:[#allocation41_spill] sm:$0xff] %v9532_v63  ;;  %v9631_v63 = vpack.i.bf16 %v9301_v25, %v9315_v29 }
  0xaa   : > { %6771 = vrot.lane.b32.xlu1 %v9299_v24, %s9180_s28  ;;  %6766 = vrot.lane.b32.xlu0 %v9309_v26, %s9180_s28 }
  0xac   : > { %v9538_v0 = vpop.permute.xlu1 %370  ;;  %v9540_v2 = vpop.permute.xlu0 %6516 }
  0xad   : > { %18068 = vst [vmem:[#allocation42_spill] sm:$0xff] %v9538_v0  ;;  %18069 = vst [vmem:[#allocation43_spill] sm:$0xff] %v9540_v2  ;;  %v18077_v0 = vunpack.i.h.bf16 %v9516_v59  ;;  %v18078_v2 = vunpack.i.l.bf16 %v9516_v59 }
  0xae   : > { %6781 = vrot.lane.b32.xlu1 %v9329_v34, %s9180_s28  ;;  %6776 = vrot.lane.b32.xlu0 %v9333_v35, %s9180_s28 }
  0xaf   : > { %v9598_v62 = vsel %vm17626_vm2, %v18078_v2, %v18077_v0 }
  0xb0   : > { %v9546_v7 = vpop.permute.xlu1 %6526  ;;  %v9548_v8 = vpop.permute.xlu0 %6521  ;;  %18079 = vst [vmem:[#allocation51_spill] sm:$0xff] %v9598_v62 }
  0xb1   : > { %18070 = vst [vmem:[#allocation44_spill] sm:$0xff] %v9546_v7 }
  0xb2   : > { %820 = vrot.lane.b32.xlu1 %v9319_v32, %s9180_s28  ;;  %6786 = vrot.lane.b32.xlu0 %v9349_v39, %s9180_s28 }
  0xb4   : > { %v9562_v22 = vpop.permute.xlu1 %6536  ;;  %v9564_v23 = vpop.permute.xlu0 %6531 }
  0xb5   : > { %18072 = vst [vmem:[#allocation46_spill] sm:$0xff] %v9562_v22  ;;  %18073 = vst [vmem:[#allocation47_spill] sm:$0xff] %v9564_v23  ;;  %v17288_v44 = vunpack.i.h.bf16 %v9564_v23  ;;  %v17289_v46 = vunpack.i.l.bf16 %v9564_v23  ;;  %v9627_v22 = vpack.i.bf16 %v9335_v36, %v9311_v27 }
  0xb6   : > { %6796 = vrot.lane.b32.xlu1 %v9556_v13, %s9181_s29  ;;  %6791 = vrot.lane.b32.xlu0 %v9560_v15, %s9181_s29 }
  0xb7   : > { %v9587_v45 = vsel %vm447_vm1, %v17289_v46, %v17288_v44  ;;  %v9606_v44 = vpack.i.bf16 %v9313_v28, %v9277_v17  ;;  %v9610_v46 = vpack.i.bf16 %v9275_v16, %v9293_v21 }
  0xb8   : > { %18074 = vst [vmem:[#allocation48_spill] sm:$0xff] %v9587_v45  ;;  %v9589_v31 = vpop.permute.xlu1 %6546  ;;  %v9591_v30 = vpop.permute.xlu0 %6541  ;;  %v9650_v45 = vpack.i.bf16 %v9319_v32, %v9337_v37 }
  0xb9   : > { %18075 = vst [vmem:[#allocation49_spill] sm:$0xff] %v9589_v31  ;;  %18076 = vst [vmem:[#allocation50_spill] sm:$0xff] %v9591_v30  ;;  %v9615_v31 = vld [vmem:[%s9240_s20 + $0x50] sm:$0xff] }
  0xba   : > { %6806 = vrot.lane.b32.xlu1 %v9576_v53, %s9181_s29  ;;  %6801 = vrot.lane.b32.xlu0 %v9580_v5, %s9181_s29  ;;  %v9634_v30 = vunpack.c.l.bf16 %v9615_v31 }
  0xbc   : > { %v9617_v0 = vpop.permute.xlu1 %6556  ;;  %v9619_v2 = vpop.permute.xlu0 %6551  ;;  %v9646_v62 = vpack.i.bf16 %v9634_v30, %v9321_v33 }
  0xbd   : > { %18080 = vst [vmem:[#allocation52_spill] sm:$0xff] %v9617_v0  ;;  %18081 = vst [vmem:[#allocation53_spill] sm:$0xff] %v9619_v2 }
  0xbe   : > { %6816 = vrot.lane.b32.xlu1 %v9606_v44, %s9181_s29  ;;  %6811 = vrot.lane.b32.xlu0 %v9610_v46, %s9181_s29  ;;  %18084 = vst [vmem:[#allocation56_spill] sm:$0xff] %v9646_v62 }
  0xc0   : > { %v9636_v0 = vpop.permute.xlu1 %445  ;;  %v9638_v2 = vpop.permute.xlu0 %6561 }
  0xc1   : > { %18082 = vst [vmem:[#allocation54_spill] sm:$0xff] %v9636_v0  ;;  %18083 = vst [vmem:[#allocation55_spill] sm:$0xff] %v9638_v2 }
  0xc2   : > { %6826 = vrot.lane.b32.xlu1 %v9627_v22, %s9181_s29  ;;  %6821 = vrot.lane.b32.xlu0 %v9631_v63, %s9181_s29 }
  0xc4   : > { %v9652_v36 = vpop.permute.xlu1 %6571  ;;  %v9654_v25 = vpop.permute.xlu0 %6566 }
  0xc5   : > { %18085 = vst [vmem:[#allocation57_spill] sm:$0xff] %v9652_v36 }
  0xc6   : > { %6836 = vrot.lane.b32.xlu1 %v9646_v62, %s9181_s29  ;;  %6831 = vrot.lane.b32.xlu0 %v9650_v45, %s9181_s29 }
  0xc8   : > { %v9660_v0 = vpop.permute.xlu1 %6581  ;;  %v9662_v2 = vpop.permute.xlu0 %6576 }
  0xc9   : > { %18086 = vst [vmem:[#allocation58_spill] sm:$0xff] %v9660_v0  ;;  %18087 = vst [vmem:[#allocation59_spill] sm:$0xff] %v9662_v2  ;;  %v18101_v54 = vunpack.i.h.bf16 %v9662_v2  ;;  %v18102_v29 = vunpack.i.l.bf16 %v9662_v2 }
  0xca   : > { %6846 = vrot.lane.b32.xlu1 %v9556_v13, %s9182_s30  ;;  %6841 = vrot.lane.b32.xlu0 %v9560_v15, %s9182_s30 }
  0xcb   : > { %v9728_v55 = vsel %vm17512_vm4, %v18102_v29, %v18101_v54 }
  0xcc   : > { %v9668_v32 = vpop.permute.xlu1 %6591  ;;  %v9670_v61 = vpop.permute.xlu0 %6586  ;;  %18103 = vst [vmem:[#allocation73_spill] sm:$0xff] %v9728_v55 }
  0xcd   : > { %18088 = vst [vmem:[#allocation60_spill] sm:$0xff] %v9668_v32  ;;  %18089 = vst [vmem:[#allocation61_spill] sm:$0xff] %v9670_v61 }
  0xce   : > { %6856 = vrot.lane.b32.xlu1 %v9576_v53, %s9182_s30  ;;  %6851 = vrot.lane.b32.xlu0 %v9580_v5, %s9182_s30 }
  0xd0   : > { %v9676_v0 = vpop.permute.xlu1 %6601  ;;  %v9678_v60 = vpop.permute.xlu0 %6596 }
  0xd1   : > { %18090 = vst [vmem:[#allocation62_spill] sm:$0xff] %v9676_v0  ;;  %18091 = vst [vmem:[#allocation63_spill] sm:$0xff] %v9678_v60 }
  0xd2   : > { %6866 = vrot.lane.b32.xlu1 %v9606_v44, %s9182_s30  ;;  %6861 = vrot.lane.b32.xlu0 %v9610_v46, %s9182_s30 }
  0xd4   : > { %v9684_v58 = vpop.permute.xlu1 %520  ;;  %v9686_v32 = vpop.permute.xlu0 %6606 }
  0xd5   : > { %18092 = vst [vmem:[#allocation64_spill] sm:$0xff] %v9684_v58  ;;  %18093 = vst [vmem:[#allocation65_spill] sm:$0xff] %v9686_v32 }
  0xd6   : > { %6876 = vrot.lane.b32.xlu1 %v9627_v22, %s9182_s30  ;;  %6871 = vrot.lane.b32.xlu0 %v9631_v63, %s9182_s30 }
  0xd8   : > { %v9692_v61 = vpop.permute.xlu1 %6616  ;;  %v9694_v0 = vpop.permute.xlu0 %6611 }
  0xd9   : > { %18094 = vst [vmem:[#allocation66_spill] sm:$0xff] %v9692_v61  ;;  %18095 = vst [vmem:[#allocation67_spill] sm:$0xff] %v9694_v0  ;;  %v18198_v6 = vunpack.i.l.bf16 %v9692_v61 }
  0xda   : > { %6886 = vrot.lane.b32.xlu1 %v9646_v62, %s9182_s30  ;;  %6881 = vrot.lane.b32.xlu0 %v9650_v45, %s9182_s30 }
  0xdc   : > { %v9700_v60 = vpop.permute.xlu1 %6626  ;;  %v9702_v58 = vpop.permute.xlu0 %6621 }
  0xdd   : > { %18096 = vst [vmem:[#allocation68_spill] sm:$0xff] %v9700_v60  ;;  %18097 = vst [vmem:[#allocation69_spill] sm:$0xff] %v9702_v58  ;;  %v17324_v28 = vunpack.i.h.bf16 %v9702_v58  ;;  %v17325_v27 = vunpack.i.l.bf16 %v9702_v58 }
  0xde   : > { %6896 = vrot.lane.b32.xlu1 %v9556_v13, %s9183_s5  ;;  %6891 = vrot.lane.b32.xlu0 %v9560_v15, %s9183_s5 }
  0xdf   : > { %v9717_v32 = vsel %vm17488_vm3, %v17325_v27, %v17324_v28 }
  0xe0   : > { %18098 = vst [vmem:[#allocation70_spill] sm:$0xff] %v9717_v32  ;;  %v9719_v37 = vpop.permute.xlu1 %6636  ;;  %v9721_v60 = vpop.permute.xlu0 %6631 }
  0xe1   : > { %18099 = vst [vmem:[#allocation71_spill] sm:$0xff] %v9719_v37  ;;  %18100 = vst [vmem:[#allocation72_spill] sm:$0xff] %v9721_v60 }
  0xe2   : > { %6906 = vrot.lane.b32.xlu1 %v9576_v53, %s9183_s5  ;;  %6901 = vrot.lane.b32.xlu0 %v9580_v5, %s9183_s5 }
  0xe4   : > { %v9736_v27 = vpop.permute.xlu1 %6646  ;;  %v9738_v37 = vpop.permute.xlu0 %6641 }
  0xe5   : > { %18104 = vst [vmem:[#allocation74_spill] sm:$0xff] %v9736_v27  ;;  %18105 = vst [vmem:[#allocation75_spill] sm:$0xff] %v9738_v37 }
  0xe6   : > { %6916 = vrot.lane.b32.xlu1 %v9606_v44, %s9183_s5  ;;  %6911 = vrot.lane.b32.xlu0 %v9610_v46, %s9183_s5 }
  0xe8   : > { %v9744_v29 = vpop.permute.xlu1 %595  ;;  %v9746_v54 = vpop.permute.xlu0 %6651 }
  0xe9   : > { %18106 = vst [vmem:[#allocation76_spill] sm:$0xff] %v9744_v29  ;;  %18107 = vst [vmem:[#allocation77_spill] sm:$0xff] %v9746_v54 }
  0xea   : > { %6926 = vrot.lane.b32.xlu1 %v9627_v22, %s9183_s5  ;;  %6921 = vrot.lane.b32.xlu0 %v9631_v63, %s9183_s5 }
  0xec   : > { %v9752_v28 = vpop.permute.xlu1 %6661  ;;  %v9754_v27 = vpop.permute.xlu0 %6656 }
  0xed   : > { %v18196_v1 = vunpack.i.l.bf16 %v9752_v28 }
  0xee   : > { %1046 = vrot.lane.b32.xlu1 %v9321_v33, %s9183_s5  ;;  %6931 = vrot.lane.b32.xlu0 %v9650_v45, %s9183_s5 }
  0xf0   : > { %v9760_v37 = vpop.permute.xlu1 %6671  ;;  %v9762_v29 = vpop.permute.xlu0 %6666 }
  0xf1   : > { %18108 = vst [vmem:[#allocation78_spill] sm:$0xff] %v9760_v37  ;;  %18109 = vst [vmem:[#allocation79_spill] sm:$0xff] %v9762_v29  ;;  %v18121_v10 = vunpack.i.h.bf16 %v9762_v29  ;;  %v18122_v52 = vunpack.i.l.bf16 %v9762_v29 }
  0xf2   : > { %6941 = vrot.lane.b32.xlu1 %v9556_v13, %s17528_s6  ;;  %6936 = vrot.lane.b32.xlu0 %v9560_v15, %s17528_s6 }
  0xf3   : > { %v9828_v51 = vsel %vm17502_vm6, %v18122_v52, %v18121_v10 }
  0xf4   : > { %v9768_v54 = vpop.permute.xlu1 %6681  ;;  %v9770_v55 = vpop.permute.xlu0 %6676  ;;  %18123 = vst [vmem:[#allocation91_spill] sm:$0xff] %v9828_v51 }
  0xf5   : > { %18110 = vst [vmem:[#allocation80_spill] sm:$0xff] %v9768_v54  ;;  %18111 = vst [vmem:[#allocation81_spill] sm:$0xff] %v9770_v55 }
  0xf6   : > { %6951 = vrot.lane.b32.xlu1 %v9576_v53, %s17528_s6  ;;  %6946 = vrot.lane.b32.xlu0 %v9580_v5, %s17528_s6 }
  0xf8   : > { %v9776_v32 = vpop.permute.xlu1 %6691  ;;  %v9778_v60 = vpop.permute.xlu0 %6686 }
  0xf9   : > { %18112 = vst [vmem:[#allocation82_spill] sm:$0xff] %v9776_v32  ;;  %18113 = vst [vmem:[#allocation83_spill] sm:$0xff] %v9778_v60 }
  0xfa   : > { %6961 = vrot.lane.b32.xlu1 %v9606_v44, %s17528_s6  ;;  %6956 = vrot.lane.b32.xlu0 %v9610_v46, %s17528_s6 }
  0xfc   : > { %v9784_v37 = vpop.permute.xlu1 %670  ;;  %v9786_v54 = vpop.permute.xlu0 %6696 }
  0xfd   : > { %18114 = vst [vmem:[#allocation84_spill] sm:$0xff] %v9784_v37  ;;  %18115 = vst [vmem:[#allocation85_spill] sm:$0xff] %v9786_v54 }
  0xfe   : > { %6971 = vrot.lane.b32.xlu1 %v9627_v22, %s17528_s6  ;;  %6966 = vrot.lane.b32.xlu0 %v9631_v63, %s17528_s6 }
 0x100   : > { %v9792_v55 = vpop.permute.xlu1 %6706  ;;  %v9794_v32 = vpop.permute.xlu0 %6701 }
 0x102   : > { %1121 = vrot.lane.b32.xlu1 %v9321_v33, %s17528_s6  ;;  %6976 = vrot.lane.b32.xlu0 %v9650_v45, %s17528_s6 }
 0x104   : > { %v9800_v60 = vpop.permute.xlu1 %6716  ;;  %v9802_v37 = vpop.permute.xlu0 %6711 }
 0x105   : > { %18116 = vst [vmem:[#allocation86_spill] sm:$0xff] %v9800_v60  ;;  %18117 = vst [vmem:[#allocation87_spill] sm:$0xff] %v9802_v37  ;;  %v17350_v20 = vunpack.i.h.bf16 %v9802_v37  ;;  %v17351_v21 = vunpack.i.l.bf16 %v9802_v37 }
 0x106   : > { %6986 = vrot.lane.b32.xlu1 %v9556_v13, %s9185_s7  ;;  %6981 = vrot.lane.b32.xlu0 %v9560_v15, %s9185_s7 }
 0x107   : > { %v9817_v54 = vsel %vm17497_vm5, %v17351_v21, %v17350_v20 }
 0x108   : > { %18118 = vst [vmem:[#allocation88_spill] sm:$0xff] %v9817_v54  ;;  %v9819_v16 = vpop.permute.xlu1 %6726  ;;  %v9821_v60 = vpop.permute.xlu0 %6721 }
 0x109   : > { %18119 = vst [vmem:[#allocation89_spill] sm:$0xff] %v9819_v16  ;;  %18120 = vst [vmem:[#allocation90_spill] sm:$0xff] %v9821_v60 }
 0x10a   : > { %6996 = vrot.lane.b32.xlu1 %v9576_v53, %s9185_s7  ;;  %6991 = vrot.lane.b32.xlu0 %v9580_v5, %s9185_s7 }
 0x10c   : > { %v9836_v21 = vpop.permute.xlu1 %6736  ;;  %v9838_v16 = vpop.permute.xlu0 %6731 }
 0x10d   : > { %18124 = vst [vmem:[#allocation92_spill] sm:$0xff] %v9836_v21  ;;  %18125 = vst [vmem:[#allocation93_spill] sm:$0xff] %v9838_v16 }
 0x10e   : > { %7006 = vrot.lane.b32.xlu1 %v9606_v44, %s9185_s7  ;;  %7001 = vrot.lane.b32.xlu0 %v9610_v46, %s9185_s7 }
 0x110   : > { %v9844_v10 = vpop.permute.xlu1 %745  ;;  %v9846_v52 = vpop.permute.xlu0 %6741 }
 0x111   : > { %18126 = vst [vmem:[#allocation94_spill] sm:$0xff] %v9844_v10  ;;  %18127 = vst [vmem:[#allocation95_spill] sm:$0xff] %v9846_v52 }
 0x112   : > { %7016 = vrot.lane.b32.xlu1 %v9627_v22, %s9185_s7  ;;  %7011 = vrot.lane.b32.xlu0 %v9631_v63, %s9185_s7 }
 0x114   : > { %v9852_v20 = vpop.permute.xlu1 %6751  ;;  %v9854_v21 = vpop.permute.xlu0 %6746 }
 0x116   : > { %1196 = vrot.lane.b32.xlu1 %v9321_v33, %s9185_s7  ;;  %7021 = vrot.lane.b32.xlu0 %v9650_v45, %s9185_s7 }
 0x118   : > { %v9860_v16 = vpop.permute.xlu1 %6761  ;;  %v9862_v10 = vpop.permute.xlu0 %6756 }
 0x119   : > { %18128 = vst [vmem:[#allocation96_spill] sm:$0xff] %v9860_v16  ;;  %18129 = vst [vmem:[#allocation97_spill] sm:$0xff] %v9862_v10 }
 0x11a   : > { %7031 = vrot.lane.b32.xlu1 %v9556_v13, %s9186_s8  ;;  %7026 = vrot.lane.b32.xlu0 %v9560_v15, %s9186_s8 }
 0x11c   : > { %v9868_v52 = vpop.permute.xlu1 %6771  ;;  %v9870_v51 = vpop.permute.xlu0 %6766 }
 0x11d   : > { %18130 = vst [vmem:[#allocation98_spill] sm:$0xff] %v9868_v52  ;;  %18131 = vst [vmem:[#allocation99_spill] sm:$0xff] %v9870_v51 }
 0x11e   : > { %7041 = vrot.lane.b32.xlu1 %v9576_v53, %s9186_s8  ;;  %7036 = vrot.lane.b32.xlu0 %v9580_v5, %s9186_s8 }
 0x120   : > { %v9876_v54 = vpop.permute.xlu1 %6781  ;;  %v9878_v60 = vpop.permute.xlu0 %6776 }
 0x121   : > { %18132 = vst [vmem:[#allocation100_spill] sm:$0xff] %v9876_v54  ;;  %18133 = vst [vmem:[#allocation101_spill] sm:$0xff] %v9878_v60 }
 0x122   : > { %7051 = vrot.lane.b32.xlu1 %v9606_v44, %s9186_s8  ;;  %7046 = vrot.lane.b32.xlu0 %v9610_v46, %s9186_s8 }
 0x124   : > { %v9884_v16 = vpop.permute.xlu1 %820  ;;  %v9886_v52 = vpop.permute.xlu0 %6786 }
 0x125   : > { %18134 = vst [vmem:[#allocation102_spill] sm:$0xff] %v9884_v16  ;;  %18135 = vst [vmem:[#allocation103_spill] sm:$0xff] %v9886_v52 }
 0x126   : > { %7061 = vrot.lane.b32.xlu1 %v9627_v22, %s9186_s8  ;;  %7056 = vrot.lane.b32.xlu0 %v9631_v63, %s9186_s8 }
 0x128   : > { %v9892_v51 = vpop.permute.xlu1 %6796  ;;  %v9894_v54 = vpop.permute.xlu0 %6791 }
 0x12a   : > { %1271 = vrot.lane.b32.xlu1 %v9321_v33, %s9186_s8  ;;  %7066 = vrot.lane.b32.xlu0 %v9650_v45, %s9186_s8 }
 0x12c   : > { %v9900_v60 = vpop.permute.xlu1 %6806  ;;  %v9902_v16 = vpop.permute.xlu0 %6801 }
 0x12d   : > { %18136 = vst [vmem:[#allocation104_spill] sm:$0xff] %v9900_v60 }
 0x12e   : > { %7076 = vrot.lane.b32.xlu1 %v9556_v13, %s9187_s9  ;;  %7071 = vrot.lane.b32.xlu0 %v9560_v15, %s9187_s9 }
 0x130   : > { %v9908_v52 = vpop.permute.xlu1 %6816  ;;  %v9910_v9 = vpop.permute.xlu0 %6811 }
 0x131   : > { %18137 = vst [vmem:[#allocation105_spill] sm:$0xff] %v9908_v52  ;;  %18138 = vst [vmem:[#allocation106_spill] sm:$0xff] %v9910_v9 }
 0x132   : > { %7086 = vrot.lane.b32.xlu1 %v9576_v53, %s9187_s9  ;;  %7081 = vrot.lane.b32.xlu0 %v9580_v5, %s9187_s9 }
 0x134   : > { %v9916_v3 = vpop.permute.xlu1 %6826  ;;  %v9918_v4 = vpop.permute.xlu0 %6821 }
 0x135   : > { %18139 = vst [vmem:[#allocation107_spill] sm:$0xff] %v9916_v3  ;;  %18140 = vst [vmem:[#allocation108_spill] sm:$0xff] %v9918_v4 }
 0x136   : > { %7096 = vrot.lane.b32.xlu1 %v9606_v44, %s9187_s9  ;;  %7091 = vrot.lane.b32.xlu0 %v9610_v46, %s9187_s9 }
 0x138   : > { %v9924_v47 = vpop.permute.xlu1 %6836  ;;  %v9926_v52 = vpop.permute.xlu0 %6831 }
 0x139   : > { %18141 = vst [vmem:[#allocation109_spill] sm:$0xff] %v9924_v47  ;;  %18142 = vst [vmem:[#allocation110_spill] sm:$0xff] %v9926_v52 }
 0x13a   : > { %7106 = vrot.lane.b32.xlu1 %v9627_v22, %s9187_s9  ;;  %7101 = vrot.lane.b32.xlu0 %v9631_v63, %s9187_s9 }
 0x13c   : > { %v9932_v42 = vpop.permute.xlu1 %6846  ;;  %v9934_v3 = vpop.permute.xlu0 %6841 }
 0x13e   : > { %1346 = vrot.lane.b32.xlu1 %v9321_v33, %s9187_s9  ;;  %7111 = vrot.lane.b32.xlu0 %v9650_v45, %s9187_s9 }
 0x140   : > { %v9940_v4 = vpop.permute.xlu1 %6856  ;;  %v9942_v47 = vpop.permute.xlu0 %6851 }
 0x141   : > { %18143 = vst [vmem:[#allocation111_spill] sm:$0xff] %v9940_v4 }
 0x142   : > { %7121 = vrot.lane.b32.xlu1 %v9268_v14, %s9188_s10  ;;  %7116 = vrot.lane.b32.xlu0 %v9289_v19, %s9188_s10 }
 0x144   : > { %v9948_v52 = vpop.permute.xlu1 %6866  ;;  %v9950_v48 = vpop.permute.xlu0 %6861 }
 0x145   : > { %18144 = vst [vmem:[#allocation112_spill] sm:$0xff] %v9948_v52  ;;  %18145 = vst [vmem:[#allocation113_spill] sm:$0xff] %v9950_v48 }
 0x146   : > { %7131 = vrot.lane.b32.xlu1 %v9309_v26, %s9188_s10  ;;  %7126 = vrot.lane.b32.xlu0 %v9285_v18, %s9188_s10 }
 0x148   : > { %v9956_v33 = vpop.permute.xlu1 %6876  ;;  %v9958_v40 = vpop.permute.xlu0 %6871 }
 0x149   : > { %18146 = vst [vmem:[#allocation114_spill] sm:$0xff] %v9956_v33  ;;  %18147 = vst [vmem:[#allocation115_spill] sm:$0xff] %v9958_v40 }
 0x14a   : > { %7141 = vrot.lane.b32.xlu1 %v9333_v35, %s9188_s10  ;;  %7136 = vrot.lane.b32.xlu0 %v9299_v24, %s9188_s10 }
 0x14c   : > { %v9964_v60 = vpop.permute.xlu1 %6886  ;;  %v9966_v52 = vpop.permute.xlu0 %6881 }
 0x14d   : > { %18148 = vst [vmem:[#allocation116_spill] sm:$0xff] %v9964_v60  ;;  %18149 = vst [vmem:[#allocation117_spill] sm:$0xff] %v9966_v52  ;;  %v17403_v60 = vunpack.i.h.bf16 %v9942_v47 }
 0x14e   : > { %7151 = vrot.lane.b32.xlu1 %v9349_v39, %s9188_s10  ;;  %7146 = vrot.lane.b32.xlu0 %v9329_v34, %s9188_s10 }
 0x150   : > { %v9972_v9 = vpop.permute.xlu1 %6896  ;;  %v9974_v33 = vpop.permute.xlu0 %6891 }
 0x151   : > { %v18208_v29 = vunpack.i.l.bf16 %v9972_v9 }
 0x152   : > { %1425 = vrot.lane.b32.xlu1 %v9634_v30, %s9188_s10  ;;  %7156 = vrot.lane.b32.xlu0 %v9345_v38, %s9188_s10 }
 0x154   : > { %v9982_v40 = vpop.permute.xlu1 %6906  ;;  %v9984_v48 = vpop.permute.xlu0 %6901 }
 0x155   : > { %18150 = vst [vmem:[#allocation118_spill] sm:$0xff] %v9982_v40  ;;  %18151 = vst [vmem:[#allocation119_spill] sm:$0xff] %v9984_v48  ;;  %v17401_v4 = vunpack.i.h.bf16 %v9984_v48  ;;  %v17402_v17 = vunpack.i.l.bf16 %v9984_v48  ;;  %v18153_v40 = vunpack.i.l.bf16 %v9942_v47 }
 0x156   : > { %7166 = vrot.lane.b32.xlu1 %v9268_v14, %s9189_s11  ;;  %7161 = vrot.lane.b32.xlu0 %v9289_v19, %s9189_s11 }
 0x157   : > { %v9997_v52 = vsel %vm1048_vm8, %v17402_v17, %v17401_v4  ;;  %v10004_v15 = vsel %vm17658_vm7, %v18153_v40, %v17403_v60 }
 0x158   : > { %18152 = vst [vmem:[#allocation120_spill] sm:$0xff] %v9997_v52  ;;  %18154 = vst [vmem:[#allocation121_spill] sm:$0xff] %v10004_v15  ;;  %v10006_v50 = vpop.permute.xlu1 %6916  ;;  %v10008_v11 = vpop.permute.xlu0 %6911 }
 0x159   : > { %18155 = vst [vmem:[#allocation122_spill] sm:$0xff] %v10006_v50  ;;  %18156 = vst [vmem:[#allocation123_spill] sm:$0xff] %v10008_v11 }
 0x15a   : > { %7176 = vrot.lane.b32.xlu1 %v9309_v26, %s9189_s11  ;;  %7171 = vrot.lane.b32.xlu0 %v9285_v18, %s9189_s11 }
 0x15c   : > { %v10016_v4 = vpop.permute.xlu1 %6926  ;;  %v10018_v17 = vpop.permute.xlu0 %6921 }
 0x15d   : > { %18157 = vst [vmem:[#allocation124_spill] sm:$0xff] %v10016_v4  ;;  %18158 = vst [vmem:[#allocation125_spill] sm:$0xff] %v10018_v17 }
 0x15e   : > { %7186 = vrot.lane.b32.xlu1 %v9333_v35, %s9189_s11  ;;  %7181 = vrot.lane.b32.xlu0 %v9299_v24, %s9189_s11 }
 0x160   : > { %v10024_v40 = vpop.permute.xlu1 %1046  ;;  %v10026_v60 = vpop.permute.xlu0 %6931 }
 0x161   : > { %18159 = vst [vmem:[#allocation126_spill] sm:$0xff] %v10024_v40  ;;  %18160 = vst [vmem:[#allocation127_spill] sm:$0xff] %v10026_v60 }
 0x162   : > { %7196 = vrot.lane.b32.xlu1 %v9349_v39, %s9189_s11  ;;  %7191 = vrot.lane.b32.xlu0 %v9329_v34, %s9189_s11 }
 0x164   : > { %v10032_v49 = vpop.permute.xlu1 %6941  ;;  %v10034_v4 = vpop.permute.xlu0 %6936 }
 0x166   : > { %1482 = vrot.lane.b32.xlu1 %v9634_v30, %s9189_s11  ;;  %7201 = vrot.lane.b32.xlu0 %v9345_v38, %s9189_s11 }
 0x168   : > { %v10040_v17 = vpop.permute.xlu1 %6951  ;;  %v10042_v40 = vpop.permute.xlu0 %6946 }
 0x169   : > { %18161 = vst [vmem:[#allocation128_spill] sm:$0xff] %v10040_v17  ;;  %18162 = vst [vmem:[#allocation129_spill] sm:$0xff] %v10042_v40  ;;  %v17435_v17 = vunpack.i.l.bf16 %v9652_v36 }
 0x16a   : > { %7211 = vrot.lane.b32.xlu1 %v9268_v14, %s9190_s12  ;;  %7206 = vrot.lane.b32.xlu0 %v9289_v19, %s9190_s12 }
 0x16c   : > { %v10048_v60 = vpop.permute.xlu1 %6961  ;;  %v10050_v50 = vpop.permute.xlu0 %6956 }
 0x16d   : > { %18163 = vst [vmem:[#allocation130_spill] sm:$0xff] %v10048_v60  ;;  %18164 = vst [vmem:[#allocation131_spill] sm:$0xff] %v10050_v50  ;;  %v10133_v60 = vunpack.c.h.bf16 %v9615_v31  ;;  %v18186_v31 = vunpack.i.l.bf16 %v9506_v56 }
 0x16e   : > { %7221 = vrot.lane.b32.xlu1 %v9309_v26, %s9190_s12  ;;  %7216 = vrot.lane.b32.xlu0 %v9285_v18, %s9190_s12 }
 0x16f   : > { %18179 = vst [vmem:[#allocation146_spill] sm:$0xff] %v10133_v60 }
 0x170   : > { %v10056_v11 = vpop.permute.xlu1 %6971  ;;  %v10058_v52 = vpop.permute.xlu0 %6966 }
 0x171   : > { %18165 = vst [vmem:[#allocation132_spill] sm:$0xff] %v10056_v11  ;;  %18166 = vst [vmem:[#allocation133_spill] sm:$0xff] %v10058_v52 }
 0x172   : > { %7231 = vrot.lane.b32.xlu1 %v9333_v35, %s9190_s12  ;;  %7226 = vrot.lane.b32.xlu0 %v9299_v24, %s9190_s12  ;;  %v17414_v24 = vunpack.i.h.bf16 %v10042_v40  ;;  %v17415_v35 = vunpack.i.l.bf16 %v10042_v40 }
 0x174   : > { %v10064_v14 = vpop.permute.xlu1 %1121  ;;  %v10066_v19 = vpop.permute.xlu0 %6976 }
 0x175   : > { %18167 = vst [vmem:[#allocation134_spill] sm:$0xff] %v10064_v14  ;;  %18168 = vst [vmem:[#allocation135_spill] sm:$0xff] %v10066_v19 }
 0x176   : > { %7241 = vrot.lane.b32.xlu1 %v9349_v39, %s9190_s12  ;;  %7236 = vrot.lane.b32.xlu0 %v9329_v34, %s9190_s12 }
 0x178   : > { %v10072_v18 = vpop.permute.xlu1 %6986  ;;  %v10074_v26 = vpop.permute.xlu0 %6981 }
 0x179   : > { %v6983_v2 = vunpack.i.l.bf16 %v10074_v26 }
 0x17a   : > { %1539 = vrot.lane.b32.xlu1 %v9634_v30, %s9190_s12  ;;  %7246 = vrot.lane.b32.xlu0 %v9345_v38, %s9190_s12  ;;  %v10097_v38 = vsel %vm17513_vm9, %v17415_v35, %v17414_v24 }
 0x17b   : > { %18171 = vst [vmem:[#allocation138_spill] sm:$0xff] %v10097_v38  ;;  %v18184_v38 = vunpack.i.h.bf16 %v9453_v41 }
 0x17c   : > { %v10082_v14 = vpop.permute.xlu1 %6996  ;;  %v10084_v39 = vpop.permute.xlu0 %6991 }
 0x17d   : > { %18169 = vst [vmem:[#allocation136_spill] sm:$0xff] %v10082_v14  ;;  %18170 = vst [vmem:[#allocation137_spill] sm:$0xff] %v10084_v39  ;;  %v17416_v34 = vunpack.i.h.bf16 %v10084_v39  ;;  %v17417_v19 = vunpack.i.l.bf16 %v10084_v39 }
 0x17e   : > { %7256 = vrot.lane.b32.xlu1 %v9580_v5, %s9191_s13  ;;  %7251 = vrot.lane.b32.xlu0 %v9556_v13, %s9191_s13 }
 0x17f   : > { %v10104_v30 = vsel %vm1198_vm10, %v17417_v19, %v17416_v34 }
 0x180   : > { %18172 = vst [vmem:[#allocation139_spill] sm:$0xff] %v10104_v30  ;;  %v10106_v11 = vpop.permute.xlu1 %7006  ;;  %v10108_v52 = vpop.permute.xlu0 %7001 }
 0x181   : > { %18173 = vst [vmem:[#allocation140_spill] sm:$0xff] %v10106_v11  ;;  %18174 = vst [vmem:[#allocation141_spill] sm:$0xff] %v10108_v52  ;;  %v6428_v52 = vunpack.i.l.bf16 %v9453_v41  ;;  %v6984_v41 = vunpack.i.h.bf16 %v10074_v26 }
 0x182   : > { %7266 = vrot.lane.b32.xlu1 %v9610_v46, %s9191_s13  ;;  %7261 = vrot.lane.b32.xlu0 %v9576_v53, %s9191_s13 }
 0x183   : > { %v10170_v30 = vsel %vm17625_vm0, %v6428_v52, %v18184_v38  ;;  %v18189_v52 = vunpack.i.h.bf16 %v9654_v25 }
 0x184   : > { %v10116_v24 = vpop.permute.xlu1 %7016  ;;  %v10118_v35 = vpop.permute.xlu0 %7011  ;;  %18185 = vst [vmem:[#allocation151_spill] sm:$0xff] %v10170_v30 }
 0x185   : > { %18175 = vst [vmem:[#allocation142_spill] sm:$0xff] %v10116_v24  ;;  %18176 = vst [vmem:[#allocation143_spill] sm:$0xff] %v10118_v35  ;;  %v10190_v38 = vsel %vm17512_vm4, %v18189_v52, %v17435_v17  ;;  %v18197_v52 = vunpack.i.h.bf16 %v9754_v27 }
 0x186   : > { %7276 = vrot.lane.b32.xlu1 %v9631_v63, %s9191_s13  ;;  %7271 = vrot.lane.b32.xlu0 %v9606_v44, %s9191_s13  ;;  %18190 = vst [vmem:[#allocation153_spill] sm:$0xff] %v10190_v38  ;;  %v6938_v38 = vunpack.i.l.bf16 %v10034_v4 }
 0x187   : > { %v10210_v17 = vsel %vm17502_vm6, %v18197_v52, %v18196_v1  ;;  %v18202_v52 = vunpack.i.h.bf16 %v9854_v21 }
 0x188   : > { %v10124_v34 = vpop.permute.xlu1 %1196  ;;  %v10126_v19 = vpop.permute.xlu0 %7021 }
 0x189   : > { %18177 = vst [vmem:[#allocation144_spill] sm:$0xff] %v10124_v34  ;;  %18178 = vst [vmem:[#allocation145_spill] sm:$0xff] %v10126_v19 }
 0x18a   : > { %7286 = vrot.lane.b32.xlu1 %v9650_v45, %s9191_s13  ;;  %7281 = vrot.lane.b32.xlu0 %v9627_v22, %s9191_s13 }
 0x18c   : > { %v10135_v24 = vpop.permute.xlu1 %7031  ;;  %v10137_v35 = vpop.permute.xlu0 %7026 }
 0x18d   : > { %v7033_v43 = vunpack.i.l.bf16 %v10135_v24  ;;  %v7028_v1 = vunpack.i.l.bf16 %v10137_v35 }
 0x18e   : > { %1597 = vrot.lane.b32.xlu1 %v10133_v60, %s9191_s13  ;;  %7291 = vrot.lane.b32.xlu0 %v9646_v62, %s9191_s13 }
 0x190   : > { %v10143_v34 = vpop.permute.xlu1 %7041  ;;  %v10145_v19 = vpop.permute.xlu0 %7036 }
 0x191   : > { %18180 = vst [vmem:[#allocation147_spill] sm:$0xff] %v10143_v34  ;;  %18181 = vst [vmem:[#allocation148_spill] sm:$0xff] %v10145_v19  ;;  %v18187_v34 = vunpack.i.h.bf16 %v9508_v57 }
 0x192   : > { %7301 = vrot.lane.b32.xlu1 %v9580_v5, %s9192_s14  ;;  %7296 = vrot.lane.b32.xlu0 %v9556_v13, %s9192_s14 }
 0x193   : > { %v10181_v14 = vsel %vm17626_vm2, %v18187_v34, %v18186_v31 }
 0x194   : > { %v10163_v15 = vpop.permute.xlu1 %7051  ;;  %v10165_v12 = vpop.permute.xlu0 %7046  ;;  %18188 = vst [vmem:[#allocation152_spill] sm:$0xff] %v10181_v14  ;;  %v6939_v14 = vunpack.i.h.bf16 %v10034_v4  ;;  %v18210_v4 = vunpack.i.l.bf16 %v10032_v49 }
 0x195   : > { %18182 = vst [vmem:[#allocation149_spill] sm:$0xff] %v10163_v15  ;;  %18183 = vst [vmem:[#allocation150_spill] sm:$0xff] %v10165_v12  ;;  %v18191_v15 = vunpack.i.l.bf16 %v9546_v7  ;;  %v18192_v12 = vunpack.i.h.bf16 %v9548_v8 }
 0x196   : > { %7311 = vrot.lane.b32.xlu1 %v9610_v46, %s9192_s14  ;;  %7306 = vrot.lane.b32.xlu0 %v9576_v53, %s9192_s14 }
 0x197   : > { %v10197_v30 = vsel %vm447_vm1, %v18192_v12, %v18191_v15  ;;  %v18199_v12 = vunpack.i.h.bf16 %v9694_v0  ;;  %v18209_v0 = vunpack.i.h.bf16 %v9974_v33 }
 0x198   : > { %18193 = vst [vmem:[#allocation154_spill] sm:$0xff] %v10197_v30  ;;  %v10201_v50 = vpop.permute.xlu1 %7061  ;;  %v10203_v11 = vpop.permute.xlu0 %7056 }
 0x199   : > { %18194 = vst [vmem:[#allocation155_spill] sm:$0xff] %v10201_v50  ;;  %18195 = vst [vmem:[#allocation156_spill] sm:$0xff] %v10203_v11  ;;  %v10217_v15 = vsel %vm17488_vm3, %v18199_v12, %v18198_v6  ;;  %v10222_v50 = vunpack.i.l.bf16 %v9892_v51  ;;  %v17445_v11 = vunpack.i.h.bf16 %v9894_v54  ;;  %v18201_v6 = vunpack.i.l.bf16 %v9852_v20 }
 0x19a   : > { %18200 = vst [vmem:[#allocation157_spill] sm:$0xff] %v10217_v15  ;;  %7321 = vrot.lane.b32.xlu1 %v9631_v63, %s9192_s14  ;;  %7316 = vrot.lane.b32.xlu0 %v9606_v44, %s9192_s14 }
 0x19b   : > { %v10236_v12 = vsel %vm17507_vm11, %v18202_v52, %v18201_v6  ;;  %v10247_v23 = vsel %vm898_vm12, %v17445_v11, %v10222_v50  ;;  %v7029_v6 = vunpack.i.h.bf16 %v10137_v35  ;;  %v10258_v52 = vunpack.i.l.bf16 %v9932_v42 }
 0x19c   : > { %v10239_v59 = vpop.permute.xlu1 %1271  ;;  %v10241_v34 = vpop.permute.xlu0 %7066  ;;  %v7038_v11 = vunpack.i.l.bf16 %v10145_v19 }
 0x19d   : > { %18203 = vst [vmem:[#allocation158_spill] sm:$0xff] %v10239_v59  ;;  %18204 = vst [vmem:[#allocation159_spill] sm:$0xff] %v10241_v34  ;;  %v1275_v35 = vsel %vm17544_vm13, %v7029_v6, %v7033_v43  ;;  %v18205_v34 = vunpack.i.l.bf16 %v10072_v18 }
 0x19e   : > { %7331 = vrot.lane.b32.xlu1 %v9650_v45, %s9192_s14  ;;  %7326 = vrot.lane.b32.xlu0 %v9627_v22, %s9192_s14 }
 0x19f   : > { %v1200_v30 = vsel %vm1198_vm10, %v6984_v41, %v18205_v34  ;;  %v7034_v34 = vunpack.i.h.bf16 %v10135_v24 }
 0x1a0   : > { %v7077_v56 = vpop.permute.xlu1 %7076  ;;  %v7072_v7 = vpop.permute.xlu0 %7071 }
 0x1a1   : > { %v7078_v58 = vunpack.i.l.bf16 %v7077_v56  ;;  %v7074_v57 = vunpack.i.h.bf16 %v7072_v7  ;;  %v7073_v15 = vunpack.i.l.bf16 %v7072_v7  ;;  %v7079_v26 = vunpack.i.h.bf16 %v7077_v56 }
 0x1a2   : > { %1654 = vrot.lane.b32.xlu1 %v10133_v60, %s9192_s14  ;;  %7336 = vrot.lane.b32.xlu0 %v9646_v62, %s9192_s14  ;;  %v1274_v7 = vsel %vm17544_vm13, %v7028_v1, %v7029_v6  ;;  %v1050_v56 = vsel %vm1048_vm8, %v18209_v0, %v18208_v29  ;;  %v6989_v6 = vunpack.i.h.bf16 %v10072_v18  ;;  %v1199_v29 = vsel %vm1198_vm10, %v6983_v2, %v6984_v41 }
 0x1a3   : > { %v1350_v59 = vsel %vm17531_vm14, %v7074_v57, %v7078_v58  ;;  %v1349_v31 = vsel %vm17531_vm14, %v7073_v15, %v7074_v57  ;;  %v1125_v15 = vsel %vm17513_vm9, %v6939_v14, %v18210_v4  ;;  %v1351_v4 = vsel %vm17531_vm14, %v7078_v58, %v7079_v26 }
 0x1a4   : > { %v10282_v36 = vpop.permute.xlu1 %7086  ;;  %v10284_v60 = vpop.permute.xlu0 %7081  ;;  %v2743_v62 = vpack.c.bf16 %v1350_v59, %v1275_v35  ;;  %v2742_v61 = vpack.c.bf16 %v1349_v31, %v1274_v7  ;;  %v18211_v59 = vunpack.i.h.bf16 %v10145_v19  ;;  %v2725_v0 = vpack.c.bf16 %v1200_v30, %v1125_v15 }
 0x1a5   : > { %18206 = vst [vmem:[#allocation160_spill] sm:$0xff] %v10282_v36  ;;  %18207 = vst [vmem:[#allocation161_spill] sm:$0xff] %v10284_v60  ;;  %v17470_v1 = vunpack.i.h.bf16 %v10284_v60  ;;  %v7083_v57 = vunpack.i.l.bf16 %v10284_v60  ;;  %v1277_v35 = vsel %vm17544_vm13, %v7034_v34, %v7038_v11  ;;  %v18216_v2 = vunpack.i.l.bf16 %v10084_v39 }
 0x1a6   : > { %v10301_v31 = vsel %vm17544_vm13, %v7038_v11, %v18211_v59  ;;  %7346 = vrot.lane.b32.xlu1 %v9580_v5, %s9193_s17  ;;  %7341 = vrot.lane.b32.xlu0 %v9556_v13, %s9193_s17  ;;  %v6944_v59 = vunpack.i.h.bf16 %v10032_v49  ;;  %v6843_v11 = vunpack.i.l.bf16 %v9934_v3  ;;  %v1124_v58 = vsel %vm17513_vm9, %v6938_v38, %v6939_v14 }
 0x1a7   : > { %18212 = vst [vmem:[#allocation162_spill] sm:$0xff] %v10301_v31  ;;  %v10311_v24 = vsel %vm17531_vm14, %v7083_v57, %v17470_v1  ;;  %2933 = vmatprep.subr.bf16.mxu0 %v2743_v62  ;;  %v1352_v7 = vsel %vm17531_vm14, %v7079_v26, %v7083_v57  ;;  %v1202_v15 = vsel %vm1198_vm10, %v6989_v6, %v18216_v2  ;;  %v18221_v1 = vunpack.i.l.bf16 %v10072_v18 }
 0x1a8   : > { %18213 = vst [vmem:[#allocation163_spill] sm:$0xff] %v10311_v24  ;;  %2934 = vmatpush1.bf16.msra.mxu0 %v2742_v61  ;;  %v10317_v19 = vpop.permute.xlu1 %7096  ;;  %v10319_v30 = vpop.permute.xlu0 %7091  ;;  %v2745_v41 = vpack.c.bf16 %v1352_v7, %v1277_v35  ;;  %v1276_v26 = vsel %vm17544_vm13, %v7033_v43, %v7034_v34  ;;  %v18217_v61 = vunpack.i.h.bf16 %v9934_v3  ;;  %v6899_v35 = vunpack.i.h.bf16 %v9972_v9 }
 0x1a9   : > { %18214 = vst [vmem:[#allocation164_spill] sm:$0xff] %v10317_v19  ;;  %18215 = vst [vmem:[#allocation165_spill] sm:$0xff] %v10319_v30  ;;  %2935 = vmatprep.subr.bf16.mxu0 %v2725_v0  ;;  %v2724_v7 = vpack.c.bf16 %v1199_v29, %v1124_v58  ;;  %v2744_v2 = vpack.c.bf16 %v1351_v4, %v1276_v26  ;;  %v18218_v0 = vunpack.i.l.bf16 %v10042_v40  ;;  %v18219_v34 = vunpack.i.h.bf16 %v9974_v33 }
 0x1aa   : > { %v975_v57 = vsel %vm17658_vm7, %v18217_v61, %v10258_v52  ;;  %7356 = vrot.lane.b32.xlu1 %v9610_v46, %s9193_s17  ;;  %7351 = vrot.lane.b32.xlu0 %v9576_v53, %s9193_s17  ;;  %v18220_v61 = vunpack.i.l.bf16 %v9974_v33  ;;  %v1201_v19 = vsel %vm1198_vm10, %v18221_v1, %v6989_v6  ;;  %v17473_v29 = vunpack.i.l.bf16 %v9902_v16 }
 0x1ab   : > { %v1127_v14 = vsel %vm17513_vm9, %v6944_v59, %v18218_v0  ;;  %2974 = vmatprep.subr.bf16.mxu1 %v2745_v41  ;;  %v2707_v43 = vpack.c.bf16 %v1050_v56, %v975_v57  ;;  %v6849_v4 = vunpack.i.h.bf16 %v9932_v42  ;;  %v18224_v41 = vunpack.i.l.bf16 %v9984_v48 }
 0x1ac   : > { %v2727_v38 = vpack.c.bf16 %v1202_v15, %v1127_v14  ;;  %v1049_v62 = vsel %vm1048_vm8, %v18220_v61, %v18219_v34  ;;  %2936 = vmatpush1.bf16.msra.mxu0 %v2724_v7  ;;  %2975 = vmatpush1.bf16.msra.mxu1 %v2744_v2  ;;  %v10351_v58 = vpop.permute.xlu1 %7106  ;;  %v10353_v56 = vpop.permute.xlu0 %7101  ;;  %v17472_v15 = vunpack.i.l.bf16 %v9862_v10  ;;  %v18225_v18 = vunpack.i.h.bf16 %v9934_v3 }
 0x1ad   : > { %18222 = vst [vmem:[#allocation166_spill] sm:$0xff] %v10351_v58  ;;  %18223 = vst [vmem:[#allocation167_spill] sm:$0xff] %v10353_v56  ;;  %v1052_v33 = vsel %vm1048_vm8, %v6899_v35, %v18224_v41  ;;  %2937 = vmatprep.subr.bf16.mxu0 %v2707_v43  ;;  %v18226_v42 = vunpack.i.l.bf16 %v10032_v49  ;;  %v6799_v26 = vunpack.i.h.bf16 %v9892_v51  ;;  %v18227_v2 = vunpack.i.l.bf16 %v9942_v47  ;;  %v18272_v58 = vld [vmem:[#allocation23_spill] sm:$0xff] }
 0x1ae   : > { %2976 = vmatprep.subr.bf16.mxu1 %v2727_v38  ;;  %v974_v1 = vsel %vm17658_vm7, %v6843_v11, %v18225_v18  ;;  %7366 = vrot.lane.b32.xlu1 %v9631_v63, %s9193_s17  ;;  %v2689_v49 = vpack.c.bf16 %v10247_v23, %v10236_v12  ;;  %v18228_v51 = vunpack.i.h.bf16 %v9894_v54  ;;  %v18229_v11 = vunpack.i.l.bf16 %v9894_v54 }
 0x1af   : > { %v1126_v6 = vsel %vm17513_vm9, %v18226_v42, %v6944_v59  ;;  %7361 = vrot.lane.b32.xlu0 %v9606_v44, %s9193_s17  ;;  %v2706_v57 = vpack.c.bf16 %v1049_v62, %v974_v1  ;;  %v10373_v3 = vsel %vm17658_vm7, %v6849_v4, %v18227_v2  ;;  %v18230_v14 = vunpack.i.l.bf16 %v9972_v9 }
 0x1b0   : > { %v2726_v7 = vpack.c.bf16 %v1201_v19, %v1126_v6  ;;  %v2709_v59 = vpack.c.bf16 %v1052_v33, %v10373_v3  ;;  %v899_v0 = vsel %vm898_vm12, %v18229_v11, %v18228_v51  ;;  %v6658_v62 = vunpack.i.l.bf16 %v9754_v27  ;;  %v10387_v43 = vpop.permute.xlu1 %1346  ;;  %v10389_v38 = vpop.permute.xlu0 %7111 }
 0x1b1   : > { %v1051_v19 = vsel %vm1048_vm8, %v18230_v14, %v6899_v35  ;;  %2938 = vmatpush1.bf16.msra.mxu0 %v2706_v57  ;;  %18231 = vst [vmem:[#allocation168_spill] sm:$0xff] %v10387_v43  ;;  %18232 = vst [vmem:[#allocation169_spill] sm:$0xff] %v10389_v38  ;;  %v18233_v23 = vunpack.i.l.bf16 %v9792_v55  ;;  %v18234_v12 = vunpack.i.h.bf16 %v9794_v32  ;;  %v10399_v9 = vsel %vm898_vm12, %v6799_v26, %v17473_v29  ;;  %v18258_v43 = vld [vmem:[#allocation69_spill] sm:$0xff] }
 0x1b2   : > { %2977 = vmatpush1.bf16.msra.mxu1 %v2726_v7  ;;  %v18236_v34 = vunpack.i.l.bf16 %v9794_v32  ;;  %v6523_v41 = vunpack.i.l.bf16 %v9548_v8  ;;  %2939 = vmatprep.subr.bf16.mxu0 %v2689_v49  ;;  %v18237_v33 = vunpack.i.h.bf16 %v9854_v21  ;;  %v18238_v18 = vunpack.i.l.bf16 %v9854_v21 }
 0x1b3   : > { %v749_v54 = vsel %vm17497_vm5, %v18234_v12, %v18233_v23  ;;  %v18235_v35 = vmov %v18234_v12  ;;  %2978 = vmatprep.subr.bf16.mxu1 %v2709_v59  ;;  %v10414_v42 = vsel %vm17658_vm7, %v10258_v52, %v6849_v4  ;;  %v18239_v32 = vunpack.i.h.bf16 %v9852_v20  ;;  %7376 = vrot.lane.b32.xlu1 %v9650_v45, %s9193_s17  ;;  %v18242_v12 = vld [vmem:[#allocation67_spill] sm:$0xff] }
 0x1b4   : > { %v748_v61 = vsel %vm17497_vm5, %v18236_v34, %v18235_v35  ;;  %v823_v1 = vsel %vm17507_vm11, %v18238_v18, %v18237_v33  ;;  %v6709_v57 = vunpack.i.h.bf16 %v9792_v55  ;;  %7371 = vrot.lane.b32.xlu0 %v9627_v22, %s9193_s17  ;;  %v2708_v7 = vpack.c.bf16 %v1051_v19, %v10414_v42  ;;  %v10435_v11 = vpop.permute.xlu1 %7121  ;;  %v10437_v14 = vpop.permute.xlu0 %7116 }
 0x1b5   : > { %v826_v6 = vsel %vm17507_vm11, %v18239_v32, %v17472_v15  ;;  %v2688_v21 = vpack.c.bf16 %v899_v0, %v823_v1  ;;  %v6664_v4 = vunpack.i.h.bf16 %v9752_v28  ;;  %v2671_v2 = vpack.c.bf16 %v749_v54, %v10210_v17 }
 0x1b6   : > { %v2691_v49 = vpack.c.bf16 %v10399_v9, %v826_v6  ;;  %v10432_v59 = vsel %vm898_vm12, %v10222_v50, %v6799_v26  ;;  %v6568_v51 = vunpack.i.l.bf16 %v9654_v25  ;;  %2979 = vmatpush1.bf16.msra.mxu1 %v2708_v7  ;;  %v18240_v0 = vunpack.i.h.bf16 %v9754_v27  ;;  %v18249_v6 = vld [vmem:[#allocation66_spill] sm:$0xff] }
 0x1b7   : > { %2940 = vmatpush1.bf16.msra.mxu0 %v2688_v21  ;;  %v18241_v17 = vunpack.i.l.bf16 %v9802_v37  ;;  %v18243_v54 = vunpack.i.h.bf16 %v18242_v12  ;;  %v18244_v26 = vunpack.i.l.bf16 %v18242_v12  ;;  %v18245_v33 = vmov %v18239_v32  ;;  %v18250_v7 = vld [vmem:[#allocation146_spill] sm:$0xff] }
 0x1b8   : > { %v673_v19 = vsel %vm17502_vm6, %v6658_v62, %v18240_v0  ;;  %2941 = vmatprep.subr.bf16.mxu0 %v2671_v2  ;;  %2980 = vmatprep.subr.bf16.mxu1 %v2691_v49  ;;  %v18246_v18 = vunpack.i.l.bf16 %v9852_v20  ;;  %v18247_v62 = vld [vmem:[#allocation79_spill] sm:$0xff]  ;;  %v6619_v21 = vunpack.i.h.bf16 %v18249_v6  ;;  %v18251_v0 = vld [vmem:[#allocation56_spill] sm:$0xff]  ;;  %v18252_v2 = vld [vmem:[#allocation57_spill] sm:$0xff]  ;;  %v10473_v15 = vpop.permute.xlu0 %7126  ;;  %v18259_v38 = vunpack.i.l.bf16 %v18258_v43 }
 0x1b9   : > { %v751_v23 = vsel %vm17497_vm5, %v6709_v57, %v18241_v17  ;;  %v598_v35 = vsel %vm17488_vm3, %v18244_v26, %v18243_v54  ;;  %v2670_v34 = vpack.c.bf16 %v748_v61, %v673_v19  ;;  %v18248_v1 = vunpack.i.l.bf16 %v18247_v62  ;;  %1711 = vrot.lane.b32.xlu1 %v18250_v7, %s9193_s17  ;;  %7381 = vrot.lane.b32.xlu0 %v18251_v0, %s9193_s17  ;;  %v18253_v19 = vld [vmem:[#allocation153_spill] sm:$0xff] }
 0x1ba   : > { %v825_v27 = vsel %vm17507_vm11, %v18246_v18, %v18245_v33  ;;  %v6574_v49 = vunpack.i.h.bf16 %v18252_v2  ;;  %v18254_v20 = vld [vmem:[#allocation157_spill] sm:$0xff]  ;;  %v18255_v54 = vunpack.i.l.bf16 %v9792_v55  ;;  %v18256_v33 = vld [vmem:[#allocation35_spill] sm:$0xff]  ;;  %v18260_v55 = vunpack.i.h.bf16 %v9548_v8 }
 0x1bb   : > { %v676_v32 = vsel %vm17502_vm6, %v6664_v4, %v18248_v1  ;;  %v2690_v61 = vpack.c.bf16 %v10432_v59, %v825_v27  ;;  %v2653_v17 = vpack.c.bf16 %v18254_v20, %v18253_v19  ;;  %v6478_v18 = vunpack.i.l.bf16 %v18256_v33  ;;  %2942 = vmatpush1.bf16.msra.mxu0 %v2670_v34  ;;  %v10471_v1 = vpop.permute.xlu1 %7131  ;;  %v18262_v19 = vld [vmem:[#allocation59_spill] sm:$0xff] }
 0x1bc   : > { %v2673_v12 = vpack.c.bf16 %v751_v23, %v676_v32  ;;  %v750_v26 = vsel %vm17497_vm5, %v18255_v54, %v6709_v57  ;;  %v18257_v27 = vunpack.i.h.bf16 %v9654_v25  ;;  %v601_v23 = vsel %vm17488_vm3, %v6619_v21, %v18259_v38  ;;  %v18265_v38 = vld [vmem:[#allocation34_spill] sm:$0xff] }
 0x1bd   : > { %2981 = vmatpush1.bf16.msra.mxu1 %v2690_v61  ;;  %v448_v57 = vsel %vm447_vm1, %v6523_v41, %v18260_v55  ;;  %2943 = vmatprep.subr.bf16.mxu0 %v2653_v17  ;;  %v18261_v32 = vunpack.i.l.bf16 %v9752_v28  ;;  %v18263_v20 = vunpack.i.l.bf16 %v18262_v19  ;;  %v18266_v41 = vld [vmem:[#allocation152_spill] sm:$0xff]  ;;  %v18267_v28 = vld [vmem:[#allocation154_spill] sm:$0xff]  ;;  %v18268_v17 = vunpack.i.l.bf16 %v18249_v6  ;;  %v10503_v55 = vpop.permute.xlu0 %7136  ;;  %v18274_v6 = vld [vmem:[#allocation47_spill] sm:$0xff] }
 0x1be   : > { %v523_v29 = vsel %vm17512_vm4, %v6568_v51, %v18257_v27  ;;  %2982 = vmatprep.subr.bf16.mxu1 %v2673_v12  ;;  %v18264_v51 = vld [vmem:[#allocation44_spill] sm:$0xff]  ;;  %7391 = vrot.lane.b32.xlu1 %v9580_v5, %s9194_s18  ;;  %v18273_v56 = vunpack.i.h.bf16 %v18272_v58  ;;  %vm17686_vm5 = vcmask 711680   ;;  %vm1770_vm11 = vcmask 547840  }
 0x1bf   : > { %v2652_v34 = vpack.c.bf16 %v598_v35, %v523_v29  ;;  %v675_v61 = vsel %vm17502_vm6, %v18261_v32, %v6664_v4  ;;  %v526_v25 = vsel %vm17512_vm4, %v6574_v49, %v18263_v20  ;;  %v6529_v54 = vunpack.i.h.bf16 %v18264_v51  ;;  %7386 = vrot.lane.b32.xlu0 %v9556_v13, %s9194_s18  ;;  %v10501_v27 = vpop.permute.xlu1 %7141 }
 0x1c0   : > { %v2672_v8 = vpack.c.bf16 %v750_v26, %v675_v61  ;;  %v6484_v29 = vunpack.i.h.bf16 %v18265_v38  ;;  %v2635_v35 = vpack.c.bf16 %v18267_v28, %v18266_v41  ;;  %v2655_v4 = vpack.c.bf16 %v601_v23, %v526_v25  ;;  %v18270_v61 = vld [vmem:[#allocation25_spill] sm:$0xff] }
 0x1c1   : > { %v600_v12 = vsel %vm17488_vm3, %v18268_v17, %v6619_v21  ;;  %2944 = vmatpush1.bf16.msra.mxu0 %v2652_v34  ;;  %v18269_v32 = vunpack.i.h.bf16 %v18256_v33  ;;  %v18271_v20 = vunpack.i.l.bf16 %v18270_v61  ;;  %v18275_v25 = vunpack.i.l.bf16 %v18274_v6  ;;  %v18277_v41 = vld [vmem:[#allocation37_spill] sm:$0xff]  ;;  %v10535_v17 = vpop.permute.xlu0 %7146  ;;  %v18285_v61 = vld [vmem:[#allocation151_spill] sm:$0xff] }
 0x1c2   : > { %2983 = vmatpush1.bf16.msra.mxu1 %v2672_v8  ;;  %2945 = vmatprep.subr.bf16.mxu0 %v2635_v35  ;;  %v18276_v8 = vunpack.i.l.bf16 %v18252_v2  ;;  %18282 = vst [vmem:[#allocation66_spill] sm:$0xff] %v10535_v17  ;;  %vm1599_vm3 = vcmask 629760   ;;  %vm1484_vm6 = vcmask 703488   ;;  %vm1541_vm9 = vcmask 695296  }
 0x1c3   : > { %v373_v26 = vsel %vm17626_vm2, %v6478_v18, %v18269_v32  ;;  %v10513_v23 = vsel %vm17625_vm0, %v18273_v56, %v18271_v20  ;;  %v451_v21 = vsel %vm447_vm1, %v6529_v54, %v18275_v25  ;;  %2984 = vmatprep.subr.bf16.mxu1 %v2655_v4  ;;  %v18278_v18 = vunpack.i.l.bf16 %v18277_v41  ;;  %7401 = vrot.lane.b32.xlu1 %v9610_v46, %s9194_s18  ;;  %v18279_v56 = vld [vmem:[#allocation5_spill] sm:$0xff]  ;;  %v18283_v32 = vld [vmem:[#allocation2_spill] sm:$0xff] }
 0x1c4   : > { %v2634_v34 = vpack.c.bf16 %v448_v57, %v373_v26  ;;  %v525_v33 = vsel %vm17512_vm4, %v18276_v8, %v6574_v49  ;;  %7396 = vrot.lane.b32.xlu0 %v9576_v53, %s9194_s18  ;;  %v2617_v35 = vpack.c.bf16 %v10513_v23, %v18279_v56  ;;  %v18280_v57 = vunpack.i.l.bf16 %v18264_v51  ;;  %v10533_v49 = vpop.permute.xlu1 %7151 }
 0x1c5   : > { %v376_v28 = vsel %vm17626_vm2, %v6484_v29, %v18278_v18  ;;  %v2654_v58 = vpack.c.bf16 %v600_v12, %v525_v33  ;;  %18281 = vst [vmem:[#allocation67_spill] sm:$0xff] %v10533_v49  ;;  %v18284_v26 = vunpack.c.l.bf16 %v18283_v32  ;;  %v18286_v20 = vunpack.i.l.bf16 %v18265_v38  ;;  %v10551_v33 = vpop.permute.xlu0 %7156  ;;  %v18292_v38 = vld [vmem:[#allocation29_spill] sm:$0xff] }
 0x1c6   : > { %v2637_v4 = vpack.c.bf16 %v451_v21, %v376_v28  ;;  %v450_v2 = vsel %vm447_vm1, %v18280_v57, %v6529_v54  ;;  %2946 = vmatpush1.bf16.msra.mxu0 %v2634_v34  ;;  %v18287_v54 = vld [vmem:[#allocation9_spill] sm:$0xff]  ;;  %v18288_v21 = vld [vmem:[#allocation28_spill] sm:$0xff]  ;;  %18290 = vst [vmem:[#allocation56_spill] sm:$0xff] %v10551_v33  ;;  %v18298_v57 = vld [vmem:[#allocation11_spill] sm:$0xff]  ;;  %v17503_v33 = vunpack.i.h.bf16 %v10435_v11  ;;  %vm1713_vm4 = vcmask 613376  }
 0x1c7   : > { %2985 = vmatpush1.bf16.msra.mxu1 %v2654_v58  ;;  %2947 = vmatprep.subr.bf16.mxu0 %v2617_v35  ;;  %v2616_v12 = vpack.c.bf16 %v18285_v61, %v18284_v26  ;;  %v375_v25 = vsel %vm17626_vm2, %v18286_v20, %v6484_v29  ;;  %v2619_v34 = vpack.c.bf16 %v18288_v21, %v18287_v54  ;;  %vm17543_vm14 = vcmask 719872  }
 0x1c8   : > { %2986 = vmatprep.subr.bf16.mxu1 %v2637_v4  ;;  %7411 = vrot.lane.b32.xlu1 %v9631_v63, %s9194_s18  ;;  %v2636_v51 = vpack.c.bf16 %v450_v2, %v375_v25  ;;  %v10549_v8 = vpop.permute.xlu1 %1425  ;;  %v18291_v63 = vld [vmem:[#allocation8_spill] sm:$0xff]  ;;  %v7460_v2 = vpack.i.bf16 %v10373_v3, %v10414_v42  ;;  %vm17873_vm13 = vcmask 1043456  }
 0x1c9   : > { %7406 = vrot.lane.b32.xlu0 %v9606_v44, %s9194_s18  ;;  %18289 = vst [vmem:[#allocation146_spill] sm:$0xff] %v10549_v8  ;;  %v2618_v44 = vpack.c.bf16 %v18292_v38, %v18291_v63  ;;  %v10561_v18 = vpop.permute.xlu0 %7161 }
 0x1ca   : > { %2948 = vmatpush1.bf16.msra.mxu0 %v2616_v12  ;;  %v7163_v36 = vunpack.i.l.bf16 %v10561_v18 }
 0x1cb   : > { %2987 = vmatpush1.bf16.msra.mxu1 %v2636_v51 }
 0x1cc   : > { %2988 = vmatprep.subr.bf16.mxu1 %v2619_v34  ;;  %7421 = vrot.lane.b32.xlu1 %v9650_v45, %s9194_s18  ;;  %v10559_v29 = vpop.permute.xlu1 %7166 }
 0x1cd   : > { %7416 = vrot.lane.b32.xlu0 %v9627_v22, %s9194_s18  ;;  %v10569_v45 = vpop.permute.xlu0 %7171 }
 0x1cf   : > { %2989 = vmatpush1.bf16.msra.mxu1 %v2618_v44 }
 0x1d0   : > { %1768 = vrot.lane.b32.xlu1 %v18250_v7, %s9194_s18  ;;  %v10567_v28 = vpop.permute.xlu1 %7176 }
 0x1d1   : > { %7426 = vrot.lane.b32.xlu0 %v18251_v0, %s9194_s18  ;;  %v10577_v58 = vpop.permute.xlu0 %7181  ;;  %v18293_v0 = vld [vmem:[#allocation45_spill] sm:$0xff] }
 0x1d4   : > { %1797 = vrot.lane.b32.xlu1 %v18250_v7, %s9182_s30  ;;  %v10575_v22 = vpop.permute.xlu1 %7186 }
 0x1d5   : > { %1791 = vrot.lane.b32.xlu0 %v18250_v7, %s9181_s29  ;;  %v10585_v35 = vpop.permute.xlu0 %7191 }
 0x1d6   : > { %18295 = vst [vmem:[#allocation153_spill] sm:$0xff] %v10585_v35 }
 0x1d8   : > { %7436 = vrot.lane.b32.xlu1 %v9556_v13, %s17741_s19  ;;  %v10583_v56 = vpop.permute.xlu1 %7196  ;;  %v7455_v13 = vpack.i.bf16 %v10258_v52, %v18298_v57  ;;  %v18468_v57 = vld [vmem:[#allocation117_spill] sm:$0xff] }
 0x1d9   : > { %7431 = vrot.lane.b32.xlu0 %v18293_v0, %s17741_s19  ;;  %18294 = vst [vmem:[#allocation57_spill] sm:$0xff] %v10583_v56  ;;  %v10593_v4 = vpop.permute.xlu0 %7201 }
 0x1da   : > { %18297 = vst [vmem:[#allocation35_spill] sm:$0xff] %v10593_v4 }
 0x1dc   : > { %7446 = vrot.lane.b32.xlu1 %v9576_v53, %s17741_s19  ;;  %v10591_v7 = vpop.permute.xlu1 %1482 }
 0x1dd   : > { %7441 = vrot.lane.b32.xlu0 %v9580_v5, %s17741_s19  ;;  %18296 = vst [vmem:[#allocation157_spill] sm:$0xff] %v10591_v7  ;;  %v10604_v53 = vpop.permute.xlu0 %7206  ;;  %v7470_v5 = vpack.i.bf16 %v10399_v9, %v10432_v59 }
 0x1e0   : > { %7456 = vrot.lane.b32.xlu1 %v7455_v13, %s17741_s19  ;;  %v10602_v32 = vpop.permute.xlu1 %7211 }
 0x1e1   : > { %7451 = vrot.lane.b32.xlu0 %v9610_v46, %s17741_s19  ;;  %v10611_v52 = vpop.permute.xlu0 %7216  ;;  %v7213_v6 = vunpack.i.l.bf16 %v10602_v32 }
 0x1e4   : > { %v10609_v26 = vpop.permute.xlu1 %7221 }
 0x1e5   : > { %7461 = vrot.lane.b32.xlu0 %v7460_v2, %s17741_s19  ;;  %v10616_v46 = vpop.permute.xlu0 %7226 }
 0x1e8   : > { %v10614_v61 = vpop.permute.xlu1 %7231 }
 0x1e9   : > { %7471 = vrot.lane.b32.xlu0 %v7470_v5, %s17741_s19  ;;  %v10620_v42 = vpop.permute.xlu0 %7236 }
 0x1ea   : > { %18300 = vst [vmem:[#allocation34_spill] sm:$0xff] %v10620_v42 }
 0x1ec   : > { %v10618_v3 = vpop.permute.xlu1 %7241 }
 0x1ed   : > { %18299 = vst [vmem:[#allocation44_spill] sm:$0xff] %v10618_v3  ;;  %v10624_v20 = vpop.permute.xlu0 %7246 }
 0x1ee   : > { %18302 = vst [vmem:[#allocation154_spill] sm:$0xff] %v10624_v20 }
 0x1f0   : > { %v10622_v12 = vpop.permute.xlu1 %1539 }
 0x1f1   : > { %18301 = vst [vmem:[#allocation152_spill] sm:$0xff] %v10622_v12  ;;  %v10628_v9 = vpop.permute.xlu0 %7251 }
 0x1f2   : > { %v7254_v12 = vunpack.i.h.bf16 %v10628_v9  ;;  %v18313_v20 = vunpack.i.l.bf16 %v10628_v9 }
 0x1f4   : > { %v10626_v25 = vpop.permute.xlu1 %7256 }
 0x1f5   : > { %v10632_v51 = vpop.permute.xlu0 %7261 }
 0x1f8   : > { %v10630_v59 = vpop.permute.xlu1 %7266 }
 0x1f9   : > { %v10636_v34 = vpop.permute.xlu0 %7271 }
 0x1fc   : > { %v10634_v54 = vpop.permute.xlu1 %7276 }
 0x1fd   : > { %v10640_v44 = vpop.permute.xlu0 %7281 }
 0x1fe   : > { %18304 = vst [vmem:[#allocation23_spill] sm:$0xff] %v10640_v44 }
 0x200   : > { %v10638_v63 = vpop.permute.xlu1 %7286 }
 0x201   : > { %18303 = vst [vmem:[#allocation25_spill] sm:$0xff] %v10638_v63  ;;  %v10644_v13 = vpop.permute.xlu0 %7291 }
 0x202   : > { %18306 = vst [vmem:[#allocation2_spill] sm:$0xff] %v10644_v13  ;;  %v7123_v13 = vunpack.i.l.bf16 %v10435_v11 }
 0x204   : > { %v10642_v0 = vpop.permute.xlu1 %1597 }
 0x205   : > { %18305 = vst [vmem:[#allocation5_spill] sm:$0xff] %v10642_v0  ;;  %v7297_v5 = vpop.permute.xlu0 %7296 }
 0x206   : > { %v7299_v7 = vunpack.i.h.bf16 %v7297_v5  ;;  %v7298_v43 = vunpack.i.l.bf16 %v7297_v5 }
 0x208   : > { %v10646_v2 = vpop.permute.xlu1 %7301  ;;  %v1657_v62 = vsel %vm1656_vm15, %v7298_v43, %v7299_v7 }
 0x209   : > { %v17486_v30 = vunpack.i.l.bf16 %v10646_v2  ;;  %v10655_v8 = vpop.permute.xlu0 %7306  ;;  %v18325_v44 = vunpack.i.l.bf16 %v10646_v2 }
 0x20b   : > { %v1658_v37 = vsel %vm1656_vm15, %v7299_v7, %v17486_v30  ;;  %v7119_v7 = vunpack.i.h.bf16 %v10437_v14 }
 0x20c   : > { %v10653_v19 = vpop.permute.xlu1 %7311  ;;  %v7480_v10 = vpack.i.bf16 %v1658_v37, %v1657_v62 }
 0x20d   : > { %v10660_v24 = vpop.permute.xlu0 %7316  ;;  %v1429_v39 = vsel %vm17686_vm5, %v7119_v7, %v7123_v13 }
 0x20e   : > { %7481 = vrot.lane.b32.xlu0 %v7480_v10, %s17741_s19 }
 0x210   : > { %v10658_v31 = vpop.permute.xlu1 %7321 }
 0x211   : > { %18307 = vst [vmem:[#allocation151_spill] sm:$0xff] %v10658_v31  ;;  %v10664_v5 = vpop.permute.xlu0 %7326 }
 0x212   : > { %18309 = vst [vmem:[#allocation28_spill] sm:$0xff] %v10664_v5 }
 0x214   : > { %v10662_v0 = vpop.permute.xlu1 %7331 }
 0x215   : > { %18308 = vst [vmem:[#allocation9_spill] sm:$0xff] %v10662_v0  ;;  %v10668_v30 = vpop.permute.xlu0 %7336  ;;  %v1600_v0 = vsel %vm1599_vm3, %v18313_v20, %v7254_v12 }
 0x216   : > { %18311 = vst [vmem:[#allocation29_spill] sm:$0xff] %v10668_v30  ;;  %v18312_v30 = vunpack.i.l.bf16 %v10626_v25 }
 0x218   : > { %v10666_v40 = vpop.permute.xlu1 %1654  ;;  %v1601_v37 = vsel %vm1599_vm3, %v7254_v12, %v18312_v30  ;;  %v17508_v30 = vunpack.i.h.bf16 %v10561_v18 }
 0x219   : > { %18310 = vst [vmem:[#allocation8_spill] sm:$0xff] %v10666_v40  ;;  %v10675_v10 = vpop.permute.xlu0 %7341 }
 0x21a   : > { %v17498_v4 = vunpack.i.l.bf16 %v10675_v10  ;;  %v18327_v41 = vunpack.i.l.bf16 %v10675_v10 }
 0x21c   : > { %v10673_v62 = vpop.permute.xlu1 %7346  ;;  %v7490_v40 = vpack.i.bf16 %v17498_v4, %v7298_v43  ;;  %v7500_v43 = vpack.i.bf16 %v1601_v37, %v1600_v0  ;;  %v1430_v4 = vsel %vm17686_vm5, %v7123_v13, %v17503_v33  ;;  %v1485_v0 = vsel %vm1484_vm6, %v7163_v36, %v17508_v30 }
 0x21d   : > { %v10691_v48 = vpop.permute.xlu0 %7351  ;;  %v7510_v20 = vpack.i.bf16 %v1430_v4, %v1429_v39  ;;  %v18318_v39 = vld [vmem:[#allocation121_spill] sm:$0xff]  ;;  %v17525_v42 = vunpack.i.h.bf16 %v10673_v62 }
 0x21e   : > { %7491 = vrot.lane.b32.xlu0 %v7490_v40, %s17741_s19  ;;  %v7118_v40 = vunpack.i.l.bf16 %v10437_v14  ;;  %v7530_v14 = vpack.i.bf16 %v18318_v39, %v10513_v23  ;;  %v18322_v23 = vld [vmem:[#allocation111_spill] sm:$0xff] }
 0x220   : > { %v10689_v60 = vpop.permute.xlu1 %7356  ;;  %v1428_v33 = vsel %vm17686_vm5, %v7118_v40, %v7119_v7 }
 0x221   : > { %v10702_v12 = vpop.permute.xlu0 %7361  ;;  %v7520_v49 = vpack.i.bf16 %v1485_v0, %v1428_v33 }
 0x222   : > { %7501 = vrot.lane.b32.xlu0 %v7500_v43, %s17741_s19 }
 0x224   : > { %v10700_v56 = vpop.permute.xlu1 %7366 }
 0x226   : > { %v10711_v13 = vpop.permute.xlu0 %7371  ;;  %7511 = vrot.lane.b32.xlu0 %v7510_v20, %s17741_s19 }
 0x227   : > { %18315 = vst [vmem:[#allocation170_spill] sm:$0xff] %v10711_v13 }
 0x228   : > { %v10709_v37 = vpop.permute.xlu1 %7376 }
 0x229   : > { %18314 = vst [vmem:[#allocation45_spill] sm:$0xff] %v10709_v37  ;;  %v7209_v37 = vunpack.i.h.bf16 %v10604_v53 }
 0x22a   : > { %7521 = vrot.lane.b32.xlu0 %v7520_v49, %s17741_s19 }
 0x22b   : > { %v10717_v35 = vpop.permute.xlu0 %7381 }
 0x22c   : > { %v10715_v63 = vpop.permute.xlu1 %1711  ;;  %18317 = vst [vmem:[#allocation172_spill] sm:$0xff] %v10717_v35  ;;  %v18319_v35 = vunpack.i.h.bf16 %v9902_v16 }
 0x22d   : > { %18316 = vst [vmem:[#allocation171_spill] sm:$0xff] %v10715_v63  ;;  %v7214_v63 = vunpack.i.h.bf16 %v10602_v32 }
 0x22e   : > { %7531 = vrot.lane.b32.xlu0 %v7530_v14, %s17741_s19 }
 0x230   : > { %v10722_v36 = vpop.permute.xlu1 %7391 }
 0x231   : > { %v7387_v4 = vpop.permute.xlu0 %7386  ;;  %v17510_v43 = vunpack.i.l.bf16 %v10722_v36  ;;  %v17518_v14 = vunpack.i.h.bf16 %v10722_v36 }
 0x232   : > { %v7389_v30 = vunpack.i.h.bf16 %v7387_v4  ;;  %v7388_v20 = vunpack.i.l.bf16 %v7387_v4  ;;  %v7344_v4 = vunpack.i.h.bf16 %v10675_v10 }
 0x234   : > { %v1772_v7 = vsel %vm1770_vm11, %v7389_v30, %v17510_v43  ;;  %v1771_v49 = vsel %vm1770_vm11, %v7388_v20, %v7389_v30  ;;  %v18320_v43 = vunpack.i.l.bf16 %v9902_v16 }
 0x235   : > { %v10732_v40 = vpop.permute.xlu1 %7401  ;;  %v7465_v39 = vpack.i.bf16 %v1772_v7, %v1771_v49  ;;  %v18323_v7 = vld [vmem:[#allocation113_spill] sm:$0xff]  ;;  %v18324_v49 = vunpack.i.h.bf16 %v10646_v2 }
 0x236   : > { %v10734_v0 = vpop.permute.xlu0 %7396  ;;  %v10745_v30 = vsel %vm898_vm12, %v18320_v43, %v18319_v35  ;;  %v7475_v35 = vpack.i.bf16 %v10222_v50, %v7388_v20  ;;  %v1714_v50 = vsel %vm1713_vm4, %v18327_v41, %v7344_v4  ;;  %v7168_v20 = vunpack.i.l.bf16 %v10559_v29 }
 0x237   : > { %v7398_v33 = vunpack.i.l.bf16 %v10734_v0  ;;  %18321 = vst [vmem:[#allocation173_spill] sm:$0xff] %v10745_v30  ;;  %7466 = vrot.lane.b32.xlu1 %v7465_v39, %s17741_s19  ;;  %v1659_v5 = vsel %vm1656_vm15, %v18325_v44, %v18324_v49  ;;  %v18333_v49 = vld [vmem:[#allocation106_spill] sm:$0xff] }
 0x239   : > { %v1774_v17 = vsel %vm1770_vm11, %v17518_v14, %v7398_v33  ;;  %v18326_v14 = vunpack.i.l.bf16 %v10673_v62 }
 0x23a   : > { %v10757_v43 = vpop.permute.xlu1 %7411  ;;  %v7540_v39 = vpack.i.bf16 %v10745_v30, %v1774_v17  ;;  %v18328_v17 = vunpack.i.l.bf16 %v18323_v7  ;;  %v18329_v30 = vunpack.i.h.bf16 %v18322_v23 }
 0x23b   : > { %v10759_v3 = vpop.permute.xlu0 %7406  ;;  %v1715_v32 = vsel %vm1713_vm4, %v7344_v4, %v18326_v14  ;;  %7476 = vrot.lane.b32.xlu1 %v7475_v35, %s17741_s19  ;;  %v1544_v14 = vsel %vm1541_vm9, %v7213_v6, %v7214_v63 }
 0x23c   : > { %7541 = vrot.lane.b32.xlu0 %v7540_v39, %s17741_s19  ;;  %v10781_v44 = vsel %vm17658_vm7, %v18329_v30, %v18328_v17  ;;  %v7485_v4 = vpack.i.bf16 %v1715_v32, %v1714_v50  ;;  %v1543_v39 = vsel %vm1541_vm9, %v7209_v37, %v7213_v6  ;;  %v18332_v30 = vunpack.i.h.bf16 %v10734_v0 }
 0x23d   : > { %18330 = vst [vmem:[#allocation111_spill] sm:$0xff] %v10781_v44  ;;  %v7550_v35 = vpack.i.bf16 %v1659_v5, %v10781_v44  ;;  %v7208_v32 = vunpack.i.l.bf16 %v10604_v53  ;;  %v18334_v5 = vunpack.i.l.bf16 %v10691_v48  ;;  %v17527_v50 = vunpack.i.h.bf16 %v10559_v29 }
 0x23e   : > { %v10785_v10 = vpop.permute.xlu1 %7421  ;;  %v1775_v17 = vsel %vm1770_vm11, %v7398_v33, %v18332_v30  ;;  %v18336_v30 = vld [vmem:[#allocation104_spill] sm:$0xff]  ;;  %v18337_v53 = vunpack.i.l.bf16 %v10611_v52 }
 0x23f   : > { %18331 = vst [vmem:[#allocation113_spill] sm:$0xff] %v10785_v10  ;;  %v10787_v41 = vpop.permute.xlu0 %7416  ;;  %7486 = vrot.lane.b32.xlu1 %v7485_v4, %s17741_s19  ;;  %v1717_v6 = vsel %vm1713_vm4, %v17525_v42, %v18334_v5  ;;  %v7495_v4 = vpack.i.bf16 %v1544_v14, %v1543_v39  ;;  %v17526_v10 = vunpack.i.h.bf16 %v18336_v30  ;;  %v18338_v42 = vunpack.i.l.bf16 %v18333_v49 }
 0x240   : > { %7551 = vrot.lane.b32.xlu0 %v7550_v35, %s17741_s19  ;;  %v7560_v35 = vpack.i.bf16 %v1775_v17, %v1717_v6  ;;  %v1545_v13 = vsel %vm1541_vm9, %v7214_v63, %v18337_v53  ;;  %v1542_v39 = vsel %vm1541_vm9, %v7208_v32, %v7209_v37  ;;  %v17530_v17 = vunpack.i.l.bf16 %v10632_v51 }
 0x241   : > { %v10824_v14 = vsel %vm898_vm12, %v17526_v10, %v18338_v42  ;;  %v1487_v63 = vsel %vm1484_vm6, %v7168_v20, %v17527_v50  ;;  %v18340_v6 = vunpack.i.h.bf16 %v10561_v18  ;;  %v17534_v37 = vunpack.i.h.bf16 %v10626_v25 }
 0x242   : > { %v10807_v44 = vpop.permute.xlu1 %1768  ;;  %18339 = vst [vmem:[#allocation104_spill] sm:$0xff] %v10824_v14  ;;  %v7570_v42 = vpack.i.bf16 %v1545_v13, %v10824_v14  ;;  %v18342_v32 = vunpack.i.h.bf16 %v10655_v8  ;;  %v18343_v10 = vunpack.i.l.bf16 %v10655_v8  ;;  %v17532_v18 = vunpack.i.l.bf16 %v10689_v60 }
 0x243   : > { %18335 = vst [vmem:[#allocation106_spill] sm:$0xff] %v10807_v44  ;;  %v10809_v33 = vpop.permute.xlu0 %7426  ;;  %7496 = vrot.lane.b32.xlu1 %v7495_v4, %s17741_s19  ;;  %v1486_v4 = vsel %vm1484_vm6, %v18340_v6, %v7168_v20  ;;  %v17533_v20 = vunpack.i.h.bf16 %v10691_v48  ;;  %v1603_v13 = vsel %vm1599_vm3, %v17534_v37, %v17530_v17  ;;  %v232_v17 = vld [vmem:[%s17279_s1] sm:$0xff]  ;;  %v18350_v14 = vpack.i.bf16 %v18288_v21, %v18292_v38 }
 0x244   : > { %7561 = vrot.lane.b32.xlu0 %v7560_v35, %s17741_s19  ;;  %v18341_v35 = vunpack.i.l.bf16 %v10628_v9  ;;  %v1661_v50 = vsel %vm1656_vm15, %v18343_v10, %v18342_v32  ;;  %v17535_v9 = vunpack.i.l.bf16 %v10473_v15  ;;  %v7515_v10 = vpack.i.bf16 %v1487_v63, %v1486_v4 }
 0x245   : > { %v17537_v32 = vunpack.i.l.bf16 %v10609_v26  ;;  %v10873_v63 = vcombine.high %v232_v17, %v232_v17  ;;  %v18345_v4 = vunpack.i.h.bf16 %v10435_v11  ;;  %v18352_v17 = vunpack.i.h.bf16 %v9942_v47 }
 0x246   : > { %v7505_v53 = vpack.i.bf16 %v18341_v35, %v1542_v39  ;;  %v10836_v5 = vpop.permute.xlu1 %1797  ;;  %v7580_v35 = vpack.i.bf16 %v1661_v50, %v1603_v13  ;;  %v6858_v50 = vunpack.i.l.bf16 %v18322_v23  ;;  %v18358_v47 = vunpack.i.l.bf16 %v10630_v59 }
 0x247   : > { %v10838_v31 = vpop.permute.xlu0 %1791  ;;  %18344 = vst [vmem:[#allocation174_spill] sm:$0xff] %v10873_v63  ;;  %v1431_v13 = vsel %vm17686_vm5, %v18345_v4, %v17535_v9  ;;  %6352 = vmatprep.mubr.msk.bf16.mxu0 %vm17543_vm14, %v10873_v63  ;;  %6354 = vmatprep.mubr.msk.bf16.mxu1 %vm17543_vm14, %v10873_v63  ;;  %v18348_v9 = vunpack.i.h.bf16 %v10722_v36  ;;  %vm2219_vm14 = vcmask 367616   ;;  %v18376_v63 = vunpack.i.l.bf16 %v18323_v7 }
 0x248   : > { %7506 = vrot.lane.b32.xlu1 %v7505_v53, %s17741_s19  ;;  %7571 = vrot.lane.b32.xlu0 %v7570_v42, %s17741_s19  ;;  %v17538_v53 = vunpack.i.h.bf16 %v10611_v52  ;;  %v1719_v42 = vsel %vm1713_vm4, %v17533_v20, %v17532_v18  ;;  %v7174_v18 = vunpack.i.h.bf16 %v10569_v45  ;;  %v6808_v20 = vunpack.i.l.bf16 %v18336_v30 }
 0x249   : > { %v10913_v4 = vsel %vm17658_vm7, %v18352_v17, %v6858_v50  ;;  %v18359_v17 = vunpack.i.h.bf16 %v10632_v51 }
 0x24a   : > { %v10857_v39 = vpop.permute.xlu1 %7436  ;;  %v1547_v11 = vsel %vm1541_vm9, %v17538_v53, %v17537_v32  ;;  %v18351_v32 = vld [vmem:[#allocation22_spill] sm:$0xff] }
 0x24b   : > { %v10859_v6 = vpop.permute.xlu0 %7431  ;;  %18353 = vst [vmem:[#allocation22_spill] sm:$0xff] %v10913_v4  ;;  %v1605_v53 = vsel %vm1599_vm3, %v18359_v17, %v18358_v47  ;;  %v18366_v17 = vunpack.i.l.bf16 %v10567_v28 }
 0x24c   : > { %7516 = vrot.lane.b32.xlu1 %v7515_v10, %s17741_s19  ;;  %7581 = vrot.lane.b32.xlu0 %v7580_v35, %s17741_s19  ;;  %v7590_v35 = vpack.i.bf16 %v1431_v13, %v1719_v42  ;;  %v18349_v42 = vunpack.i.l.bf16 %v10722_v36  ;;  %v18354_v36 = vunpack.i.l.bf16 %v10569_v45 }
 0x24e   : > { %v10883_v37 = vpop.permute.xlu1 %7446  ;;  %v1773_v13 = vsel %vm1770_vm11, %v18349_v42, %v18348_v9  ;;  %v1489_v9 = vsel %vm1484_vm6, %v18354_v36, %v7174_v18  ;;  %v18355_v42 = vunpack.i.h.bf16 %v18322_v23  ;;  %v18360_v36 = vunpack.i.h.bf16 %v9902_v16 }
 0x24f   : > { %18346 = vst [vmem:[#allocation175_spill] sm:$0xff] %v10883_v37  ;;  %v10885_v10 = vpop.permute.xlu0 %7441 }
 0x250   : > { %18347 = vst [vmem:[#allocation176_spill] sm:$0xff] %v10885_v10  ;;  %7526 = vrot.lane.b32.xlu1 %v18350_v14, %s17741_s19  ;;  %7591 = vrot.lane.b32.xlu0 %v7590_v35, %s17741_s19  ;;  %v10921_v37 = vsel %vm17658_vm7, %v6858_v50, %v18355_v42  ;;  %v7535_v14 = vpack.i.bf16 %v1773_v13, %v10913_v4  ;;  %v18364_v13 = vunpack.i.l.bf16 %v18351_v32  ;;  %v18369_v10 = vld [vmem:[#allocation27_spill] sm:$0xff] }
 0x251   : > { %18356 = vst [vmem:[#allocation177_spill] sm:$0xff] %v10921_v37  ;;  %v7600_v35 = vpack.i.bf16 %v1547_v11, %v1489_v9  ;;  %v10935_v23 = vsel %vm898_vm12, %v18360_v36, %v6808_v20  ;;  %v18363_v11 = vunpack.i.h.bf16 %v18351_v32  ;;  %v1490_v36 = vsel %vm1484_vm6, %v7174_v18, %v18366_v17 }
 0x252   : > { %18361 = vst [vmem:[#allocation179_spill] sm:$0xff] %v10935_v23  ;;  %v10939_v21 = vpop.permute.xlu1 %7456  ;;  %v7545_v16 = vpack.i.bf16 %v10921_v37, %v10935_v23  ;;  %v18370_v17 = vunpack.i.h.bf16 %v10471_v1 }
 0x253   : > { %v10924_v38 = vpop.permute.xlu0 %7451  ;;  %18362 = vst [vmem:[#allocation180_spill] sm:$0xff] %v10939_v21  ;;  %v10948_v9 = vsel %vm17625_vm0, %v18364_v13, %v18363_v11 }
 0x254   : > { %18357 = vst [vmem:[#allocation178_spill] sm:$0xff] %v10924_v38  ;;  %7536 = vrot.lane.b32.xlu1 %v7535_v14, %s17741_s19  ;;  %7601 = vrot.lane.b32.xlu0 %v7600_v35, %s17741_s19  ;;  %18365 = vst [vmem:[#allocation181_spill] sm:$0xff] %v10948_v9  ;;  %v18367_v14 = vunpack.i.h.bf16 %v10673_v62  ;;  %v18368_v35 = vunpack.i.l.bf16 %v10673_v62  ;;  %v7610_v11 = vpack.i.bf16 %v10948_v9, %v1605_v53  ;;  %v7459_v38 = vunpack.i.h.bf16 %v10939_v21 }
 0x255   : > { %v18371_v62 = vunpack.i.l.bf16 %v10471_v1  ;;  %v18372_v53 = vunpack.i.l.bf16 %v10655_v8 }
 0x256   : > { %v1716_v42 = vsel %vm1713_vm4, %v18368_v35, %v18367_v14  ;;  %v18373_v35 = vunpack.i.h.bf16 %v10646_v2 }
 0x257   : > { %v10961_v50 = vpop.permute.xlu0 %7461  ;;  %v1434_v14 = vsel %vm17686_vm5, %v18371_v62, %v18370_v17 }
 0x258   : > { %v17551_v47 = vunpack.i.h.bf16 %v10961_v50  ;;  %v7463_v37 = vunpack.i.l.bf16 %v10961_v50  ;;  %7546 = vrot.lane.b32.xlu1 %v7545_v16, %s17741_s19  ;;  %7611 = vrot.lane.b32.xlu0 %v7610_v11, %s17741_s19  ;;  %v1660_v13 = vsel %vm1656_vm15, %v18373_v35, %v18372_v53  ;;  %v7620_v17 = vpack.i.bf16 %v1490_v36, %v1434_v14  ;;  %v18374_v16 = vld [vmem:[#allocation24_spill] sm:$0xff] }
 0x259   : > { %v7555_v44 = vpack.i.bf16 %v1716_v42, %v1660_v13  ;;  %v17554_v4 = vunpack.i.h.bf16 %v18374_v16  ;;  %v18375_v11 = vunpack.i.h.bf16 %v18323_v7  ;;  %v18378_v53 = vunpack.i.l.bf16 %v10732_v40 }
 0x25a   : > { %v2401_v18 = vsel %vm2219_vm14, %v7463_v37, %v17551_v47  ;;  %v2400_v21 = vsel %vm2219_vm14, %v7459_v38, %v7463_v37  ;;  %v18379_v35 = vunpack.i.h.bf16 %v10734_v0  ;;  %v7408_v37 = vunpack.i.l.bf16 %v10759_v3 }
 0x25b   : > { %v2851_v62 = vpack.c.bf16 %v2401_v18, %v2401_v18  ;;  %v2850_v23 = vpack.c.bf16 %v2400_v21, %v2400_v21  ;;  %v10991_v2 = vsel %vm17658_vm7, %v18376_v63, %v18375_v11  ;;  %v18380_v38 = vunpack.i.l.bf16 %v18369_v10  ;;  %v18388_v11 = vld [vmem:[#allocation115_spill] sm:$0xff] }
 0x25c   : > { %18377 = vst [vmem:[#allocation27_spill] sm:$0xff] %v10991_v2  ;;  %v1776_v47 = vsel %vm1770_vm11, %v18379_v35, %v18378_v53  ;;  %7556 = vrot.lane.b32.xlu1 %v7555_v44, %s17741_s19  ;;  %7621 = vrot.lane.b32.xlu0 %v7620_v17, %s17741_s19  ;;  %v18382_v42 = vunpack.i.h.bf16 %v18336_v30  ;;  %v17552_v36 = vunpack.i.h.bf16 %v18333_v49  ;;  %v17553_v44 = vunpack.i.h.bf16 %v10732_v40 }
 0x25d   : > { %v2880_v21 = vsel %vm17873_vm13, %v2850_v23, 0  ;;  %v11007_v63 = vsel %vm17625_vm0, %v17554_v4, %v18380_v38  ;;  %6351 = vmatprep.subr.msk.bf16.mxu0 %vm17873_vm13, %v2851_v62  ;;  %v18384_v18 = vunpack.i.h.bf16 %v10626_v25  ;;  %v18385_v14 = vunpack.i.l.bf16 %v10626_v25 }
 0x25e   : > { %18381 = vst [vmem:[#allocation24_spill] sm:$0xff] %v11007_v63  ;;  %v11012_v0 = vsel %vm898_vm12, %v6808_v20, %v18382_v42  ;;  %2954 = vmatpush2.bf16.msra.mxu0 %v2880_v21  ;;  %v7630_v13 = vpack.i.bf16 %v10991_v2, %v11007_v63  ;;  %v17557_v20 = vunpack.i.h.bf16 %v10653_v19  ;;  %v7313_v17 = vunpack.i.l.bf16 %v10653_v19 }
 0x25f   : > { %18383 = vst [vmem:[#allocation182_spill] sm:$0xff] %v11012_v0  ;;  %v7565_v23 = vpack.i.bf16 %v11012_v0, %v1776_v47  ;;  %v1602_v30 = vsel %vm1599_vm3, %v18385_v14, %v18384_v18  ;;  %v1778_v62 = vsel %vm1770_vm11, %v17553_v44, %v7408_v37  ;;  %v18386_v47 = vunpack.i.l.bf16 %v18333_v49  ;;  %v18391_v18 = vld [vmem:[#allocation112_spill] sm:$0xff] }
 0x260   : > { %7631 = vrot.lane.b32.xlu0 %v7630_v13, %s17741_s19  ;;  %v17555_v53 = vunpack.i.l.bf16 %v18388_v11  ;;  %v18389_v35 = vunpack.i.h.bf16 %v10611_v52  ;;  %v18390_v21 = vunpack.i.l.bf16 %v10611_v52  ;;  %v6869_v13 = vunpack.i.h.bf16 %v18391_v18 }
 0x261   : > { %7566 = vrot.lane.b32.xlu1 %v7565_v23, %s17741_s19  ;;  %v11037_v25 = vsel %vm898_vm12, %v18386_v47, %v17552_v36  ;;  %v1663_v14 = vsel %vm1656_vm15, %v7313_v17, %v17557_v20  ;;  %v18392_v47 = vunpack.i.h.bf16 %v10691_v48  ;;  %v18393_v36 = vunpack.i.l.bf16 %v10691_v48 }
 0x262   : > { %18387 = vst [vmem:[#allocation183_spill] sm:$0xff] %v11037_v25  ;;  %v1546_v38 = vsel %vm1541_vm9, %v18390_v21, %v18389_v35  ;;  %v7640_v23 = vpack.i.bf16 %v11037_v25, %v1778_v62  ;;  %v17556_v4 = vunpack.i.h.bf16 %v10759_v3  ;;  %v11063_v52 = vsel %vm17658_vm7, %v6869_v13, %v17555_v53 }
 0x263   : > { %v7575_v42 = vpack.i.bf16 %v1602_v30, %v1546_v38  ;;  %v1718_v44 = vsel %vm1713_vm4, %v18393_v36, %v18392_v47  ;;  %18394 = vst [vmem:[#allocation115_spill] sm:$0xff] %v11063_v52  ;;  %v7129_v30 = vunpack.i.h.bf16 %v10473_v15  ;;  %v18395_v62 = vunpack.i.h.bf16 %v10655_v8 }
 0x264   : > { %7641 = vrot.lane.b32.xlu0 %v7640_v23, %s17741_s19  ;;  %v17558_v36 = vunpack.i.l.bf16 %v10702_v12  ;;  %v7650_v21 = vpack.i.bf16 %v1663_v14, %v11063_v52  ;;  %v18396_v38 = vunpack.i.l.bf16 %v10569_v45  ;;  %v17559_v47 = vunpack.i.l.bf16 %v10616_v46 }
 0x265   : > { %7576 = vrot.lane.b32.xlu1 %v7575_v42, %s17741_s19  ;;  %v1662_v48 = vsel %vm1656_vm15, %v18395_v62, %v7313_v17  ;;  %v18397_v42 = vunpack.i.h.bf16 %v10559_v29  ;;  %v17572_v53 = vunpack.i.h.bf16 %v10689_v60  ;;  %v1779_v8 = vsel %vm1770_vm11, %v7408_v37, %v17556_v4 }
 0x266   : > { %v7585_v35 = vpack.i.bf16 %v1718_v44, %v1662_v48  ;;  %v18398_v44 = vld [vmem:[#allocation108_spill] sm:$0xff]  ;;  %v18399_v45 = vunpack.i.l.bf16 %v10473_v15  ;;  %v7224_v14 = vunpack.i.h.bf16 %v10609_v26  ;;  %v18400_v48 = vld [vmem:[#allocation105_spill] sm:$0xff]  ;;  %v18401_v15 = vunpack.i.h.bf16 %v10632_v51 }
 0x267   : > { %v1488_v23 = vsel %vm1484_vm6, %v18397_v42, %v18396_v38  ;;  %v17561_v17 = vunpack.i.l.bf16 %v18398_v44  ;;  %v1721_v62 = vsel %vm1713_vm4, %v17572_v53, %v17558_v36  ;;  %v17568_v37 = vunpack.i.h.bf16 %v18400_v48 }
 0x268   : > { %7651 = vrot.lane.b32.xlu0 %v7650_v21, %s17741_s19  ;;  %v1432_v29 = vsel %vm17686_vm5, %v18399_v45, %v7129_v30  ;;  %v1549_v21 = vsel %vm1541_vm9, %v7224_v14, %v17559_v47  ;;  %v18402_v42 = vunpack.i.l.bf16 %v10632_v51  ;;  %v17560_v4 = vunpack.i.h.bf16 %v10660_v24 }
 0x269   : > { %7586 = vrot.lane.b32.xlu1 %v7585_v35, %s17741_s19  ;;  %v7595_v38 = vpack.i.bf16 %v1488_v23, %v1432_v29  ;;  %v7660_v35 = vpack.i.bf16 %v1779_v8, %v1721_v62  ;;  %v17571_v20 = vunpack.i.l.bf16 %v10660_v24  ;;  %v6443_v23 = vunpack.i.l.bf16 %v18374_v16 }
 0x26a   : > { %v1604_v45 = vsel %vm1599_vm3, %v18402_v42, %v18401_v15  ;;  %v11112_v8 = vsel %vm898_vm12, %v17568_v37, %v17561_v17  ;;  %v18404_v51 = vunpack.i.l.bf16 %v10609_v26  ;;  %v17562_v62 = vunpack.i.l.bf16 %v10636_v34 }
 0x26b   : > { %18403 = vst [vmem:[#allocation112_spill] sm:$0xff] %v11112_v8  ;;  %v18405_v15 = vunpack.i.l.bf16 %v10471_v1  ;;  %v7670_v36 = vpack.i.bf16 %v1549_v21, %v11112_v8  ;;  %v17564_v47 = vunpack.i.h.bf16 %v10630_v59  ;;  %v1665_v26 = vsel %vm1656_vm15, %v17571_v20, %v17560_v4  ;;  %v18444_v8 = vld [vmem:[#allocation33_spill] sm:$0xff] }
 0x26c   : > { %7661 = vrot.lane.b32.xlu0 %v7660_v35, %s17741_s19  ;;  %v1548_v29 = vsel %vm1541_vm9, %v18404_v51, %v7224_v14  ;;  %v17563_v35 = vunpack.i.h.bf16 %v10567_v28  ;;  %v17565_v14 = vunpack.i.l.bf16 %v10700_v56  ;;  %v17566_v51 = vunpack.i.h.bf16 %v10702_v12 }
 0x26d   : > { %7596 = vrot.lane.b32.xlu1 %v7595_v38, %s17741_s19  ;;  %v1433_v38 = vsel %vm17686_vm5, %v7129_v30, %v18405_v15  ;;  %v7605_v42 = vpack.i.bf16 %v1604_v45, %v1548_v29  ;;  %v18406_v30 = vunpack.i.h.bf16 %v18351_v32  ;;  %v17567_v45 = vunpack.i.l.bf16 %v10503_v55 }
 0x26e   : > { %v1607_v29 = vsel %vm1599_vm3, %v17564_v47, %v17562_v62  ;;  %v1723_v17 = vsel %vm1713_vm4, %v17566_v51, %v17565_v14  ;;  %v18409_v62 = vunpack.i.h.bf16 %v18374_v16  ;;  %v7184_v14 = vunpack.i.h.bf16 %v10577_v58 }
 0x26f   : > { %v11136_v21 = vsel %vm17625_vm0, %v18406_v30, %v6443_v23  ;;  %v7680_v4 = vpack.i.bf16 %v1665_v26, %v1607_v29  ;;  %v17570_v30 = vunpack.i.h.bf16 %v10616_v46  ;;  %v18411_v26 = vld [vmem:[#allocation26_spill] sm:$0xff]  ;;  %v17573_v16 = vunpack.i.l.bf16 %v10577_v58 }
 0x270   : > { %7671 = vrot.lane.b32.xlu0 %v7670_v36, %s17741_s19  ;;  %18407 = vst [vmem:[#allocation108_spill] sm:$0xff] %v11136_v21  ;;  %v7615_v15 = vpack.i.bf16 %v1433_v38, %v11136_v21  ;;  %v18408_v36 = vunpack.i.l.bf16 %v10567_v28  ;;  %v11160_v38 = vsel %vm17625_vm0, %v6443_v23, %v18409_v62  ;;  %v6454_v29 = vunpack.i.h.bf16 %v18411_v26  ;;  %v18531_v21 = vld [vmem:[#allocation44_spill] sm:$0xff] }
 0x271   : > { %7606 = vrot.lane.b32.xlu1 %v7605_v42, %s17741_s19  ;;  %v17569_v42 = vunpack.i.l.bf16 %v10614_v61  ;;  %18410 = vst [vmem:[#allocation105_spill] sm:$0xff] %v11160_v38  ;;  %v6453_v23 = vunpack.i.l.bf16 %v18411_v26  ;;  %v6449_v62 = vunpack.i.h.bf16 %v18369_v10  ;;  %v18414_v37 = vunpack.i.l.bf16 %v10732_v40 }
 0x272   : > { %v1491_v32 = vsel %vm1484_vm6, %v18408_v36, %v17563_v35  ;;  %v6868_v36 = vunpack.i.l.bf16 %v18391_v18  ;;  %v18412_v35 = vunpack.i.h.bf16 %v10471_v1  ;;  %v17574_v1 = vunpack.i.l.bf16 %v10634_v54 }
 0x273   : > { %v18417_v20 = vunpack.i.h.bf16 %v18323_v7  ;;  %v18422_v7 = vunpack.i.l.bf16 %v18369_v10  ;;  %v18427_v18 = vunpack.i.h.bf16 %v18333_v49  ;;  %v18433_v52 = vunpack.i.h.bf16 %v10689_v60 }
 0x274   : > { %7681 = vrot.lane.b32.xlu0 %v7680_v4, %s17741_s19  ;;  %v1435_v47 = vsel %vm17686_vm5, %v18412_v35, %v17567_v45  ;;  %v1551_v4 = vsel %vm1541_vm9, %v17570_v30, %v17569_v42  ;;  %v17575_v35 = vunpack.i.h.bf16 %v10636_v34  ;;  %v18413_v45 = vunpack.i.h.bf16 %v10732_v40 }
 0x275   : > { %7616 = vrot.lane.b32.xlu1 %v7615_v15, %s17741_s19  ;;  %v7625_v15 = vpack.i.bf16 %v11160_v38, %v1491_v32  ;;  %v7690_v51 = vpack.i.bf16 %v1435_v47, %v1723_v17  ;;  %v6818_v30 = vunpack.i.l.bf16 %v18400_v48  ;;  %v11198_v53 = vsel %vm17658_vm7, %v18417_v20, %v6868_v36 }
 0x276   : > { %v1777_v26 = vsel %vm1770_vm11, %v18414_v37, %v18413_v45  ;;  %18418 = vst [vmem:[#allocation26_spill] sm:$0xff] %v11198_v53  ;;  %v1493_v40 = vsel %vm1484_vm6, %v17573_v16, %v7184_v14  ;;  %v11206_v45 = vsel %vm17625_vm0, %v6453_v23, %v6454_v29  ;;  %v11215_v20 = vsel %vm17625_vm0, %v18422_v7, %v6449_v62 }
 0x277   : > { %18420 = vst [vmem:[#allocation184_spill] sm:$0xff] %v11206_v45  ;;  %v7635_v42 = vpack.i.bf16 %v1777_v26, %v11198_v53  ;;  %v7700_v17 = vpack.i.bf16 %v1551_v4, %v1493_v40  ;;  %18423 = vst [vmem:[#allocation186_spill] sm:$0xff] %v11215_v20  ;;  %v11220_v16 = vsel %vm17658_vm7, %v6868_v36, %v6869_v13  ;;  %v18425_v26 = vld [vmem:[#allocation30_spill] sm:$0xff]  ;;  %v18426_v40 = vld [vmem:[#allocation31_spill] sm:$0xff]  ;;  %v18432_v36 = vunpack.i.l.bf16 %v10575_v22 }
 0x278   : > { %7691 = vrot.lane.b32.xlu0 %v7690_v51, %s17741_s19  ;;  %18424 = vst [vmem:[#allocation187_spill] sm:$0xff] %v11220_v16  ;;  %v6464_v4 = vunpack.i.h.bf16 %v18425_v26  ;;  %v6463_v10 = vunpack.i.l.bf16 %v18425_v26  ;;  %v6458_v7 = vunpack.i.l.bf16 %v18426_v40  ;;  %v11237_v13 = vsel %vm898_vm12, %v18427_v18, %v6818_v30 }
 0x279   : > { %7626 = vrot.lane.b32.xlu1 %v7625_v15, %s17741_s19  ;;  %v11209_v15 = vsel %vm17625_vm0, %v6449_v62, %v6453_v23  ;;  %v1609_v23 = vsel %vm1599_vm3, %v17575_v35, %v17574_v1  ;;  %v6459_v62 = vunpack.i.h.bf16 %v18426_v40  ;;  %18428 = vst [vmem:[#allocation30_spill] sm:$0xff] %v11237_v13  ;;  %v7645_v51 = vpack.i.bf16 %v11220_v16, %v11237_v13  ;;  %v18477_v35 = vld [vmem:[#allocation38_spill] sm:$0xff] }
 0x27a   : > { %18421 = vst [vmem:[#allocation185_spill] sm:$0xff] %v11209_v15  ;;  %v7710_v40 = vpack.i.bf16 %v11215_v20, %v1609_v23  ;;  %v1494_v1 = vsel %vm1484_vm6, %v7184_v14, %v18432_v36  ;;  %v18434_v26 = vunpack.i.l.bf16 %v10689_v60  ;;  %v11261_v25 = vsel %vm17625_vm0, %v6463_v10, %v6464_v4 }
 0x27b   : > { %18435 = vst [vmem:[#allocation31_spill] sm:$0xff] %v11261_v25  ;;  %v11271_v36 = vsel %vm17625_vm0, %v6459_v62, %v6463_v10  ;;  %v11274_v60 = vsel %vm17625_vm0, %v6454_v29, %v6458_v7  ;;  %v18442_v18 = vunpack.i.l.bf16 %v10660_v24  ;;  %v6469_v14 = vunpack.i.h.bf16 %v18444_v8 }
 0x27c   : > { %7701 = vrot.lane.b32.xlu0 %v7700_v17, %s17741_s19  ;;  %v1720_v16 = vsel %vm1713_vm4, %v18434_v26, %v18433_v52  ;;  %v11264_v17 = vsel %vm17625_vm0, %v6458_v7, %v6459_v62  ;;  %18438 = vst [vmem:[#allocation189_spill] sm:$0xff] %v11271_v36  ;;  %18439 = vst [vmem:[#allocation190_spill] sm:$0xff] %v11274_v60  ;;  %v18440_v52 = vunpack.i.h.bf16 %v10501_v27  ;;  %v18441_v26 = vunpack.i.l.bf16 %v10501_v27 }
 0x27d   : > { %7636 = vrot.lane.b32.xlu1 %v7635_v42, %s17741_s19  ;;  %18436 = vst [vmem:[#allocation188_spill] sm:$0xff] %v11264_v17  ;;  %v6468_v10 = vunpack.i.l.bf16 %v18444_v8  ;;  %v18445_v29 = vunpack.i.h.bf16 %v18388_v11  ;;  %v18446_v7 = vunpack.i.l.bf16 %v18388_v11  ;;  %v18459_v8 = vld [vmem:[#allocation151_spill] sm:$0xff]  ;;  %v18460_v42 = vunpack.i.h.bf16 %v10757_v43 }
 0x27e   : > { %v1438_v23 = vsel %vm17686_vm5, %v18441_v26, %v18440_v52  ;;  %v18448_v52 = vunpack.i.l.bf16 %v10757_v43  ;;  %v18449_v26 = vunpack.i.h.bf16 %v10759_v3  ;;  %v18530_v47 = vunpack.i.l.bf16 %v10575_v22 }
 0x27f   : > { %v7720_v49 = vpack.i.bf16 %v1494_v1, %v1438_v23  ;;  %v11293_v20 = vsel %vm17658_vm7, %v18446_v7, %v18445_v29  ;;  %v18453_v7 = vunpack.i.h.bf16 %v18400_v48  ;;  %v18456_v1 = vld [vmem:[#allocation16_spill] sm:$0xff] }
 0x280   : > { %7711 = vrot.lane.b32.xlu0 %v7710_v40, %s17741_s19  ;;  %18447 = vst [vmem:[#allocation33_spill] sm:$0xff] %v11293_v20  ;;  %v7730_v3 = vpack.i.bf16 %v11293_v20, %v11274_v60  ;;  %v18469_v60 = vunpack.i.h.bf16 %v10616_v46 }
 0x281   : > { %7646 = vrot.lane.b32.xlu1 %v7645_v51, %s17741_s19  ;;  %v18443_v51 = vunpack.i.h.bf16 %v10653_v19  ;;  %v1780_v19 = vsel %vm1770_vm11, %v18449_v26, %v18448_v52  ;;  %v11314_v52 = vsel %vm898_vm12, %v6818_v30, %v18453_v7  ;;  %v18457_v30 = vunpack.i.h.bf16 %v10630_v59 }
 0x282   : > { %18454 = vst [vmem:[#allocation191_spill] sm:$0xff] %v11314_v52  ;;  %v7665_v29 = vpack.i.bf16 %v11314_v52, %v1780_v19  ;;  %v18458_v7 = vunpack.i.l.bf16 %v10630_v59  ;;  %v11347_v59 = vsel %vm17625_vm0, %v6464_v4, %v6468_v10 }
 0x283   : > { %v1664_v40 = vsel %vm1656_vm15, %v18443_v51, %v18442_v18  ;;  %v7418_v18 = vunpack.i.l.bf16 %v10787_v41  ;;  %v18450_v51 = vld [vmem:[#allocation17_spill] sm:$0xff]  ;;  %18464 = vst [vmem:[#allocation194_spill] sm:$0xff] %v11347_v59 }
 0x284   : > { %v7655_v62 = vpack.i.bf16 %v1720_v16, %v1664_v40  ;;  %v18451_v16 = vld [vmem:[#allocation32_spill] sm:$0xff]  ;;  %7721 = vrot.lane.b32.xlu0 %v7720_v49, %s17741_s19  ;;  %v11321_v49 = vsel %vm17625_vm0, %v6468_v10, %v6469_v14  ;;  %v1606_v26 = vsel %vm1599_vm3, %v18458_v7, %v18457_v30  ;;  %v18465_v30 = vunpack.i.h.bf16 %v18398_v44 }
 0x285   : > { %v6473_v23 = vunpack.i.l.bf16 %v18451_v16  ;;  %18455 = vst [vmem:[#allocation192_spill] sm:$0xff] %v11321_v49  ;;  %v1782_v19 = vsel %vm1770_vm11, %v18460_v42, %v7418_v18  ;;  %v18461_v52 = vunpack.i.h.bf16 %v18451_v16  ;;  %v18466_v7 = vunpack.i.l.bf16 %v18398_v44 }
 0x286   : > { %7656 = vrot.lane.b32.xlu1 %v7655_v62, %s17741_s19  ;;  %v7323_v62 = vunpack.i.l.bf16 %v18459_v8  ;;  %v18487_v10 = vunpack.i.h.bf16 %v10567_v28  ;;  %v18489_v49 = vunpack.i.h.bf16 %v10787_v41  ;;  %v18493_v28 = vld [vmem:[#allocation37_spill] sm:$0xff]  ;;  %v17608_v16 = vunpack.i.l.bf16 %v18531_v21 }
 0x287   : > { %v11341_v20 = vsel %vm17625_vm0, %v6473_v23, %v18461_v52  ;;  %v11344_v48 = vsel %vm17625_vm0, %v6469_v14, %v6473_v23  ;;  %v11356_v42 = vsel %vm898_vm12, %v18466_v7, %v18465_v30  ;;  %v18470_v14 = vunpack.i.l.bf16 %v10616_v46  ;;  %v18473_v30 = vld [vmem:[#allocation114_spill] sm:$0xff] }
 0x288   : > { %18462 = vst [vmem:[#allocation151_spill] sm:$0xff] %v11341_v20  ;;  %18463 = vst [vmem:[#allocation193_spill] sm:$0xff] %v11344_v48  ;;  %7731 = vrot.lane.b32.xlu0 %v7730_v3, %s17741_s19  ;;  %v7740_v13 = vpack.i.bf16 %v11356_v42, %v1782_v19  ;;  %v17592_v7 = vunpack.i.h.bf16 %v18473_v30  ;;  %v18474_v52 = vunpack.i.h.bf16 %v18459_v8  ;;  %v18475_v46 = vunpack.i.h.bf16 %v10702_v12  ;;  %v18482_v23 = vld [vmem:[#allocation170_spill] sm:$0xff]  ;;  %v18516_v20 = vld [vmem:[#allocation45_spill] sm:$0xff] }
 0x289   : > { %18467 = vst [vmem:[#allocation195_spill] sm:$0xff] %v11356_v42  ;;  %v1550_v4 = vsel %vm1541_vm9, %v18470_v14, %v18469_v60  ;;  %v18476_v60 = vunpack.i.l.bf16 %v10702_v12  ;;  %v17597_v42 = vunpack.i.h.bf16 %v10700_v56  ;;  %v1783_v32 = vsel %vm1770_vm11, %v7418_v18, %v18489_v49 }
 0x28a   : > { %7666 = vrot.lane.b32.xlu1 %v7665_v29, %s17741_s19  ;;  %v18472_v29 = vld [vmem:[#allocation36_spill] sm:$0xff]  ;;  %v7675_v38 = vpack.i.bf16 %v1606_v26, %v1550_v4  ;;  %v1667_v2 = vsel %vm1656_vm15, %v7323_v62, %v18474_v52  ;;  %v6503_v26 = vunpack.i.l.bf16 %v18477_v35  ;;  %v18478_v4 = vld [vmem:[#allocation39_spill] sm:$0xff]  ;;  %v18479_v52 = vunpack.i.l.bf16 %v18468_v57 }
 0x28b   : > { %v6494_v3 = vunpack.i.h.bf16 %v18472_v29  ;;  %v6493_v37 = vunpack.i.l.bf16 %v18472_v29  ;;  %v1722_v14 = vsel %vm1713_vm4, %v18476_v60, %v18475_v46  ;;  %v6499_v19 = vunpack.i.h.bf16 %v18478_v4 }
 0x28c   : > { %v6498_v29 = vunpack.i.l.bf16 %v18478_v4  ;;  %7741 = vrot.lane.b32.xlu0 %v7740_v13, %s17741_s19  ;;  %v11390_v12 = vsel %vm17658_vm7, %v17592_v7, %v18479_v52  ;;  %v7139_v46 = vunpack.i.h.bf16 %v10503_v55  ;;  %v18481_v60 = vunpack.i.h.bf16 %v10660_v24  ;;  %v11397_v4 = vpop.permute.xlu0 %7471 }
 0x28d   : > { %18480 = vst [vmem:[#allocation117_spill] sm:$0xff] %v11390_v12  ;;  %18483 = vst [vmem:[#allocation36_spill] sm:$0xff] %v11397_v4  ;;  %v7750_v53 = vpack.i.bf16 %v1667_v2, %v11390_v12  ;;  %v18486_v7 = vunpack.i.l.bf16 %v10577_v58  ;;  %v18494_v58 = vunpack.i.h.bf16 %v18493_v28  ;;  %v18497_v18 = vunpack.i.l.bf16 %v10503_v55  ;;  %v18499_v28 = vld [vmem:[#allocation107_spill] sm:$0xff]  ;;  %v18505_v12 = vld [vmem:[#allocation41_spill] sm:$0xff] }
 0x28e   : > { %7676 = vrot.lane.b32.xlu1 %v7675_v38, %s17741_s19  ;;  %v1666_v63 = vsel %vm1656_vm15, %v18481_v60, %v7323_v62  ;;  %v11400_v38 = vsel %vm17626_vm2, %v6493_v37, %v6494_v3  ;;  %v18488_v62 = vld [vmem:[#allocation34_spill] sm:$0xff]  ;;  %v18498_v60 = vunpack.i.l.bf16 %v18482_v23  ;;  %v11444_v52 = vsel %vm17626_vm2, %v6494_v3, %v6498_v29 }
 0x28f   : > { %18484 = vst [vmem:[#allocation114_spill] sm:$0xff] %v11400_v38  ;;  %v7685_v13 = vpack.i.bf16 %v1722_v14, %v1666_v63  ;;  %v1492_v24 = vsel %vm1484_vm6, %v18487_v10, %v18486_v7  ;;  %v18490_v63 = vunpack.i.h.bf16 %v18477_v35  ;;  %v11421_v14 = vsel %vm17626_vm2, %v6498_v29, %v6499_v19  ;;  %v18496_v7 = vld [vmem:[#allocation110_spill] sm:$0xff]  ;;  %18500 = vst [vmem:[#allocation34_spill] sm:$0xff] %v11444_v52 }
 0x290   : > { %18492 = vst [vmem:[#allocation39_spill] sm:$0xff] %v11421_v14  ;;  %7751 = vrot.lane.b32.xlu0 %v7750_v53, %s17741_s19  ;;  %v11428_v10 = vsel %vm17626_vm2, %v18494_v58, %v6493_v37  ;;  %v1436_v49 = vsel %vm17686_vm5, %v18497_v18, %v7139_v46  ;;  %v11440_v53 = vpop.permute.xlu0 %7481  ;;  %v18501_v55 = vunpack.i.l.bf16 %v18488_v62  ;;  %v18503_v14 = vunpack.i.l.bf16 %v10636_v34  ;;  %v18506_v3 = vld [vmem:[#allocation46_spill] sm:$0xff] }
 0x291   : > { %v11418_v2 = vsel %vm17626_vm2, %v6503_v26, %v18490_v63  ;;  %18495 = vst [vmem:[#allocation170_spill] sm:$0xff] %v11428_v10  ;;  %v7234_v63 = vunpack.i.h.bf16 %v10614_v61  ;;  %v7695_v37 = vpack.i.bf16 %v1492_v24, %v1436_v49  ;;  %v6509_v24 = vunpack.i.h.bf16 %v18505_v12 }
 0x292   : > { %18491 = vst [vmem:[#allocation38_spill] sm:$0xff] %v11418_v2  ;;  %7686 = vrot.lane.b32.xlu1 %v7685_v13, %s17741_s19  ;;  %v1725_v13 = vsel %vm1713_vm4, %v17597_v42, %v18498_v60  ;;  %v18502_v2 = vunpack.i.h.bf16 %v10636_v34  ;;  %v18504_v60 = vld [vmem:[#allocation28_spill] sm:$0xff]  ;;  %v6538_v49 = vunpack.i.l.bf16 %v18506_v3  ;;  %v18507_v34 = vunpack.i.l.bf16 %v18496_v7 }
 0x293   : > { %v7760_v58 = vpack.i.bf16 %v1783_v32, %v1725_v13  ;;  %v1553_v18 = vsel %vm1541_vm9, %v7234_v63, %v18501_v55  ;;  %v6508_v32 = vunpack.i.l.bf16 %v18505_v12  ;;  %v18510_v13 = vunpack.i.l.bf16 %v10614_v61  ;;  %v18511_v12 = vld [vmem:[#allocation23_spill] sm:$0xff] }
 0x294   : > { %v1608_v0 = vsel %vm1599_vm3, %v18503_v14, %v18502_v2  ;;  %v18508_v2 = vunpack.i.h.bf16 %v18499_v28  ;;  %v11473_v29 = vpop.permute.xlu0 %7491  ;;  %v11476_v42 = vsel %vm17626_vm2, %v6499_v19, %v6503_v26  ;;  %v18525_v26 = vld [vmem:[#allocation66_spill] sm:$0xff]  ;;  %v18526_v61 = vunpack.i.l.bf16 %v18511_v12 }
 0x295   : > { %7761 = vrot.lane.b32.xlu0 %v7760_v58, %s17741_s19  ;;  %v1552_v55 = vsel %vm1541_vm9, %v18510_v13, %v7234_v63  ;;  %18512 = vst [vmem:[#allocation107_spill] sm:$0xff] %v11476_v42  ;;  %v18514_v63 = vunpack.i.h.bf16 %v18504_v60  ;;  %v18517_v42 = vld [vmem:[#allocation40_spill] sm:$0xff]  ;;  %v18529_v19 = vunpack.i.h.bf16 %v10575_v22  ;;  %v6878_v40 = vunpack.i.l.bf16 %v18473_v30 }
 0x296   : > { %7696 = vrot.lane.b32.xlu1 %v7695_v37, %s17741_s19  ;;  %v11467_v14 = vsel %vm898_vm12, %v18508_v2, %v18507_v34  ;;  %v18513_v37 = vunpack.i.l.bf16 %v10501_v27  ;;  %v7705_v9 = vpack.i.bf16 %v1608_v0, %v1552_v55  ;;  %v18515_v2 = vunpack.i.l.bf16 %v18504_v60  ;;  %v18521_v55 = vld [vmem:[#allocation47_spill] sm:$0xff] }
 0x297   : > { %18509 = vst [vmem:[#allocation37_spill] sm:$0xff] %v11467_v14  ;;  %v7770_v34 = vpack.i.bf16 %v1553_v18, %v11467_v14  ;;  %v18519_v0 = vunpack.i.h.bf16 %v18506_v3  ;;  %v1495_v52 = vsel %vm1484_vm6, %v18530_v47, %v18529_v19  ;;  %v18534_v47 = vunpack.i.h.bf16 %v18477_v35 }
 0x298   : > { %v1437_v58 = vsel %vm17686_vm5, %v7139_v46, %v18513_v37  ;;  %v1669_v13 = vsel %vm1656_vm15, %v18515_v2, %v18514_v63  ;;  %v11493_v46 = vsel %vm17626_vm2, %v6508_v32, %v6509_v24  ;;  %v18522_v37 = vunpack.i.h.bf16 %v18521_v55  ;;  %v18524_v2 = vld [vmem:[#allocation49_spill] sm:$0xff] }
 0x299   : > { %18518 = vst [vmem:[#allocation28_spill] sm:$0xff] %v11493_v46  ;;  %v11498_v18 = vsel %vm447_vm1, %v6538_v49, %v18519_v0  ;;  %7771 = vrot.lane.b32.xlu0 %v7770_v34, %s17741_s19  ;;  %v18527_v0 = vunpack.i.h.bf16 %v10634_v54  ;;  %v18528_v34 = vld [vmem:[#allocation50_spill] sm:$0xff]  ;;  %v18546_v35 = vunpack.i.h.bf16 %v18488_v62  ;;  %vm18604_vm0 = vcmask 441344  }
 0x29a   : > { %18520 = vst [vmem:[#allocation41_spill] sm:$0xff] %v11498_v18  ;;  %7706 = vrot.lane.b32.xlu1 %v7705_v9, %s17741_s19  ;;  %v11505_v63 = vsel %vm447_vm1, %v18522_v37, %v6538_v49  ;;  %v11515_v9 = vpop.permute.xlu0 %7501  ;;  %v6543_v55 = vunpack.i.l.bf16 %v18528_v34  ;;  %v7715_v49 = vpack.i.bf16 %v1437_v58, %v11209_v15  ;;  %v11540_v58 = vsel %vm17626_vm2, %v18534_v47, %v6508_v32 }
 0x29b   : > { %18523 = vst [vmem:[#allocation46_spill] sm:$0xff] %v11505_v63  ;;  %v1611_v14 = vsel %vm1599_vm3, %v18527_v0, %v18526_v61  ;;  %v18532_v61 = vunpack.i.l.bf16 %v18516_v20  ;;  %v18533_v0 = vunpack.i.h.bf16 %v18482_v23  ;;  %18535 = vst [vmem:[#allocation23_spill] sm:$0xff] %v11540_v58  ;;  %v18541_v32 = vunpack.i.h.bf16 %v18524_v2  ;;  %v18582_v63 = vld [vmem:[#allocation113_spill] sm:$0xff] }
 0x29c   : > { %v7780_v37 = vpack.i.bf16 %v1669_v13, %v1611_v14  ;;  %v18536_v13 = vunpack.i.l.bf16 %v18517_v42  ;;  %v18542_v47 = vunpack.i.l.bf16 %v18524_v2  ;;  %v1555_v48 = vsel %vm1541_vm9, %v18546_v35, %v17608_v16  ;;  %v18547_v42 = vld [vmem:[#allocation25_spill] sm:$0xff]  ;;  %v18584_v2 = vld [vmem:[#allocation147_spill] sm:$0xff] }
 0x29d   : > { %v1727_v46 = vsel %vm1713_vm4, %v18533_v0, %v18532_v61  ;;  %v18538_v61 = vunpack.i.l.bf16 %v18525_v26  ;;  %v18539_v0 = vunpack.i.h.bf16 %v10501_v27  ;;  %v18552_v35 = vunpack.i.h.bf16 %v18388_v11  ;;  %v18557_v11 = vld [vmem:[#allocation67_spill] sm:$0xff] }
 0x29e   : > { %7716 = vrot.lane.b32.xlu1 %v7715_v49, %s17741_s19  ;;  %7781 = vrot.lane.b32.xlu0 %v7780_v37, %s17741_s19  ;;  %v11545_v19 = vsel %vm17626_vm2, %v6509_v24, %v18536_v13  ;;  %v18540_v37 = vld [vmem:[#allocation153_spill] sm:$0xff]  ;;  %v11561_v24 = vsel %vm447_vm1, %v18542_v47, %v18541_v32  ;;  %v18544_v13 = vunpack.i.h.bf16 %v18528_v34  ;;  %v18548_v47 = vunpack.i.h.bf16 %v10757_v43 }
 0x29f   : > { %18537 = vst [vmem:[#allocation45_spill] sm:$0xff] %v11545_v19  ;;  %v1439_v49 = vsel %vm17686_vm5, %v18539_v0, %v18538_v61  ;;  %18543 = vst [vmem:[#allocation47_spill] sm:$0xff] %v11561_v24  ;;  %v11568_v61 = vpop.permute.xlu0 %7511  ;;  %v7725_v0 = vpack.i.bf16 %v11206_v45, %v1495_v52  ;;  %v6828_v24 = vunpack.i.l.bf16 %v18499_v28  ;;  %v11593_v16 = vsel %vm17658_vm7, %v18552_v35, %v6878_v40  ;;  %v18569_v45 = vld [vmem:[#allocation109_spill] sm:$0xff] }
 0x2a0   : > { %v11566_v27 = vsel %vm447_vm1, %v6543_v55, %v18544_v13  ;;  %v7790_v14 = vpack.i.bf16 %v1439_v49, %v1727_v46  ;;  %v18549_v13 = vunpack.i.l.bf16 %v10757_v43  ;;  %v18550_v46 = vunpack.i.h.bf16 %v18473_v30  ;;  %18553 = vst [vmem:[#allocation153_spill] sm:$0xff] %v11593_v16  ;;  %v18554_v43 = vld [vmem:[#allocation116_spill] sm:$0xff] }
 0x2a1   : > { %18545 = vst [vmem:[#allocation66_spill] sm:$0xff] %v11566_v27  ;;  %v6884_v52 = vunpack.i.h.bf16 %v18468_v57  ;;  %v18555_v30 = vunpack.i.h.bf16 %v18540_v37  ;;  %v7153_v19 = vunpack.i.l.bf16 %v18557_v11  ;;  %v18560_v38 = vunpack.i.l.bf16 %v18547_v42 }
 0x2a2   : > { %v1781_v58 = vsel %vm1770_vm11, %v18549_v13, %v18548_v47  ;;  %v11588_v49 = vsel %vm17658_vm7, %v6878_v40, %v18550_v46  ;;  %7726 = vrot.lane.b32.xlu1 %v7725_v0, %s17741_s19  ;;  %7791 = vrot.lane.b32.xlu0 %v7790_v14, %s17741_s19  ;;  %v6888_v13 = vunpack.i.l.bf16 %v18554_v43  ;;  %v18556_v46 = vunpack.i.l.bf16 %v18540_v37 }
 0x2a3   : > { %18551 = vst [vmem:[#allocation44_spill] sm:$0xff] %v11588_v49  ;;  %v7149_v40 = vunpack.i.h.bf16 %v18525_v26  ;;  %v7735_v0 = vpack.i.bf16 %v1781_v58, %v11593_v16  ;;  %v18561_v18 = vunpack.i.h.bf16 %v18511_v12  ;;  %v18562_v34 = vunpack.i.h.bf16 %v18506_v3  ;;  %v18579_v16 = vld [vmem:[#allocation57_spill] sm:$0xff] }
 0x2a4   : > { %v1497_v32 = vsel %vm1484_vm6, %v18556_v46, %v18555_v30  ;;  %v18565_v58 = vunpack.i.h.bf16 %v18499_v28  ;;  %v18570_v3 = vunpack.i.h.bf16 %v18496_v7  ;;  %v18571_v28 = vunpack.i.l.bf16 %v18496_v7  ;;  %v18585_v46 = vld [vmem:[#allocation160_spill] sm:$0xff] }
 0x2a5   : > { %v7800_v35 = vpack.i.bf16 %v1555_v48, %v1497_v32  ;;  %v1613_v27 = vsel %vm1599_vm3, %v18561_v18, %v18560_v38  ;;  %v11618_v30 = vsel %vm447_vm1, %v18562_v34, %v6543_v55  ;;  %v18567_v32 = vunpack.i.h.bf16 %v18398_v44  ;;  %v11632_v38 = vpop.permute.xlu0 %7521 }
 0x2a6   : > { %18563 = vst [vmem:[#allocation25_spill] sm:$0xff] %v11618_v30  ;;  %v11624_v48 = vsel %vm898_vm12, %v6828_v24, %v18565_v58  ;;  %7736 = vrot.lane.b32.xlu1 %v7735_v0, %s17741_s19  ;;  %v11641_v18 = vsel %vm898_vm12, %v18571_v28, %v18570_v3  ;;  %v18573_v44 = vunpack.i.h.bf16 %v18554_v43  ;;  %v18575_v55 = vunpack.i.l.bf16 %v18468_v57 }
 0x2a7   : > { %18566 = vst [vmem:[#allocation116_spill] sm:$0xff] %v11624_v48  ;;  %v11629_v15 = vsel %vm898_vm12, %v18567_v32, %v6828_v24  ;;  %7801 = vrot.lane.b32.xlu0 %v7800_v35, %s17741_s19  ;;  %18572 = vst [vmem:[#allocation109_spill] sm:$0xff] %v11641_v18  ;;  %v18577_v35 = vld [vmem:[#allocation118_spill] sm:$0xff]  ;;  %v18578_v32 = vld [vmem:[#allocation136_spill] sm:$0xff]  ;;  %v1441_v3 = vsel %vm17686_vm5, %v7149_v40, %v7153_v19  ;;  %v7810_v28 = vpack.i.bf16 %v18456_v1, %v1613_v27  ;;  %vm18608_vm2 = vcmask 375808  }
 0x2a8   : > { %18568 = vst [vmem:[#allocation67_spill] sm:$0xff] %v11629_v15  ;;  %v11646_v34 = vsel %vm17658_vm7, %v6888_v13, %v18573_v44  ;;  %v11651_v24 = vsel %vm17658_vm7, %v18575_v55, %v6884_v52  ;;  %v7745_v0 = vpack.i.bf16 %v11588_v49, %v11629_v15  ;;  %v18580_v57 = vunpack.i.h.bf16 %v10700_v56  ;;  %v18589_v49 = vld [vmem:[#allocation137_spill] sm:$0xff] }
 0x2a9   : > { %18574 = vst [vmem:[#allocation196_spill] sm:$0xff] %v11646_v34  ;;  %18576 = vst [vmem:[#allocation197_spill] sm:$0xff] %v11651_v24  ;;  %v18581_v55 = vunpack.i.l.bf16 %v10700_v56  ;;  %v11668_v58 = vsel %vm17658_vm7, %v6884_v52, %v6888_v13  ;;  %v18586_v44 = vunpack.i.l.bf16 %v18504_v60  ;;  %v18587_v56 = vunpack.i.h.bf16 %v18459_v8  ;;  %v11684_v47 = vpop.permute.xlu0 %7531  ;;  %v11686_v15 = vpop.permute.xlu1 %7466  ;;  %v18617_v34 = vld [vmem:[#allocation9_spill] sm:$0xff] }
 0x2aa   : > { %18583 = vst [vmem:[#allocation57_spill] sm:$0xff] %v11668_v58  ;;  %7746 = vrot.lane.b32.xlu1 %v7745_v0, %s17741_s19  ;;  %v7473_v52 = vunpack.i.l.bf16 %v11397_v4  ;;  %v7840_v13 = vpack.i.bf16 %v11651_v24, %v11347_v59  ;;  %v18588_v27 = vunpack.i.l.bf16 %v18578_v32  ;;  %v18590_v8 = vunpack.i.h.bf16 %v18589_v49 }
 0x2ab   : > { %v1724_v10 = vsel %vm1713_vm4, %v18581_v55, %v18580_v57  ;;  %7811 = vrot.lane.b32.xlu0 %v7810_v28, %s17741_s19  ;;  %v1668_v57 = vsel %vm1656_vm15, %v18587_v56, %v18586_v44  ;;  %v7820_v28 = vpack.i.bf16 %v1441_v3, %v11271_v36  ;;  %v18591_v56 = vunpack.i.l.bf16 %v18577_v35  ;;  %v18592_v55 = vld [vmem:[#allocation119_spill] sm:$0xff] }
 0x2ac   : > { %v7755_v0 = vpack.i.bf16 %v1724_v10, %v1668_v57  ;;  %v11694_v44 = vsel %vm1198_vm10, %v18590_v8, %v18588_v27  ;;  %v18593_v30 = vunpack.i.h.bf16 %v18592_v55  ;;  %v18595_v59 = vunpack.i.h.bf16 %v18579_v16  ;;  %v18599_v55 = vld [vmem:[#allocation128_spill] sm:$0xff]  ;;  %v18606_v8 = vld [vmem:[#allocation161_spill] sm:$0xff] }
 0x2ad   : > { %v18596_v10 = vunpack.i.l.bf16 %v18579_v16  ;;  %v18597_v57 = vunpack.i.l.bf16 %v18582_v63  ;;  %v18598_v49 = vunpack.i.h.bf16 %v10787_v41  ;;  %v7468_v1 = vunpack.i.l.bf16 %v11686_v15  ;;  %v18602_v41 = vld [vmem:[#allocation148_spill] sm:$0xff] }
 0x2ae   : > { %v11701_v24 = vsel %vm1048_vm8, %v18593_v30, %v18591_v56  ;;  %v18600_v30 = vunpack.i.h.bf16 %v18557_v11  ;;  %7756 = vrot.lane.b32.xlu1 %v7755_v0, %s17741_s19  ;;  %v18607_v36 = vunpack.i.h.bf16 %v18606_v8  ;;  %v18613_v8 = vunpack.i.h.bf16 %v11397_v4 }
 0x2af   : > { %18594 = vst [vmem:[#allocation113_spill] sm:$0xff] %v11701_v24  ;;  %v1499_v3 = vsel %vm1484_vm6, %v18596_v10, %v18595_v59  ;;  %v1784_v27 = vsel %vm1770_vm11, %v18598_v49, %v18597_v57  ;;  %7821 = vrot.lane.b32.xlu0 %v7820_v28, %s17741_s19  ;;  %v18601_v59 = vunpack.i.l.bf16 %v18584_v2  ;;  %v18603_v10 = vunpack.i.h.bf16 %v18602_v41 }
 0x2b0   : > { %v11719_v56 = vsel %vm17686_vm5, %v7153_v19, %v18600_v30  ;;  %v18605_v49 = vunpack.i.l.bf16 %v18585_v46  ;;  %v18609_v19 = vunpack.i.l.bf16 %v18525_v26  ;;  %v18610_v28 = vunpack.i.l.bf16 %v18540_v37  ;;  %v18614_v46 = vld [vmem:[#allocation14_spill] sm:$0xff] }
 0x2b1   : > { %v11728_v57 = vsel %vm18604_vm0, %v18603_v10, %v18601_v59  ;;  %v18611_v30 = vunpack.i.h.bf16 %v10575_v22  ;;  %v18612_v59 = vunpack.i.h.bf16 %v11686_v15  ;;  %v7244_v26 = vunpack.i.h.bf16 %v18531_v21 }
 0x2b2   : > { %v11735_v32 = vsel %vm18608_vm2, %v18607_v36, %v18605_v49  ;;  %v11740_v0 = vsel %vm17686_vm5, %v18609_v19, %v7149_v40  ;;  %v2383_v36 = vsel %vm2219_vm14, %v7473_v52, %v18613_v8  ;;  %v7477_v49 = vpop.permute.xlu1 %7476  ;;  %v11756_v40 = vpop.permute.xlu0 %7541  ;;  %v7765_v19 = vpack.i.bf16 %v11624_v48, %v1784_v27  ;;  %v18709_v48 = vld [vmem:[#allocation87_spill] sm:$0xff] }
 0x2b3   : > { %v11747_v41 = vsel %vm1484_vm6, %v18611_v30, %v18610_v28  ;;  %v2365_v10 = vsel %vm2219_vm14, %v7468_v1, %v18612_v59  ;;  %v7830_v22 = vpack.i.bf16 %v18614_v46, %v1499_v3  ;;  %v18615_v28 = vunpack.i.h.bf16 %v10634_v54 }
 0x2b4   : > { %v2833_v2 = vpack.c.bf16 %v2383_v36, %v2365_v10  ;;  %v18616_v30 = vunpack.i.l.bf16 %v10634_v54  ;;  %v7479_v14 = vunpack.i.h.bf16 %v7477_v49  ;;  %v7478_v8 = vunpack.i.l.bf16 %v7477_v49  ;;  %7766 = vrot.lane.b32.xlu1 %v7765_v19, %s17741_s19 }
 0x2b5   : > { %v7333_v24 = vunpack.i.l.bf16 %v18617_v34  ;;  %v7483_v4 = vunpack.i.l.bf16 %v11440_v53  ;;  %v7493_v27 = vunpack.i.l.bf16 %v11473_v29  ;;  %7831 = vrot.lane.b32.xlu0 %v7830_v22, %s17741_s19  ;;  %v18618_v54 = vunpack.i.h.bf16 %v18488_v62 }
 0x2b6   : > { %v1610_v59 = vsel %vm1599_vm3, %v18616_v30, %v18615_v28  ;;  %v18619_v3 = vunpack.i.l.bf16 %v18488_v62  ;;  %v17633_v36 = vunpack.i.h.bf16 %v18582_v63  ;;  %2955 = vmatprep.subr.bf16.mxu0 %v2833_v2  ;;  %v2364_v49 = vsel %vm2219_vm14, %v7478_v8, %v7468_v1  ;;  %v18620_v30 = vld [vmem:[#allocation154_spill] sm:$0xff]  ;;  %v11786_v46 = vpop.permute.xlu1 %7486  ;;  %v11788_v62 = vpop.permute.xlu0 %7551 }
 0x2b7   : > { %v2382_v28 = vsel %vm2219_vm14, %v7479_v14, %v7473_v52  ;;  %v18621_v35 = vunpack.i.h.bf16 %v18482_v23  ;;  %v18622_v19 = vunpack.i.l.bf16 %v18482_v23  ;;  %v18623_v2 = vunpack.i.l.bf16 %v10809_v33 }
 0x2b8   : > { %v1554_v10 = vsel %vm1541_vm9, %v18619_v3, %v18618_v54  ;;  %v2832_v3 = vpack.c.bf16 %v2382_v28, %v2364_v49  ;;  %v7494_v14 = vunpack.i.h.bf16 %v11473_v29  ;;  %v17634_v52 = vunpack.i.h.bf16 %v11786_v46 }
 0x2b9   : > { %v1726_v22 = vsel %vm1713_vm4, %v18622_v19, %v18621_v35  ;;  %v7775_v54 = vpack.i.bf16 %v1610_v59, %v1554_v10  ;;  %v1786_v1 = vsel %vm1770_vm11, %v17633_v36, %v18623_v2  ;;  %v7488_v23 = vunpack.i.l.bf16 %v11786_v46  ;;  %7841 = vrot.lane.b32.xlu0 %v7840_v13, %s17741_s19 }
 0x2ba   : > { %v17637_v35 = vunpack.i.h.bf16 %v18617_v34  ;;  %v18624_v8 = vunpack.i.h.bf16 %v18504_v60  ;;  %v18625_v59 = vunpack.i.h.bf16 %v11440_v53  ;;  %v2328_v29 = vsel %vm2219_vm14, %v7493_v27, %v7483_v4  ;;  %2956 = vmatpush2.bf16.msra.mxu0 %v2832_v3  ;;  %v11816_v13 = vpop.permute.xlu0 %7561 }
 0x2bb   : > { %7776 = vrot.lane.b32.xlu1 %v7775_v54, %s17741_s19  ;;  %v7503_v28 = vunpack.i.l.bf16 %v11515_v9  ;;  %v2347_v60 = vsel %vm2219_vm14, %v7488_v23, %v17634_v52  ;;  %v2346_v2 = vsel %vm2219_vm14, %v7494_v14, %v7488_v23  ;;  %v11814_v54 = vpop.permute.xlu1 %7496  ;;  %v17636_v27 = vunpack.i.h.bf16 %v10809_v33 }
 0x2bc   : > { %v1670_v19 = vsel %vm1656_vm15, %v18624_v8, %v7333_v24  ;;  %v2329_v10 = vsel %vm2219_vm14, %v7483_v4, %v18625_v59  ;;  %v7850_v59 = vpack.i.bf16 %v11641_v18, %v1786_v1  ;;  %v2814_v4 = vpack.c.bf16 %v2346_v2, %v2328_v29 }
 0x2bd   : > { %v7785_v8 = vpack.i.bf16 %v1726_v22, %v1670_v19  ;;  %v2815_v36 = vpack.c.bf16 %v2347_v60, %v2329_v10  ;;  %v18626_v3 = vunpack.i.h.bf16 %v18554_v43  ;;  %v17635_v52 = vunpack.i.h.bf16 %v11814_v54  ;;  %v18630_v10 = vld [vmem:[#allocation172_spill] sm:$0xff] }
 0x2be   : > { %v7498_v14 = vunpack.i.l.bf16 %v11814_v54  ;;  %v18627_v23 = vunpack.i.l.bf16 %v18579_v16  ;;  %v18628_v7 = vunpack.i.h.bf16 %v18540_v37  ;;  %v18629_v1 = vunpack.i.l.bf16 %v18531_v21  ;;  %7851 = vrot.lane.b32.xlu0 %v7850_v59, %s17741_s19  ;;  %v11855_v59 = vpop.permute.xlu0 %7571 }
 0x2bf   : > { %v1800_v49 = vsel %vm17658_vm7, %v18626_v3, %v10836_v5  ;;  %v17638_v29 = vunpack.i.l.bf16 %v18630_v10  ;;  %7786 = vrot.lane.b32.xlu1 %v7785_v8, %s17741_s19  ;;  %v7795_v5 = vpack.i.bf16 %v11747_v41, %v11740_v0  ;;  %v1671_v37 = vsel %vm1656_vm15, %v7333_v24, %v17637_v35  ;;  %2957 = vmatprep.subr.bf16.mxu0 %v2815_v36  ;;  %v7507_v24 = vpop.permute.xlu1 %7506 }
 0x2c0   : > { %v11831_v22 = vsel %vm1484_vm6, %v18628_v7, %v18627_v23  ;;  %v1556_v19 = vsel %vm1541_vm9, %v18629_v1, %v7244_v26  ;;  %v18631_v7 = vunpack.i.l.bf16 %v18620_v30  ;;  %v2293_v21 = vsel %vm2219_vm14, %v7498_v14, %v17635_v52  ;;  %2958 = vmatpush2.bf16.msra.mxu0 %v2814_v4 }
 0x2c1   : > { %v18632_v60 = vunpack.i.h.bf16 %v11515_v9  ;;  %v17639_v0 = vunpack.i.h.bf16 %v18516_v20  ;;  %v7860_v41 = vpack.i.bf16 %v1671_v37, %v1800_v49  ;;  %v18634_v36 = vunpack.i.l.bf16 %v18511_v12  ;;  %v18636_v49 = vld [vmem:[#allocation29_spill] sm:$0xff] }
 0x2c2   : > { %v1557_v43 = vsel %vm1541_vm9, %v7244_v26, %v18631_v7  ;;  %v18633_v26 = vunpack.i.h.bf16 %v18511_v12  ;;  %v18635_v1 = vunpack.i.l.bf16 %v10809_v33  ;;  %v7508_v52 = vunpack.i.l.bf16 %v7507_v24 }
 0x2c3   : > { %v2311_v2 = vsel %vm2219_vm14, %v7503_v28, %v18632_v60  ;;  %v7509_v60 = vunpack.i.h.bf16 %v7507_v24  ;;  %v17640_v4 = vunpack.i.h.bf16 %v18636_v49  ;;  %v17641_v37 = vunpack.i.l.bf16 %v18636_v49  ;;  %7796 = vrot.lane.b32.xlu1 %v7795_v5, %s17741_s19  ;;  %7861 = vrot.lane.b32.xlu0 %v7860_v41, %s17741_s19  ;;  %v11882_v35 = vpop.permute.xlu1 %7516 }
 0x2c4   : > { %v2797_v3 = vpack.c.bf16 %v2311_v2, %v2293_v21  ;;  %v1612_v23 = vsel %vm1599_vm3, %v18634_v36, %v18633_v26  ;;  %v1787_v7 = vsel %vm1770_vm11, %v18635_v1, %v17636_v27  ;;  %v1729_v12 = vsel %vm1713_vm4, %v17639_v0, %v17638_v29  ;;  %v18637_v1 = vld [vmem:[#allocation2_spill] sm:$0xff]  ;;  %v11884_v29 = vpop.permute.xlu0 %7581 }
 0x2c5   : > { %v7513_v2 = vunpack.i.l.bf16 %v11568_v61  ;;  %v7523_v24 = vunpack.i.l.bf16 %v11632_v38  ;;  %v2292_v26 = vsel %vm2219_vm14, %v7508_v52, %v7498_v14  ;;  %v2310_v36 = vsel %vm2219_vm14, %v7509_v60, %v7503_v28 }
 0x2c6   : > { %2959 = vmatprep.subr.bf16.mxu0 %v2797_v3  ;;  %v17644_v27 = vunpack.i.l.bf16 %v18637_v1  ;;  %v7805_v0 = vpack.i.bf16 %v1612_v23, %v1556_v19  ;;  %v7870_v8 = vpack.i.bf16 %v1787_v7, %v1729_v12  ;;  %v2796_v5 = vpack.c.bf16 %v2310_v36, %v2292_v26 }
 0x2c7   : > { %v18638_v41 = vunpack.i.h.bf16 %v18569_v45  ;;  %v7524_v3 = vunpack.i.h.bf16 %v11632_v38  ;;  %v17642_v52 = vunpack.i.h.bf16 %v11882_v35  ;;  %v7518_v28 = vunpack.i.l.bf16 %v11882_v35 }
 0x2c8   : > { %v1673_v14 = vsel %vm1656_vm15, %v17641_v37, %v17640_v4  ;;  %v17643_v19 = vunpack.i.l.bf16 %v10857_v39  ;;  %v7434_v23 = vunpack.i.h.bf16 %v10859_v6  ;;  %v7433_v7 = vunpack.i.l.bf16 %v10859_v6  ;;  %7806 = vrot.lane.b32.xlu1 %v7805_v0, %s17741_s19  ;;  %7871 = vrot.lane.b32.xlu0 %v7870_v8, %s17741_s19  ;;  %v11914_v0 = vpop.permute.xlu0 %7591 }
 0x2c9   : > { %v1794_v21 = vsel %vm898_vm12, %v18638_v41, %v10838_v31  ;;  %2960 = vmatpush2.bf16.msra.mxu0 %v2796_v5  ;;  %v18639_v31 = vunpack.i.h.bf16 %v11568_v61  ;;  %v2275_v60 = vsel %vm2219_vm14, %v7518_v28, %v17642_v52  ;;  %v2256_v12 = vsel %vm2219_vm14, %v7523_v24, %v7513_v2  ;;  %v11912_v41 = vpop.permute.xlu1 %7526  ;;  %v18645_v24 = vld [vmem:[#allocation171_spill] sm:$0xff] }
 0x2ca   : > { %v2274_v26 = vsel %vm2219_vm14, %v7524_v3, %v7518_v28  ;;  %v7880_v36 = vpack.i.bf16 %v1557_v43, %v1794_v21  ;;  %v7534_v6 = vunpack.i.h.bf16 %v11684_v47  ;;  %v17652_v4 = vunpack.i.h.bf16 %v18630_v10 }
 0x2cb   : > { %v2257_v38 = vsel %vm2219_vm14, %v7513_v2, %v18639_v31  ;;  %v2778_v5 = vpack.c.bf16 %v2274_v26, %v2256_v12  ;;  %v7533_v31 = vunpack.i.l.bf16 %v11684_v47  ;;  %v17645_v37 = vunpack.i.h.bf16 %v11912_v41  ;;  %v18640_v2 = vld [vmem:[#allocation56_spill] sm:$0xff] }
 0x2cc   : > { %v2779_v8 = vpack.c.bf16 %v2275_v60, %v2257_v38  ;;  %v7528_v52 = vunpack.i.l.bf16 %v11912_v41  ;;  %v18641_v21 = vunpack.i.h.bf16 %v18547_v42  ;;  %v18642_v28 = vpack.i.bf16 %v11264_v17, %v18450_v51  ;;  %7881 = vrot.lane.b32.xlu0 %v7880_v36, %s17741_s19  ;;  %v11944_v36 = vpop.permute.xlu0 %7601 }
 0x2cd   : > { %v7825_v47 = vpack.i.bf16 %v11831_v22, %v11719_v56  ;;  %v2221_v38 = vsel %vm2219_vm14, %v7434_v23, %v17643_v19  ;;  %v2220_v12 = vsel %vm2219_vm14, %v7433_v7, %v7434_v23  ;;  %v18646_v7 = vunpack.i.l.bf16 %v18640_v2 }
 0x2ce   : > { %v1615_v3 = vsel %vm1599_vm3, %v18641_v21, %v17644_v27  ;;  %7816 = vrot.lane.b32.xlu1 %v18642_v28, %s17741_s19  ;;  %2961 = vmatprep.subr.bf16.mxu0 %v2779_v8  ;;  %v2239_v60 = vsel %vm2219_vm14, %v7528_v52, %v17645_v37  ;;  %v2238_v26 = vsel %vm2219_vm14, %v7533_v31, %v7528_v52  ;;  %v11942_v21 = vpop.permute.xlu1 %7536  ;;  %v18643_v8 = vunpack.i.h.bf16 %v10961_v50  ;;  %v18644_v27 = vld [vmem:[#allocation35_spill] sm:$0xff]  ;;  %v18648_v50 = vld [vmem:[#allocation152_spill] sm:$0xff] }
 0x2cf   : > { %2962 = vmatpush2.bf16.msra.mxu0 %v2778_v5  ;;  %v7890_v28 = vpack.i.bf16 %v1673_v14, %v1615_v3  ;;  %v2761_v56 = vpack.c.bf16 %v2239_v60, %v2221_v38  ;;  %v2760_v22 = vpack.c.bf16 %v2238_v26, %v2220_v12  ;;  %v17647_v43 = vunpack.i.h.bf16 %v18644_v27 }
 0x2d0   : > { %v2402_v19 = vsel %vm2219_vm14, %v18643_v8, %v7534_v6  ;;  %v17650_v37 = vunpack.i.l.bf16 %v18644_v27  ;;  %v1731_v52 = vsel %vm1713_vm4, %v17652_v4, %v18645_v24  ;;  %v17646_v23 = vunpack.i.l.bf16 %v11942_v21  ;;  %v18675_v4 = vld [vmem:[#allocation196_spill] sm:$0xff] }
 0x2d1   : > { %v18647_v14 = vunpack.i.h.bf16 %v18557_v11  ;;  %v18649_v31 = vunpack.i.h.bf16 %v18620_v30  ;;  %v17649_v38 = vunpack.i.h.bf16 %v18637_v1  ;;  %7891 = vrot.lane.b32.xlu0 %v7890_v28, %s17741_s19  ;;  %v2747_v24 = vpack.c.bf16 %v11735_v32, %v11728_v57  ;;  %2963 = vmatprep.subr.bf16.mxu0 %v2761_v56  ;;  %v9158_v11 = vld [vmem:[%s17279_s1] sm:$0xff]  ;;  %v11982_v32 = vpop.permute.xlu0 %7611 }
 0x2d2   : > { %7826 = vrot.lane.b32.xlu1 %v7825_v47, %s17741_s19  ;;  %v7539_v60 = vunpack.i.h.bf16 %v11942_v21  ;;  %v11974_v12 = vcombine.low %v9158_v11, %v9158_v11  ;;  %v2403_v26 = vsel %vm2219_vm14, %v7534_v6, %v17646_v23  ;;  %v2852_v8 = vpack.c.bf16 %v2402_v19, %v2402_v19  ;;  %v11980_v28 = vpop.permute.xlu1 %7546 }
 0x2d3   : > { %v1443_v5 = vsel %vm17686_vm5, %v18647_v14, %v18646_v7  ;;  %v1559_v3 = vsel %vm1541_vm9, %v18649_v31, %v18648_v50  ;;  %v7544_v47 = vunpack.i.h.bf16 %v11756_v40  ;;  %2964 = vmatpush2.bf16.msra.mxu0 %v2760_v22  ;;  %v2853_v56 = vpack.c.bf16 %v2403_v26, %v2403_v26  ;;  %v18652_v14 = vld [vmem:[#allocation129_spill] sm:$0xff] }
 0x2d4   : > { %18650 = vst [vmem:[#allocation137_spill] sm:$0xff] %v11974_v12  ;;  %v7900_v57 = vpack.i.bf16 %v1443_v5, %v1731_v52  ;;  %v18651_v7 = vunpack.i.l.bf16 %v18599_v55  ;;  %v18653_v31 = vunpack.i.h.bf16 %v18652_v14  ;;  %vm18654_vm0 = vcmask 457728   ;;  %3015 = vmatprep.subr.bf16.mxu0 %v2747_v24 }
 0x2d5   : > { %v1501_v19 = vsel %vm1484_vm6, %v17650_v37, %v17647_v43  ;;  %v18655_v6 = vunpack.i.h.bf16 %v18582_v63  ;;  %v18656_v22 = vunpack.i.l.bf16 %v18582_v63  ;;  %v17648_v52 = vunpack.i.l.bf16 %v11756_v40  ;;  %6353 = vmatprep.subr.msk.bf16.mxu1 %vm17873_vm13, %v2853_v56  ;;  %v18664_v37 = vld [vmem:[#allocation36_spill] sm:$0xff] }
 0x2d6   : > { %v1129_v11 = vsel %vm18654_vm0, %v18653_v31, %v18651_v7  ;;  %v17651_v5 = vunpack.i.l.bf16 %v11980_v28  ;;  %v17655_v26 = vunpack.i.l.bf16 %v18569_v45  ;;  %v18657_v7 = vld [vmem:[#allocation5_spill] sm:$0xff]  ;;  %v18658_v31 = vld [vmem:[#allocation15_spill] sm:$0xff]  ;;  %7901 = vrot.lane.b32.xlu0 %v7900_v57, %s17741_s19  ;;  %2966 = vmatmul.mubr.bf16.vlgmr.msra.gmra.mxu0 %v11974_v12  ;;  %v2886_v24 = vsel %vm17873_vm13, %v2852_v8, 0  ;;  %v12028_v8 = vpop.permute.xlu1 %7556 }
 0x2d7   : > { %v1785_v23 = vsel %vm1770_vm11, %v18656_v22, %v18655_v6  ;;  %v1617_v14 = vsel %vm1599_vm3, %v17649_v38, %v18657_v7  ;;  %v18659_v43 = vpack.i.bf16 %v11261_v25, %v18658_v31  ;;  %v2729_v63 = vpack.c.bf16 %v11694_v44, %v1129_v11  ;;  %2995 = vmatpush2.bf16.msra.mxu1 %v2886_v24  ;;  %v18662_v11 = vld [vmem:[#allocation162_spill] sm:$0xff]  ;;  %v18674_v44 = vld [vmem:[#allocation113_spill] sm:$0xff] }
 0x2d8   : > { %v7910_v6 = vpack.i.bf16 %v1559_v3, %v1501_v19  ;;  %v2367_v22 = vsel %vm2219_vm14, %v7539_v60, %v17648_v52  ;;  %v2385_v7 = vsel %vm2219_vm14, %v7544_v47, %v17651_v5  ;;  %v18661_v3 = vld [vmem:[#allocation163_spill] sm:$0xff]  ;;  %v12030_v19 = vpop.permute.xlu0 %7621  ;;  %v7845_v52 = vpack.i.bf16 %v1785_v23, %v11668_v58  ;;  %v18669_v23 = vld [vmem:[#allocation97_spill] sm:$0xff] }
 0x2d9   : > { %7836 = vrot.lane.b32.xlu1 %v18659_v43, %s17741_s19  ;;  %v18660_v43 = vunpack.i.h.bf16 %v11686_v15  ;;  %v18663_v56 = vpack.c.bf16 %v18661_v3, %v18662_v11  ;;  %v2835_v38 = vpack.c.bf16 %v2385_v7, %v2367_v22  ;;  %v18665_v5 = vunpack.i.h.bf16 %v18664_v37  ;;  %v18666_v11 = vld [vmem:[#allocation174_spill] sm:$0xff] }
 0x2da   : > { %v7559_v24 = vunpack.i.h.bf16 %v12028_v8  ;;  %vm18667_vm2 = vcmask 719872   ;;  %v6759_v22 = vunpack.i.h.bf16 %v18669_v23  ;;  %v18670_v37 = vld [vmem:[#allocation110_spill] sm:$0xff]  ;;  %7911 = vrot.lane.b32.xlu0 %v7910_v6, %s17741_s19  ;;  %v18676_v18 = vunpack.i.l.bf16 %v12028_v8 }
 0x2db   : > { %v2366_v57 = vsel %vm2219_vm14, %v18660_v43, %v7539_v60  ;;  %3016 = vmatpush1.bf16.msra.mxu0 %v18663_v56  ;;  %v2384_v15 = vsel %vm2219_vm14, %v18665_v5, %v7544_v47  ;;  %v7554_v60 = vunpack.i.h.bf16 %v11788_v62  ;;  %6356 = vmatprep.mubr.msk.bf16.mxu0 %vm18667_vm2, %v18666_v11  ;;  %v18668_v56 = vld [vmem:[#allocation96_spill] sm:$0xff]  ;;  %v18671_v47 = vunpack.i.h.bf16 %v18670_v37 }
 0x2dc   : > { %3017 = vmatprep.subr.bf16.mxu0 %v2729_v63  ;;  %v2834_v7 = vpack.c.bf16 %v2384_v15, %v2366_v57  ;;  %2996 = vmatprep.subr.bf16.mxu1 %v2835_v38  ;;  %v18673_v63 = vld [vmem:[#allocation22_spill] sm:$0xff]  ;;  %v18677_v37 = vunpack.i.l.bf16 %v11816_v13  ;;  %v12066_v38 = vpop.permute.xlu1 %7566  ;;  %v18681_v57 = vld [vmem:[#allocation20_spill] sm:$0xff]  ;;  %vm18692_vm0 = vcmask 957440   ;;  %vm18696_vm2 = vcmask 867328  }
 0x2dd   : > { %v12049_v5 = vsel %vm898_vm12, %v18671_v47, %v17655_v26  ;;  %7846 = vrot.lane.b32.xlu1 %v7845_v52, %s17741_s19  ;;  %v2711_v43 = vpack.c.bf16 %v18674_v44, %v18673_v63  ;;  %v2331_v25 = vsel %vm2219_vm14, %v7554_v60, %v18676_v18  ;;  %v18678_v52 = vld [vmem:[#allocation139_spill] sm:$0xff]  ;;  %v18679_v26 = vld [vmem:[#allocation138_spill] sm:$0xff]  ;;  %v7920_v44 = vpack.i.bf16 %v18681_v57, %v1617_v14  ;;  %v12092_v57 = vpop.permute.xlu0 %7631 }
 0x2de   : > { %18672 = vst [vmem:[#allocation119_spill] sm:$0xff] %v12049_v5  ;;  %v7855_v3 = vpack.i.bf16 %v18675_v4, %v12049_v5  ;;  %v2349_v47 = vsel %vm2219_vm14, %v7559_v24, %v18677_v37  ;;  %2997 = vmatpush2.bf16.msra.mxu1 %v2834_v7  ;;  %v18680_v6 = vpack.c.bf16 %v18678_v52, %v18679_v26  ;;  %v18682_v4 = vunpack.i.h.bf16 %v11786_v46  ;;  %v18683_v5 = vld [vmem:[#allocation146_spill] sm:$0xff] }
 0x2df   : > { %v2817_v15 = vpack.c.bf16 %v2349_v47, %v2331_v25  ;;  %v18684_v18 = vunpack.i.h.bf16 %v18640_v2  ;;  %v18685_v7 = vunpack.i.h.bf16 %v18516_v20  ;;  %v18686_v37 = vunpack.i.l.bf16 %v18516_v20  ;;  %v18688_v14 = vld [vmem:[#allocation58_spill] sm:$0xff]  ;;  %v18690_v47 = vld [vmem:[#allocation59_spill] sm:$0xff]  ;;  %18694 = vst [vmem:[#allocation128_spill] sm:$0xff] %v12092_v57  ;;  %7921 = vrot.lane.b32.xlu0 %v7920_v44, %s17741_s19 }
 0x2e0   : > { %3018 = vmatpush1.bf16.msra.mxu0 %v18680_v6  ;;  %v2348_v63 = vsel %vm2219_vm14, %v18682_v4, %v7559_v24  ;;  %v18687_v52 = vunpack.i.h.bf16 %v11440_v53  ;;  %v18689_v46 = vunpack.i.l.bf16 %v18688_v14  ;;  %v18691_v24 = vunpack.i.h.bf16 %v18690_v47  ;;  %v18693_v4 = vld [vmem:[#allocation68_spill] sm:$0xff] }
 0x2e1   : > { %v1445_v58 = vsel %vm17686_vm5, %v18684_v18, %v18683_v5  ;;  %v1728_v26 = vsel %vm1713_vm4, %v18686_v37, %v18685_v7  ;;  %3019 = vmatprep.subr.bf16.mxu0 %v2711_v43  ;;  %7856 = vrot.lane.b32.xlu1 %v7855_v3, %s17741_s19  ;;  %v18695_v53 = vunpack.i.l.bf16 %v18668_v56  ;;  %v18697_v43 = vld [vmem:[#allocation78_spill] sm:$0xff]  ;;  %v18699_v37 = vld [vmem:[#allocation79_spill] sm:$0xff]  ;;  %vm18701_vm7 = vcmask 883712   ;;  %v18774_v14 = vld [vmem:[#allocation48_spill] sm:$0xff] }
 0x2e2   : > { %v2330_v25 = vsel %vm2219_vm14, %v18687_v52, %v7554_v60  ;;  %v12089_v6 = vsel %vm18692_vm0, %v18691_v24, %v18689_v46  ;;  %v18698_v7 = vunpack.i.l.bf16 %v18697_v43  ;;  %v18700_v52 = vunpack.i.h.bf16 %v18699_v37  ;;  %vm18703_vm0 = vmmov %vm18696_vm2  ;;  %2998 = vmatprep.subr.bf16.mxu1 %v2817_v15 }
 0x2e3   : > { %v2816_v20 = vpack.c.bf16 %v2348_v63, %v2330_v25  ;;  %v828_v60 = vsel %vm18696_vm2, %v6759_v22, %v18695_v53  ;;  %v18702_v47 = vunpack.i.l.bf16 %v18669_v23  ;;  %v18704_v18 = vunpack.i.l.bf16 %v18636_v49  ;;  %v18706_v63 = vld [vmem:[#allocation179_spill] sm:$0xff]  ;;  %v18707_v53 = vld [vmem:[#allocation86_spill] sm:$0xff] }
 0x2e4   : > { %v678_v46 = vsel %vm18701_vm7, %v18700_v52, %v18698_v7  ;;  %v18705_v3 = vunpack.i.h.bf16 %v18617_v34  ;;  %v2693_v25 = vpack.c.bf16 %v18706_v63, %v828_v60  ;;  %v18708_v31 = vunpack.i.l.bf16 %v18707_v53  ;;  %v18712_v7 = vld [vmem:[#allocation106_spill] sm:$0xff]  ;;  %v18714_v52 = vld [vmem:[#allocation120_spill] sm:$0xff]  ;;  %v18717_v60 = vld [vmem:[#allocation193_spill] sm:$0xff] }
 0x2e5   : > { %v827_v24 = vsel %vm18703_vm0, %v18702_v47, %v6759_v22  ;;  %v18710_v17 = vunpack.i.h.bf16 %v18709_v48  ;;  %vm18711_vm2 = vcmask 875520   ;;  %v18713_v23 = vunpack.i.h.bf16 %v10809_v33  ;;  %2999 = vmatpush2.bf16.msra.mxu1 %v2816_v20  ;;  %v18715_v47 = vld [vmem:[#allocation121_spill] sm:$0xff] }
 0x2e6   : > { %v1672_v44 = vsel %vm1656_vm15, %v18705_v3, %v18704_v18  ;;  %v18716_v34 = vpack.c.bf16 %v18714_v52, %v18715_v47  ;;  %v12125_v18 = vpop.permute.xlu1 %7576  ;;  %v7930_v3 = vpack.i.bf16 %v1445_v58, %v18717_v60  ;;  %v7574_v63 = vunpack.i.h.bf16 %v11855_v59  ;;  %v18718_v20 = vld [vmem:[#allocation173_spill] sm:$0xff] }
 0x2e7   : > { %v753_v37 = vsel %vm18711_vm2, %v18710_v17, %v18708_v31  ;;  %v1788_v22 = vsel %vm1770_vm11, %v18713_v23, %v18712_v7  ;;  %v7865_v15 = vpack.i.bf16 %v1728_v26, %v1672_v44  ;;  %v7579_v17 = vunpack.i.h.bf16 %v12125_v18  ;;  %v18720_v44 = vld [vmem:[#allocation69_spill] sm:$0xff]  ;;  %v18725_v31 = vld [vmem:[#allocation123_spill] sm:$0xff] }
 0x2e8   : > { %3020 = vmatpush1.bf16.msra.mxu0 %v18716_v34  ;;  %v17661_v33 = vunpack.i.l.bf16 %v12125_v18  ;;  %7931 = vrot.lane.b32.xlu0 %v7930_v3, %s17741_s19  ;;  %v2692_v7 = vpack.c.bf16 %v18718_v20, %v827_v24  ;;  %v2675_v26 = vpack.c.bf16 %v753_v37, %v678_v46  ;;  %v18719_v58 = vunpack.i.l.bf16 %v18693_v4  ;;  %v18727_v37 = vld [vmem:[#allocation157_spill] sm:$0xff]  ;;  %v18728_v3 = vld [vmem:[#allocation18_spill] sm:$0xff]  ;;  %v18780_v4 = vld [vmem:[#allocation4_spill] sm:$0xff] }
 0x2e9   : > { %3021 = vmatprep.subr.bf16.mxu0 %v2693_v25  ;;  %7866 = vrot.lane.b32.xlu1 %v7865_v15, %s17741_s19  ;;  %v18721_v23 = vunpack.i.h.bf16 %v18720_v44  ;;  %vm18722_vm7 = vcmask 949248   ;;  %v18723_v47 = vunpack.i.h.bf16 %v18569_v45  ;;  %v18724_v34 = vunpack.i.l.bf16 %v18569_v45 }
 0x2ea   : > { %v2295_v15 = vsel %vm2219_vm14, %v7574_v63, %v17661_v33  ;;  %v18726_v46 = vunpack.i.l.bf16 %v11884_v29  ;;  %v7940_v20 = vpack.i.bf16 %v18728_v3, %v18727_v37  ;;  %v12157_v44 = vpop.permute.xlu1 %7586  ;;  %v18733_v51 = vunpack.i.l.bf16 %v18547_v42 }
 0x2eb   : > { %v603_v52 = vsel %vm18722_vm7, %v18721_v23, %v18719_v58  ;;  %v1793_v25 = vsel %vm898_vm12, %v18724_v34, %v18723_v47  ;;  %v12155_v58 = vpop.permute.xlu0 %7641  ;;  %v18730_v47 = vunpack.i.h.bf16 %v11515_v9  ;;  %v18736_v9 = vld [vmem:[#allocation118_spill] sm:$0xff]  ;;  %v18743_v60 = vunpack.i.l.bf16 %v18725_v31 }
 0x2ec   : > { %v2313_v24 = vsel %vm2219_vm14, %v7579_v17, %v18726_v46  ;;  %18729 = vst [vmem:[#allocation148_spill] sm:$0xff] %v12155_v58  ;;  %3022 = vmatpush1.bf16.msra.mxu0 %v2692_v7  ;;  %v7875_v45 = vpack.i.bf16 %v1793_v25, %v1788_v22  ;;  %v18732_v46 = vunpack.i.h.bf16 %v18547_v42  ;;  %v18734_v7 = vunpack.i.h.bf16 %v11814_v54  ;;  %7941 = vrot.lane.b32.xlu0 %v7940_v20, %s17741_s19  ;;  %v18748_v42 = vld [vmem:[#allocation141_spill] sm:$0xff] }
 0x2ed   : > { %v2799_v23 = vpack.c.bf16 %v2313_v24, %v2295_v15  ;;  %v2312_v34 = vsel %vm2219_vm14, %v18730_v47, %v7579_v17  ;;  %3023 = vmatprep.subr.bf16.mxu0 %v2675_v26  ;;  %v17663_v24 = vunpack.i.h.bf16 %v18736_v9  ;;  %v2657_v47 = vpack.c.bf16 %v603_v52, %v12089_v6  ;;  %v18741_v6 = vld [vmem:[#allocation91_spill] sm:$0xff] }
 0x2ee   : > { %v1614_v3 = vsel %vm1599_vm3, %v18733_v51, %v18732_v46  ;;  %v2294_v22 = vsel %vm2219_vm14, %v18734_v7, %v7574_v63  ;;  %7876 = vrot.lane.b32.xlu1 %v7875_v45, %s17741_s19  ;;  %v18737_v26 = vunpack.i.h.bf16 %v18620_v30  ;;  %v18738_v54 = vunpack.i.l.bf16 %v18620_v30  ;;  %v18739_v7 = vld [vmem:[#allocation90_spill] sm:$0xff]  ;;  %v18749_v51 = vld [vmem:[#allocation8_spill] sm:$0xff] }
 0x2ef   : > { %v2798_v17 = vpack.c.bf16 %v2312_v34, %v2294_v22  ;;  %v7594_v46 = vunpack.i.h.bf16 %v11914_v0  ;;  %3000 = vmatprep.subr.bf16.mxu1 %v2799_v23  ;;  %v18740_v34 = vld [vmem:[#allocation88_spill] sm:$0xff]  ;;  %v12190_v22 = vpop.permute.xlu1 %7596  ;;  %v12197_v30 = vsel %vm1048_vm8, %v17663_v24, %v18743_v60  ;;  %v18744_v23 = vunpack.i.h.bf16 %v18630_v10  ;;  %v12214_v24 = vpop.permute.xlu0 %7651 }
 0x2f0   : > { %v1558_v63 = vsel %vm1541_vm9, %v18738_v54, %v18737_v26  ;;  %v18742_v52 = vpack.c.bf16 %v18740_v34, %v18741_v6  ;;  %v18745_v26 = vunpack.i.l.bf16 %v18630_v10  ;;  %v17667_v54 = vunpack.i.l.bf16 %v11944_v36  ;;  %18751 = vst [vmem:[#allocation161_spill] sm:$0xff] %v12214_v24 }
 0x2f1   : > { %3001 = vmatpush2.bf16.msra.mxu1 %v2798_v17  ;;  %v7885_v33 = vpack.i.bf16 %v1614_v3, %v1558_v63  ;;  %v7599_v34 = vunpack.i.h.bf16 %v12190_v22  ;;  %v17664_v6 = vunpack.i.l.bf16 %v12190_v22  ;;  %v18746_v3 = vld [vmem:[#allocation131_spill] sm:$0xff]  ;;  %v18750_v45 = vunpack.i.h.bf16 %v18636_v49 }
 0x2f2   : > { %3024 = vmatpush1.bf16.msra.mxu0 %v18742_v52  ;;  %v1730_v17 = vsel %vm1713_vm4, %v18745_v26, %v18744_v23  ;;  %v18747_v52 = vld [vmem:[#allocation136_spill] sm:$0xff]  ;;  %v18754_v49 = vunpack.i.h.bf16 %v11568_v61  ;;  %v7549_v60 = vunpack.i.h.bf16 %v11980_v28  ;;  %v18760_v61 = vld [vmem:[#allocation165_spill] sm:$0xff]  ;;  %v18777_v48 = vunpack.i.l.bf16 %v11788_v62 }
 0x2f3   : > { %3025 = vmatprep.subr.bf16.mxu0 %v2657_v47  ;;  %v1674_v10 = vsel %vm1656_vm15, %v18750_v45, %v18749_v51  ;;  %7886 = vrot.lane.b32.xlu1 %v7885_v33, %s17741_s19  ;;  %v18752_v23 = vld [vmem:[#allocation32_spill] sm:$0xff]  ;;  %v2259_v47 = vsel %vm2219_vm14, %v7594_v46, %v17664_v6  ;;  %v2277_v15 = vsel %vm2219_vm14, %v7599_v34, %v17667_v54  ;;  %v18755_v45 = vunpack.i.h.bf16 %v11882_v35  ;;  %v12236_v63 = vpop.permute.xlu1 %7606  ;;  %v18759_v54 = vld [vmem:[#allocation147_spill] sm:$0xff] }
 0x2f4   : > { %v18753_v26 = vunpack.i.h.bf16 %v18752_v23  ;;  %v2258_v51 = vsel %vm2219_vm14, %v18754_v49, %v7594_v46  ;;  %v18756_v23 = vld [vmem:[#allocation70_spill] sm:$0xff]  ;;  %v7895_v6 = vpack.i.bf16 %v1730_v17, %v1674_v10  ;;  %v2781_v24 = vpack.c.bf16 %v2277_v15, %v2259_v47  ;;  %v18768_v47 = vld [vmem:[#allocation176_spill] sm:$0xff] }
 0x2f5   : > { %v2276_v33 = vsel %vm2219_vm14, %v18755_v45, %v7599_v34  ;;  %v7044_v31 = vunpack.i.h.bf16 %v18759_v54  ;;  %v18761_v46 = vunpack.i.l.bf16 %v18644_v27  ;;  %v18762_v35 = vunpack.i.h.bf16 %v18579_v16  ;;  %v18766_v17 = vld [vmem:[#allocation170_spill] sm:$0xff] }
 0x2f6   : > { %1875 = vrot.lane.b32.xlu0 %v18753_v26, %s17741_s19  ;;  %v18757_v26 = vld [vmem:[#allocation73_spill] sm:$0xff]  ;;  %v2780_v58 = vpack.c.bf16 %v2276_v33, %v2258_v51  ;;  %v18763_v49 = vunpack.i.h.bf16 %v18637_v1  ;;  %v18764_v45 = vunpack.i.l.bf16 %v18637_v1  ;;  %v7439_v10 = vunpack.i.h.bf16 %v10857_v39  ;;  %3002 = vmatprep.subr.bf16.mxu1 %v2781_v24  ;;  %v18770_v1 = vld [vmem:[#allocation160_spill] sm:$0xff]  ;;  %v12267_v51 = vpop.permute.xlu0 %7661 }
 0x2f7   : > { %v18758_v20 = vpack.c.bf16 %v18756_v23, %v18757_v26  ;;  %v1500_v34 = vsel %vm1484_vm6, %v18762_v35, %v18761_v46  ;;  %v18765_v23 = vld [vmem:[#allocation46_spill] sm:$0xff]  ;;  %v7614_v16 = vunpack.i.h.bf16 %v11982_v32  ;;  %7896 = vrot.lane.b32.xlu1 %v7895_v6, %s17741_s19  ;;  %v7089_v35 = vunpack.i.h.bf16 %v18770_v1  ;;  %18773 = vst [vmem:[#allocation9_spill] sm:$0xff] %v12267_v51  ;;  %v18775_v6 = vld [vmem:[#allocation51_spill] sm:$0xff]  ;;  %v12272_v46 = vpop.permute.xlu1 %7616  ;;  %v18779_v51 = vld [vmem:[#allocation108_spill] sm:$0xff] }
 0x2f8   : > { %v18767_v15 = vpack.c.bf16 %v18765_v23, %v18766_v17  ;;  %v18769_v26 = vld [vmem:[#allocation150_spill] sm:$0xff]  ;;  %3003 = vmatpush2.bf16.msra.mxu1 %v2780_v58  ;;  %v18776_v24 = vpack.c.bf16 %v18774_v14, %v18775_v6  ;;  %v7564_v58 = vunpack.i.h.bf16 %v11816_v13  ;;  %v17672_v17 = vunpack.i.l.bf16 %v12272_v46 }
 0x2f9   : > { %3026 = vmatpush1.bf16.msra.mxu0 %v18758_v20  ;;  %v1616_v20 = vsel %vm1599_vm3, %v18764_v45, %v18763_v49  ;;  %v18771_v49 = vunpack.i.h.bf16 %v18640_v2  ;;  %v18772_v45 = vunpack.i.l.bf16 %v18640_v2  ;;  %v2405_v2 = vsel %vm2219_vm14, %v7549_v60, %v18777_v48 }
 0x2fa   : > { %3027 = vmatprep.subr.bf16.mxu0 %v18767_v15  ;;  %v7569_v15 = vunpack.i.h.bf16 %v12066_v38  ;;  %v18781_v25 = vpack.c.bf16 %v18779_v51, %v18780_v4  ;;  %v7915_v14 = vpack.i.bf16 %v1616_v20, %v18648_v50  ;;  %vm18783_vm0 = vcmask 375808  }
 0x2fb   : > { %v1444_v23 = vsel %vm17686_vm5, %v18772_v45, %v18771_v49  ;;  %v18778_v49 = vunpack.i.l.bf16 %v11942_v21  ;;  %v17673_v48 = vunpack.i.l.bf16 %v11855_v59  ;;  %v18784_v21 = vunpack.i.l.bf16 %v18768_v47 }
 0x2fc   : > { %v7905_v33 = vpack.i.bf16 %v1500_v34, %v1444_v23  ;;  %v18782_v34 = vunpack.i.l.bf16 %v18760_v61  ;;  %v18785_v6 = vunpack.i.l.bf16 %v10857_v39  ;;  %v18786_v4 = vunpack.i.h.bf16 %v11912_v41  ;;  %v12311_v41 = vpop.permute.xlu1 %7626 }
 0x2fd   : > { %3028 = vmatpush1.bf16.msra.mxu0 %v18776_v24  ;;  %v2404_v45 = vsel %vm2219_vm14, %v18778_v49, %v7549_v60  ;;  %v2223_v60 = vsel %vm2219_vm14, %v7439_v10, %v18784_v21  ;;  %v2241_v20 = vsel %vm2219_vm14, %v7614_v16, %v17672_v17  ;;  %v18788_v21 = vld [vmem:[#allocation181_spill] sm:$0xff]  ;;  %vm18792_vm2 = vcmask 441344  }
 0x2fe   : > { %3029 = vmatprep.subr.bf16.mxu0 %v18781_v25  ;;  %v1356_v23 = vsel %vm18783_vm0, %v7089_v35, %v18782_v34  ;;  %7906 = vrot.lane.b32.xlu1 %v7905_v33, %s17741_s19  ;;  %v2222_v24 = vsel %vm2219_vm14, %v18785_v6, %v7439_v10  ;;  %v2240_v50 = vsel %vm2219_vm14, %v18786_v4, %v7614_v16  ;;  %v18787_v33 = vunpack.i.l.bf16 %v12066_v38  ;;  %v18789_v10 = vld [vmem:[#allocation3_spill] sm:$0xff] }
 0x2ff   : > { %v2855_v25 = vpack.c.bf16 %v2405_v2, %v2405_v2  ;;  %v2854_v51 = vpack.c.bf16 %v2404_v45, %v2404_v45  ;;  %v7589_v34 = vunpack.i.h.bf16 %v12157_v44  ;;  %v18790_v6 = vpack.c.bf16 %v18788_v21, %v18789_v10 }
 0x300   : > { %v2369_v49 = vsel %vm2219_vm14, %v7564_v58, %v18787_v33  ;;  %v2763_v2 = vpack.c.bf16 %v2241_v20, %v2223_v60  ;;  %v2387_v16 = vsel %vm2219_vm14, %v7569_v15, %v17673_v48  ;;  %v2762_v45 = vpack.c.bf16 %v2240_v50, %v2222_v24 }
 0x301   : > { %3030 = vmatpush1.bf16.msra.mxu0 %v18790_v6  ;;  %v18791_v4 = vunpack.i.l.bf16 %v18769_v26  ;;  %v18793_v17 = vunpack.i.l.bf16 %v18746_v3  ;;  %v18794_v39 = vunpack.i.h.bf16 %v18599_v55  ;;  %vm18795_vm7 = vcmask 457728  }
 0x302   : > { %6355 = vmatprep.subr.msk.bf16.mxu0 %vm17873_vm13, %v2855_v25  ;;  %v18796_v10 = vunpack.i.l.bf16 %v18748_v42  ;;  %v18797_v60 = vunpack.i.h.bf16 %v18747_v52  ;;  %v18798_v6 = vunpack.i.l.bf16 %v18770_v1  ;;  %v7584_v50 = vunpack.i.h.bf16 %v11884_v29  ;;  %7916 = vrot.lane.b32.xlu1 %v7915_v14, %s17741_s19  ;;  %v12347_v14 = vpop.permute.xlu1 %7636 }
 0x303   : > { %v1281_v33 = vsel %vm18792_vm2, %v7044_v31, %v18791_v4  ;;  %v1131_v21 = vsel %vm18795_vm7, %v18794_v39, %v18793_v17  ;;  %v12335_v4 = vpop.permute.xlu0 %7671  ;;  %3004 = vmatprep.subr.bf16.mxu1 %v2763_v2  ;;  %v18800_v39 = vunpack.i.l.bf16 %v18759_v54  ;;  %v17675_v25 = vunpack.i.l.bf16 %v12236_v63 }
 0x304   : > { %v1206_v20 = vsel %vm1198_vm10, %v18797_v60, %v18796_v10  ;;  %v1355_v24 = vsel %vm18783_vm0, %v18798_v6, %v7089_v35  ;;  %18799 = vst [vmem:[#allocation154_spill] sm:$0xff] %v12335_v4  ;;  %v2749_v17 = vpack.c.bf16 %v1356_v23, %v1281_v33  ;;  %v18801_v10 = vunpack.i.l.bf16 %v11980_v28  ;;  %3005 = vmatpush2.bf16.msra.mxu1 %v2762_v45 }
 0x305   : > { %v1280_v48 = vsel %vm18792_vm2, %v18800_v39, %v7044_v31  ;;  %v2892_v35 = vsel %vm17873_vm13, %v2854_v51, 0  ;;  %v2837_v60 = vpack.c.bf16 %v2387_v16, %v2369_v49  ;;  %v7609_v6 = vunpack.i.h.bf16 %v12236_v63 }
 0x306   : > { %v2386_v1 = vsel %vm2219_vm14, %v18801_v10, %v7569_v15  ;;  %3036 = vmatpush2.bf16.msra.mxu0 %v2892_v35  ;;  %3056 = vmatprep.subr.bf16.mxu1 %v2749_v17  ;;  %v18802_v54 = vunpack.i.l.bf16 %v12157_v44  ;;  %v18803_v28 = vunpack.i.l.bf16 %v11914_v0  ;;  %v18804_v23 = vunpack.i.h.bf16 %v18747_v52  ;;  %v18808_v35 = vld [vmem:[#allocation192_spill] sm:$0xff] }
 0x307   : > { %v18805_v51 = vunpack.i.l.bf16 %v18747_v52  ;;  %v18806_v2 = vunpack.i.h.bf16 %v18644_v27  ;;  %v18807_v45 = vunpack.i.l.bf16 %v11756_v40  ;;  %3037 = vmatprep.subr.bf16.mxu0 %v2837_v60  ;;  %v2748_v17 = vpack.c.bf16 %v1355_v24, %v1280_v48  ;;  %v18809_v52 = vld [vmem:[#allocation21_spill] sm:$0xff]  ;;  %3007 = vmatmul.mubr.bf16.vlgmr.msra.gmra.mxu1 %v11974_v12 }
 0x308   : > { %v2333_v31 = vsel %vm2219_vm14, %v7584_v50, %v18802_v54  ;;  %v2351_v15 = vsel %vm2219_vm14, %v7589_v34, %v18803_v28  ;;  %v7604_v39 = vunpack.i.h.bf16 %v11944_v36  ;;  %v17677_v10 = vunpack.i.l.bf16 %v11982_v32 }
 0x309   : > { %v1205_v49 = vsel %vm1198_vm10, %v18805_v51, %v18804_v23  ;;  %v1502_v16 = vsel %vm1484_vm6, %v18806_v2, %v18727_v37  ;;  %v2368_v33 = vsel %vm2219_vm14, %v18807_v45, %v7564_v58  ;;  %v18810_v54 = vpack.i.bf16 %v18808_v35, %v18809_v52  ;;  %v18811_v37 = vld [vmem:[#allocation99_spill] sm:$0xff]  ;;  %3057 = vmatpush1.bf16.msra.mxu1 %v2748_v17  ;;  %v12385_v2 = vpop.permute.xlu0 %7681 }
 0x30a   : > { %v2836_v27 = vpack.c.bf16 %v2386_v1, %v2368_v33  ;;  %v2731_v28 = vpack.c.bf16 %v1206_v20, %v1131_v21  ;;  %v17681_v23 = vunpack.i.l.bf16 %v18811_v37  ;;  %v18812_v40 = vunpack.i.h.bf16 %v18599_v55  ;;  %v12388_v20 = vpop.permute.xlu1 %7646 }
 0x30b   : > { %7926 = vrot.lane.b32.xlu1 %v18810_v54, %s17741_s19  ;;  %v18813_v58 = vunpack.i.l.bf16 %v18599_v55  ;;  %v18814_v24 = vunpack.i.l.bf16 %v11816_v13  ;;  %v2819_v51 = vpack.c.bf16 %v2351_v15, %v2333_v31  ;;  %vm18815_vm0 = vcmask 719872  }
 0x30c   : > { %6358 = vmatprep.mubr.msk.bf16.mxu1 %vm18815_vm0, %v18666_v11  ;;  %v17674_v21 = vunpack.i.l.bf16 %v12311_v41  ;;  %3038 = vmatpush2.bf16.msra.mxu0 %v2836_v27  ;;  %v7935_v55 = vpack.i.bf16 %v1502_v16, %v18683_v5  ;;  %v2297_v13 = vsel %vm2219_vm14, %v7604_v39, %v17675_v25  ;;  %v6764_v1 = vunpack.i.h.bf16 %v18668_v56 }
 0x30d   : > { %v1130_v48 = vsel %vm18795_vm7, %v18813_v58, %v18812_v40  ;;  %v2350_v60 = vsel %vm2219_vm14, %v18814_v24, %v7589_v34  ;;  %3058 = vmatprep.subr.bf16.mxu1 %v2731_v28  ;;  %v2315_v34 = vsel %vm2219_vm14, %v7609_v6, %v17677_v10  ;;  %v18816_v31 = vunpack.i.h.bf16 %v18736_v9  ;;  %3039 = vmatprep.subr.bf16.mxu0 %v2819_v51  ;;  %v18819_v28 = vld [vmem:[#allocation111_spill] sm:$0xff]  ;;  %v18820_v58 = vld [vmem:[#allocation81_spill] sm:$0xff] }
 0x30e   : > { %v18817_v15 = vunpack.i.l.bf16 %v18736_v9  ;;  %v18818_v33 = vunpack.i.l.bf16 %v12028_v8  ;;  %v2730_v16 = vpack.c.bf16 %v1205_v49, %v1130_v48  ;;  %v7624_v17 = vunpack.i.h.bf16 %v12030_v19 }
 0x30f   : > { %v7619_v54 = vunpack.i.h.bf16 %v12272_v46  ;;  %7936 = vrot.lane.b32.xlu1 %v7935_v55, %s17741_s19  ;;  %v2713_v40 = vpack.c.bf16 %v12197_v30, %v18819_v28  ;;  %v17678_v9 = vunpack.i.l.bf16 %v18820_v58  ;;  %v18821_v24 = vunpack.i.l.bf16 %v11884_v29  ;;  %v12422_v30 = vpop.permute.xlu1 %7656 }
 0x310   : > { %v1055_v45 = vsel %vm1048_vm8, %v18817_v15, %v18816_v31  ;;  %v2332_v5 = vsel %vm2219_vm14, %v18818_v33, %v7584_v50  ;;  %3059 = vmatpush1.bf16.msra.mxu1 %v2730_v16  ;;  %v2801_v50 = vpack.c.bf16 %v2315_v34, %v2297_v13  ;;  %v18822_v49 = vunpack.i.l.bf16 %v18739_v7  ;;  %v18826_v13 = vld [vmem:[#allocation175_spill] sm:$0xff]  ;;  %v18828_v33 = vld [vmem:[#allocation177_spill] sm:$0xff]  ;;  %v18829_v16 = vld [vmem:[#allocation104_spill] sm:$0xff] }
 0x311   : > { %v2818_v27 = vpack.c.bf16 %v2350_v60, %v2332_v5  ;;  %v2314_v8 = vsel %vm2219_vm14, %v18821_v24, %v7609_v6  ;;  %v18823_v48 = vunpack.i.h.bf16 %v18707_v53  ;;  %vm18824_vm2 = vcmask 875520   ;;  %3060 = vmatprep.subr.bf16.mxu1 %v2713_v40  ;;  %v12438_v24 = vpop.permute.xlu0 %7691 }
 0x312   : > { %v17676_v55 = vunpack.i.l.bf16 %v12030_v19  ;;  %v7629_v60 = vunpack.i.h.bf16 %v12311_v41  ;;  %v2279_v29 = vsel %vm2219_vm14, %v7624_v17, %v17674_v21  ;;  %vm18825_vm7 = vcmask 867328  }
 0x313   : > { %v755_v51 = vsel %vm18824_vm2, %v18823_v48, %v18822_v49  ;;  %3040 = vmatpush2.bf16.msra.mxu0 %v2818_v27  ;;  %v830_v6 = vsel %vm18825_vm7, %v6764_v1, %v17681_v23  ;;  %v17680_v34 = vunpack.i.l.bf16 %v18826_v13  ;;  %v18827_v31 = vunpack.i.l.bf16 %v12125_v18  ;;  %v18830_v49 = vld [vmem:[#allocation151_spill] sm:$0xff]  ;;  %v18868_v23 = vld [vmem:[#allocation130_spill] sm:$0xff] }
 0x314   : > { %3041 = vmatprep.subr.bf16.mxu0 %v2801_v50  ;;  %v2712_v5 = vpack.c.bf16 %v1055_v45, %v18828_v33  ;;  %v2695_v27 = vpack.c.bf16 %v18829_v16, %v830_v6  ;;  %v7444_v28 = vunpack.i.h.bf16 %v18768_v47  ;;  %v17679_v40 = vunpack.i.l.bf16 %v12092_v57  ;;  %v18831_v48 = vld [vmem:[#allocation19_spill] sm:$0xff]  ;;  %v18836_v33 = vld [vmem:[#allocation72_spill] sm:$0xff] }
 0x315   : > { %v2296_v15 = vsel %vm2219_vm14, %v18827_v31, %v7604_v39  ;;  %v18832_v21 = vpack.i.bf16 %v18830_v49, %v18831_v48  ;;  %v2261_v18 = vsel %vm2219_vm14, %v7619_v54, %v17676_v55  ;;  %v18833_v39 = vunpack.i.l.bf16 %v12190_v22  ;;  %v18842_v48 = vld [vmem:[#allocation164_spill] sm:$0xff]  ;;  %v18848_v55 = vld [vmem:[#allocation149_spill] sm:$0xff] }
 0x316   : > { %v2800_v25 = vpack.c.bf16 %v2314_v8, %v2296_v15  ;;  %3061 = vmatpush1.bf16.msra.mxu1 %v2712_v5  ;;  %v2783_v50 = vpack.c.bf16 %v2279_v29, %v2261_v18  ;;  %v18834_v6 = vunpack.i.h.bf16 %v18697_v43  ;;  %vm18835_vm0 = vcmask 883712   ;;  %v12465_v5 = vpop.permute.xlu1 %7666 }
 0x317   : > { %7946 = vrot.lane.b32.xlu1 %v18832_v21, %s17741_s19  ;;  %v2260_v45 = vsel %vm2219_vm14, %v18833_v39, %v7619_v54  ;;  %v18837_v16 = vunpack.i.l.bf16 %v18836_v33  ;;  %v18838_v21 = vld [vmem:[#allocation68_spill] sm:$0xff]  ;;  %vm18840_vm2 = vcmask 949248   ;;  %v18841_v49 = vunpack.i.l.bf16 %v18668_v56  ;;  %3062 = vmatprep.subr.bf16.mxu1 %v2695_v27  ;;  %s9197_s19 = smov 1  }
 0x318   : > { %v680_v31 = vsel %vm18835_vm0, %v18834_v6, %v17678_v9  ;;  %v18839_v8 = vunpack.i.h.bf16 %v18838_v21  ;;  %v17682_v54 = vunpack.i.l.bf16 %v18842_v48  ;;  %v7094_v29 = vunpack.i.h.bf16 %v18760_v61  ;;  %3042 = vmatpush2.bf16.msra.mxu0 %v2800_v25 }
 0x319   : > { %v829_v22 = vsel %vm18825_vm7, %v18841_v49, %v6764_v1  ;;  %v2243_v18 = vsel %vm2219_vm14, %v7629_v60, %v17679_v40  ;;  %v18843_v39 = vunpack.i.h.bf16 %v18707_v53  ;;  %v18844_v6 = vunpack.i.l.bf16 %v18707_v53  ;;  %3043 = vmatprep.subr.bf16.mxu0 %v2783_v50 }
 0x31a   : > { %v605_v15 = vsel %vm18840_vm2, %v18839_v8, %v18837_v16  ;;  %vm18845_vm0 = vcmask 875520   ;;  %v18846_v1 = vunpack.i.l.bf16 %v11944_v36  ;;  %v18847_v8 = vld [vmem:[#allocation182_spill] sm:$0xff]  ;;  %v2677_v49 = vpack.c.bf16 %v755_v51, %v680_v31  ;;  %v18855_v31 = vld [vmem:[#allocation49_spill] sm:$0xff] }
 0x31b   : > { %v754_v56 = vsel %vm18845_vm0, %v18844_v6, %v18843_v39  ;;  %v2694_v25 = vpack.c.bf16 %v18847_v8, %v829_v22  ;;  %v7049_v10 = vunpack.i.h.bf16 %v18769_v26  ;;  %v2225_v40 = vsel %vm2219_vm14, %v7444_v28, %v17680_v34  ;;  %v18852_v6 = vld [vmem:[#allocation58_spill] sm:$0xff] }
 0x31c   : > { %v2278_v16 = vsel %vm2219_vm14, %v18846_v1, %v7624_v17  ;;  %v18849_v53 = vunpack.i.l.bf16 %v12272_v46  ;;  %v2765_v36 = vpack.c.bf16 %v2243_v18, %v2225_v40  ;;  %v18850_v17 = vld [vmem:[#allocation61_spill] sm:$0xff]  ;;  %v18853_v22 = vunpack.i.h.bf16 %v18852_v6  ;;  %v18857_v8 = vld [vmem:[#allocation50_spill] sm:$0xff]  ;;  %v18862_v40 = vld [vmem:[#allocation140_spill] sm:$0xff] }
 0x31d   : > { %v2782_v9 = vpack.c.bf16 %v2278_v16, %v2260_v45  ;;  %3063 = vmatpush1.bf16.msra.mxu1 %v2694_v25  ;;  %v18851_v50 = vunpack.i.l.bf16 %v18850_v17  ;;  %vm18854_vm2 = vcmask 957440   ;;  %v18856_v1 = vunpack.i.l.bf16 %v18855_v31  ;;  %v18901_v31 = vld [vmem:[#allocation41_spill] sm:$0xff] }
 0x31e   : > { %v2242_v39 = vsel %vm2219_vm14, %v18849_v53, %v7629_v60  ;;  %v18858_v45 = vunpack.i.h.bf16 %v18857_v8  ;;  %v18859_v34 = vunpack.i.h.bf16 %v18697_v43  ;;  %v18860_v46 = vunpack.i.l.bf16 %v18697_v43  ;;  %v12506_v53 = vpop.permute.xlu0 %7701  ;;  %3064 = vmatprep.subr.bf16.mxu1 %v2677_v49 }
 0x31f   : > { %v530_v51 = vsel %vm18854_vm2, %v18853_v22, %v18851_v50  ;;  %vm18861_vm7 = vcmask 883712   ;;  %v7004_v25 = vunpack.i.h.bf16 %v18748_v42  ;;  %3044 = vmatpush2.bf16.msra.mxu0 %v2782_v9  ;;  %v12508_v50 = vpop.permute.xlu1 %7676  ;;  %vm18863_vm0 = vcmask 375808  }
 0x320   : > { %v12497_v16 = vsel %vm447_vm1, %v18858_v45, %v18856_v1  ;;  %v679_v60 = vsel %vm18861_vm7, %v18860_v46, %v18859_v34  ;;  %v1358_v22 = vsel %vm18863_vm0, %v7094_v29, %v17682_v54  ;;  %v18864_v1 = vunpack.i.h.bf16 %v18838_v21  ;;  %3045 = vmatprep.subr.bf16.mxu0 %v2765_v36 }
 0x321   : > { %v18865_v43 = vunpack.i.l.bf16 %v18838_v21  ;;  %vm18866_vm2 = vcmask 949248   ;;  %v18867_v8 = vunpack.i.l.bf16 %v18768_v47  ;;  %v2676_v46 = vpack.c.bf16 %v754_v56, %v679_v60  ;;  %v18874_v56 = vld [vmem:[#allocation107_spill] sm:$0xff] }
 0x322   : > { %v2659_v9 = vpack.c.bf16 %v605_v15, %v530_v51  ;;  %v6959_v49 = vunpack.i.h.bf16 %v18746_v3  ;;  %v18869_v54 = vunpack.i.l.bf16 %v18848_v55  ;;  %vm18870_vm7 = vcmask 441344  }
 0x323   : > { %v604_v34 = vsel %vm18866_vm2, %v18865_v43, %v18864_v1  ;;  %v2224_v45 = vsel %vm2219_vm14, %v18867_v8, %v7444_v28  ;;  %v18871_v21 = vunpack.i.l.bf16 %v18760_v61  ;;  %3065 = vmatpush1.bf16.msra.mxu1 %v2676_v46  ;;  %v18872_v43 = vld [vmem:[#allocation34_spill] sm:$0xff]  ;;  %v18873_v28 = vld [vmem:[#allocation25_spill] sm:$0xff]  ;;  %v18875_v51 = vunpack.i.h.bf16 %v18852_v6 }
 0x324   : > { %v2764_v27 = vpack.c.bf16 %v2242_v39, %v2224_v45  ;;  %v1283_v35 = vsel %vm18870_vm7, %v7049_v10, %v18869_v54  ;;  %v2641_v36 = vpack.c.bf16 %v18873_v28, %v18872_v43  ;;  %v18876_v39 = vunpack.i.l.bf16 %v18852_v6  ;;  %v18878_v8 = vld [vmem:[#allocation122_spill] sm:$0xff]  ;;  %v18879_v45 = vld [vmem:[#allocation123_spill] sm:$0xff]  ;;  %3066 = vmatprep.subr.bf16.mxu1 %v2659_v9  ;;  %v18886_v54 = vld [vmem:[#allocation60_spill] sm:$0xff]  ;;  %v12553_v9 = vpop.permute.xlu0 %7711 }
 0x325   : > { %v1357_v1 = vsel %vm18863_vm0, %v18871_v21, %v7094_v29  ;;  %v2751_v47 = vpack.c.bf16 %v1358_v22, %v1283_v35  ;;  %vm18877_vm2 = vcmask 957440   ;;  %v6914_v61 = vunpack.i.h.bf16 %v18879_v45  ;;  %v12540_v29 = vpop.permute.xlu1 %7686 }
 0x326   : > { %v529_v60 = vsel %vm18877_vm2, %v18876_v39, %v18875_v51  ;;  %3046 = vmatpush2.bf16.msra.mxu0 %v2764_v27  ;;  %18880 = vst [vmem:[#allocation172_spill] sm:$0xff] %v12540_v29  ;;  %v18881_v35 = vunpack.i.l.bf16 %v18862_v40  ;;  %v18883_v43 = vunpack.i.l.bf16 %v18769_v26  ;;  %v18884_v51 = vld [vmem:[#allocation39_spill] sm:$0xff]  ;;  %v18885_v39 = vld [vmem:[#allocation66_spill] sm:$0xff]  ;;  %v6589_v18 = vunpack.i.h.bf16 %v18850_v17 }
 0x327   : > { %3097 = vmatprep.subr.bf16.mxu0 %v2751_v47  ;;  %v2658_v28 = vpack.c.bf16 %v604_v34, %v529_v60  ;;  %vm18888_vm0 = vcmask 457728   ;;  %v18889_v26 = vunpack.i.l.bf16 %v18748_v42  ;;  %v7634_v34 = vunpack.i.h.bf16 %v12092_v57  ;;  %v18893_v47 = vld [vmem:[#allocation98_spill] sm:$0xff]  ;;  %v18925_v57 = vld [vmem:[#allocation105_spill] sm:$0xff] }
 0x328   : > { %v1208_v22 = vsel %vm1198_vm10, %v7004_v25, %v18881_v35  ;;  %v1282_v6 = vsel %vm18870_vm7, %v18883_v43, %v7049_v10  ;;  %v18887_v35 = vunpack.i.l.bf16 %v18868_v23  ;;  %v18890_v43 = vld [vmem:[#allocation80_spill] sm:$0xff]  ;;  %v18892_v42 = vunpack.i.l.bf16 %v18878_v8  ;;  %vm18895_vm2 = vmmov %vm18888_vm0 }
 0x329   : > { %v2750_v52 = vpack.c.bf16 %v1357_v1, %v1282_v6  ;;  %v1207_v10 = vsel %vm1198_vm10, %v18889_v26, %v7004_v25  ;;  %3048 = vmatmul.mubr.bf16.vlgmr.msra.gmra.mxu0 %v11974_v12  ;;  %3067 = vmatpush1.bf16.msra.mxu1 %v2658_v28  ;;  %v18891_v6 = vld [vmem:[#allocation89_spill] sm:$0xff]  ;;  %v6724_v26 = vunpack.i.h.bf16 %v18739_v7  ;;  %vm18896_vm7 = vcmask 719872  }
 0x32a   : > { %v1133_v21 = vsel %vm18888_vm0, %v6959_v49, %v18887_v35  ;;  %v12567_v35 = vpop.permute.xlu1 %7696  ;;  %3068 = vmatprep.subr.bf16.mxu1 %v2641_v36  ;;  %v1058_v25 = vsel %vm1048_vm8, %v6914_v61, %v18892_v42  ;;  %6360 = vmatprep.mubr.msk.bf16.mxu0 %vm18896_vm7, %v18666_v11  ;;  %v18898_v27 = vunpack.i.l.bf16 %v18850_v17  ;;  %vm18899_vm0 = vcmask 957440  }
 0x32b   : > { %v2733_v60 = vpack.c.bf16 %v1208_v22, %v1133_v21  ;;  %3098 = vmatpush1.bf16.msra.mxu0 %v2750_v52  ;;  %v6769_v22 = vunpack.i.h.bf16 %v18811_v37  ;;  %v18894_v21 = vunpack.i.l.bf16 %v18746_v3  ;;  %v18900_v1 = vunpack.i.l.bf16 %v18879_v45  ;;  %v18907_v45 = vld [vmem:[#allocation71_spill] sm:$0xff]  ;;  %vm18917_vm7 = vmmov %vm18899_vm0 }
 0x32c   : > { %v12584_v42 = vsel %vm18899_vm0, %v18898_v27, %v6589_v18  ;;  %v18905_v36 = vunpack.i.l.bf16 %v12347_v14  ;;  %v18906_v27 = vunpack.i.l.bf16 %v11788_v62  ;;  %v18919_v12 = vunpack.i.l.bf16 %v18893_v47  ;;  %v18923_v3 = vld [vmem:[#allocation27_spill] sm:$0xff]  ;;  %v18926_v47 = vld [vmem:[#allocation6_spill] sm:$0xff] }
 0x32d   : > { %v1132_v28 = vsel %vm18895_vm2, %v18894_v21, %v6959_v49  ;;  %3099 = vmatprep.subr.bf16.mxu0 %v2733_v60  ;;  %v1057_v46 = vsel %vm1048_vm8, %v18900_v1, %v6914_v61  ;;  %v18902_v49 = vld [vmem:[#allocation114_spill] sm:$0xff]  ;;  %v6634_v61 = vunpack.i.h.bf16 %v18836_v33  ;;  %vm18915_vm2 = vcmask 883712  }
 0x32e   : > { %v2732_v15 = vpack.c.bf16 %v1207_v10, %v1132_v28  ;;  %v18903_v60 = vpack.c.bf16 %v18901_v31, %v18902_v49  ;;  %v18904_v21 = vld [vmem:[#allocation26_spill] sm:$0xff]  ;;  %v2407_v17 = vsel %vm2219_vm14, %v7634_v34, %v18905_v36  ;;  %v2406_v52 = vsel %vm2219_vm14, %v18906_v27, %v7634_v34  ;;  %v12602_v10 = vpop.permute.xlu0 %7721  ;;  %v12604_v1 = vpop.permute.xlu1 %7706  ;;  %v18910_v31 = vld [vmem:[#allocation24_spill] sm:$0xff]  ;;  %v18911_v28 = vld [vmem:[#allocation7_spill] sm:$0xff] }
 0x32f   : > { %v2715_v11 = vpack.c.bf16 %v1058_v25, %v18904_v21  ;;  %18908 = vst [vmem:[#allocation29_spill] sm:$0xff] %v12602_v10  ;;  %18909 = vst [vmem:[#allocation2_spill] sm:$0xff] %v12604_v1  ;;  %v18912_v25 = vpack.c.bf16 %v18910_v31, %v18911_v28  ;;  %v18913_v49 = vunpack.i.l.bf16 %v18890_v43  ;;  %v18914_v36 = vunpack.i.h.bf16 %v18820_v58  ;;  %v18918_v21 = vld [vmem:[#allocation148_spill] sm:$0xff]  ;;  %v18924_v10 = vld [vmem:[#allocation30_spill] sm:$0xff] }
 0x330   : > { %3069 = vmatpush1.bf16.msra.mxu1 %v18903_v60  ;;  %3100 = vmatpush1.bf16.msra.mxu0 %v2732_v15  ;;  %v18916_v34 = vunpack.i.l.bf16 %v18886_v54  ;;  %v7644_v27 = vunpack.i.h.bf16 %v18918_v21  ;;  %v7639_v15 = vunpack.i.h.bf16 %v12347_v14  ;;  %vm18920_vm0 = vcmask 867328  }
 0x331   : > { %3070 = vmatprep.subr.bf16.mxu1 %v18912_v25  ;;  %v682_v62 = vsel %vm18915_vm2, %v18914_v36, %v18913_v49  ;;  %3101 = vmatprep.subr.bf16.mxu0 %v2715_v11  ;;  %v832_v31 = vsel %vm18920_vm0, %v6769_v22, %v18919_v12  ;;  %v18921_v28 = vunpack.i.l.bf16 %v18891_v6  ;;  %vm18922_vm5 = vcmask 875520   ;;  %v18935_v11 = vld [vmem:[#allocation9_spill] sm:$0xff] }
 0x332   : > { %v12617_v60 = vsel %vm18917_vm7, %v6589_v18, %v18916_v34  ;;  %v2714_v49 = vpack.c.bf16 %v1057_v46, %v18923_v3  ;;  %v2857_v36 = vpack.c.bf16 %v2407_v17, %v2407_v17  ;;  %v2697_v1 = vpack.c.bf16 %v18924_v10, %v832_v31  ;;  %v12642_v17 = vpop.permute.xlu1 %7716  ;;  %vm18933_vm7 = vmmov %vm18920_vm0 }
 0x333   : > { %v757_v25 = vsel %vm18922_vm5, %v6724_v26, %v18921_v28  ;;  %v2856_v18 = vpack.c.bf16 %v2406_v52, %v2406_v52  ;;  %v17693_v34 = vunpack.i.l.bf16 %v18918_v21  ;;  %v7659_v29 = vunpack.i.h.bf16 %v12422_v30 }
 0x334   : > { %v18927_v48 = vpack.c.bf16 %v18925_v57, %v18926_v47  ;;  %v18928_v12 = vunpack.i.l.bf16 %v12388_v20  ;;  %v18929_v3 = vunpack.i.l.bf16 %v18739_v7  ;;  %3102 = vmatpush1.bf16.msra.mxu0 %v2714_v49  ;;  %v2679_v10 = vpack.c.bf16 %v757_v25, %v682_v62  ;;  %v12659_v25 = vpop.permute.xlu0 %7731 }
 0x335   : > { %v18930_v31 = vunpack.i.l.bf16 %v18907_v45  ;;  %vm18931_vm2 = vcmask 949248   ;;  %v17694_v7 = vunpack.i.l.bf16 %v18935_v11  ;;  %3103 = vmatprep.subr.bf16.mxu0 %v2697_v1  ;;  %v18936_v49 = vunpack.i.l.bf16 %v12066_v38 }
 0x336   : > { %3071 = vmatpush1.bf16.msra.mxu1 %v18927_v48  ;;  %v2389_v28 = vsel %vm2219_vm14, %v7644_v27, %v18928_v12  ;;  %v756_v52 = vsel %vm18922_vm5, %v18929_v3, %v6724_v26  ;;  %v18932_v48 = vunpack.i.l.bf16 %v18811_v37  ;;  %v18934_v12 = vld [vmem:[#allocation161_spill] sm:$0xff]  ;;  %v2371_v26 = vsel %vm2219_vm14, %v7639_v15, %v17693_v34  ;;  %v18937_v37 = vld [vmem:[#allocation183_spill] sm:$0xff]  ;;  %vm18941_vm0 = vmmov %vm18931_vm2 }
 0x337   : > { %6357 = vmatprep.subr.msk.bf16.mxu1 %vm17873_vm13, %v2857_v36  ;;  %v607_v57 = vsel %vm18931_vm2, %v6634_v61, %v18930_v31  ;;  %v7654_v46 = vunpack.i.h.bf16 %v18934_v12  ;;  %v2370_v62 = vsel %vm2219_vm14, %v18936_v49, %v7639_v15  ;;  %v2898_v36 = vsel %vm17873_vm13, %v2856_v18, 0  ;;  %v18939_v15 = vld [vmem:[#allocation63_spill] sm:$0xff] }
 0x338   : > { %v831_v47 = vsel %vm18933_vm7, %v18932_v48, %v6769_v22  ;;  %v2839_v22 = vpack.c.bf16 %v2389_v28, %v2371_v26  ;;  %v7679_v31 = vunpack.i.h.bf16 %v12508_v50  ;;  %v17697_v48 = vunpack.i.l.bf16 %v12508_v50 }
 0x339   : > { %v2696_v3 = vpack.c.bf16 %v18937_v37, %v831_v47  ;;  %v18938_v1 = vunpack.i.l.bf16 %v12422_v30  ;;  %v2353_v38 = vsel %vm2219_vm14, %v7659_v29, %v17694_v7  ;;  %v18940_v47 = vunpack.i.l.bf16 %v18836_v33  ;;  %v12679_v37 = vpop.permute.xlu1 %7726 }
 0x33a   : > { %3077 = vmatpush2.bf16.msra.mxu1 %v2898_v36  ;;  %v18942_v26 = vunpack.i.l.bf16 %v11855_v59  ;;  %v18944_v7 = vunpack.i.l.bf16 %v18820_v58  ;;  %vm18945_vm5 = vcmask 883712   ;;  %v7674_v18 = vunpack.i.h.bf16 %v12335_v4 }
 0x33b   : > { %v2335_v34 = vsel %vm2219_vm14, %v7654_v46, %v18938_v1  ;;  %v606_v28 = vsel %vm18941_vm0, %v18940_v47, %v6634_v61  ;;  %3104 = vmatpush1.bf16.msra.mxu0 %v2696_v3  ;;  %3078 = vmatprep.subr.bf16.mxu1 %v2839_v22  ;;  %v18943_v1 = vunpack.i.h.bf16 %v18820_v58  ;;  %v17698_v33 = vunpack.i.l.bf16 %v12385_v2 }
 0x33c   : > { %v2388_v36 = vsel %vm2219_vm14, %v18942_v26, %v7644_v27  ;;  %3105 = vmatprep.subr.bf16.mxu0 %v2679_v10  ;;  %v18946_v59 = vunpack.i.l.bf16 %v11914_v0  ;;  %v2821_v47 = vpack.c.bf16 %v2353_v38, %v2335_v34  ;;  %v2661_v22 = vpack.c.bf16 %v607_v57, %v12617_v60  ;;  %v18947_v0 = vld [vmem:[#allocation75_spill] sm:$0xff] }
 0x33d   : > { %v681_v49 = vsel %vm18945_vm5, %v18944_v7, %v18943_v1  ;;  %v2838_v61 = vpack.c.bf16 %v2388_v36, %v2370_v62  ;;  %v7699_v26 = vunpack.i.h.bf16 %v12567_v35  ;;  %v17695_v58 = vunpack.i.l.bf16 %v12567_v35  ;;  %v12707_v57 = vpop.permute.xlu1 %7736 }
 0x33e   : > { %v2352_v27 = vsel %vm2219_vm14, %v18946_v59, %v7659_v29  ;;  %v2678_v3 = vpack.c.bf16 %v756_v52, %v681_v49  ;;  %v2299_v7 = vsel %vm2219_vm14, %v7674_v18, %v17697_v48  ;;  %v2317_v10 = vsel %vm2219_vm14, %v7679_v31, %v17698_v33  ;;  %v12705_v52 = vpop.permute.xlu0 %7741  ;;  %v18949_v59 = vld [vmem:[#allocation93_spill] sm:$0xff]  ;;  %v18957_v29 = vld [vmem:[#allocation167_spill] sm:$0xff] }
 0x33f   : > { %3079 = vmatpush2.bf16.msra.mxu1 %v2838_v61  ;;  %v18948_v34 = vunpack.i.l.bf16 %v12157_v44  ;;  %v2660_v38 = vpack.c.bf16 %v606_v28, %v12584_v42  ;;  %v7694_v36 = vunpack.i.h.bf16 %v12438_v24  ;;  %v17696_v1 = vunpack.i.l.bf16 %v12506_v53 }
 0x340   : > { %3106 = vmatpush1.bf16.msra.mxu0 %v2678_v3  ;;  %3080 = vmatprep.subr.bf16.mxu1 %v2821_v47  ;;  %v2803_v62 = vpack.c.bf16 %v2317_v10, %v2299_v7  ;;  %v18951_v47 = vld [vmem:[#allocation125_spill] sm:$0xff]  ;;  %v17699_v42 = vunpack.i.l.bf16 %v12642_v17  ;;  %v7649_v10 = vunpack.i.h.bf16 %v12388_v20  ;;  %v18954_v48 = vpack.c.bf16 %v12497_v16, %v18874_v56 }
 0x341   : > { %v2334_v60 = vsel %vm2219_vm14, %v18948_v34, %v7654_v46  ;;  %3107 = vmatprep.subr.bf16.mxu0 %v2661_v22  ;;  %v18950_v34 = vunpack.i.l.bf16 %v11982_v32  ;;  %v2263_v28 = vsel %vm2219_vm14, %v7694_v36, %v17695_v58  ;;  %v7054_v46 = vunpack.i.h.bf16 %v18848_v55 }
 0x342   : > { %v2820_v61 = vpack.c.bf16 %v2352_v27, %v2334_v60  ;;  %v2281_v27 = vsel %vm2219_vm14, %v7699_v26, %v17696_v1  ;;  %v12732_v60 = vpop.permute.xlu1 %7746  ;;  %v7714_v1 = vunpack.i.h.bf16 %v12553_v9  ;;  %v17702_v22 = vunpack.i.l.bf16 %v18957_v29 }
 0x343   : > { %v2316_v3 = vsel %vm2219_vm14, %v18950_v34, %v7679_v31  ;;  %v18952_v31 = vunpack.i.l.bf16 %v12236_v63  ;;  %v18953_v34 = vld [vmem:[#allocation178_spill] sm:$0xff]  ;;  %v18955_v63 = vld [vmem:[#allocation143_spill] sm:$0xff]  ;;  %v2785_v33 = vpack.c.bf16 %v2281_v27, %v2263_v28  ;;  %v18958_v32 = vunpack.i.l.bf16 %v12030_v19  ;;  %v18962_v27 = vld [vmem:[#allocation164_spill] sm:$0xff] }
 0x344   : > { %3081 = vmatpush2.bf16.msra.mxu1 %v2820_v61  ;;  %3108 = vmatpush1.bf16.msra.mxu0 %v2660_v38  ;;  %v7449_v61 = vunpack.i.h.bf16 %v18826_v13  ;;  %v17701_v58 = vunpack.i.l.bf16 %v18953_v34  ;;  %v18956_v38 = vunpack.i.l.bf16 %v12311_v41  ;;  %v2245_v56 = vsel %vm2219_vm14, %v7714_v1, %v17699_v42 }
 0x345   : > { %v2298_v7 = vsel %vm2219_vm14, %v18952_v31, %v7674_v18  ;;  %3082 = vmatprep.subr.bf16.mxu1 %v2803_v62  ;;  %3109 = vmatprep.subr.bf16.mxu0 %v18954_v48  ;;  %v17700_v18 = vunpack.i.l.bf16 %v18934_v12  ;;  %v12742_v31 = vpop.permute.xlu0 %7751  ;;  %v2262_v16 = vsel %vm2219_vm14, %v18958_v32, %v7694_v36  ;;  %v7669_v48 = vunpack.i.h.bf16 %v12465_v5 }
 0x346   : > { %v2802_v49 = vpack.c.bf16 %v2316_v3, %v2298_v7  ;;  %v2280_v62 = vsel %vm2219_vm14, %v18956_v38, %v7699_v26  ;;  %v17703_v41 = vunpack.i.l.bf16 %v12465_v5  ;;  %v18959_v26 = vpack.c.bf16 %v18885_v39, %v18884_v51  ;;  %v18961_v3 = vld [vmem:[#allocation156_spill] sm:$0xff]  ;;  %v18963_v7 = vld [vmem:[#allocation185_spill] sm:$0xff] }
 0x347   : > { %v2409_v19 = vsel %vm2219_vm14, %v7649_v10, %v17700_v18  ;;  %v18960_v36 = vunpack.i.l.bf16 %v12347_v14  ;;  %v7099_v32 = vunpack.i.h.bf16 %v18962_v27  ;;  %v18964_v38 = vld [vmem:[#allocation13_spill] sm:$0xff]  ;;  %v2784_v44 = vpack.c.bf16 %v2280_v62, %v2262_v16  ;;  %v18966_v14 = vld [vmem:[#allocation128_spill] sm:$0xff] }
 0x348   : > { %3083 = vmatpush2.bf16.msra.mxu1 %v2802_v49  ;;  %3110 = vmatpush1.bf16.msra.mxu0 %v18959_v26  ;;  %v18965_v42 = vpack.c.bf16 %v18963_v7, %v18964_v38  ;;  %v2227_v51 = vsel %vm2219_vm14, %v7449_v61, %v17701_v58  ;;  %v7664_v39 = vunpack.i.h.bf16 %v18935_v11  ;;  %v18967_v26 = vunpack.i.l.bf16 %v18966_v14  ;;  %v18970_v38 = vld [vmem:[#allocation172_spill] sm:$0xff] }
 0x349   : > { %3084 = vmatprep.subr.bf16.mxu1 %v2785_v33  ;;  %v2408_v49 = vsel %vm2219_vm14, %v18960_v36, %v7649_v10  ;;  %v12779_v36 = vpop.permute.xlu1 %7756  ;;  %v2767_v18 = vpack.c.bf16 %v2245_v56, %v2227_v51  ;;  %v18968_v28 = vunpack.i.l.bf16 %v18826_v13  ;;  %v2859_v62 = vpack.c.bf16 %v2409_v19, %v2409_v19  ;;  %v12789_v33 = vpop.permute.xlu0 %7761  ;;  %v18975_v19 = vld [vmem:[#allocation133_spill] sm:$0xff] }
 0x34a   : > { %3111 = vmatprep.subr.bf16.mxu0 %v18965_v42  ;;  %v2244_v10 = vsel %vm2219_vm14, %v18967_v26, %v7714_v1  ;;  %v2858_v16 = vpack.c.bf16 %v2408_v49, %v2408_v49  ;;  %vm18969_vm2 = vcmask 375808   ;;  %v7689_v58 = vunpack.i.h.bf16 %v18970_v38  ;;  %v18971_v1 = vld [vmem:[#allocation186_spill] sm:$0xff]  ;;  %v18972_v26 = vld [vmem:[#allocation12_spill] sm:$0xff] }
 0x34b   : > { %v2226_v42 = vsel %vm2219_vm14, %v18968_v28, %v7449_v61  ;;  %v1360_v7 = vsel %vm18969_vm2, %v7099_v32, %v17702_v22  ;;  %v18973_v56 = vpack.c.bf16 %v18971_v1, %v18972_v26  ;;  %v2373_v13 = vsel %vm2219_vm14, %v7664_v39, %v17703_v41  ;;  %vm18981_vm0 = vmmov %vm18969_vm2 }
 0x34c   : > { %3085 = vmatpush2.bf16.msra.mxu1 %v2784_v44  ;;  %v18974_v44 = vunpack.i.l.bf16 %v12335_v4  ;;  %v2766_v28 = vpack.c.bf16 %v2244_v10, %v2226_v42  ;;  %v18976_v51 = vunpack.i.l.bf16 %v18961_v3  ;;  %vm18977_vm7 = vcmask 441344  }
 0x34d   : > { %3112 = vmatpush1.bf16.msra.mxu0 %v18973_v56  ;;  %3086 = vmatprep.subr.bf16.mxu1 %v2767_v18  ;;  %v18978_v1 = vunpack.i.l.bf16 %v18955_v63  ;;  %v18979_v18 = vunpack.i.h.bf16 %v18862_v40  ;;  %v18980_v56 = vunpack.i.l.bf16 %v18962_v27  ;;  %v17705_v49 = vunpack.i.l.bf16 %v12438_v24  ;;  %vm18983_vm5 = vmmov %vm18977_vm7  ;;  %v18985_v27 = vld [vmem:[#allocation2_spill] sm:$0xff] }
 0x34e   : > { %v2391_v61 = vsel %vm2219_vm14, %v7669_v48, %v18974_v44  ;;  %6359 = vmatprep.subr.msk.bf16.mxu0 %vm17873_vm13, %v2859_v62  ;;  %v1285_v22 = vsel %vm18977_vm7, %v7054_v46, %v18976_v51  ;;  %v7684_v44 = vunpack.i.h.bf16 %v12385_v2  ;;  %v18982_v10 = vunpack.i.l.bf16 %v18848_v55 }
 0x34f   : > { %v1210_v26 = vsel %vm1198_vm10, %v18979_v18, %v18978_v1  ;;  %v1359_v41 = vsel %vm18981_vm0, %v18980_v56, %v7099_v32  ;;  %v2753_v62 = vpack.c.bf16 %v1360_v7, %v1285_v22  ;;  %v18984_v51 = vunpack.i.l.bf16 %v12388_v20  ;;  %v12824_v56 = vpop.permute.xlu1 %7766 }
 0x350   : > { %v1284_v42 = vsel %vm18983_vm5, %v18982_v10, %v7054_v46  ;;  %3087 = vmatpush2.bf16.msra.mxu1 %v2766_v28  ;;  %v2904_v1 = vsel %vm17873_vm13, %v2858_v16, 0  ;;  %v2841_v18 = vpack.c.bf16 %v2391_v61, %v2373_v13  ;;  %v7709_v4 = vunpack.i.h.bf16 %v18985_v27  ;;  %18986 = vst [vmem:[#allocation56_spill] sm:$0xff] %v12824_v56 }
 0x351   : > { %v2390_v14 = vsel %vm2219_vm14, %v18984_v51, %v7669_v48  ;;  %v17706_v32 = vunpack.i.l.bf16 %v18985_v27  ;;  %3118 = vmatpush2.bf16.msra.mxu0 %v2904_v1  ;;  %3138 = vmatprep.subr.bf16.mxu1 %v2753_v62  ;;  %v18987_v55 = vunpack.i.l.bf16 %v18970_v38  ;;  %v2355_v20 = vsel %vm2219_vm14, %v7689_v58, %v17705_v49 }
 0x352   : > { %v18988_v22 = vunpack.i.h.bf16 %v18862_v40  ;;  %v18989_v48 = vunpack.i.l.bf16 %v18862_v40  ;;  %v18990_v7 = vunpack.i.l.bf16 %v18918_v21  ;;  %3119 = vmatprep.subr.bf16.mxu0 %v2841_v18  ;;  %v2752_v61 = vpack.c.bf16 %v1359_v41, %v1284_v42  ;;  %v18994_v40 = vld [vmem:[#allocation137_spill] sm:$0xff] }
 0x353   : > { %v2337_v46 = vsel %vm2219_vm14, %v7684_v44, %v18987_v55  ;;  %v18991_v28 = vunpack.i.l.bf16 %v18975_v19  ;;  %v18992_v62 = vunpack.i.h.bf16 %v18868_v23  ;;  %vm18993_vm2 = vcmask 457728   ;;  %v12847_v55 = vpop.permute.xlu0 %7771  ;;  %3089 = vmatmul.mubr.bf16.vlgmr.msra.gmra.mxu1 %v18994_v40 }
 0x354   : > { %v1209_v16 = vsel %vm1198_vm10, %v18989_v48, %v18988_v22  ;;  %v2372_v13 = vsel %vm2219_vm14, %v18990_v7, %v7664_v39  ;;  %v7704_v51 = vunpack.i.h.bf16 %v12506_v53  ;;  %v18995_v48 = vld [vmem:[#allocation101_spill] sm:$0xff]  ;;  %v18996_v41 = vunpack.i.l.bf16 %v18935_v11  ;;  %3139 = vmatpush1.bf16.msra.mxu1 %v2752_v61  ;;  %vm19001_vm7 = vmmov %vm18993_vm2  ;;  %v19010_v39 = vld [vmem:[#allocation115_spill] sm:$0xff] }
 0x355   : > { %v1135_v10 = vsel %vm18993_vm2, %v18992_v62, %v18991_v28  ;;  %v2840_v22 = vpack.c.bf16 %v2390_v14, %v2372_v13  ;;  %v2823_v18 = vpack.c.bf16 %v2355_v20, %v2337_v46  ;;  %v18997_v7 = vunpack.i.l.bf16 %v18951_v47  ;;  %v19003_v20 = vld [vmem:[#allocation98_spill] sm:$0xff] }
 0x356   : > { %v2735_v21 = vpack.c.bf16 %v1210_v26, %v1135_v10  ;;  %v2354_v42 = vsel %vm2219_vm14, %v18996_v41, %v7689_v58  ;;  %v18998_v28 = vunpack.i.h.bf16 %v18878_v8  ;;  %v18999_v49 = vunpack.i.h.bf16 %v18868_v23  ;;  %v19009_v41 = vld [vmem:[#allocation29_spill] sm:$0xff]  ;;  %v19011_v26 = vld [vmem:[#allocation83_spill] sm:$0xff] }
 0x357   : > { %v19000_v1 = vunpack.i.l.bf16 %v18868_v23  ;;  %3120 = vmatpush2.bf16.msra.mxu0 %v2840_v22  ;;  %v2301_v11 = vsel %vm2219_vm14, %v7704_v51, %v17706_v32  ;;  %v19002_v58 = vunpack.i.l.bf16 %v12553_v9  ;;  %v6774_v13 = vunpack.i.h.bf16 %v19003_v20  ;;  %v12897_v56 = vpop.permute.xlu0 %7781 }
 0x358   : > { %v1060_v62 = vsel %vm1048_vm8, %v18998_v28, %v18997_v7  ;;  %3140 = vmatprep.subr.bf16.mxu1 %v2735_v21  ;;  %v19004_v61 = vmov %v18998_v28  ;;  %v19005_v23 = vunpack.i.l.bf16 %v18878_v8  ;;  %v19006_v10 = vunpack.i.l.bf16 %v12422_v30  ;;  %3121 = vmatprep.subr.bf16.mxu0 %v2823_v18  ;;  %v19007_v21 = vld [vmem:[#allocation174_spill] sm:$0xff] }
 0x359   : > { %v1134_v14 = vsel %vm19001_vm7, %v19000_v1, %v18999_v49  ;;  %v2319_v46 = vsel %vm2219_vm14, %v7709_v4, %v19002_v58  ;;  %vm19008_vm0 = vcmask 719872   ;;  %v7724_v7 = vunpack.i.h.bf16 %v19009_v41  ;;  %v12884_v58 = vpop.permute.xlu1 %7776 }
 0x35a   : > { %v1059_v49 = vsel %vm1048_vm8, %v19005_v23, %v19004_v61  ;;  %v2336_v1 = vsel %vm2219_vm14, %v19006_v10, %v7684_v44  ;;  %v2734_v22 = vpack.c.bf16 %v1209_v16, %v1134_v14  ;;  %6362 = vmatprep.mubr.msk.bf16.mxu1 %vm19008_vm0, %v19007_v21  ;;  %v7719_v28 = vunpack.i.h.bf16 %v12642_v17 }
 0x35b   : > { %v2822_v32 = vpack.c.bf16 %v2354_v42, %v2336_v1  ;;  %v2717_v8 = vpack.c.bf16 %v1060_v62, %v19010_v39  ;;  %v19012_v30 = vunpack.i.l.bf16 %v12385_v2  ;;  %v2805_v16 = vpack.c.bf16 %v2319_v46, %v2301_v11  ;;  %v19019_v11 = vld [vmem:[#allocation180_spill] sm:$0xff] }
 0x35c   : > { %3141 = vmatpush1.bf16.msra.mxu1 %v2734_v22  ;;  %v19013_v18 = vunpack.i.l.bf16 %v18949_v59  ;;  %v19014_v14 = vunpack.i.h.bf16 %v18891_v6  ;;  %vm19015_vm5 = vcmask 875520   ;;  %v17708_v10 = vunpack.i.l.bf16 %v19009_v41 }
 0x35d   : > { %v2318_v44 = vsel %vm2219_vm14, %v19012_v30, %v7709_v4  ;;  %v7729_v39 = vunpack.i.h.bf16 %v12679_v37  ;;  %3122 = vmatpush2.bf16.msra.mxu0 %v2822_v32  ;;  %3142 = vmatprep.subr.bf16.mxu1 %v2717_v8  ;;  %v19016_v2 = vunpack.i.l.bf16 %v12679_v37  ;;  %v19017_v42 = vunpack.i.l.bf16 %v18995_v48  ;;  %v19021_v30 = vld [vmem:[#allocation187_spill] sm:$0xff] }
 0x35e   : > { %v759_v23 = vsel %vm19015_vm5, %v19014_v14, %v19013_v18  ;;  %vm19018_vm2 = vcmask 867328   ;;  %v19020_v1 = vunpack.i.l.bf16 %v12508_v50  ;;  %3123 = vmatprep.subr.bf16.mxu0 %v2805_v16  ;;  %v2716_v18 = vpack.c.bf16 %v1059_v49, %v19021_v30  ;;  %v19022_v14 = vld [vmem:[#allocation112_spill] sm:$0xff] }
 0x35f   : > { %v2283_v4 = vsel %vm2219_vm14, %v7724_v7, %v19016_v2  ;;  %v834_v62 = vsel %vm19018_vm2, %v6774_v13, %v19017_v42  ;;  %v7454_v8 = vunpack.i.h.bf16 %v18953_v34  ;;  %v17709_v61 = vunpack.i.l.bf16 %v12659_v25  ;;  %vm19031_vm5 = vmmov %vm19018_vm2 }
 0x360   : > { %v2300_v22 = vsel %vm2219_vm14, %v19020_v1, %v7704_v51  ;;  %v2699_v32 = vpack.c.bf16 %v19022_v14, %v834_v62  ;;  %v2265_v42 = vsel %vm2219_vm14, %v7719_v28, %v17708_v10  ;;  %v19023_v46 = vunpack.i.l.bf16 %v12567_v35  ;;  %3143 = vmatpush1.bf16.msra.mxu1 %v2716_v18  ;;  %v19032_v14 = vld [vmem:[#allocation166_spill] sm:$0xff] }
 0x361   : > { %v2804_v2 = vpack.c.bf16 %v2318_v44, %v2300_v22  ;;  %v2787_v51 = vpack.c.bf16 %v2283_v4, %v2265_v42  ;;  %v19024_v16 = vunpack.i.l.bf16 %v19011_v26  ;;  %v19025_v49 = vunpack.i.h.bf16 %v18890_v43 }
 0x362   : > { %v2264_v50 = vsel %vm2219_vm14, %v19023_v46, %v7719_v28  ;;  %vm19026_vm7 = vcmask 883712   ;;  %v19027_v1 = vunpack.i.l.bf16 %v18947_v0  ;;  %v19028_v44 = vunpack.i.h.bf16 %v18907_v45  ;;  %v12935_v46 = vpop.permute.xlu1 %7786  ;;  %3144 = vmatprep.subr.bf16.mxu1 %v2699_v32  ;;  %v12951_v28 = vpop.permute.xlu0 %7791 }
 0x363   : > { %v684_v62 = vsel %vm19026_vm7, %v19025_v49, %v19024_v16  ;;  %vm19029_vm0 = vcmask 949248   ;;  %v19030_v30 = vunpack.i.l.bf16 %v19003_v20  ;;  %v7104_v4 = vunpack.i.h.bf16 %v18957_v29  ;;  %19033 = vst [vmem:[#allocation35_spill] sm:$0xff] %v12935_v46  ;;  %3124 = vmatpush2.bf16.msra.mxu0 %v2804_v2  ;;  %v19039_v2 = vld [vmem:[#allocation155_spill] sm:$0xff] }
 0x364   : > { %v609_v22 = vsel %vm19029_vm0, %v19028_v44, %v19027_v1  ;;  %v2247_v18 = vsel %vm2219_vm14, %v7729_v39, %v17709_v61  ;;  %v19034_v42 = vunpack.i.h.bf16 %v18891_v6  ;;  %v19035_v16 = vunpack.i.l.bf16 %v18891_v6  ;;  %3125 = vmatprep.subr.bf16.mxu0 %v2787_v51  ;;  %v19038_v1 = vld [vmem:[#allocation191_spill] sm:$0xff] }
 0x365   : > { %v833_v35 = vsel %vm19031_vm5, %v19030_v30, %v6774_v13  ;;  %vm19036_vm2 = vcmask 875520   ;;  %v19037_v13 = vunpack.i.l.bf16 %v12506_v53  ;;  %v2681_v30 = vpack.c.bf16 %v759_v23, %v684_v62 }
 0x366   : > { %v758_v20 = vsel %vm19036_vm2, %v19035_v16, %v19034_v42  ;;  %v2698_v44 = vpack.c.bf16 %v19038_v1, %v833_v35  ;;  %v17712_v32 = vunpack.i.l.bf16 %v19039_v2  ;;  %v7059_v10 = vunpack.i.h.bf16 %v18961_v3  ;;  %v19041_v42 = vld [vmem:[#allocation53_spill] sm:$0xff]  ;;  %v12985_v1 = vpop.permute.xlu1 %7796 }
 0x367   : > { %v2282_v49 = vsel %vm2219_vm14, %v19037_v13, %v7724_v7  ;;  %v19040_v46 = vunpack.i.l.bf16 %v19019_v11  ;;  %v6553_v16 = vunpack.i.l.bf16 %v19041_v42  ;;  %v19042_v53 = vunpack.i.l.bf16 %v12642_v17 }
 0x368   : > { %v2786_v61 = vpack.c.bf16 %v2282_v49, %v2264_v50  ;;  %3145 = vmatpush1.bf16.msra.mxu1 %v2698_v44  ;;  %v19043_v23 = vunpack.i.l.bf16 %v18939_v15  ;;  %v19044_v62 = vunpack.i.h.bf16 %v18886_v54  ;;  %vm19045_vm7 = vcmask 957440   ;;  %v19049_v49 = vld [vmem:[#allocation142_spill] sm:$0xff] }
 0x369   : > { %v2229_v6 = vsel %vm2219_vm14, %v7454_v8, %v19040_v46  ;;  %v2246_v7 = vsel %vm2219_vm14, %v19042_v53, %v7729_v39  ;;  %v19046_v50 = vunpack.i.h.bf16 %v18890_v43  ;;  %v19047_v13 = vunpack.i.l.bf16 %v18890_v43  ;;  %3146 = vmatprep.subr.bf16.mxu1 %v2681_v30 }
 0x36a   : > { %v2769_v51 = vpack.c.bf16 %v2247_v18, %v2229_v6  ;;  %v534_v35 = vsel %vm19045_vm7, %v19044_v62, %v19043_v23  ;;  %vm19048_vm0 = vcmask 883712   ;;  %v7014_v17 = vunpack.i.h.bf16 %v18955_v63  ;;  %3126 = vmatpush2.bf16.msra.mxu0 %v2786_v61 }
 0x36b   : > { %v683_v46 = vsel %vm19048_vm0, %v19047_v13, %v19046_v50  ;;  %v19050_v39 = vunpack.i.l.bf16 %v19032_v14  ;;  %vm19051_vm5 = vcmask 375808   ;;  %v19052_v44 = vunpack.i.h.bf16 %v18907_v45  ;;  %v19056_v13 = vld [vmem:[#allocation132_spill] sm:$0xff] }
 0x36c   : > { %v19053_v6 = vunpack.i.l.bf16 %v18907_v45  ;;  %vm19054_vm2 = vcmask 949248   ;;  %v19055_v43 = vunpack.i.l.bf16 %v18953_v34  ;;  %3127 = vmatprep.subr.bf16.mxu0 %v2769_v51  ;;  %v2680_v62 = vpack.c.bf16 %v758_v20, %v683_v46  ;;  %vm19060_vm0 = vmmov %vm19051_vm5 }
 0x36d   : > { %v1362_v18 = vsel %vm19051_vm5, %v7104_v4, %v19050_v39  ;;  %v2663_v50 = vpack.c.bf16 %v609_v22, %v534_v35  ;;  %v17713_v61 = vunpack.i.l.bf16 %v19056_v13  ;;  %v6969_v30 = vunpack.i.h.bf16 %v18975_v19  ;;  %v19061_v22 = vld [vmem:[#allocation49_spill] sm:$0xff] }
 0x36e   : > { %v608_v53 = vsel %vm19054_vm2, %v19053_v6, %v19052_v44  ;;  %v2228_v23 = vsel %vm2219_vm14, %v19055_v43, %v7454_v8  ;;  %vm19057_vm7 = vcmask 441344   ;;  %v19059_v34 = vunpack.i.l.bf16 %v18957_v29  ;;  %3147 = vmatpush1.bf16.msra.mxu1 %v2680_v62  ;;  %v19066_v43 = vld [vmem:[#allocation124_spill] sm:$0xff] }
 0x36f   : > { %v2768_v39 = vpack.c.bf16 %v2246_v7, %v2228_v23  ;;  %v1287_v45 = vsel %vm19057_vm7, %v7059_v10, %v17712_v32  ;;  %v19062_v51 = vunpack.i.h.bf16 %v19061_v22  ;;  %v19063_v46 = vunpack.i.h.bf16 %v18886_v54  ;;  %v13004_v32 = vpop.permute.xlu0 %7801  ;;  %3148 = vmatprep.subr.bf16.mxu1 %v2663_v50  ;;  %vm19070_vm2 = vmmov %vm19057_vm7  ;;  %v19071_v22 = vld [vmem:[#allocation38_spill] sm:$0xff]  ;;  %v19073_v50 = vld [vmem:[#allocation23_spill] sm:$0xff] }
 0x370   : > { %v1361_v8 = vsel %vm19060_vm0, %v19059_v34, %v7104_v4  ;;  %v2755_v20 = vpack.c.bf16 %v1362_v18, %v1287_v45  ;;  %v19064_v7 = vunpack.i.l.bf16 %v18886_v54  ;;  %vm19065_vm5 = vcmask 957440   ;;  %v19075_v23 = vld [vmem:[#allocation52_spill] sm:$0xff] }
 0x371   : > { %v459_v35 = vsel %vm447_vm1, %v19062_v51, %v6553_v16  ;;  %v6924_v44 = vunpack.i.h.bf16 %v18951_v47  ;;  %3128 = vmatpush2.bf16.msra.mxu0 %v2768_v39  ;;  %v19067_v29 = vunpack.i.l.bf16 %v19049_v49  ;;  %v19068_v18 = vunpack.i.h.bf16 %v19041_v42  ;;  %v19072_v51 = vld [vmem:[#allocation47_spill] sm:$0xff]  ;;  %v19080_v42 = vld [vmem:[#allocation92_spill] sm:$0xff] }
 0x372   : > { %v533_v6 = vsel %vm19065_vm5, %v19064_v7, %v19063_v46  ;;  %v19069_v54 = vunpack.i.l.bf16 %v18961_v3  ;;  %3179 = vmatprep.subr.bf16.mxu0 %v2755_v20  ;;  %v2644_v46 = vpack.c.bf16 %v19072_v51, %v19071_v22  ;;  %v2645_v7 = vpack.c.bf16 %v459_v35, %v19073_v50  ;;  %v19082_v51 = vld [vmem:[#allocation100_spill] sm:$0xff]  ;;  %v19093_v50 = vld [vmem:[#allocation190_spill] sm:$0xff] }
 0x373   : > { %v1212_v4 = vsel %vm1198_vm10, %v7014_v17, %v19067_v29  ;;  %v13012_v62 = vsel %vm447_vm1, %v6553_v16, %v19068_v18  ;;  %v2662_v34 = vpack.c.bf16 %v608_v53, %v533_v6  ;;  %vm19074_vm7 = vcmask 457728   ;;  %v19079_v6 = vld [vmem:[#allocation82_spill] sm:$0xff] }
 0x374   : > { %v1286_v45 = vsel %vm19070_vm2, %v19069_v54, %v7059_v10  ;;  %v1137_v29 = vsel %vm19074_vm7, %v6969_v30, %v17713_v61  ;;  %v19076_v11 = vunpack.i.l.bf16 %v19075_v23  ;;  %v19077_v16 = vmov %v19068_v18  ;;  %3130 = vmatmul.mubr.bf16.vlgmr.msra.gmra.mxu0 %v18994_v40  ;;  %vm19084_vm0 = vmmov %vm19074_vm7  ;;  %v19103_v23 = vld [vmem:[#allocation67_spill] sm:$0xff] }
 0x375   : > { %v2754_v39 = vpack.c.bf16 %v1361_v8, %v1286_v45  ;;  %v19078_v10 = vunpack.i.l.bf16 %v18955_v63  ;;  %v7734_v20 = vunpack.i.h.bf16 %v12659_v25  ;;  %v17714_v8 = vunpack.i.l.bf16 %v12707_v57  ;;  %3149 = vmatpush1.bf16.msra.mxu1 %v2662_v34  ;;  %v19088_v45 = vld [vmem:[#allocation28_spill] sm:$0xff] }
 0x376   : > { %v13028_v3 = vsel %vm447_vm1, %v19077_v16, %v19076_v11  ;;  %v2737_v35 = vpack.c.bf16 %v1212_v4, %v1137_v29  ;;  %v17715_v18 = vunpack.i.l.bf16 %v19079_v6  ;;  %v13039_v11 = vpop.permute.xlu1 %7806  ;;  %3150 = vmatprep.subr.bf16.mxu1 %v2645_v7  ;;  %v19081_v63 = vunpack.i.l.bf16 %v19066_v43  ;;  %v13055_v16 = vpop.permute.xlu0 %7811 }
 0x377   : > { %v1211_v53 = vsel %vm1198_vm10, %v19078_v10, %v7014_v17  ;;  %3180 = vmatpush1.bf16.msra.mxu0 %v2754_v39  ;;  %v6734_v22 = vunpack.i.h.bf16 %v18949_v59  ;;  %v6779_v4 = vunpack.i.h.bf16 %v18995_v48  ;;  %v19083_v34 = vunpack.i.l.bf16 %v18975_v19  ;;  %v19094_v19 = vld [vmem:[#allocation11_spill] sm:$0xff] }
 0x378   : > { %v1062_v17 = vsel %vm1048_vm8, %v6924_v44, %v19081_v63  ;;  %3181 = vmatprep.subr.bf16.mxu0 %v2737_v35  ;;  %vm19085_vm5 = vcmask 719872   ;;  %v19086_v39 = vunpack.i.l.bf16 %v18951_v47  ;;  %v19087_v63 = vld [vmem:[#allocation45_spill] sm:$0xff]  ;;  %v2411_v47 = vsel %vm2219_vm14, %v7734_v20, %v17714_v8 }
 0x379   : > { %v1136_v29 = vsel %vm19084_vm0, %v19083_v34, %v6969_v30  ;;  %6364 = vmatprep.mubr.msk.bf16.mxu0 %vm19085_vm5, %v19007_v21  ;;  %3151 = vmatpush1.bf16.msra.mxu1 %v2644_v46  ;;  %v19089_v30 = vld [vmem:[#allocation153_spill] sm:$0xff]  ;;  %v6644_v54 = vunpack.i.h.bf16 %v18947_v0  ;;  %v19095_v46 = vpack.c.bf16 %v19093_v50, %v19094_v19  ;;  %vm19097_vm2 = vcmask 883712   ;;  %v19104_v21 = vld [vmem:[#allocation184_spill] sm:$0xff] }
 0x37a   : > { %v1061_v7 = vsel %vm1048_vm8, %v19086_v39, %v6924_v44  ;;  %v2736_v10 = vpack.c.bf16 %v1211_v53, %v1136_v29  ;;  %v2719_v35 = vpack.c.bf16 %v1062_v17, %v19089_v30  ;;  %v19090_v44 = vunpack.i.l.bf16 %v18934_v12  ;;  %v19091_v53 = vld [vmem:[#allocation62_spill] sm:$0xff]  ;;  %v13088_v19 = vpop.permute.xlu1 %7816 }
 0x37b   : > { %v19092_v39 = vld [vmem:[#allocation74_spill] sm:$0xff]  ;;  %3152 = vmatprep.subr.bf16.mxu1 %v19095_v46  ;;  %v19096_v17 = vunpack.i.h.bf16 %v19011_v26  ;;  %v7744_v12 = vunpack.i.h.bf16 %v12705_v52  ;;  %vm19099_vm7 = vcmask 867328   ;;  %vm19101_vm0 = vcmask 875520   ;;  %v19102_v46 = vld [vmem:[#allocation33_spill] sm:$0xff] }
 0x37c   : > { %v2410_v34 = vsel %vm2219_vm14, %v19090_v44, %v7734_v20  ;;  %3182 = vmatpush1.bf16.msra.mxu0 %v2736_v10  ;;  %v7739_v20 = vunpack.i.h.bf16 %v12707_v57  ;;  %v19098_v44 = vunpack.i.l.bf16 %v19082_v51  ;;  %v19100_v10 = vunpack.i.l.bf16 %v19080_v42  ;;  %vm19109_vm5 = vmmov %vm19101_vm0 }
 0x37d   : > { %v686_v30 = vsel %vm19097_vm2, %v19096_v17, %v17715_v18  ;;  %3183 = vmatprep.subr.bf16.mxu0 %v2719_v35  ;;  %v2718_v29 = vpack.c.bf16 %v1061_v7, %v19102_v46  ;;  %v2861_v61 = vpack.c.bf16 %v2411_v47, %v2411_v47  ;;  %v2860_v18 = vpack.c.bf16 %v2410_v34, %v2410_v34 }
 0x37e   : > { %v836_v8 = vsel %vm19099_vm7, %v6779_v4, %v19098_v44  ;;  %v761_v50 = vsel %vm19101_vm0, %v6734_v22, %v19100_v10  ;;  %v17723_v6 = vunpack.i.l.bf16 %v12705_v52  ;;  %v7759_v35 = vunpack.i.h.bf16 %v12779_v36  ;;  %v19105_v44 = vld [vmem:[#allocation10_spill] sm:$0xff] }
 0x37f   : > { %v2701_v17 = vpack.c.bf16 %v19103_v23, %v836_v8  ;;  %v17721_v51 = vunpack.i.l.bf16 %v12779_v36  ;;  %v19106_v40 = vpack.c.bf16 %v19104_v21, %v19105_v44  ;;  %v19107_v10 = vunpack.i.l.bf16 %v12732_v60  ;;  %v13105_v8 = vpop.permute.xlu0 %7821 }
 0x380   : > { %v6599_v7 = vunpack.i.h.bf16 %v18939_v15  ;;  %v19108_v47 = vunpack.i.l.bf16 %v18949_v59  ;;  %3184 = vmatpush1.bf16.msra.mxu0 %v2718_v29  ;;  %v2683_v34 = vpack.c.bf16 %v761_v50, %v686_v30  ;;  %v19110_v46 = vunpack.i.l.bf16 %v19092_v39  ;;  %v19114_v50 = vld [vmem:[#allocation195_spill] sm:$0xff] }
 0x381   : > { %3153 = vmatpush1.bf16.msra.mxu1 %v19106_v40  ;;  %v2393_v42 = vsel %vm2219_vm14, %v7744_v12, %v19107_v10  ;;  %vm19111_vm2 = vcmask 949248   ;;  %v19112_v21 = vunpack.i.l.bf16 %v18995_v48  ;;  %v7754_v10 = vunpack.i.h.bf16 %v12742_v31  ;;  %3185 = vmatprep.subr.bf16.mxu0 %v2701_v17 }
 0x382   : > { %v760_v23 = vsel %vm19109_vm5, %v19108_v47, %v6734_v22  ;;  %6361 = vmatprep.subr.msk.bf16.mxu1 %vm17873_vm13, %v2861_v61  ;;  %v611_v40 = vsel %vm19111_vm2, %v6644_v54, %v19110_v46  ;;  %v17722_v59 = vunpack.i.l.bf16 %v12789_v33  ;;  %v2375_v22 = vsel %vm2219_vm14, %v7739_v20, %v17723_v6  ;;  %vm19117_vm0 = vmmov %vm19111_vm2 }
 0x383   : > { %v835_v44 = vsel %vm19099_vm7, %v19112_v21, %v6779_v4  ;;  %v19113_v61 = vunpack.i.l.bf16 %v12465_v5  ;;  %v2910_v30 = vsel %vm17873_vm13, %v2860_v18, 0  ;;  %v2843_v48 = vpack.c.bf16 %v2393_v42, %v2375_v22  ;;  %v19115_v21 = vld [vmem:[#allocation55_spill] sm:$0xff]  ;;  %v19118_v42 = vld [vmem:[#allocation154_spill] sm:$0xff] }
 0x384   : > { %v2700_v47 = vpack.c.bf16 %v19114_v50, %v835_v44  ;;  %v7779_v4 = vunpack.i.h.bf16 %v12884_v58  ;;  %v2339_v17 = vsel %vm2219_vm14, %v7754_v10, %v17721_v51  ;;  %v2357_v5 = vsel %vm2219_vm14, %v7759_v35, %v17722_v59  ;;  %v13139_v50 = vpop.permute.xlu1 %7826 }
 0x385   : > { %v2374_v29 = vsel %vm2219_vm14, %v19113_v61, %v7739_v20  ;;  %3159 = vmatpush2.bf16.msra.mxu1 %v2910_v30  ;;  %v19116_v18 = vunpack.i.l.bf16 %v18947_v0  ;;  %v19119_v22 = vunpack.i.l.bf16 %v19118_v42  ;;  %v19120_v30 = vunpack.i.l.bf16 %v19091_v53 }
 0x386   : > { %3186 = vmatpush1.bf16.msra.mxu0 %v2700_v47  ;;  %3160 = vmatprep.subr.bf16.mxu1 %v2843_v48  ;;  %vm19121_vm5 = vcmask 957440   ;;  %v19122_v59 = vunpack.i.h.bf16 %v19011_v26  ;;  %v19123_v20 = vunpack.i.l.bf16 %v19011_v26  ;;  %vm19124_vm2 = vcmask 883712   ;;  %v13154_v48 = vpop.permute.xlu0 %7831 }
 0x387   : > { %v610_v44 = vsel %vm19117_vm0, %v19116_v18, %v6644_v54  ;;  %v2392_v61 = vsel %vm2219_vm14, %v19119_v22, %v7744_v12  ;;  %v536_v51 = vsel %vm19121_vm5, %v6599_v7, %v19120_v30  ;;  %v7774_v54 = vunpack.i.h.bf16 %v12847_v55  ;;  %3187 = vmatprep.subr.bf16.mxu0 %v2683_v34  ;;  %vm19128_vm7 = vmmov %vm19121_vm5 }
 0x388   : > { %v685_v0 = vsel %vm19124_vm2, %v19123_v20, %v19122_v59  ;;  %v17727_v18 = vunpack.i.l.bf16 %v12897_v56  ;;  %v2842_v12 = vpack.c.bf16 %v2392_v61, %v2374_v29  ;;  %v19125_v42 = vunpack.i.l.bf16 %v12438_v24  ;;  %v19132_v61 = vld [vmem:[#allocation77_spill] sm:$0xff]  ;;  %v13179_v29 = vpop.permute.xlu1 %7836 }
 0x389   : > { %v2682_v22 = vpack.c.bf16 %v760_v23, %v685_v0  ;;  %v2825_v30 = vpack.c.bf16 %v2357_v5, %v2339_v17  ;;  %v2665_v6 = vpack.c.bf16 %v611_v40, %v536_v51  ;;  %v7799_v46 = vunpack.i.h.bf16 %v12985_v1  ;;  %v19129_v23 = vld [vmem:[#allocation65_spill] sm:$0xff]  ;;  %v19130_v51 = vld [vmem:[#allocation127_spill] sm:$0xff] }
 0x38a   : > { %v2356_v47 = vsel %vm2219_vm14, %v19125_v42, %v7759_v35  ;;  %v17725_v26 = vunpack.i.l.bf16 %v12985_v1  ;;  %3161 = vmatpush2.bf16.msra.mxu1 %v2842_v12  ;;  %v19126_v59 = vunpack.i.l.bf16 %v12884_v58  ;;  %v2321_v24 = vsel %vm2219_vm14, %v7779_v4, %v17727_v18 }
 0x38b   : > { %v19127_v35 = vunpack.i.l.bf16 %v18939_v15  ;;  %v17724_v40 = vunpack.i.l.bf16 %v19130_v51  ;;  %v19131_v17 = vunpack.i.l.bf16 %v18970_v38  ;;  %3188 = vmatpush1.bf16.msra.mxu0 %v2682_v22  ;;  %3162 = vmatprep.subr.bf16.mxu1 %v2825_v30  ;;  %v7794_v12 = vunpack.i.h.bf16 %v12951_v28 }
 0x38c   : > { %v2303_v20 = vsel %vm2219_vm14, %v7774_v54, %v19126_v59  ;;  %v17726_v42 = vunpack.i.l.bf16 %v13004_v32  ;;  %3189 = vmatprep.subr.bf16.mxu0 %v2665_v6  ;;  %v19133_v59 = vunpack.i.l.bf16 %v12553_v9  ;;  %v7819_v22 = vunpack.i.h.bf16 %v13088_v19 }
 0x38d   : > { %v535_v34 = vsel %vm19128_vm7, %v19127_v35, %v6599_v7  ;;  %v2338_v5 = vsel %vm2219_vm14, %v19131_v17, %v7754_v10  ;;  %v17728_v7 = vunpack.i.h.bf16 %v19066_v43  ;;  %v2807_v10 = vpack.c.bf16 %v2321_v24, %v2303_v20  ;;  %v13194_v24 = vpop.permute.xlu0 %7841 }
 0x38e   : > { %v2824_v15 = vpack.c.bf16 %v2356_v47, %v2338_v5  ;;  %v2320_v35 = vsel %vm2219_vm14, %v19133_v59, %v7779_v4  ;;  %v2664_v38 = vpack.c.bf16 %v610_v44, %v535_v34  ;;  %v17729_v30 = vunpack.i.l.bf16 %v13088_v19  ;;  %v19136_v59 = vld [vmem:[#allocation145_spill] sm:$0xff] }
 0x38f   : > { %v2267_v6 = vsel %vm2219_vm14, %v7794_v12, %v17725_v26  ;;  %v2285_v47 = vsel %vm2219_vm14, %v7799_v46, %v17726_v42  ;;  %v19134_v4 = vunpack.i.l.bf16 %v18985_v27  ;;  %v7749_v20 = vunpack.i.h.bf16 %v12732_v60  ;;  %v19138_v26 = vld [vmem:[#allocation169_spill] sm:$0xff] }
 0x390   : > { %3163 = vmatpush2.bf16.msra.mxu1 %v2824_v15  ;;  %3190 = vmatpush1.bf16.msra.mxu0 %v2664_v38  ;;  %v13201_v34 = vsel %vm1048_vm8, %v17728_v7, %v17724_v40  ;;  %v7814_v5 = vunpack.i.h.bf16 %v13055_v16  ;;  %v17730_v27 = vunpack.i.l.bf16 %v13105_v8  ;;  %v2789_v0 = vpack.c.bf16 %v2285_v47, %v2267_v6  ;;  %v13226_v6 = vpop.permute.xlu1 %7846 }
 0x391   : > { %v2302_v44 = vsel %vm2219_vm14, %v19134_v4, %v7774_v54  ;;  %3164 = vmatprep.subr.bf16.mxu1 %v2807_v10  ;;  %v19135_v54 = vpack.c.bf16 %v13028_v3, %v19087_v63  ;;  %v17731_v10 = vunpack.i.l.bf16 %v12742_v31  ;;  %v19137_v4 = vunpack.i.l.bf16 %v12679_v37 }
 0x392   : > { %v2806_v15 = vpack.c.bf16 %v2320_v35, %v2302_v44  ;;  %v17732_v42 = vunpack.i.l.bf16 %v19138_v26  ;;  %v19139_v18 = vunpack.i.l.bf16 %v19009_v41  ;;  %v2231_v3 = vsel %vm2219_vm14, %v7814_v5, %v17729_v30  ;;  %v19140_v35 = vld [vmem:[#allocation56_spill] sm:$0xff]  ;;  %v19144_v30 = vld [vmem:[#allocation189_spill] sm:$0xff] }
 0x393   : > { %3191 = vmatprep.subr.bf16.mxu0 %v19135_v54  ;;  %v2284_v40 = vsel %vm2219_vm14, %v19137_v4, %v7799_v46  ;;  %v2249_v63 = vsel %vm2219_vm14, %v7819_v22, %v17730_v27  ;;  %v7769_v37 = vunpack.i.h.bf16 %v19140_v35  ;;  %v19141_v41 = vpack.c.bf16 %v13012_v62, %v19088_v45  ;;  %v19143_v54 = vld [vmem:[#allocation159_spill] sm:$0xff]  ;;  %v19145_v27 = vld [vmem:[#allocation17_spill] sm:$0xff] }
 0x394   : > { %v2266_v7 = vsel %vm2219_vm14, %v19139_v18, %v7794_v12  ;;  %3165 = vmatpush2.bf16.msra.mxu1 %v2806_v15  ;;  %v2413_v18 = vsel %vm2219_vm14, %v7749_v20, %v17731_v10  ;;  %v19142_v12 = vunpack.i.l.bf16 %v12707_v57  ;;  %v7064_v44 = vunpack.i.h.bf16 %v19039_v2  ;;  %v19148_v10 = vld [vmem:[#allocation180_spill] sm:$0xff] }
 0x395   : > { %3192 = vmatpush1.bf16.msra.mxu0 %v19141_v41  ;;  %3166 = vmatprep.subr.bf16.mxu1 %v2789_v0  ;;  %v7109_v4 = vunpack.i.h.bf16 %v19032_v14  ;;  %v19146_v9 = vpack.c.bf16 %v19144_v30, %v19145_v27  ;;  %v2788_v62 = vpack.c.bf16 %v2284_v40, %v2266_v7  ;;  %v7764_v45 = vunpack.i.h.bf16 %v12789_v33  ;;  %v13245_v41 = vpop.permute.xlu0 %7851  ;;  %v19151_v7 = vld [vmem:[#allocation35_spill] sm:$0xff]  ;;  %v19152_v0 = vld [vmem:[#allocation188_spill] sm:$0xff] }
 0x396   : > { %v2412_v47 = vsel %vm2219_vm14, %v19142_v12, %v7749_v20  ;;  %v19147_v57 = vunpack.i.l.bf16 %v12659_v25  ;;  %v2771_v12 = vpack.c.bf16 %v2249_v63, %v2231_v3  ;;  %v19149_v17 = vunpack.i.l.bf16 %v19148_v10  ;;  %v19153_v25 = vld [vmem:[#allocation16_spill] sm:$0xff]  ;;  %v19157_v3 = vld [vmem:[#allocation135_spill] sm:$0xff] }
 0x397   : > { %3193 = vmatprep.subr.bf16.mxu0 %v19146_v9  ;;  %v2863_v15 = vpack.c.bf16 %v2413_v18, %v2413_v18  ;;  %v2862_v30 = vpack.c.bf16 %v2412_v47, %v2412_v47  ;;  %vm19150_vm0 = vcmask 375808   ;;  %v7789_v9 = vunpack.i.h.bf16 %v19151_v7 }
 0x398   : > { %v2248_v20 = vsel %vm2219_vm14, %v19147_v57, %v7819_v22  ;;  %v2230_v38 = vsel %vm2219_vm14, %v19149_v17, %v7814_v5  ;;  %3167 = vmatpush2.bf16.msra.mxu1 %v2788_v62  ;;  %v1364_v40 = vsel %vm19150_vm0, %v7109_v4, %v17732_v42  ;;  %v17735_v27 = vunpack.i.l.bf16 %v19151_v7  ;;  %vm19163_vm2 = vmmov %vm19150_vm0 }
 0x399   : > { %v19154_v46 = vpack.c.bf16 %v19152_v0, %v19153_v25  ;;  %3168 = vmatprep.subr.bf16.mxu1 %v2771_v12  ;;  %v19155_v22 = vunpack.i.l.bf16 %v19140_v35  ;;  %v19156_v5 = vunpack.i.l.bf16 %v12847_v55  ;;  %v2770_v18 = vpack.c.bf16 %v2248_v20, %v2230_v38 }
 0x39a   : > { %v19158_v47 = vunpack.i.l.bf16 %v19143_v54  ;;  %vm19159_vm5 = vcmask 441344   ;;  %v19161_v0 = vunpack.i.h.bf16 %v19049_v49  ;;  %v19162_v12 = vunpack.i.l.bf16 %v19032_v14 }
 0x39b   : > { %3194 = vmatpush1.bf16.msra.mxu0 %v19154_v46  ;;  %v2377_v17 = vsel %vm2219_vm14, %v7764_v45, %v19155_v22  ;;  %v2395_v10 = vsel %vm2219_vm14, %v7769_v37, %v19156_v5  ;;  %v19160_v46 = vunpack.i.l.bf16 %v19136_v59  ;;  %v7784_v22 = vunpack.i.h.bf16 %v12897_v56  ;;  %vm19165_vm7 = vmmov %vm19159_vm5 }
 0x39c   : > { %6363 = vmatprep.subr.msk.bf16.mxu0 %vm17873_vm13, %v2863_v15  ;;  %v1289_v62 = vsel %vm19159_vm5, %v7064_v44, %v19158_v47  ;;  %v1363_v25 = vsel %vm19163_vm2, %v19162_v12, %v7109_v4  ;;  %v17736_v5 = vunpack.i.l.bf16 %v12951_v28  ;;  %v13282_v15 = vpop.permute.xlu1 %7856  ;;  %v19164_v20 = vunpack.i.l.bf16 %v19039_v2  ;;  %3169 = vmatpush2.bf16.msra.mxu1 %v2770_v18  ;;  %v13291_v4 = vpop.permute.xlu0 %7861 }
 0x39d   : > { %v1214_v57 = vsel %vm1198_vm10, %v19161_v0, %v19160_v46  ;;  %v2757_v38 = vpack.c.bf16 %v1364_v40, %v1289_v62  ;;  %v19166_v42 = vunpack.i.l.bf16 %v12732_v60  ;;  %v2916_v14 = vsel %vm17873_vm13, %v2862_v30, 0 }
 0x39e   : > { %v1288_v47 = vsel %vm19165_vm7, %v19164_v20, %v7064_v44  ;;  %v2845_v46 = vpack.c.bf16 %v2395_v10, %v2377_v17  ;;  %v7809_v0 = vunpack.i.h.bf16 %v13039_v11  ;;  %v17733_v12 = vunpack.i.l.bf16 %v13039_v11 }
 0x39f   : > { %v2394_v63 = vsel %vm2219_vm14, %v19166_v42, %v7769_v37  ;;  %3200 = vmatpush2.bf16.msra.mxu0 %v2916_v14  ;;  %3220 = vmatprep.subr.bf16.mxu1 %v2757_v38  ;;  %v2341_v2 = vsel %vm2219_vm14, %v7784_v22, %v17735_v27  ;;  %v2359_v60 = vsel %vm2219_vm14, %v7789_v9, %v17736_v5  ;;  %v19167_v42 = vunpack.i.h.bf16 %v19049_v49  ;;  %v19173_v14 = vld [vmem:[#allocation137_spill] sm:$0xff] }
 0x3a0   : > { %v19168_v37 = vunpack.i.l.bf16 %v19049_v49  ;;  %v19169_v30 = vunpack.i.l.bf16 %v12705_v52  ;;  %3201 = vmatprep.subr.bf16.mxu0 %v2845_v46  ;;  %v2756_v17 = vpack.c.bf16 %v1363_v25, %v1288_v47  ;;  %v19170_v10 = vunpack.i.l.bf16 %v19157_v3  ;;  %3171 = vmatmul.mubr.bf16.vlgmr.msra.gmra.mxu1 %v19173_v14  ;;  %v19185_v27 = vld [vmem:[#allocation117_spill] sm:$0xff]  ;;  %v19186_v52 = vld [vmem:[#allocation95_spill] sm:$0xff] }
 0x3a1   : > { %v19171_v18 = vunpack.i.h.bf16 %v19056_v13  ;;  %vm19172_vm0 = vcmask 457728   ;;  %v7804_v38 = vunpack.i.h.bf16 %v13004_v32  ;;  %v17734_v20 = vunpack.i.l.bf16 %v13055_v16 }
 0x3a2   : > { %v1213_v44 = vsel %vm1198_vm10, %v19168_v37, %v19167_v42  ;;  %v2376_v40 = vsel %vm2219_vm14, %v19169_v30, %v7764_v45  ;;  %v19174_v37 = vld [vmem:[#allocation85_spill] sm:$0xff]  ;;  %v19176_v25 = vunpack.i.l.bf16 %v19056_v13  ;;  %vm19177_vm5 = vmmov %vm19172_vm0  ;;  %v19178_v46 = vunpack.i.l.bf16 %v12789_v33  ;;  %3221 = vmatpush1.bf16.msra.mxu1 %v2756_v17 }
 0x3a3   : > { %v1139_v62 = vsel %vm19172_vm0, %v19171_v18, %v19170_v10  ;;  %v2844_v49 = vpack.c.bf16 %v2394_v63, %v2376_v40  ;;  %v19175_v45 = vmov %v19171_v18  ;;  %v2827_v10 = vpack.c.bf16 %v2359_v60, %v2341_v2  ;;  %v19179_v18 = vld [vmem:[#allocation174_spill] sm:$0xff]  ;;  %v13330_v40 = vpop.permute.xlu1 %7866  ;;  %v19187_v2 = vld [vmem:[#allocation100_spill] sm:$0xff] }
 0x3a4   : > { %v2739_v42 = vpack.c.bf16 %v1214_v57, %v1139_v62  ;;  %v1138_v47 = vsel %vm19177_vm5, %v19176_v25, %v19175_v45  ;;  %v2358_v30 = vsel %vm2219_vm14, %v19178_v46, %v7789_v9  ;;  %vm19180_vm2 = vcmask 719872   ;;  %v19181_v9 = vld [vmem:[#allocation103_spill] sm:$0xff] }
 0x3a5   : > { %6366 = vmatprep.mubr.msk.bf16.mxu1 %vm19180_vm2, %v19179_v18  ;;  %v7829_v63 = vunpack.i.h.bf16 %v13139_v50  ;;  %v17737_v57 = vunpack.i.l.bf16 %v13139_v50  ;;  %3202 = vmatpush2.bf16.msra.mxu0 %v2844_v49  ;;  %v2305_v13 = vsel %vm2219_vm14, %v7804_v38, %v17733_v12  ;;  %v2323_v33 = vsel %vm2219_vm14, %v7809_v0, %v17734_v20  ;;  %v13349_v12 = vpop.permute.xlu0 %7871 }
 0x3a6   : > { %3222 = vmatprep.subr.bf16.mxu1 %v2739_v42  ;;  %v19182_v60 = vunpack.i.h.bf16 %v19066_v43  ;;  %v19183_v17 = vunpack.i.l.bf16 %v19066_v43  ;;  %v19184_v45 = vunpack.i.l.bf16 %v12779_v36  ;;  %3203 = vmatprep.subr.bf16.mxu0 %v2827_v10  ;;  %v2738_v42 = vpack.c.bf16 %v1213_v44, %v1138_v47  ;;  %v19195_v10 = vld [vmem:[#allocation82_spill] sm:$0xff] }
 0x3a7   : > { %v7824_v25 = vunpack.i.h.bf16 %v13105_v8  ;;  %v17738_v46 = vunpack.i.l.bf16 %v13154_v48  ;;  %v2721_v5 = vpack.c.bf16 %v13201_v34, %v19185_v27  ;;  %v17740_v43 = vunpack.i.l.bf16 %v19186_v52 }
 0x3a8   : > { %v1063_v62 = vsel %vm1048_vm8, %v19183_v17, %v19182_v60  ;;  %v2340_v49 = vsel %vm2219_vm14, %v19184_v45, %v7784_v22  ;;  %v6784_v60 = vunpack.i.h.bf16 %v19187_v2  ;;  %v19188_v36 = vunpack.i.l.bf16 %v12897_v56  ;;  %3223 = vmatpush1.bf16.msra.mxu1 %v2738_v42  ;;  %v13376_v42 = vpop.permute.xlu1 %7876 }
 0x3a9   : > { %v2826_v20 = vpack.c.bf16 %v2358_v30, %v2340_v49  ;;  %v2809_v44 = vpack.c.bf16 %v2323_v33, %v2305_v13  ;;  %v7839_v47 = vunpack.i.h.bf16 %v13179_v29  ;;  %3224 = vmatprep.subr.bf16.mxu1 %v2721_v5  ;;  %v2269_v34 = vsel %vm2219_vm14, %v7824_v25, %v17737_v57  ;;  %v19189_v30 = vld [vmem:[#allocation92_spill] sm:$0xff]  ;;  %v19194_v57 = vld [vmem:[#allocation37_spill] sm:$0xff] }
 0x3aa   : > { %v2322_v22 = vsel %vm2219_vm14, %v19188_v36, %v7809_v0  ;;  %v2287_v27 = vsel %vm2219_vm14, %v7829_v63, %v17738_v46  ;;  %v6739_v56 = vunpack.i.h.bf16 %v19189_v30  ;;  %v19190_v0 = vunpack.i.l.bf16 %v12884_v58  ;;  %v19191_v33 = vld [vmem:[#allocation44_spill] sm:$0xff] }
 0x3ab   : > { %3204 = vmatpush2.bf16.msra.mxu0 %v2826_v20  ;;  %v2720_v17 = vpack.c.bf16 %v1063_v62, %v19191_v33  ;;  %v19192_v20 = vunpack.i.l.bf16 %v19181_v9  ;;  %vm19193_vm7 = vcmask 867328   ;;  %v7834_v45 = vunpack.i.h.bf16 %v13154_v48 }
 0x3ac   : > { %v2304_v13 = vsel %vm2219_vm14, %v19190_v0, %v7804_v38  ;;  %3205 = vmatprep.subr.bf16.mxu0 %v2809_v44  ;;  %v17739_v49 = vunpack.i.l.bf16 %v13194_v24  ;;  %v6694_v58 = vunpack.i.h.bf16 %v19195_v10  ;;  %v19196_v38 = vunpack.i.l.bf16 %v13004_v32  ;;  %vm19199_vm5 = vmmov %vm19193_vm7 }
 0x3ad   : > { %v838_v5 = vsel %vm19193_vm7, %v6784_v60, %v19192_v20  ;;  %v2808_v36 = vpack.c.bf16 %v2322_v22, %v2304_v13  ;;  %3225 = vmatpush1.bf16.msra.mxu1 %v2720_v17  ;;  %v2791_v62 = vpack.c.bf16 %v2287_v27, %v2269_v34  ;;  %vm19197_vm0 = vcmask 875520   ;;  %v13390_v13 = vpop.permute.xlu0 %7881  ;;  %v19202_v27 = vld [vmem:[#allocation116_spill] sm:$0xff] }
 0x3ae   : > { %v2703_v46 = vpack.c.bf16 %v19194_v57, %v838_v5  ;;  %v2286_v44 = vsel %vm2219_vm14, %v19196_v38, %v7829_v63  ;;  %v763_v0 = vsel %vm19197_vm0, %v6739_v56, %v17740_v43  ;;  %v19198_v33 = vunpack.i.l.bf16 %v19187_v2  ;;  %vm19206_vm7 = vmmov %vm19197_vm0 }
 0x3af   : > { %v7114_v22 = vunpack.i.h.bf16 %v19138_v26  ;;  %3206 = vmatpush2.bf16.msra.mxu0 %v2808_v36  ;;  %v19200_v32 = vunpack.i.l.bf16 %v13179_v29  ;;  %v2251_v57 = vsel %vm2219_vm14, %v7839_v47, %v17739_v49  ;;  %v6649_v34 = vunpack.i.h.bf16 %v19092_v39 }
 0x3b0   : > { %v837_v20 = vsel %vm19199_vm5, %v19198_v33, %v6784_v60  ;;  %3226 = vmatprep.subr.bf16.mxu1 %v2703_v46  ;;  %v19201_v2 = vunpack.i.l.bf16 %v12985_v1  ;;  %3207 = vmatprep.subr.bf16.mxu0 %v2791_v62  ;;  %v19203_v5 = vunpack.i.l.bf16 %v19174_v37  ;;  %vm19204_vm2 = vcmask 883712  }
 0x3b1   : > { %v2233_v63 = vsel %vm2219_vm14, %v7834_v45, %v19200_v32  ;;  %v2702_v17 = vpack.c.bf16 %v19202_v27, %v837_v20  ;;  %v19205_v36 = vunpack.i.l.bf16 %v19189_v30  ;;  %v7069_v33 = vunpack.i.h.bf16 %v19143_v54  ;;  %v19210_v27 = vld [vmem:[#allocation52_spill] sm:$0xff]  ;;  %vm19212_vm5 = vmmov %vm19204_vm2 }
 0x3b2   : > { %v2268_v60 = vsel %vm2219_vm14, %v19201_v2, %v7824_v25  ;;  %v688_v46 = vsel %vm19204_vm2, %v6694_v58, %v19203_v5  ;;  %v6604_v43 = vunpack.i.h.bf16 %v19091_v53  ;;  %v19207_v1 = vunpack.i.l.bf16 %v13105_v8  ;;  %v19213_v8 = vld [vmem:[#allocation168_spill] sm:$0xff] }
 0x3b3   : > { %v762_v38 = vsel %vm19206_vm7, %v19205_v36, %v6739_v56  ;;  %v2790_v32 = vpack.c.bf16 %v2286_v44, %v2268_v60  ;;  %v2685_v49 = vpack.c.bf16 %v763_v0, %v688_v46  ;;  %3227 = vmatpush1.bf16.msra.mxu1 %v2702_v17  ;;  %v2773_v62 = vpack.c.bf16 %v2251_v57, %v2233_v63  ;;  %v13422_v0 = vpop.permute.xlu1 %7886 }
 0x3b4   : > { %v2250_v25 = vsel %vm2219_vm14, %v19207_v1, %v7839_v47  ;;  %v19208_v20 = vunpack.i.l.bf16 %v19132_v61  ;;  %vm19209_vm0 = vcmask 949248   ;;  %v6559_v30 = vunpack.i.h.bf16 %v19210_v27 }
 0x3b5   : > { %v19211_v56 = vunpack.i.l.bf16 %v19195_v10  ;;  %v7024_v44 = vunpack.i.h.bf16 %v19136_v59  ;;  %3208 = vmatpush2.bf16.msra.mxu0 %v2790_v32  ;;  %3228 = vmatprep.subr.bf16.mxu1 %v2685_v49  ;;  %vm19214_vm2 = vcmask 375808   ;;  %v19215_v63 = vunpack.i.l.bf16 %v19092_v39  ;;  %vm19216_vm7 = vmmov %vm19209_vm0  ;;  %v13436_v49 = vpop.permute.xlu0 %7891 }
 0x3b6   : > { %v613_v2 = vsel %vm19209_vm0, %v6649_v34, %v19208_v20  ;;  %v1366_v47 = vsel %vm19214_vm2, %v7114_v22, %v19213_v8  ;;  %v19217_v60 = vunpack.i.l.bf16 %v13088_v19  ;;  %3209 = vmatprep.subr.bf16.mxu0 %v2773_v62  ;;  %vm19219_vm0 = vcmask 957440   ;;  %v19220_v20 = vld [vmem:[#allocation158_spill] sm:$0xff] }
 0x3b7   : > { %v687_v5 = vsel %vm19212_vm5, %v19211_v56, %v6694_v58  ;;  %v612_v57 = vsel %vm19216_vm7, %v19215_v63, %v6649_v34  ;;  %v19218_v58 = vunpack.i.l.bf16 %v19129_v23  ;;  %v6979_v36 = vunpack.i.h.bf16 %v19157_v3  ;;  %v19222_v34 = vld [vmem:[#allocation40_spill] sm:$0xff]  ;;  %vm19226_vm7 = vmmov %vm19219_vm0 }
 0x3b8   : > { %v2232_v17 = vsel %vm2219_vm14, %v19217_v60, %v7834_v45  ;;  %v2684_v10 = vpack.c.bf16 %v762_v38, %v687_v5  ;;  %vm19221_vm5 = vcmask 441344   ;;  %v6514_v56 = vunpack.i.h.bf16 %v19222_v34  ;;  %v19227_v63 = vld [vmem:[#allocation144_spill] sm:$0xff] }
 0x3b9   : > { %v538_v46 = vsel %vm19219_vm0, %v6604_v43, %v19218_v58  ;;  %v2772_v32 = vpack.c.bf16 %v2250_v25, %v2232_v17  ;;  %v1291_v39 = vsel %vm19221_vm5, %v7069_v33, %v19220_v20  ;;  %v19223_v19 = vunpack.i.l.bf16 %v19138_v26  ;;  %vm19229_vm0 = vmmov %vm19221_vm5  ;;  %v19230_v17 = vld [vmem:[#allocation43_spill] sm:$0xff]  ;;  %v19234_v20 = vld [vmem:[#allocation134_spill] sm:$0xff] }
 0x3ba   : > { %v2667_v1 = vpack.c.bf16 %v613_v2, %v538_v46  ;;  %3229 = vmatpush1.bf16.msra.mxu1 %v2684_v10  ;;  %v2759_v38 = vpack.c.bf16 %v1366_v47, %v1291_v39  ;;  %v19224_v62 = vunpack.i.l.bf16 %v19115_v21  ;;  %v19225_v8 = vunpack.i.l.bf16 %v19091_v53  ;;  %v13462_v46 = vpop.permute.xlu1 %7896 }
 0x3bb   : > { %v1365_v45 = vsel %vm19214_vm2, %v19223_v19, %v7114_v22  ;;  %v6934_v2 = vunpack.i.h.bf16 %v19130_v51  ;;  %3210 = vmatpush2.bf16.msra.mxu0 %v2772_v32  ;;  %v1216_v60 = vsel %vm1198_vm10, %v7024_v44, %v19227_v63  ;;  %v19228_v26 = vunpack.i.l.bf16 %v19143_v54 }
 0x3bc   : > { %v463_v5 = vsel %vm447_vm1, %v6559_v30, %v19224_v62  ;;  %v537_v25 = vsel %vm19226_vm7, %v19225_v8, %v6604_v43  ;;  %3230 = vmatprep.subr.bf16.mxu1 %v2667_v1  ;;  %3261 = vmatprep.subr.bf16.mxu0 %v2759_v38  ;;  %v19231_v10 = vunpack.i.l.bf16 %v19230_v17  ;;  %vm19232_vm5 = vcmask 1031168  }
 0x3bd   : > { %v1290_v22 = vsel %vm19229_vm0, %v19228_v26, %v7069_v33  ;;  %v2666_v47 = vpack.c.bf16 %v612_v57, %v537_v25  ;;  %v19233_v53 = vunpack.i.l.bf16 %v19210_v27  ;;  %vm19235_vm2 = vcmask 457728   ;;  %vm19238_vm7 = vmmov %vm19232_vm5 }
 0x3be   : > { %v388_v58 = vsel %vm19232_vm5, %v6514_v56, %v19231_v10  ;;  %v2758_v32 = vpack.c.bf16 %v1365_v45, %v1290_v22  ;;  %v1141_v39 = vsel %vm19235_vm2, %v6979_v36, %v19234_v20  ;;  %v19236_v54 = vunpack.i.l.bf16 %v19136_v59  ;;  %3212 = vmatmul.mubr.bf16.vlgmr.msra.gmra.mxu0 %v19173_v14  ;;  %v19239_v59 = vld [vmem:[#allocation126_spill] sm:$0xff]  ;;  %vm19241_vm0 = vmmov %vm19235_vm2  ;;  %v19249_v20 = vld [vmem:[#allocation31_spill] sm:$0xff] }
 0x3bf   : > { %v462_v43 = vsel %vm447_vm1, %v19233_v53, %v6559_v30  ;;  %v2649_v1 = vpack.c.bf16 %v463_v5, %v388_v58  ;;  %v7844_v57 = vunpack.i.h.bf16 %v13194_v24  ;;  %v7848_v19 = vunpack.i.l.bf16 %v13226_v6  ;;  %3231 = vmatpush1.bf16.msra.mxu1 %v2666_v47  ;;  %v13477_v5 = vpop.permute.xlu0 %7901  ;;  %v19244_v47 = vld [vmem:[#allocation15_spill] sm:$0xff]  ;;  %v19245_v10 = vld [vmem:[#allocation194_spill] sm:$0xff] }
 0x3c0   : > { %v1215_v33 = vsel %vm1198_vm10, %v19236_v54, %v7024_v44  ;;  %v2741_v27 = vpack.c.bf16 %v1216_v60, %v1141_v39  ;;  %v19237_v30 = vunpack.i.l.bf16 %v19222_v34  ;;  %v6564_v38 = vunpack.i.h.bf16 %v19115_v21  ;;  %3262 = vmatpush1.bf16.msra.mxu0 %v2758_v32  ;;  %v19246_v32 = vld [vmem:[#allocation57_spill] sm:$0xff]  ;;  %v19250_v54 = vld [vmem:[#allocation84_spill] sm:$0xff] }
 0x3c1   : > { %v6699_v62 = vunpack.i.h.bf16 %v19174_v37  ;;  %3232 = vmatprep.subr.bf16.mxu1 %v2649_v1  ;;  %v1066_v44 = vsel %vm1048_vm8, %v6934_v2, %v19239_v59  ;;  %v6744_v8 = vunpack.i.h.bf16 %v19186_v52  ;;  %v6789_v25 = vunpack.i.h.bf16 %v19181_v9  ;;  %v19248_v1 = vld [vmem:[#allocation14_spill] sm:$0xff] }
 0x3c2   : > { %v387_v45 = vsel %vm19238_vm7, %v19237_v30, %v6514_v56  ;;  %v19240_v63 = vunpack.i.l.bf16 %v19157_v3  ;;  %3263 = vmatprep.subr.bf16.mxu0 %v2741_v27  ;;  %vm19242_vm5 = vcmask 719872   ;;  %v19243_v60 = vunpack.i.l.bf16 %v19130_v51  ;;  %v19252_v27 = vld [vmem:[#allocation54_spill] sm:$0xff] }
 0x3c3   : > { %v2648_v56 = vpack.c.bf16 %v462_v43, %v387_v45  ;;  %6368 = vmatprep.mubr.msk.bf16.mxu0 %vm19242_vm5, %v19179_v18  ;;  %v2631_v58 = vpack.c.bf16 %v19245_v10, %v19244_v47  ;;  %v7858_v53 = vunpack.i.l.bf16 %v13282_v15  ;;  %v2723_v3 = vpack.c.bf16 %v1066_v44, %v19246_v32  ;;  %v19253_v45 = vld [vmem:[#allocation102_spill] sm:$0xff]  ;;  %v19258_v47 = vld [vmem:[#allocation119_spill] sm:$0xff] }
 0x3c4   : > { %v1140_v34 = vsel %vm19241_vm0, %v19240_v63, %v6979_v36  ;;  %v1065_v26 = vsel %vm1048_vm8, %v19243_v60, %v6934_v2  ;;  %v2415_v36 = vsel %vm2219_vm14, %v7844_v57, %v7848_v19  ;;  %v19247_v43 = vunpack.i.l.bf16 %v12742_v31  ;;  %v13502_v2 = vpop.permute.xlu1 %7906  ;;  %v19255_v44 = vld [vmem:[#allocation94_spill] sm:$0xff] }
 0x3c5   : > { %v2740_v22 = vpack.c.bf16 %v1215_v33, %v1140_v34  ;;  %3233 = vmatpush1.bf16.msra.mxu1 %v2648_v56  ;;  %v6654_v51 = vunpack.i.h.bf16 %v19132_v61  ;;  %v2630_v39 = vpack.c.bf16 %v19249_v20, %v19248_v1  ;;  %vm19251_vm2 = vcmask 883712   ;;  %v13522_v34 = vpop.permute.xlu0 %7911  ;;  %v19257_v56 = vld [vmem:[#allocation197_spill] sm:$0xff] }
 0x3c6   : > { %v2414_v18 = vsel %vm2219_vm14, %v19247_v43, %v7844_v57  ;;  %3234 = vmatprep.subr.bf16.mxu1 %v2631_v58  ;;  %v690_v33 = vsel %vm19251_vm2, %v6699_v62, %v19250_v54  ;;  %v13514_v31 = vsel %vm447_vm1, %v6564_v38, %v19252_v27  ;;  %v7854_v57 = vunpack.i.h.bf16 %v13245_v41 }
 0x3c7   : > { %3264 = vmatpush1.bf16.msra.mxu0 %v2740_v22  ;;  %v7849_v30 = vunpack.i.h.bf16 %v13226_v6  ;;  %vm19254_vm7 = vcmask 867328   ;;  %vm19256_vm0 = vcmask 875520   ;;  %v2722_v60 = vpack.c.bf16 %v1065_v26, %v19257_v56 }
 0x3c8   : > { %3265 = vmatprep.subr.bf16.mxu0 %v2723_v3  ;;  %v840_v59 = vsel %vm19254_vm7, %v6789_v25, %v19253_v45  ;;  %v765_v63 = vsel %vm19256_vm0, %v6744_v8, %v19255_v44  ;;  %v2865_v22 = vpack.c.bf16 %v2415_v36, %v2415_v36  ;;  %v2864_v58 = vpack.c.bf16 %v2414_v18, %v2414_v18  ;;  %vm19260_vm5 = vmmov %vm19256_vm0  ;;  %v19261_v18 = vld [vmem:[#allocation76_spill] sm:$0xff] }
 0x3c9   : > { %v2705_v10 = vpack.c.bf16 %v19258_v47, %v840_v59  ;;  %v7853_v32 = vunpack.i.l.bf16 %v13245_v41  ;;  %v7869_v43 = vunpack.i.h.bf16 %v13330_v40  ;;  %v7868_v3 = vunpack.i.l.bf16 %v13330_v40  ;;  %3235 = vmatpush1.bf16.msra.mxu1 %v2630_v39 }
 0x3ca   : > { %v2397_v1 = vsel %vm2219_vm14, %v7854_v57, %v7858_v53  ;;  %v6609_v20 = vunpack.i.h.bf16 %v19129_v23  ;;  %v19259_v54 = vunpack.i.l.bf16 %v19186_v52  ;;  %6365 = vmatprep.subr.msk.bf16.mxu1 %vm17873_vm13, %v2865_v22  ;;  %v2687_v36 = vpack.c.bf16 %v765_v63, %v690_v33  ;;  %v13550_v63 = vpop.permute.xlu1 %7916 }
 0x3cb   : > { %3266 = vmatpush1.bf16.msra.mxu0 %v2722_v60  ;;  %vm19262_vm2 = vcmask 949248   ;;  %v19263_v45 = vunpack.i.l.bf16 %v19181_v9  ;;  %v7864_v59 = vunpack.i.h.bf16 %v13291_v4  ;;  %v7873_v44 = vunpack.i.l.bf16 %v13349_v12  ;;  %v19265_v9 = vld [vmem:[#allocation109_spill] sm:$0xff] }
 0x3cc   : > { %v764_v26 = vsel %vm19260_vm5, %v19259_v54, %v6744_v8  ;;  %v615_v27 = vsel %vm19262_vm2, %v6654_v51, %v19261_v18  ;;  %3267 = vmatprep.subr.bf16.mxu0 %v2705_v10  ;;  %v2379_v52 = vsel %vm2219_vm14, %v7849_v30, %v7853_v32  ;;  %v19264_v8 = vunpack.i.l.bf16 %v19140_v35  ;;  %vm19267_vm0 = vmmov %vm19262_vm2 }
 0x3cd   : > { %v839_v39 = vsel %vm19254_vm7, %v19263_v45, %v6789_v25  ;;  %v2922_v56 = vsel %vm17873_vm13, %v2864_v58, 0  ;;  %v2847_v25 = vpack.c.bf16 %v2397_v1, %v2379_v52  ;;  %v7889_v22 = vunpack.i.h.bf16 %v13422_v0  ;;  %v13569_v45 = vpop.permute.xlu0 %7921 }
 0x3ce   : > { %v2378_v33 = vsel %vm2219_vm14, %v19264_v8, %v7849_v30  ;;  %v2704_v60 = vpack.c.bf16 %v19265_v9, %v839_v39  ;;  %v7888_v47 = vunpack.i.l.bf16 %v13422_v0  ;;  %3241 = vmatpush2.bf16.msra.mxu1 %v2922_v56  ;;  %v2343_v10 = vsel %vm2219_vm14, %v7864_v59, %v7868_v3  ;;  %v19269_v39 = vld [vmem:[#allocation64_spill] sm:$0xff] }
 0x3cf   : > { %v2361_v35 = vsel %vm2219_vm14, %v7869_v43, %v7873_v44  ;;  %v6519_v30 = vunpack.i.h.bf16 %v19230_v17  ;;  %v19266_v58 = vunpack.i.l.bf16 %v19132_v61  ;;  %v19268_v1 = vunpack.i.l.bf16 %v12847_v55  ;;  %3242 = vmatprep.subr.bf16.mxu1 %v2847_v25 }
 0x3d0   : > { %3268 = vmatpush1.bf16.msra.mxu0 %v2704_v60  ;;  %vm19270_vm5 = vcmask 957440   ;;  %v19271_v8 = vunpack.i.l.bf16 %v19174_v37  ;;  %vm19272_vm2 = vcmask 883712   ;;  %v7884_v61 = vunpack.i.h.bf16 %v13390_v13 }
 0x3d1   : > { %v614_v54 = vsel %vm19267_vm0, %v19266_v58, %v6654_v51  ;;  %v2396_v18 = vsel %vm2219_vm14, %v19268_v1, %v7854_v57  ;;  %v540_v52 = vsel %vm19270_vm5, %v6609_v20, %v19269_v39  ;;  %v7893_v51 = vunpack.i.l.bf16 %v13436_v49  ;;  %3269 = vmatprep.subr.bf16.mxu0 %v2687_v36  ;;  %vm19279_vm0 = vmmov %vm19270_vm5 }
 0x3d2   : > { %v689_v56 = vsel %vm19272_vm2, %v19271_v8, %v6699_v62  ;;  %v2846_v55 = vpack.c.bf16 %v2396_v18, %v2378_v33  ;;  %v19273_v57 = vunpack.i.l.bf16 %v12951_v28  ;;  %v2829_v25 = vpack.c.bf16 %v2361_v35, %v2343_v10  ;;  %v19276_v33 = vld [vmem:[#allocation42_spill] sm:$0xff] }
 0x3d3   : > { %v2686_v60 = vpack.c.bf16 %v764_v26, %v689_v56  ;;  %v2669_v58 = vpack.c.bf16 %v615_v27, %v540_v52  ;;  %v7909_v1 = vunpack.i.h.bf16 %v13502_v2  ;;  %v7908_v39 = vunpack.i.l.bf16 %v13502_v2  ;;  %v13599_v27 = vpop.permute.xlu1 %7926  ;;  %v13719_v2 = vpop.f32.mrf.mxu1 }
 0x3d4   : > { %v2360_v9 = vsel %vm2219_vm14, %v19273_v57, %v7869_v43  ;;  %3243 = vmatpush2.bf16.msra.mxu1 %v2846_v55  ;;  %v2307_v37 = vsel %vm2219_vm14, %v7884_v61, %v7888_v47  ;;  %v2325_v62 = vsel %vm2219_vm14, %v7889_v22, %v7893_v51  ;;  %v19274_v28 = vunpack.i.l.bf16 %v19115_v21 }
 0x3d5   : > { %v19275_v26 = vunpack.i.l.bf16 %v19151_v7  ;;  %3270 = vmatpush1.bf16.msra.mxu0 %v2686_v60  ;;  %3244 = vmatprep.subr.bf16.mxu1 %v2829_v25  ;;  %vm19277_vm7 = vcmask 1031168   ;;  %v19278_v35 = vunpack.i.l.bf16 %v19129_v23  ;;  %v7904_v52 = vunpack.i.h.bf16 %v13477_v5  ;;  %v13608_v7 = vpop.permute.xlu0 %7931 }
 0x3d6   : > { %v464_v43 = vsel %vm447_vm1, %v19274_v28, %v6564_v38  ;;  %v390_v10 = vsel %vm19277_vm7, %v6519_v30, %v19276_v33  ;;  %v7913_v21 = vunpack.i.l.bf16 %v13522_v34  ;;  %3271 = vmatprep.subr.bf16.mxu0 %v2669_v58  ;;  %v2811_v55 = vpack.c.bf16 %v2325_v62, %v2307_v37  ;;  %vm19283_vm5 = vmmov %vm19277_vm7 }
 0x3d7   : > { %v2342_v36 = vsel %vm2219_vm14, %v19275_v26, %v7864_v59  ;;  %v539_v18 = vsel %vm19279_vm0, %v19278_v35, %v6609_v20  ;;  %v19280_v59 = vunpack.i.l.bf16 %v13055_v16  ;;  %v2651_v57 = vpack.c.bf16 %v13514_v31, %v390_v10  ;;  %v13638_v10 = vpop.f32.mrf.mxu0  ;;  %v19287_v35 = vld [vmem:[#allocation193_spill] sm:$0xff]  ;;  %vm19328_vm2 = vmmov %vm19283_vm5 }
 0x3d8   : > { %v2828_v38 = vpack.c.bf16 %v2360_v9, %v2342_v36  ;;  %v2668_v56 = vpack.c.bf16 %v614_v54, %v539_v18  ;;  %v7929_v23 = vunpack.i.h.bf16 %v13599_v27  ;;  %v7928_v20 = vunpack.i.l.bf16 %v13599_v27  ;;  %vm19343_vm7 = vmmov %vm19279_vm0 }
 0x3d9   : > { %v2324_v8 = vsel %vm2219_vm14, %v19280_v59, %v7889_v22  ;;  %v2271_v60 = vsel %vm2219_vm14, %v7904_v52, %v7908_v39  ;;  %v2289_v9 = vsel %vm2219_vm14, %v7909_v1, %v7913_v21  ;;  %v19281_v16 = vunpack.i.l.bf16 %v13039_v11 }
 0x3da   : > { %3245 = vmatpush2.bf16.msra.mxu1 %v2828_v38  ;;  %v7859_v54 = vunpack.i.h.bf16 %v13282_v15  ;;  %3272 = vmatpush1.bf16.msra.mxu0 %v2668_v56  ;;  %v19282_v31 = vunpack.i.l.bf16 %v19230_v17  ;;  %v7924_v58 = vunpack.i.h.bf16 %v13569_v45  ;;  %v7933_v37 = vunpack.i.l.bf16 %v13608_v7  ;;  %v13654_v38 = vpop.f32.mrf.mxu0  ;;  %v19289_v56 = vld [vmem:[#allocation192_spill] sm:$0xff] }
 0x3db   : > { %v2306_v22 = vsel %vm2219_vm14, %v19281_v16, %v7884_v61  ;;  %3246 = vmatprep.subr.bf16.mxu1 %v2811_v55  ;;  %3273 = vmatprep.subr.bf16.mxu0 %v2651_v57  ;;  %v7863_v28 = vunpack.i.l.bf16 %v13291_v4  ;;  %v19284_v11 = vunpack.i.l.bf16 %v13154_v48  ;;  %v2793_v36 = vpack.c.bf16 %v2289_v9, %v2271_v60 }
 0x3dc   : > { %v389_v25 = vsel %vm19283_vm5, %v19282_v31, %v6519_v30  ;;  %v2810_v62 = vpack.c.bf16 %v2324_v8, %v2306_v22  ;;  %v19285_v33 = vunpack.i.l.bf16 %v13139_v50  ;;  %v19286_v30 = vld [vmem:[#allocation21_spill] sm:$0xff]  ;;  %v2235_v4 = vsel %vm2219_vm14, %v7924_v58, %v7928_v20  ;;  %v19288_v8 = vld [vmem:[#allocation20_spill] sm:$0xff]  ;;  %v2971_v22 = vpop.f32.mrf.mxu0 }
 0x3dd   : > { %v2288_v61 = vsel %vm2219_vm14, %v19284_v11, %v7909_v1  ;;  %v2650_v26 = vpack.c.bf16 %v464_v43, %v389_v25  ;;  %v2633_v18 = vpack.c.bf16 %v19287_v35, %v19286_v30  ;;  %v2253_v48 = vsel %vm2219_vm14, %v7929_v23, %v7933_v37 }
 0x3de   : > { %v2270_v17 = vsel %vm2219_vm14, %v19285_v33, %v7904_v52  ;;  %3247 = vmatpush2.bf16.msra.mxu1 %v2810_v62  ;;  %v7879_v1 = vunpack.i.h.bf16 %v13376_v42  ;;  %v7878_v50 = vunpack.i.l.bf16 %v13376_v42  ;;  %v2417_v43 = vsel %vm2219_vm14, %v7859_v54, %v7863_v28 }
 0x3df   : > { %3274 = vmatpush1.bf16.msra.mxu0 %v2650_v26  ;;  %3248 = vmatprep.subr.bf16.mxu1 %v2793_v36  ;;  %v2416_v52 = vsel %vm2219_vm14, %v7848_v19, %v7859_v54  ;;  %v2792_v59 = vpack.c.bf16 %v2288_v61, %v2270_v17  ;;  %v2632_v55 = vpack.c.bf16 %v19289_v56, %v19288_v8  ;;  %v7874_v57 = vunpack.i.h.bf16 %v13349_v12  ;;  %v7937_v61 = vpop.permute.xlu1 %7936 }
 0x3e0   : > { %3275 = vmatprep.subr.bf16.mxu0 %v2633_v18  ;;  %v7883_v60 = vunpack.i.l.bf16 %v13390_v13  ;;  %v19290_v42 = vunpack.i.l.bf16 %v13194_v24  ;;  %v2775_v16 = vpack.c.bf16 %v2253_v48, %v2235_v4  ;;  %v19291_v6 = vunpack.i.l.bf16 %v13179_v29  ;;  %v7942_v18 = vpop.permute.xlu0 %7941 }
 0x3e1   : > { %v2867_v54 = vpack.c.bf16 %v2417_v43, %v2417_v43  ;;  %v2866_v31 = vpack.c.bf16 %v2416_v52, %v2416_v52  ;;  %v7899_v25 = vunpack.i.h.bf16 %v13462_v46  ;;  %v7898_v62 = vunpack.i.l.bf16 %v13462_v46 }
 0x3e2   : > { %v2252_v9 = vsel %vm2219_vm14, %v19290_v42, %v7929_v23  ;;  %v2234_v19 = vsel %vm2219_vm14, %v19291_v6, %v7924_v58  ;;  %3249 = vmatpush2.bf16.msra.mxu1 %v2792_v59  ;;  %v2381_v13 = vsel %vm2219_vm14, %v7874_v57, %v7878_v50  ;;  %v2399_v24 = vsel %vm2219_vm14, %v7879_v1, %v7883_v60  ;;  %v2972_v23 = vpop.f32.mrf.mxu0 }
 0x3e3   : > { %3276 = vmatpush1.bf16.msra.mxu0 %v2632_v55  ;;  %3250 = vmatprep.subr.bf16.mxu1 %v2775_v16  ;;  %v2774_v29 = vpack.c.bf16 %v2252_v9, %v2234_v19  ;;  %v7894_v58 = vunpack.i.h.bf16 %v13436_v49  ;;  %v7903_v28 = vunpack.i.l.bf16 %v13477_v5  ;;  %v2398_v11 = vsel %vm2219_vm14, %v7858_v53, %v7879_v1  ;;  %v7947_v50 = vpop.permute.xlu1 %7946 }
 0x3e4   : > { %6367 = vmatprep.subr.msk.bf16.mxu0 %vm17873_vm13, %v2867_v54  ;;  %v2928_v46 = vsel %vm17873_vm13, %v2866_v31, 0  ;;  %v2849_v26 = vpack.c.bf16 %v2399_v24, %v2381_v13  ;;  %v7919_v36 = vunpack.i.h.bf16 %v13550_v63  ;;  %v7918_v33 = vunpack.i.l.bf16 %v13550_v63  ;;  %v1876_v42 = vpop.permute.xlu0 %1875 }
 0x3e5   : > { %v2345_v17 = vsel %vm2219_vm14, %v7894_v58, %v7898_v62  ;;  %v2363_v30 = vsel %vm2219_vm14, %v7899_v25, %v7903_v28  ;;  %v2380_v15 = vsel %vm2219_vm14, %v7853_v32, %v7874_v57  ;;  %v7914_v5 = vunpack.i.h.bf16 %v13522_v34 }
 0x3e6   : > { %3251 = vmatpush2.bf16.msra.mxu1 %v2774_v29  ;;  %v7923_v53 = vunpack.i.l.bf16 %v13569_v45  ;;  %v2848_v35 = vpack.c.bf16 %v2398_v11, %v2380_v15  ;;  %v2362_v63 = vsel %vm2219_vm14, %v7873_v44, %v7899_v25  ;;  %v2831_v4 = vpack.c.bf16 %v2363_v30, %v2345_v17  ;;  %v235_v17 = vld [vmem:[%s17281_s3] sm:$0xff] }
 0x3e7   : > { %3282 = vmatpush2.bf16.msra.mxu0 %v2928_v46  ;;  %v7939_v48 = vunpack.i.h.bf16 %v7937_v61  ;;  %v7938_v1 = vunpack.i.l.bf16 %v7937_v61  ;;  %v2309_v41 = vsel %vm2219_vm14, %v7914_v5, %v7918_v33  ;;  %v2344_v45 = vsel %vm2219_vm14, %v7868_v3, %v7894_v58 }
 0x3e8   : > { %3283 = vmatprep.subr.bf16.mxu0 %v2849_v26  ;;  %v2327_v32 = vsel %vm2219_vm14, %v7919_v36, %v7923_v53  ;;  %v7934_v43 = vunpack.i.h.bf16 %v13608_v7  ;;  %v7943_v52 = vunpack.i.l.bf16 %v7942_v18  ;;  %v2830_v12 = vpack.c.bf16 %v2362_v63, %v2344_v45 }
 0x3e9   : > { %3253 = vmatmul.mubr.bf16.vlgmr.msra.gmra.mxu1 %v19173_v14  ;;  %v2326_v44 = vsel %vm2219_vm14, %v7893_v51, %v7919_v36  ;;  %v2813_v59 = vpack.c.bf16 %v2327_v32, %v2309_v41  ;;  %v7949_v8 = vunpack.i.h.bf16 %v7947_v50  ;;  %v7948_v56 = vunpack.i.l.bf16 %v7947_v50  ;;  %v13723_v7 = vpop.f32.mrf.mxu0  ;;  %v236_v41 = vld [vmem:[%s17281_s3 + $0x8] sm:$0xff] }
 0x3ea   : > { %v2273_v55 = vsel %vm2219_vm14, %v7934_v43, %v7938_v1  ;;  %v2291_v40 = vsel %vm2219_vm14, %v7939_v48, %v7943_v52  ;;  %v2308_v3 = vsel %vm2219_vm14, %v7888_v47, %v7914_v5  ;;  %v7944_v57 = vunpack.i.h.bf16 %v7942_v18 }
 0x3eb   : > { %3284 = vmatpush2.bf16.msra.mxu0 %v2848_v35  ;;  %v2812_v60 = vpack.c.bf16 %v2326_v44, %v2308_v3  ;;  %v2290_v49 = vsel %vm2219_vm14, %v7913_v21, %v7939_v48  ;;  %v2795_v51 = vpack.c.bf16 %v2291_v40, %v2273_v55  ;;  %v2255_v16 = vsel %vm2219_vm14, %v7949_v8, %v1876_v42 }
 0x3ec   : > { %3285 = vmatprep.subr.bf16.mxu0 %v2831_v4  ;;  %v2237_v9 = vsel %vm2219_vm14, %v7944_v57, %v7948_v56  ;;  %v2272_v0 = vsel %vm2219_vm14, %v7908_v39, %v7934_v43  ;;  %v2254_v6 = vsel %vm2219_vm14, %v7933_v37, %v7949_v8  ;;  %v2236_v34 = vsel %vm2219_vm14, %v7928_v20, %v7944_v57  ;;  %v13721_v39 = vpop.f32.mrf.mxu1  ;;  %v13725_v37 = vpop.f32.mrf.mxu0 }
 0x3ed   : > { %v2794_v47 = vpack.c.bf16 %v2290_v49, %v2272_v0  ;;  %v2777_v19 = vpack.c.bf16 %v2255_v16, %v2237_v9  ;;  %v2776_v21 = vpack.c.bf16 %v2254_v6, %v2236_v34  ;;  %v3307_v46 = vlaneseq  ;;  %v237_v0 = vld [vmem:[%s17281_s3 + $0x10] sm:$0xff] }
 0x3ee   : > { %v3012_v22 = vpop.f32.mrf.mxu1  ;;  %v3053_v31 = vpop.f32.mrf.mxu0  ;;  %vm19345_vm0 = vcmask 949248   ;;  %vm19360_vm5 = vcmask 883712  }
 0x3ef   : > { %3286 = vmatpush2.bf16.msra.mxu0 %v2830_v12  ;;  %v13739_v26 = vshrl.u32 %v3307_v46, 7 }
 0x3f0   : > { %3287 = vmatprep.subr.bf16.mxu0 %v2813_v59  ;;  %v3013_v54 = vpop.f32.mrf.mxu1  ;;  %v3054_v25 = vpop.f32.mrf.mxu0 }
 0x3f1   : > { %19292 = vst [vmem:[#allocation171_spill] sm:$0xff] %v13739_v26  ;;  %v13742_v36 = vsub.s32 0, %v13739_v26  ;;  %v13745_v33 = vsub.s32 2, %v13739_v26  ;;  %v13751_v30 = vsub.s32 4, %v13739_v26  ;;  %v13761_v63 = vsub.s32 6, %v13739_v26 }
 0x3f3   : > { %3288 = vmatpush2.bf16.msra.mxu0 %v2812_v60  ;;  %v3310_v5 = vrot.slane %v235_v17, %v13742_v36  ;;  %v3314_v53 = vrot.slane %v235_v17, %v13745_v33  ;;  %v3318_v18 = vrot.slane %v235_v17, %v13751_v30  ;;  %v3322_v50 = vrot.slane %v235_v17, %v13761_v63 }
 0x3f4   : > { %3289 = vmatprep.subr.bf16.mxu0 %v2795_v51  ;;  %v3326_v12 = vrot.slane %v236_v41, %v13742_v36  ;;  %v3330_v40 = vrot.slane %v236_v41, %v13745_v33  ;;  %v3334_v42 = vrot.slane %v236_v41, %v13751_v30  ;;  %v3338_v34 = vrot.slane %v236_v41, %v13761_v63 }
 0x3f5   : > { %v13764_v48 = vrot.slane %v3310_v5, %v13742_v36  ;;  %v13767_v1 = vrot.slane %v3314_v53, %v13742_v36  ;;  %v13773_v45 = vrot.slane %v3318_v18, %v13742_v36  ;;  %v13784_v59 = vrot.slane %v3322_v50, %v13742_v36 }
 0x3f6   : > { %v13787_v55 = vrot.slane %v3326_v12, %v13742_v36  ;;  %v13796_v16 = vrot.slane %v3330_v40, %v13742_v36  ;;  %v3342_v31 = vrot.slane %v237_v0, %v13742_v36  ;;  %v3346_v46 = vrot.slane %v237_v0, %v13745_v33 }
 0x3f7   : > { %3290 = vmatpush2.bf16.msra.mxu0 %v2794_v47  ;;  %v3469_v43 = vmul.f32 %v13764_v48, %v13638_v10  ;;  %v3470_v52 = vmul.f32 %v13767_v1, %v13654_v38  ;;  %v3471_v44 = vmul.f32 %v13773_v45, %v13719_v2  ;;  %v3472_v60 = vmul.f32 %v13784_v59, %v13721_v39 }
 0x3f8   : > { %3291 = vmatprep.subr.bf16.mxu0 %v2777_v19  ;;  %v3473_v9 = vmul.f32 %v13787_v55, %v13723_v7  ;;  %v13802_v19 = vrot.slane %v3334_v42, %v13742_v36  ;;  %v3474_v54 = vmul.f32 %v13796_v16, %v13725_v37  ;;  %v3350_v18 = vrot.slane %v237_v0, %v13751_v30 }
 0x3f9   : > { %v3506_v8 = vmul.f32 %v3469_v43, %v3469_v43  ;;  %v3507_v56 = vmul.f32 %v3470_v52, %v3470_v52  ;;  %v3487_v3 = vadd.f32 %v3470_v52, %v3469_v43  ;;  %v3508_v57 = vmul.f32 %v3471_v44, %v3471_v44  ;;  %v238_v43 = vld [vmem:[%s17281_s3 + $0x18] sm:$0xff] }
 0x3fa   : > { %v3509_v6 = vmul.f32 %v3472_v60, %v3472_v60  ;;  %v3510_v22 = vmul.f32 %v3473_v9, %v3473_v9  ;;  %v13823_v50 = vrot.slane %v3346_v46, %v13742_v36 }
 0x3fb   : > { %3292 = vmatpush2.bf16.msra.mxu0 %v2776_v21  ;;  %v3524_v49 = vadd.f32 %v3507_v56, %v3506_v8  ;;  %v3488_v51 = vadd.f32 %v3487_v3, %v3471_v44  ;;  %v13829_v44 = vrot.slane %v3350_v18, %v13742_v36  ;;  %v3354_v8 = vrot.slane %v237_v0, %v13761_v63 }
 0x3fd   : > { %v3525_v47 = vadd.f32 %v3524_v49, %v3508_v57  ;;  %v3489_v21 = vadd.f32 %v3488_v51, %v3472_v60  ;;  %v3358_v57 = vrot.slane %v238_v43, %v13742_v36  ;;  %v13838_v51 = vrot.slane %v3354_v8, %v13742_v36 }
 0x3fe   : > { %3294 = vmatmul.mubr.bf16.vlgmr.msra.gmra.mxu0 %v19173_v14 }
 0x3ff   : > { %v3526_v25 = vadd.f32 %v3525_v47, %v3509_v6  ;;  %v13843_v0 = vrot.slane %v3358_v57, %v13742_v36 }
 0x413   : > { %v13727_v27 = vpop.f32.mrf.mxu1 }
 0x415   : > { %v13729_v20 = vpop.f32.mrf.mxu1 }
 0x417   : > { %v3094_v62 = vpop.f32.mrf.mxu1 }
 0x418   : > { %v3490_v62 = vadd.f32 %v3489_v21, %v3473_v9 }
 0x419   : > { %v3095_v13 = vpop.f32.mrf.mxu1 }
 0x41a   : > { %v3475_v13 = vmul.f32 %v13802_v19, %v13727_v27  ;;  %v3491_v17 = vadd.f32 %v3490_v62, %v3474_v54 }
 0x41c   : > { %v3512_v5 = vmul.f32 %v3475_v13, %v3475_v13  ;;  %v3492_v41 = vadd.f32 %v3491_v17, %v3475_v13 }
 0x434   : > { %v13731_v24 = vpop.f32.mrf.mxu0 }
 0x436   : > { %v13733_v14 = vpop.f32.mrf.mxu0 }
 0x437   : > { %v3478_v3 = vmul.f32 %v13823_v50, %v13733_v14 }
 0x438   : > { %v3135_v23 = vpop.f32.mrf.mxu0 }
 0x439   : > { %v13811_v23 = vrot.slane %v3338_v34, %v13742_v36  ;;  %v3515_v6 = vmul.f32 %v3478_v3, %v3478_v3  ;;  %v3362_v34 = vrot.slane %v238_v43, %v13745_v33 }
 0x43a   : > { %v3136_v29 = vpop.f32.mrf.mxu0 }
 0x43b   : > { %v3527_v29 = vadd.f32 %v3526_v25, %v3510_v22  ;;  %v3476_v53 = vmul.f32 %v13811_v23, %v13729_v20  ;;  %v3366_v25 = vrot.slane %v238_v43, %v13751_v30  ;;  %v13854_v46 = vrot.slane %v3362_v34, %v13742_v36 }
 0x43d   : > { %v3513_v12 = vmul.f32 %v3476_v53, %v3476_v53  ;;  %v3493_v56 = vadd.f32 %v3492_v41, %v3476_v53  ;;  %v13857_v18 = vrot.slane %v3366_v25, %v13742_v36 }
 0x460   : > { %v13735_v58 = vpop.f32.mrf.mxu1 }
 0x461   : > { %v3479_v49 = vmul.f32 %v13829_v44, %v13735_v58 }
 0x462   : > { %v13737_v28 = vpop.f32.mrf.mxu1 }
 0x464   : > { %v3176_v11 = vpop.f32.mrf.mxu1 }
 0x465   : > { %v3511_v11 = vmul.f32 %v3474_v54, %v3474_v54  ;;  %v3516_v54 = vmul.f32 %v3479_v49, %v3479_v49 }
 0x466   : > { %v3177_v61 = vpop.f32.mrf.mxu1 }
 0x467   : > { %v13814_v61 = vrot.slane %v3342_v31, %v13742_v36  ;;  %v3480_v31 = vmul.f32 %v13838_v51, %v13737_v28 }
 0x469   : > { %v3517_v53 = vmul.f32 %v3480_v31, %v3480_v31 }
 0x47e   : > { %v13753_v15 = vpop.f32.mrf.mxu0 }
 0x480   : > { %v13757_v35 = vpop.f32.mrf.mxu0 }
 0x481   : > { %v3482_v30 = vmul.f32 %v13854_v46, %v13757_v35 }
 0x482   : > { %v3217_v4 = vpop.f32.mrf.mxu0 }
 0x483   : > { %v3528_v4 = vadd.f32 %v3527_v29, %v3511_v11  ;;  %v3481_v11 = vmul.f32 %v13843_v0, %v13753_v15  ;;  %v3519_v57 = vmul.f32 %v3482_v30, %v3482_v30 }
 0x484   : > { %v3218_v32 = vpop.f32.mrf.mxu0 }
 0x485   : > { %v3477_v32 = vmul.f32 %v13814_v61, %v13731_v24  ;;  %v3529_v52 = vadd.f32 %v3528_v4, %v3512_v5  ;;  %v3370_v4 = vrot.slane %v238_v43, %v13761_v63 }
 0x487   : > { %v3514_v40 = vmul.f32 %v3477_v32, %v3477_v32  ;;  %v3530_v60 = vadd.f32 %v3529_v52, %v3513_v12  ;;  %v3494_v42 = vadd.f32 %v3493_v56, %v3477_v32  ;;  %v3518_v32 = vmul.f32 %v3481_v11, %v3481_v11  ;;  %v239_v52 = vld [vmem:[%s17281_s3 + $0x20] sm:$0xf] }
 0x488   : > { %v3374_v63 = vrot.slane %v239_v52, %v13742_v36 }
 0x489   : > { %v3531_v47 = vadd.f32 %v3530_v60, %v3514_v40  ;;  %v3495_v22 = vadd.f32 %v3494_v42, %v3478_v3  ;;  %v13868_v40 = vrot.slane %v3370_v4, %v13742_v36 }
 0x48a   : > { %v13875_v34 = vrot.slane %v3374_v63, %v13742_v36 }
 0x48b   : > { %v3532_v13 = vadd.f32 %v3531_v47, %v3515_v6  ;;  %v3496_v29 = vadd.f32 %v3495_v22, %v3479_v49  ;;  %v3378_v49 = vrot.slane %v239_v52, %v13745_v33  ;;  %v9196_v52 = vmov 1  }
 0x48c   : > { %7950 = vset.pattern.permute.xlu1 %v9196_v52 }
 0x48d   : > { %v3533_v5 = vadd.f32 %v3532_v13, %v3516_v54  ;;  %v3497_v41 = vadd.f32 %v3496_v29, %v3480_v31  ;;  %v13878_v31 = vrot.slane %v3378_v49, %v13742_v36 }
 0x48f   : > { %v3534_v12 = vadd.f32 %v3533_v5, %v3517_v53  ;;  %v3498_v8 = vadd.f32 %v3497_v41, %v3481_v11 }
 0x491   : > { %v3535_v3 = vadd.f32 %v3534_v12, %v3518_v32  ;;  %v3499_v43 = vadd.f32 %v3498_v8, %v3482_v30 }
 0x493   : > { %v3536_v47 = vadd.f32 %v3535_v3, %v3519_v57 }
 0x4a9   : > { %v13840_v9 = vpop.f32.mrf.mxu1 }
 0x4aa   : > { %v3483_v56 = vmul.f32 %v13857_v18, %v13840_v9 }
 0x4ab   : > { %v13846_v21 = vpop.f32.mrf.mxu1 }
 0x4ac   : > { %v3520_v60 = vmul.f32 %v3483_v56, %v3483_v56  ;;  %v3484_v42 = vmul.f32 %v13868_v40, %v13846_v21  ;;  %v3500_v6 = vadd.f32 %v3499_v43, %v3483_v56 }
 0x4ad   : > { %v3258_v62 = vpop.f32.mrf.mxu1 }
 0x4ae   : > { %v3537_v22 = vadd.f32 %v3536_v47, %v3520_v60  ;;  %v3521_v54 = vmul.f32 %v3484_v42, %v3484_v42  ;;  %v3501_v62 = vadd.f32 %v3500_v6, %v3484_v42  ;;  %v234_v42 = vld [vmem:[%s17280_s2] sm:$0xff] }
 0x4af   : > { %v3259_v17 = vpop.f32.mrf.mxu1 }
 0x4b0   : > { %v3538_v11 = vadd.f32 %v3537_v22, %v3521_v54  ;;  %v9198_v22 = vmov 2  }
 0x4be   : > { %v13880_v25 = vpop.f32.mrf.mxu0 }
 0x4bf   : > { %v3485_v13 = vmul.f32 %v13875_v34, %v13880_v25 }
 0x4c0   : > { %v13884_v29 = vpop.f32.mrf.mxu0 }
 0x4c1   : > { %v3502_v33 = vadd.f32 %v3501_v62, %v3485_v13  ;;  %v3522_v17 = vmul.f32 %v3485_v13, %v3485_v13  ;;  %v3486_v5 = vmul.f32 %v13878_v31, %v13884_v29 }
 0x4c2   : > { %v3299_v53 = vpop.f32.mrf.mxu0 }
 0x4c3   : > { %v3539_v4 = vadd.f32 %v3538_v11, %v3522_v17  ;;  %v3503_v41 = vadd.f32 %v3502_v33, %v3486_v5  ;;  %v3523_v32 = vmul.f32 %v3486_v5, %v3486_v5 }
 0x4c4   : > { %v3300_v36 = vpop.f32.mrf.mxu0 }
 0x4c5   : > { %3504 = vadd.xlane.f32.xlu1 %v3503_v41  ;;  %v3540_v30 = vadd.f32 %v3539_v4, %v3523_v32 }
 0x4c7   : > { %3541 = vadd.xlane.f32.xlu0 %v3540_v30 }
 0x54e   : > { %v3505_v12 = vpop.xlane.xlu1 %3504 }
 0x54f   : > { %v3544_v8 = vmul.f32 0.0008169935, %v3505_v12 }
 0x550   : > { %v3542_v56 = vpop.xlane.xlu0 %3541 }
 0x551   : > { %v3546_v3 = vmul.f32 %v3544_v8, %v3544_v8  ;;  %v3545_v57 = vmul.f32 0.0008169935, %v3542_v56 }
 0x553   : > { %v3547_v63 = vsub.f32 %v3545_v57, %v3546_v3 }
 0x555   : > { %v3548_v43 = vmax.f32 %v3547_v63, 0.0 }
 0x557   : > { %v3549_v60 = vadd.f32 1e-05, %v3548_v43 }
 0x559   : > { %9154 = vrsqrt.f32 %v3549_v60 }
 0x566   : > { %v9155_v49 = vpop.eup %9154 }
 0x567   : > { %v3551_v47 = vmul.f32 %v9155_v49, %v234_v42 }
 0x569   : > { %3560 = vperm.xlu1 %7950, %v3551_v47   ;;  %v3552_v6 = vmul.f32 %v3551_v47, %v3544_v8 }
 0x56b   : > { %3554 = vrot.lane.b32.xlu0 %v3552_v6, %s9197_s19 }
 0x56d   : > { %7951 = vset.pattern.permute.xlu1 %v9198_v22 }
 0x5dd   : > { %v3555_v54 = vpop.permute.xlu0 %3554 }
 0x5de   : > { %v3557_v62 = vsub.f32 %v234_v42, %v3555_v54 }
 0x5e0   : > { %3583 = vperm.xlu1 %7951, %v3557_v62  }
 0x5e4   : > { %v13892_v13 = vpop.permute.xlu1 %3560 }
 0x5e5   : > { %v3565_v11 = vmul.f32 %v13892_v13, %v13719_v2  ;;  %v3566_v33 = vmul.f32 %v13892_v13, %v13721_v39  ;;  %v3569_v4 = vmul.f32 %v13892_v13, %v13727_v27  ;;  %v3570_v41 = vmul.f32 %v13892_v13, %v13729_v20 }
 0x5e6   : > { %v3564_v32 = vmul.f32 %v13892_v13, %v13654_v38  ;;  %v3573_v39 = vmul.f32 %v13892_v13, %v13735_v58  ;;  %v3574_v30 = vmul.f32 %v13892_v13, %v13737_v28  ;;  %v3567_v20 = vmul.f32 %v13892_v13, %v13723_v7 }
 0x5e7   : > { %v3568_v38 = vmul.f32 %v13892_v13, %v13725_v37  ;;  %v3571_v58 = vmul.f32 %v13892_v13, %v13731_v24  ;;  %v3572_v63 = vmul.f32 %v13892_v13, %v13733_v14  ;;  %v3577_v7 = vmul.f32 %v13892_v13, %v13840_v9 }
 0x5e8   : > { %v3578_v37 = vmul.f32 %v13892_v13, %v13846_v21 }
 0x65b   : > { %v13898_v17 = vpop.permute.xlu1 %3583 }
 0x65c   : > { %v3588_v5 = vadd.f32 %v13898_v17, %v3565_v11  ;;  %v3589_v53 = vadd.f32 %v13898_v17, %v3566_v33  ;;  %v3592_v2 = vadd.f32 %v13898_v17, %v3569_v4  ;;  %v3593_v36 = vadd.f32 %v13898_v17, %v3570_v41 }
 0x65d   : > { %v3587_v27 = vadd.f32 %v13898_v17, %v3564_v32  ;;  %v3596_v8 = vadd.f32 %v13898_v17, %v3573_v39  ;;  %v3597_v56 = vadd.f32 %v13898_v17, %v3574_v30  ;;  %v3590_v60 = vadd.f32 %v13898_v17, %v3567_v20 }
 0x65e   : > { %v3606_v52 = vmax.f32 %v3588_v5, 0.0  ;;  %v3607_v12 = vmax.f32 %v3589_v53, 0.0  ;;  %v3610_v3 = vmax.f32 %v3592_v2, 0.0  ;;  %v3611_v57 = vmax.f32 %v3593_v36, 0.0 }
 0x65f   : > { %v3591_v24 = vadd.f32 %v13898_v17, %v3568_v38  ;;  %v3605_v42 = vmax.f32 %v3587_v27, 0.0  ;;  %v3600_v49 = vadd.f32 %v13898_v17, %v3577_v7  ;;  %v3601_v14 = vadd.f32 %v13898_v17, %v3578_v37 }
 0x660   : > { %v13924_v28 = vmul.f32 %v3606_v52, %v13773_v45  ;;  %v13933_v43 = vmul.f32 %v3607_v12, %v13784_v59  ;;  %v3563_v45 = vmul.f32 %v13892_v13, %v13638_v10  ;;  %v3614_v47 = vmax.f32 %v3596_v8, 0.0 }
 0x661   : > { %v3615_v9 = vmax.f32 %v3597_v56, 0.0  ;;  %v13942_v6 = vmul.f32 %v3610_v3, %v13802_v19  ;;  %v13945_v59 = vmul.f32 %v3611_v57, %v13811_v23  ;;  %v3594_v10 = vadd.f32 %v13898_v17, %v3571_v58 }
 0x662   : > { %19293 = vst [vmem:[#allocation152_spill] sm:$0xff] %v13933_v43  ;;  %v13949_v21 = vpack.i.bf16 %v13933_v43, %v13924_v28  ;;  %v3586_v22 = vadd.f32 %v13898_v17, %v3563_v45  ;;  %v3595_v54 = vadd.f32 %v13898_v17, %v3572_v63  ;;  %v3608_v62 = vmax.f32 %v3590_v60, 0.0 }
 0x663   : > { %19294 = vst [vmem:[#allocation129_spill] sm:$0xff] %v13942_v6  ;;  %19295 = vst [vmem:[#allocation5_spill] sm:$0xff] %v13945_v59  ;;  %v3609_v11 = vmax.f32 %v3591_v24, 0.0  ;;  %v13955_v33 = vmul.f32 %v3605_v42, %v13767_v1  ;;  %v3575_v23 = vmul.f32 %v13892_v13, %v13753_v15  ;;  %v3576_v5 = vmul.f32 %v13892_v13, %v13757_v35 }
 0x664   : > { %7958 = vrot.lane.b32.xlu1 %v13949_v21, %s9173_s21  ;;  %v3604_v19 = vmax.f32 %v3586_v22, 0.0  ;;  %v3618_v53 = vmax.f32 %v3600_v49, 0.0  ;;  %v3619_v4 = vmax.f32 %v3601_v14, 0.0  ;;  %v13964_v41 = vmul.f32 %v3614_v47, %v13829_v44 }
 0x665   : > { %v13967_v32 = vmul.f32 %v3615_v9, %v13838_v51  ;;  %v13974_v2 = vpack.i.bf16 %v13945_v59, %v13942_v6  ;;  %v3598_v15 = vadd.f32 %v13898_v17, %v3575_v23  ;;  %v3599_v36 = vadd.f32 %v13898_v17, %v3576_v5 }
 0x666   : > { %19296 = vst [vmem:[#allocation163_spill] sm:$0xff] %v13964_v41  ;;  %v13970_v1 = vmul.f32 %v3604_v19, %v13764_v48  ;;  %v3612_v35 = vmax.f32 %v3594_v10, 0.0  ;;  %v3613_v39 = vmax.f32 %v3595_v54, 0.0  ;;  %v13979_v30 = vmul.f32 %v3608_v62, %v13787_v55 }
 0x667   : > { %19297 = vst [vmem:[#allocation162_spill] sm:$0xff] %v13967_v32  ;;  %v13982_v44 = vmul.f32 %v3609_v11, %v13796_v16  ;;  %v13991_v51 = vmul.f32 %v3618_v53, %v13857_v18  ;;  %v13994_v52 = vmul.f32 %v3619_v4, %v13868_v40  ;;  %v14000_v55 = vpack.i.bf16 %v13967_v32, %v13964_v41 }
 0x668   : > { %19298 = vst [vmem:[#allocation36_spill] sm:$0xff] %v13970_v1  ;;  %19299 = vst [vmem:[#allocation96_spill] sm:$0xff] %v13979_v30  ;;  %v13986_v48 = vpack.i.bf16 %v13955_v33, %v13970_v1  ;;  %7968 = vrot.lane.b32.xlu1 %v13974_v2, %s9173_s21  ;;  %v3616_v16 = vmax.f32 %v3598_v15, 0.0  ;;  %v3617_v12 = vmax.f32 %v3599_v36, 0.0  ;;  %v14003_v27 = vmul.f32 %v3612_v35, %v13814_v61 }
 0x669   : > { %19300 = vst [vmem:[#allocation97_spill] sm:$0xff] %v13982_v44  ;;  %19301 = vst [vmem:[#allocation110_spill] sm:$0xff] %v13991_v51  ;;  %v14006_v20 = vmul.f32 %v3613_v39, %v13823_v50  ;;  %v14010_v18 = vpack.i.bf16 %v13982_v44, %v13979_v30  ;;  %v14018_v40 = vpack.i.bf16 %v13994_v52, %v13991_v51 }
 0x66a   : > { %19302 = vst [vmem:[#allocation22_spill] sm:$0xff] %v13994_v52  ;;  %7953 = vrot.lane.b32.xlu0 %v13986_v48, %s9173_s21  ;;  %19303 = vst [vmem:[#allocation113_spill] sm:$0xff] %v14003_v27  ;;  %v14021_v61 = vmul.f32 %v3616_v16, %v13843_v0  ;;  %v14024_v50 = vmul.f32 %v3617_v12, %v13854_v46  ;;  %v3579_v57 = vmul.f32 %v13892_v13, %v13880_v25 }
 0x66b   : > { %19304 = vst [vmem:[#allocation196_spill] sm:$0xff] %v14006_v20  ;;  %19305 = vst [vmem:[#allocation139_spill] sm:$0xff] %v14018_v40  ;;  %v14028_v38 = vpack.i.bf16 %v14006_v20, %v14003_v27  ;;  %v14166_v7 = vpack.i.bf16 %v13979_v30, %v13933_v43  ;;  %v14179_v24 = vpack.i.bf16 %v14003_v27, %v13945_v59 }
 0x66c   : > { %7978 = vrot.lane.b32.xlu1 %v14000_v55, %s9173_s21  ;;  %19306 = vst [vmem:[#allocation138_spill] sm:$0xff] %v14021_v61  ;;  %19307 = vst [vmem:[#allocation146_spill] sm:$0xff] %v14024_v50  ;;  %v14036_v8 = vpack.i.bf16 %v14024_v50, %v14021_v61  ;;  %v3602_v37 = vadd.f32 %v13898_v17, %v3579_v57  ;;  %v8237_v49 = vpack.i.bf16 %v13924_v28, %v13955_v33 }
 0x66d   : > { %v14192_v47 = vpack.i.bf16 %v14021_v61, %v13967_v32  ;;  %v14201_v10 = vpack.i.bf16 %v13942_v6, %v13982_v44  ;;  %v14217_v11 = vpack.i.bf16 %v13964_v41, %v14006_v20  ;;  %v14229_v5 = vpack.i.bf16 %v13991_v51, %v14024_v50 }
 0x66e   : > { %7963 = vrot.lane.b32.xlu0 %v14010_v18, %s9173_s21  ;;  %v3620_v42 = vmax.f32 %v3602_v37, 0.0 }
 0x66f   : > { %19322 = vst [vmem:[#allocation90_spill] sm:$0xff] %v14229_v5 }
 0x670   : > { %7988 = vrot.lane.b32.xlu1 %v14018_v40, %s9173_s21  ;;  %v14195_v9 = vmul.f32 %v3620_v42, %v13875_v34 }
 0x672   : > { %7973 = vrot.lane.b32.xlu0 %v14028_v38, %s9173_s21  ;;  %19316 = vst [vmem:[#allocation121_spill] sm:$0xff] %v14195_v9  ;;  %v14211_v62 = vpack.i.bf16 %v14195_v9, %v13994_v52 }
 0x674   : > { %7998 = vrot.lane.b32.xlu1 %v13949_v21, %s9174_s22  ;;  %19318 = vst [vmem:[#allocation69_spill] sm:$0xff] %v14211_v62 }
 0x676   : > { %7983 = vrot.lane.b32.xlu0 %v14036_v8, %s9173_s21  ;;  %s19352_s21 = smov 56  }
 0x678   : > { %8008 = vrot.lane.b32.xlu1 %v13974_v2, %s9174_s22 }
 0x67a   : > { %7993 = vrot.lane.b32.xlu0 %v13986_v48, %s9174_s22 }
 0x67c   : > { %8018 = vrot.lane.b32.xlu1 %v14000_v55, %s9174_s22 }
 0x67e   : > { %8003 = vrot.lane.b32.xlu0 %v14010_v18, %s9174_s22 }
 0x680   : > { %3741 = vrot.lane.b32.xlu1 %v13991_v51, %s9174_s22 }
 0x682   : > { %8013 = vrot.lane.b32.xlu0 %v14028_v38, %s9174_s22 }
 0x684   : > { %8033 = vrot.lane.b32.xlu1 %v13949_v21, %s9175_s23 }
 0x686   : > { %8023 = vrot.lane.b32.xlu0 %v14036_v8, %s9174_s22  ;;  %s19400_s22 = smov 45  }
 0x688   : > { %8043 = vrot.lane.b32.xlu1 %v13974_v2, %s9175_s23 }
 0x68a   : > { %8028 = vrot.lane.b32.xlu0 %v13986_v48, %s9175_s23 }
 0x68c   : > { %8053 = vrot.lane.b32.xlu1 %v14000_v55, %s9175_s23 }
 0x68e   : > { %8038 = vrot.lane.b32.xlu0 %v14010_v18, %s9175_s23 }
 0x690   : > { %3799 = vrot.lane.b32.xlu1 %v13991_v51, %s9175_s23 }
 0x692   : > { %8048 = vrot.lane.b32.xlu0 %v14028_v38, %s9175_s23 }
 0x694   : > { %8068 = vrot.lane.b32.xlu1 %v13949_v21, %s9176_s24 }
 0x696   : > { %8058 = vrot.lane.b32.xlu0 %v14036_v8, %s9175_s23 }
 0x698   : > { %8078 = vrot.lane.b32.xlu1 %v13974_v2, %s9176_s24 }
 0x69a   : > { %8063 = vrot.lane.b32.xlu0 %v13986_v48, %s9176_s24 }
 0x69c   : > { %8088 = vrot.lane.b32.xlu1 %v14000_v55, %s9176_s24 }
 0x69e   : > { %8073 = vrot.lane.b32.xlu0 %v14010_v18, %s9176_s24 }
 0x6a0   : > { %3857 = vrot.lane.b32.xlu1 %v13991_v51, %s9176_s24 }
 0x6a2   : > { %8083 = vrot.lane.b32.xlu0 %v14028_v38, %s9176_s24 }
 0x6a4   : > { %8103 = vrot.lane.b32.xlu1 %v13949_v21, %s9177_s25 }
 0x6a6   : > { %8093 = vrot.lane.b32.xlu0 %v14036_v8, %s9176_s24 }
 0x6a8   : > { %8113 = vrot.lane.b32.xlu1 %v13974_v2, %s9177_s25 }
 0x6aa   : > { %8098 = vrot.lane.b32.xlu0 %v13986_v48, %s9177_s25 }
 0x6ac   : > { %8123 = vrot.lane.b32.xlu1 %v14000_v55, %s9177_s25 }
 0x6ae   : > { %8108 = vrot.lane.b32.xlu0 %v14010_v18, %s9177_s25 }
 0x6b0   : > { %3915 = vrot.lane.b32.xlu1 %v13991_v51, %s9177_s25 }
 0x6b2   : > { %8118 = vrot.lane.b32.xlu0 %v14028_v38, %s9177_s25 }
 0x6b4   : > { %8138 = vrot.lane.b32.xlu1 %v13949_v21, %s9178_s26 }
 0x6b6   : > { %8128 = vrot.lane.b32.xlu0 %v14036_v8, %s9177_s25 }
 0x6b8   : > { %8148 = vrot.lane.b32.xlu1 %v13974_v2, %s9178_s26 }
 0x6ba   : > { %8133 = vrot.lane.b32.xlu0 %v13986_v48, %s9178_s26 }
 0x6bc   : > { %8158 = vrot.lane.b32.xlu1 %v14000_v55, %s9178_s26 }
 0x6be   : > { %8143 = vrot.lane.b32.xlu0 %v14010_v18, %s9178_s26 }
 0x6c0   : > { %3973 = vrot.lane.b32.xlu1 %v13991_v51, %s9178_s26 }
 0x6c2   : > { %8153 = vrot.lane.b32.xlu0 %v14028_v38, %s9178_s26 }
 0x6c4   : > { %8173 = vrot.lane.b32.xlu1 %v13949_v21, %s9179_s27 }
 0x6c6   : > { %8163 = vrot.lane.b32.xlu0 %v14036_v8, %s9178_s26 }
 0x6c8   : > { %8183 = vrot.lane.b32.xlu1 %v13974_v2, %s9179_s27 }
 0x6ca   : > { %8168 = vrot.lane.b32.xlu0 %v13986_v48, %s9179_s27 }
 0x6cc   : > { %8193 = vrot.lane.b32.xlu1 %v14000_v55, %s9179_s27 }
 0x6ce   : > { %8178 = vrot.lane.b32.xlu0 %v14010_v18, %s9179_s27 }
 0x6d0   : > { %4031 = vrot.lane.b32.xlu1 %v13991_v51, %s9179_s27 }
 0x6d2   : > { %8188 = vrot.lane.b32.xlu0 %v14028_v38, %s9179_s27 }
 0x6d4   : > { %8208 = vrot.lane.b32.xlu1 %v13949_v21, %s9180_s28 }
 0x6d6   : > { %8198 = vrot.lane.b32.xlu0 %v14036_v8, %s9179_s27  ;;  %v14138_v0 = vpop.permute.xlu1 %7958 }
 0x6d8   : > { %8218 = vrot.lane.b32.xlu1 %v13974_v2, %s9180_s28 }
 0x6da   : > { %8203 = vrot.lane.b32.xlu0 %v13986_v48, %s9180_s28  ;;  %v14144_v46 = vpop.permute.xlu1 %7968 }
 0x6db   : > { %19308 = vst [vmem:[#allocation59_spill] sm:$0xff] %v14144_v46  ;;  %v17843_v46 = vunpack.i.h.bf16 %v14138_v0 }
 0x6dc   : > { %v14146_v56 = vpop.permute.xlu0 %7953  ;;  %8228 = vrot.lane.b32.xlu1 %v14000_v55, %s9180_s28 }
 0x6de   : > { %8213 = vrot.lane.b32.xlu0 %v14010_v18, %s9180_s28  ;;  %v14152_v58 = vpop.permute.xlu1 %7978 }
 0x6df   : > { %19309 = vst [vmem:[#allocation78_spill] sm:$0xff] %v14152_v58 }
 0x6e0   : > { %v14154_v3 = vpop.permute.xlu0 %7963  ;;  %4089 = vrot.lane.b32.xlu1 %v13991_v51, %s9180_s28 }
 0x6e1   : > { %19310 = vst [vmem:[#allocation79_spill] sm:$0xff] %v14154_v3 }
 0x6e2   : > { %8223 = vrot.lane.b32.xlu0 %v14028_v38, %s9180_s28  ;;  %v14162_v63 = vpop.permute.xlu1 %7988 }
 0x6e3   : > { %19311 = vst [vmem:[#allocation179_spill] sm:$0xff] %v14162_v63 }
 0x6e4   : > { %v14169_v60 = vpop.permute.xlu0 %7973  ;;  %8243 = vrot.lane.b32.xlu1 %v14166_v7, %s9181_s29 }
 0x6e5   : > { %19312 = vst [vmem:[#allocation86_spill] sm:$0xff] %v14169_v60 }
 0x6e6   : > { %8233 = vrot.lane.b32.xlu0 %v14036_v8, %s9180_s28  ;;  %v14175_v25 = vpop.permute.xlu1 %7998 }
 0x6e7   : > { %19313 = vst [vmem:[#allocation87_spill] sm:$0xff] %v14175_v25 }
 0x6e8   : > { %v14181_v45 = vpop.permute.xlu0 %7983  ;;  %8253 = vrot.lane.b32.xlu1 %v14179_v24, %s9181_s29 }
 0x6e9   : > { %19314 = vst [vmem:[#allocation106_spill] sm:$0xff] %v14181_v45 }
 0x6ea   : > { %8238 = vrot.lane.b32.xlu0 %v8237_v49, %s9181_s29  ;;  %v14188_v14 = vpop.permute.xlu1 %8008 }
 0x6eb   : > { %19315 = vst [vmem:[#allocation120_spill] sm:$0xff] %v14188_v14 }
 0x6ec   : > { %v14197_v22 = vpop.permute.xlu0 %7993  ;;  %8263 = vrot.lane.b32.xlu1 %v14192_v47, %s9181_s29 }
 0x6ee   : > { %8248 = vrot.lane.b32.xlu0 %v14201_v10, %s9181_s29  ;;  %v14207_v54 = vpop.permute.xlu1 %8018 }
 0x6ef   : > { %19317 = vst [vmem:[#allocation173_spill] sm:$0xff] %v14207_v54 }
 0x6f0   : > { %v14213_v34 = vpop.permute.xlu0 %8003  ;;  %8273 = vrot.lane.b32.xlu1 %v14211_v62, %s9181_s29 }
 0x6f1   : > { %19319 = vst [vmem:[#allocation157_spill] sm:$0xff] %v14213_v34  ;;  %v17745_v39 = vunpack.i.h.bf16 %v14213_v34  ;;  %v17746_v48 = vunpack.i.l.bf16 %v14213_v34 }
 0x6f2   : > { %8258 = vrot.lane.b32.xlu0 %v14217_v11, %s9181_s29  ;;  %v14223_v19 = vpop.permute.xlu1 %3741 }
 0x6f3   : > { %19320 = vst [vmem:[#allocation18_spill] sm:$0xff] %v14223_v19  ;;  %v14269_v37 = vsel %vm19328_vm2, %v17746_v48, %v17745_v39  ;;  %vm19362_vm2 = vcmask 875520  }
 0x6f4   : > { %v14225_v23 = vpop.permute.xlu0 %8013  ;;  %8283 = vrot.lane.b32.xlu1 %v14166_v7, %s9182_s30  ;;  %19329 = vst [vmem:[#allocation8_spill] sm:$0xff] %v14269_v37 }
 0x6f5   : > { %19321 = vst [vmem:[#allocation118_spill] sm:$0xff] %v14225_v23 }
 0x6f6   : > { %8268 = vrot.lane.b32.xlu0 %v14229_v5, %s9181_s29  ;;  %v14235_v53 = vpop.permute.xlu1 %8033 }
 0x6f8   : > { %v14237_v4 = vpop.permute.xlu0 %8023  ;;  %8293 = vrot.lane.b32.xlu1 %v14179_v24, %s9182_s30 }
 0x6f9   : > { %19323 = vst [vmem:[#allocation88_spill] sm:$0xff] %v14237_v4 }
 0x6fa   : > { %8278 = vrot.lane.b32.xlu0 %v8237_v49, %s9182_s30  ;;  %v14242_v15 = vpop.permute.xlu1 %8043 }
 0x6fb   : > { %19324 = vst [vmem:[#allocation91_spill] sm:$0xff] %v14242_v15 }
 0x6fc   : > { %v14244_v36 = vpop.permute.xlu0 %8028  ;;  %8303 = vrot.lane.b32.xlu1 %v14192_v47, %s9182_s30 }
 0x6fe   : > { %8288 = vrot.lane.b32.xlu0 %v14201_v10, %s9182_s30  ;;  %v14250_v35 = vpop.permute.xlu1 %8053 }
 0x6ff   : > { %19325 = vst [vmem:[#allocation131_spill] sm:$0xff] %v14250_v35 }
 0x700   : > { %v14254_v16 = vpop.permute.xlu0 %8038  ;;  %8313 = vrot.lane.b32.xlu1 %v14211_v62, %s9182_s30 }
 0x701   : > { %19326 = vst [vmem:[#allocation136_spill] sm:$0xff] %v14254_v16  ;;  %v17747_v12 = vunpack.i.h.bf16 %v14254_v16  ;;  %v17748_v18 = vunpack.i.l.bf16 %v14254_v16 }
 0x702   : > { %8298 = vrot.lane.b32.xlu0 %v14217_v11, %s9182_s30  ;;  %v14262_v57 = vpop.permute.xlu1 %3799 }
 0x703   : > { %19327 = vst [vmem:[#allocation141_spill] sm:$0xff] %v14262_v57  ;;  %v14276_v42 = vsel %vm447_vm1, %v17748_v18, %v17747_v12 }
 0x704   : > { %19330 = vst [vmem:[#allocation32_spill] sm:$0xff] %v14276_v42  ;;  %v14278_v26 = vpop.permute.xlu0 %8048  ;;  %8323 = vrot.lane.b32.xlu1 %v14166_v7, %s9183_s5 }
 0x705   : > { %19331 = vst [vmem:[#allocation70_spill] sm:$0xff] %v14278_v26 }
 0x706   : > { %8308 = vrot.lane.b32.xlu0 %v14229_v5, %s9182_s30  ;;  %v14286_v39 = vpop.permute.xlu1 %8068 }
 0x708   : > { %v14288_v48 = vpop.permute.xlu0 %8058  ;;  %8333 = vrot.lane.b32.xlu1 %v14201_v10, %s9194_s18 }
 0x709   : > { %19332 = vst [vmem:[#allocation73_spill] sm:$0xff] %v14288_v48  ;;  %v8362_v48 = vpack.i.bf16 %v13924_v28, %v13982_v44 }
 0x70a   : > { %8318 = vrot.lane.b32.xlu0 %v8237_v49, %s9183_s5  ;;  %v14293_v12 = vpop.permute.xlu1 %8078 }
 0x70b   : > { %19333 = vst [vmem:[#allocation147_spill] sm:$0xff] %v14293_v12 }
 0x70c   : > { %v14295_v18 = vpop.permute.xlu0 %8063  ;;  %8343 = vrot.lane.b32.xlu1 %v14201_v10, %s9192_s14 }
 0x70e   : > { %8328 = vrot.lane.b32.xlu0 %v14166_v7, %s9194_s18  ;;  %v14301_v19 = vpop.permute.xlu1 %8088 }
 0x70f   : > { %19334 = vst [vmem:[#allocation165_spill] sm:$0xff] %v14301_v19 }
 0x710   : > { %v14303_v57 = vpop.permute.xlu0 %8073  ;;  %8353 = vrot.lane.b32.xlu1 %v14201_v10, %s9193_s17 }
 0x711   : > { %19335 = vst [vmem:[#allocation46_spill] sm:$0xff] %v14303_v57  ;;  %v17765_v42 = vunpack.i.h.bf16 %v14303_v57 }
 0x712   : > { %8338 = vrot.lane.b32.xlu0 %v14166_v7, %s9192_s14  ;;  %v14309_v49 = vpop.permute.xlu1 %3857 }
 0x713   : > { %19336 = vst [vmem:[#allocation170_spill] sm:$0xff] %v14309_v49 }
 0x714   : > { %v14313_v4 = vpop.permute.xlu0 %8083  ;;  %8363 = vrot.lane.b32.xlu1 %v8362_v48, %s9190_s12 }
 0x715   : > { %19337 = vst [vmem:[#allocation176_spill] sm:$0xff] %v14313_v4 }
 0x716   : > { %8348 = vrot.lane.b32.xlu0 %v14166_v7, %s9193_s17  ;;  %v14318_v19 = vpop.permute.xlu1 %8103 }
 0x718   : > { %v14320_v51 = vpop.permute.xlu0 %8093  ;;  %8373 = vrot.lane.b32.xlu1 %v14201_v10, %s9191_s13 }
 0x719   : > { %19338 = vst [vmem:[#allocation150_spill] sm:$0xff] %v14320_v51  ;;  %v17766_v51 = vunpack.i.l.bf16 %v14303_v57 }
 0x71a   : > { %8358 = vrot.lane.b32.xlu0 %v14166_v7, %s9190_s12  ;;  %v14326_v49 = vpop.permute.xlu1 %8113 }
 0x71b   : > { %19339 = vst [vmem:[#allocation160_spill] sm:$0xff] %v14326_v49 }
 0x71c   : > { %v14328_v61 = vpop.permute.xlu0 %8098  ;;  %8383 = vrot.lane.b32.xlu1 %v8362_v48, %s9188_s10 }
 0x71e   : > { %8368 = vrot.lane.b32.xlu0 %v14166_v7, %s9191_s13  ;;  %v14333_v37 = vpop.permute.xlu1 %8123 }
 0x71f   : > { %19340 = vst [vmem:[#allocation48_spill] sm:$0xff] %v14333_v37  ;;  %v14351_v37 = vsel %vm19343_vm7, %v17766_v51, %v17765_v42  ;;  %v8412_v51 = vpack.i.bf16 %v13979_v30, %v13955_v33  ;;  %vm19386_vm7 = vcmask 1039360  }
 0x720   : > { %v14337_v4 = vpop.permute.xlu0 %8108  ;;  %8393 = vrot.lane.b32.xlu1 %v8362_v48, %s9189_s11  ;;  %19344 = vst [vmem:[#allocation4_spill] sm:$0xff] %v14351_v37 }
 0x721   : > { %19341 = vst [vmem:[#allocation51_spill] sm:$0xff] %v14337_v4  ;;  %v17768_v26 = vunpack.i.h.bf16 %v14337_v4  ;;  %v17769_v35 = vunpack.i.l.bf16 %v14337_v4 }
 0x722   : > { %8378 = vrot.lane.b32.xlu0 %v14166_v7, %s9188_s10  ;;  %v14344_v54 = vpop.permute.xlu1 %3915 }
 0x723   : > { %19342 = vst [vmem:[#allocation108_spill] sm:$0xff] %v14344_v54  ;;  %v14358_v48 = vsel %vm19345_vm0, %v17769_v35, %v17768_v26  ;;  %vm19389_vm0 = vcmask 531456  }
 0x724   : > { %19346 = vst [vmem:[#allocation181_spill] sm:$0xff] %v14358_v48  ;;  %v14360_v41 = vpop.permute.xlu0 %8118  ;;  %8403 = vrot.lane.b32.xlu1 %v13949_v21, %s9187_s9 }
 0x725   : > { %19347 = vst [vmem:[#allocation3_spill] sm:$0xff] %v14360_v41 }
 0x726   : > { %8388 = vrot.lane.b32.xlu0 %v14166_v7, %s9189_s11  ;;  %v14368_v42 = vpop.permute.xlu1 %8138 }
 0x728   : > { %v14372_v49 = vpop.permute.xlu0 %8128  ;;  %8413 = vrot.lane.b32.xlu1 %v8412_v51, %s9187_s9 }
 0x729   : > { %19348 = vst [vmem:[#allocation99_spill] sm:$0xff] %v14372_v49 }
 0x72a   : > { %8398 = vrot.lane.b32.xlu0 %v13949_v21, %s9186_s8  ;;  %v14377_v26 = vpop.permute.xlu1 %8148 }
 0x72b   : > { %19349 = vst [vmem:[#allocation111_spill] sm:$0xff] %v14377_v26 }
 0x72c   : > { %v14379_v35 = vpop.permute.xlu0 %8133  ;;  %8423 = vrot.lane.b32.xlu1 %v13949_v21, %s9185_s7 }
 0x72e   : > { %8408 = vrot.lane.b32.xlu0 %v8412_v51, %s9186_s8  ;;  %v14384_v7 = vpop.permute.xlu1 %8158 }
 0x72f   : > { %19350 = vst [vmem:[#allocation81_spill] sm:$0xff] %v14384_v7 }
 0x730   : > { %v14386_v54 = vpop.permute.xlu0 %8143  ;;  %8433 = vrot.lane.b32.xlu1 %v8412_v51, %s9185_s7 }
 0x731   : > { %19351 = vst [vmem:[#allocation175_spill] sm:$0xff] %v14386_v54  ;;  %v17784_v7 = vunpack.i.l.bf16 %v14386_v54 }
 0x732   : > { %8418 = vrot.lane.b32.xlu0 %v13949_v21, %s19352_s21  ;;  %v14391_v49 = vpop.permute.xlu1 %3973 }
 0x733   : > { %19353 = vst [vmem:[#allocation177_spill] sm:$0xff] %v14391_v49 }
 0x734   : > { %v14393_v41 = vpop.permute.xlu0 %8153  ;;  %8443 = vrot.lane.b32.xlu1 %v14179_v24, %s9192_s14 }
 0x735   : > { %19354 = vst [vmem:[#allocation104_spill] sm:$0xff] %v14393_v41 }
 0x736   : > { %8428 = vrot.lane.b32.xlu0 %v8412_v51, %s19352_s21  ;;  %v14398_v37 = vpop.permute.xlu1 %8173 }
 0x738   : > { %v14400_v48 = vpop.permute.xlu0 %8163  ;;  %8453 = vrot.lane.b32.xlu1 %v14217_v11, %s9194_s18 }
 0x739   : > { %19355 = vst [vmem:[#allocation151_spill] sm:$0xff] %v14400_v48  ;;  %v17783_v48 = vunpack.i.h.bf16 %v14386_v54 }
 0x73a   : > { %8438 = vrot.lane.b32.xlu0 %v14179_v24, %s9194_s18  ;;  %v14406_v21 = vpop.permute.xlu1 %8183 }
 0x73b   : > { %19356 = vst [vmem:[#allocation19_spill] sm:$0xff] %v14406_v21 }
 0x73c   : > { %v14408_v49 = vpop.permute.xlu0 %8168  ;;  %8463 = vrot.lane.b32.xlu1 %v14179_v24, %s9191_s13 }
 0x73e   : > { %8448 = vrot.lane.b32.xlu0 %v14179_v24, %s9193_s17  ;;  %v14414_v51 = vpop.permute.xlu1 %8193 }
 0x73f   : > { %19357 = vst [vmem:[#allocation72_spill] sm:$0xff] %v14414_v51  ;;  %v14433_v51 = vsel %vm19360_vm5, %v17784_v7, %v17783_v48  ;;  %vm19393_vm5 = vcmask 375808  }
 0x740   : > { %v14418_v41 = vpop.permute.xlu0 %8178  ;;  %8473 = vrot.lane.b32.xlu1 %v14217_v11, %s9193_s17  ;;  %19361 = vst [vmem:[#allocation149_spill] sm:$0xff] %v14433_v51 }
 0x741   : > { %19358 = vst [vmem:[#allocation68_spill] sm:$0xff] %v14418_v41  ;;  %v17785_v26 = vunpack.i.h.bf16 %v14418_v41  ;;  %v17786_v21 = vunpack.i.l.bf16 %v14418_v41 }
 0x742   : > { %8458 = vrot.lane.b32.xlu0 %v13974_v2, %s9190_s12  ;;  %v14426_v12 = vpop.permute.xlu1 %4031 }
 0x743   : > { %19359 = vst [vmem:[#allocation182_spill] sm:$0xff] %v14426_v12  ;;  %v14440_v15 = vsel %vm19362_vm2, %v17786_v21, %v17785_v26  ;;  %vm19398_vm2 = vcmask 441344  }
 0x744   : > { %19363 = vst [vmem:[#allocation61_spill] sm:$0xff] %v14440_v15  ;;  %v14442_v23 = vpop.permute.xlu0 %8188  ;;  %8478 = vrot.lane.b32.xlu1 %v13974_v2, %s9188_s10 }
 0x745   : > { %19364 = vst [vmem:[#allocation58_spill] sm:$0xff] %v14442_v23 }
 0x746   : > { %8468 = vrot.lane.b32.xlu0 %v14217_v11, %s9192_s14  ;;  %v14450_v48 = vpop.permute.xlu1 %8208 }
 0x748   : > { %v14452_v7 = vpop.permute.xlu0 %8198  ;;  %8488 = vrot.lane.b32.xlu1 %v14028_v38, %s9190_s12 }
 0x749   : > { %19365 = vst [vmem:[#allocation50_spill] sm:$0xff] %v14452_v7 }
 0x74a   : > { %8483 = vrot.lane.b32.xlu0 %v13974_v2, %s9189_s11  ;;  %v14458_v26 = vpop.permute.xlu1 %8218 }
 0x74b   : > { %19366 = vst [vmem:[#allocation140_spill] sm:$0xff] %v14458_v26 }
 0x74c   : > { %v14460_v21 = vpop.permute.xlu0 %8203  ;;  %8503 = vrot.lane.b32.xlu1 %v14028_v38, %s9189_s11 }
 0x74e   : > { %8493 = vrot.lane.b32.xlu0 %v14217_v11, %s9191_s13  ;;  %v14466_v12 = vpop.permute.xlu1 %8228 }
 0x74f   : > { %19367 = vst [vmem:[#allocation130_spill] sm:$0xff] %v14466_v12 }
 0x750   : > { %v14468_v23 = vpop.permute.xlu0 %8213  ;;  %8513 = vrot.lane.b32.xlu1 %v14201_v10, %s9187_s9 }
 0x751   : > { %19368 = vst [vmem:[#allocation34_spill] sm:$0xff] %v14468_v23 }
 0x752   : > { %8498 = vrot.lane.b32.xlu0 %v14028_v38, %s9188_s10  ;;  %v14474_v2 = vpop.permute.xlu1 %4089 }
 0x753   : > { %19369 = vst [vmem:[#allocation25_spill] sm:$0xff] %v14474_v2 }
 0x754   : > { %v14476_v7 = vpop.permute.xlu0 %8223  ;;  %8518 = vrot.lane.b32.xlu1 %v14201_v10, %s19352_s21 }
 0x755   : > { %19370 = vst [vmem:[#allocation107_spill] sm:$0xff] %v14476_v7 }
 0x756   : > { %8508 = vrot.lane.b32.xlu0 %v14201_v10, %s9186_s8  ;;  %v14482_v51 = vpop.permute.xlu1 %8243 }
 0x757   : > { %v8246_v44 = vunpack.i.h.bf16 %v14482_v51  ;;  %v14626_v16 = vunpack.i.l.bf16 %v14482_v51 }
 0x758   : > { %v14484_v12 = vpop.permute.xlu0 %8233  ;;  %8528 = vrot.lane.b32.xlu1 %v14179_v24, %s9186_s8 }
 0x759   : > { %19371 = vst [vmem:[#allocation122_spill] sm:$0xff] %v14484_v12  ;;  %v14662_v51 = vsel %vm898_vm12, %v14626_v16, %v8246_v44 }
 0x75a   : > { %8523 = vrot.lane.b32.xlu0 %v14201_v10, %s9185_s7  ;;  %v14490_v38 = vpop.permute.xlu1 %8253 }
 0x75b   : > { %19372 = vst [vmem:[#allocation123_spill] sm:$0xff] %v14490_v38 }
 0x75c   : > { %v14492_v2 = vpop.permute.xlu0 %8238  ;;  %8538 = vrot.lane.b32.xlu1 %v14201_v10, %s9183_s5 }
 0x75e   : > { %8533 = vrot.lane.b32.xlu0 %v14179_v24, %s9187_s9  ;;  %v14498_v7 = vpop.permute.xlu1 %8263 }
 0x75f   : > { %19373 = vst [vmem:[#allocation39_spill] sm:$0xff] %v14498_v7 }
 0x760   : > { %v14500_v15 = vpop.permute.xlu0 %8248  ;;  %8548 = vrot.lane.b32.xlu1 %v14179_v24, %s9185_s7 }
 0x761   : > { %19374 = vst [vmem:[#allocation66_spill] sm:$0xff] %v14500_v15 }
 0x762   : > { %8543 = vrot.lane.b32.xlu0 %v14179_v24, %s19352_s21  ;;  %v14506_v12 = vpop.permute.xlu1 %8273 }
 0x763   : > { %19375 = vst [vmem:[#allocation60_spill] sm:$0xff] %v14506_v12 }
 0x764   : > { %v14508_v26 = vpop.permute.xlu0 %8258  ;;  %8568 = vrot.lane.b32.xlu1 %v14192_v47, %s9193_s17 }
 0x765   : > { %19376 = vst [vmem:[#allocation80_spill] sm:$0xff] %v14508_v26 }
 0x766   : > { %8553 = vrot.lane.b32.xlu0 %v14179_v24, %s9183_s5  ;;  %v14514_v10 = vpop.permute.xlu1 %8283 }
 0x768   : > { %v14516_v50 = vpop.permute.xlu0 %8268  ;;  %8578 = vrot.lane.b32.xlu1 %v14000_v55, %s9190_s12 }
 0x769   : > { %19377 = vst [vmem:[#allocation89_spill] sm:$0xff] %v14516_v50 }
 0x76a   : > { %8558 = vrot.lane.b32.xlu0 %v14192_v47, %s9194_s18  ;;  %v14522_v14 = vpop.permute.xlu1 %8293 }
 0x76b   : > { %19378 = vst [vmem:[#allocation41_spill] sm:$0xff] %v14522_v14  ;;  %v19395_v14 = vunpack.i.l.bf16 %v14500_v15 }
 0x76c   : > { %v14524_v12 = vpop.permute.xlu0 %8278  ;;  %8588 = vrot.lane.b32.xlu1 %v14229_v5, %s9192_s14 }
 0x76e   : > { %8563 = vrot.lane.b32.xlu0 %v14192_v47, %s9192_s14  ;;  %v14530_v24 = vpop.permute.xlu1 %8303 }
 0x76f   : > { %19379 = vst [vmem:[#allocation114_spill] sm:$0xff] %v14530_v24 }
 0x770   : > { %v14532_v27 = vpop.permute.xlu0 %8288  ;;  %8598 = vrot.lane.b32.xlu1 %v14000_v55, %s9188_s10 }
 0x771   : > { %v19409_v25 = vunpack.i.l.bf16 %v14532_v27 }
 0x772   : > { %8573 = vrot.lane.b32.xlu0 %v14229_v5, %s9194_s18  ;;  %v14538_v50 = vpop.permute.xlu1 %8313 }
 0x773   : > { %19380 = vst [vmem:[#allocation26_spill] sm:$0xff] %v14538_v50 }
 0x774   : > { %v14540_v45 = vpop.permute.xlu0 %8298  ;;  %8608 = vrot.lane.b32.xlu1 %v14036_v8, %s9190_s12 }
 0x775   : > { %19381 = vst [vmem:[#allocation71_spill] sm:$0xff] %v14540_v45 }
 0x776   : > { %8583 = vrot.lane.b32.xlu0 %v14192_v47, %s9191_s13  ;;  %v14546_v20 = vpop.permute.xlu1 %8323 }
 0x778   : > { %v14548_v32 = vpop.permute.xlu0 %8308  ;;  %8618 = vrot.lane.b32.xlu1 %v14036_v8, %s9188_s10 }
 0x779   : > { %19382 = vst [vmem:[#allocation24_spill] sm:$0xff] %v14548_v32 }
 0x77a   : > { %8593 = vrot.lane.b32.xlu0 %v14229_v5, %s9193_s17  ;;  %v14554_v63 = vpop.permute.xlu1 %8333 }
 0x77c   : > { %v14556_v50 = vpop.permute.xlu0 %8318  ;;  %8628 = vrot.lane.b32.xlu1 %v14217_v11, %s9186_s8 }
 0x77d   : > { %v8321_v43 = vunpack.i.h.bf16 %v14556_v50 }
 0x77e   : > { %8603 = vrot.lane.b32.xlu0 %v14000_v55, %s9189_s11  ;;  %v14562_v7 = vpop.permute.xlu1 %8343  ;;  %v3580_v55 = vmul.f32 %v13892_v13, %v13884_v29 }
 0x77f   : > { %19383 = vst [vmem:[#allocation7_spill] sm:$0xff] %v14562_v7 }
 0x780   : > { %v14564_v52 = vpop.permute.xlu0 %8328  ;;  %8638 = vrot.lane.b32.xlu1 %v14217_v11, %s19352_s21  ;;  %v3603_v6 = vadd.f32 %v13898_v17, %v3580_v55  ;;  %v14621_v55 = vunpack.i.l.bf16 %v14514_v10 }
 0x781   : > { %v8330_v23 = vunpack.i.l.bf16 %v14564_v52  ;;  %v8331_v1 = vunpack.i.h.bf16 %v14564_v52 }
 0x782   : > { %8613 = vrot.lane.b32.xlu0 %v14229_v5, %s9191_s13  ;;  %v14570_v32 = vpop.permute.xlu1 %8353  ;;  %v3621_v59 = vmax.f32 %v3603_v6, 0.0 }
 0x784   : > { %v14572_v58 = vpop.permute.xlu0 %8338  ;;  %8648 = vrot.lane.b32.xlu1 %v14192_v47, %s9186_s8  ;;  %v14600_v13 = vmul.f32 %v3621_v59, %v13878_v31  ;;  %v19385_v59 = vunpack.i.l.bf16 %v14154_v3 }
 0x786   : > { %8623 = vrot.lane.b32.xlu0 %v14036_v8, %s9189_s11  ;;  %v14580_v24 = vpop.permute.xlu1 %8363  ;;  %v14639_v4 = vsel %vm19386_vm7, %v17843_v46, %v19385_v59  ;;  %v19388_v59 = vunpack.i.h.bf16 %v14514_v10  ;;  %vm19401_vm7 = vmmov %vm19393_vm5 }
 0x788   : > { %v14583_v60 = vpop.permute.xlu0 %8348  ;;  %8658 = vrot.lane.b32.xlu1 %v14217_v11, %s9183_s5  ;;  %v14655_v46 = vsel %vm19389_vm0, %v14621_v55, %v19388_v59  ;;  %vm19404_vm0 = vmmov %vm19398_vm2 }
 0x789   : > { %19390 = vst [vmem:[#allocation30_spill] sm:$0xff] %v14655_v46  ;;  %v8697_v3 = vpack.i.bf16 %v14655_v46, %v14621_v55 }
 0x78a   : > { %8633 = vrot.lane.b32.xlu0 %v14217_v11, %s9187_s9  ;;  %v14589_v5 = vpop.permute.xlu1 %8373 }
 0x78c   : > { %v14591_v30 = vpop.permute.xlu0 %8358  ;;  %8668 = vrot.lane.b32.xlu1 %v14192_v47, %s9185_s7 }
 0x78e   : > { %8643 = vrot.lane.b32.xlu0 %v14217_v11, %s9185_s7  ;;  %v14597_v29 = vpop.permute.xlu1 %8383 }
 0x790   : > { %v14602_v17 = vpop.permute.xlu0 %8368  ;;  %4847 = vrot.lane.b32.xlu1 %v14600_v13, %s9182_s30 }
 0x792   : > { %8653 = vrot.lane.b32.xlu0 %v14192_v47, %s9187_s9  ;;  %v14608_v6 = vpop.permute.xlu1 %8393 }
 0x794   : > { %v14610_v8 = vpop.permute.xlu0 %8378  ;;  %8683 = vrot.lane.b32.xlu1 %v14211_v62, %s9192_s14 }
 0x796   : > { %8663 = vrot.lane.b32.xlu0 %v14192_v47, %s19352_s21  ;;  %v14617_v31 = vpop.permute.xlu1 %8403 }
 0x797   : > { %19384 = vst [vmem:[#allocation148_spill] sm:$0xff] %v14617_v31  ;;  %v8405_v57 = vunpack.i.l.bf16 %v14617_v31  ;;  %v19392_v54 = vunpack.i.h.bf16 %v14617_v31  ;;  %v14686_v31 = vsel %vm898_vm12, %v8246_v44, %v19395_v14 }
 0x798   : > { %v14628_v26 = vpop.permute.xlu0 %8388  ;;  %4823 = vrot.lane.b32.xlu1 %v14600_v13, %s9194_s18  ;;  %19396 = vst [vmem:[#allocation161_spill] sm:$0xff] %v14686_v31 }
 0x799   : > { %v4499_v38 = vsel %vm19393_vm5, %v8405_v57, %v19392_v54  ;;  %v19405_v54 = vunpack.i.l.bf16 %v14562_v7  ;;  %v8281_v7 = vunpack.i.h.bf16 %v14524_v12  ;;  %vm19411_vm5 = vcmask 531456  }
 0x79a   : > { %8673 = vrot.lane.b32.xlu0 %v14192_v47, %s9183_s5  ;;  %v14646_v41 = vpop.permute.xlu1 %8413  ;;  %v8350_v47 = vunpack.i.l.bf16 %v14583_v60 }
 0x79b   : > { %19387 = vst [vmem:[#allocation27_spill] sm:$0xff] %v14646_v41  ;;  %v8415_v34 = vunpack.i.l.bf16 %v14646_v41  ;;  %v8712_v41 = vpack.i.bf16 %v8330_v23, %v14686_v31 }
 0x79c   : > { %v14664_v11 = vpop.permute.xlu0 %8398  ;;  %8693 = vrot.lane.b32.xlu1 %v14018_v40, %s9190_s12 }
 0x79d   : > { %19391 = vst [vmem:[#allocation105_spill] sm:$0xff] %v14664_v11  ;;  %v8400_v59 = vunpack.i.l.bf16 %v14664_v11  ;;  %v19397_v45 = vunpack.i.h.bf16 %v14664_v11  ;;  %v4498_v44 = vsel %vm19401_vm7, %v8415_v34, %v8405_v57  ;;  %vm19418_vm7 = vmmov %vm19411_vm5 }
 0x79e   : > { %8678 = vrot.lane.b32.xlu0 %v14211_v62, %s9194_s18  ;;  %v14679_v9 = vpop.permute.xlu1 %8423 }
 0x79f   : > { %19394 = vst [vmem:[#allocation6_spill] sm:$0xff] %v14679_v9  ;;  %v4441_v40 = vsel %vm19398_vm2, %v8400_v59, %v19397_v45  ;;  %v8425_v11 = vunpack.i.l.bf16 %v14679_v9  ;;  %v4825_v45 = vsel %vm1770_vm11, %v8330_v23, %v8331_v1  ;;  %vm19415_vm2 = vcmask 457728  }
 0x7a0   : > { %v14696_v46 = vpop.permute.xlu0 %8408  ;;  %v5588_v15 = vpack.c.bf16 %v4499_v38, %v4441_v40  ;;  %8698 = vrot.lane.b32.xlu1 %v8697_v3, %s19400_s22  ;;  %v19403_v3 = vunpack.i.h.bf16 %v14583_v60  ;;  %v8360_v38 = vunpack.i.l.bf16 %v14591_v30 }
 0x7a1   : > { %19399 = vst [vmem:[#allocation9_spill] sm:$0xff] %v14696_v46  ;;  %v8410_v14 = vunpack.i.l.bf16 %v14696_v46 }
 0x7a2   : > { %8688 = vrot.lane.b32.xlu0 %v14211_v62, %s9193_s17  ;;  %5736 = vmatprep.subr.bf16.mxu1 %v5588_v15  ;;  %v14709_v40 = vpop.permute.xlu1 %8433  ;;  %v4781_v34 = vsel %vm1713_vm4, %v8350_v47, %v19403_v3  ;;  %v19406_v15 = vunpack.i.h.bf16 %v14572_v58 }
 0x7a3   : > { %19402 = vst [vmem:[#allocation183_spill] sm:$0xff] %v14709_v40  ;;  %v4440_v52 = vsel %vm19404_vm0, %v8410_v14, %v8400_v59  ;;  %v8435_v59 = vunpack.i.l.bf16 %v14709_v40  ;;  %v19408_v14 = vunpack.i.h.bf16 %v14679_v9  ;;  %v8366_v9 = vunpack.i.h.bf16 %v14580_v24  ;;  %vm19421_vm0 = vmmov %vm19415_vm2 }
 0x7a4   : > { %v4738_v31 = vsel %vm1656_vm15, %v19406_v15, %v19405_v54  ;;  %v14724_v62 = vpop.permute.xlu0 %8418  ;;  %v5587_v46 = vpack.c.bf16 %v4498_v44, %v4440_v52  ;;  %8713 = vrot.lane.b32.xlu1 %v8712_v41, %s19400_s22  ;;  %v19410_v54 = vunpack.i.h.bf16 %v14514_v10  ;;  %v8320_v41 = vunpack.i.l.bf16 %v14556_v50 }
 0x7a5   : > { %19407 = vst [vmem:[#allocation63_spill] sm:$0xff] %v14724_v62  ;;  %v8420_v57 = vunpack.i.l.bf16 %v14724_v62  ;;  %v4383_v23 = vsel %vm1198_vm10, %v8425_v11, %v19408_v14  ;;  %v8722_v15 = vpack.i.bf16 %v4781_v34, %v4738_v31  ;;  %v19413_v14 = vunpack.i.h.bf16 %v14591_v30 }
 0x7a6   : > { %v14739_v44 = vsel %vm19411_vm5, %v19410_v54, %v19409_v25  ;;  %4841 = vrot.lane.b32.xlu0 %v14600_v13, %s9181_s29  ;;  %5737 = vmatpush1.bf16.msra.mxu1 %v5587_v46  ;;  %v14744_v52 = vpop.permute.xlu1 %8443  ;;  %v19414_v25 = vunpack.i.h.bf16 %v14724_v62  ;;  %v19416_v50 = vunpack.i.l.bf16 %v14554_v63  ;;  %v19417_v34 = vunpack.i.l.bf16 %v14546_v20 }
 0x7a7   : > { %19412 = vst [vmem:[#allocation75_spill] sm:$0xff] %v14744_v52  ;;  %v4649_v3 = vsel %vm1541_vm9, %v8360_v38, %v19413_v14  ;;  %v8702_v31 = vpack.i.bf16 %v4825_v45, %v14739_v44  ;;  %v8340_v10 = vunpack.i.l.bf16 %v14572_v58  ;;  %v4209_v45 = vsel %vm19418_vm7, %v8281_v7, %v14621_v55 }
 0x7a8   : > { %v4325_v54 = vsel %vm19415_vm2, %v8420_v57, %v19414_v25  ;;  %v4826_v40 = vsel %vm1770_vm11, %v8331_v1, %v19416_v50  ;;  %v14757_v46 = vpop.permute.xlu0 %8428  ;;  %8723 = vrot.lane.b32.xlu1 %v8722_v15, %s19400_s22  ;;  %v4267_v14 = vsel %vm1048_vm8, %v8321_v43, %v19417_v34  ;;  %v4382_v25 = vsel %vm1198_vm10, %v8435_v59, %v8425_v11 }
 0x7a9   : > { %v5574_v52 = vpack.c.bf16 %v4383_v23, %v4325_v54  ;;  %v8430_v62 = vunpack.i.l.bf16 %v14757_v46  ;;  %v8280_v1 = vunpack.i.l.bf16 %v14524_v12  ;;  %v4266_v23 = vsel %vm1048_vm8, %v8320_v41, %v8321_v43 }
 0x7aa   : > { %8703 = vrot.lane.b32.xlu0 %v8702_v31, %s19400_s22  ;;  %v14773_v15 = vpop.permute.xlu1 %8453  ;;  %v8732_v54 = vpack.i.bf16 %v4649_v3, %v8350_v47  ;;  %v19419_v50 = vunpack.i.l.bf16 %v14589_v5  ;;  %v19420_v34 = vunpack.i.h.bf16 %v14602_v17  ;;  %v8390_v12 = vunpack.i.l.bf16 %v14628_v26 }
 0x7ab   : > { %5738 = vmatprep.subr.bf16.mxu1 %v5574_v52  ;;  %v4324_v43 = vsel %vm19421_vm0, %v8430_v62, %v8420_v57  ;;  %v8707_v31 = vpack.i.bf16 %v14662_v51, %v4826_v40  ;;  %v5560_v47 = vpack.c.bf16 %v4267_v14, %v4209_v45  ;;  %v19422_v3 = vunpack.i.h.bf16 %v14572_v58 }
 0x7ac   : > { %v4694_v11 = vsel %vm1599_vm3, %v19420_v34, %v19419_v50  ;;  %v14784_v52 = vpop.permute.xlu0 %8438  ;;  %v5573_v55 = vpack.c.bf16 %v4382_v25, %v4324_v43  ;;  %8733 = vrot.lane.b32.xlu1 %v8732_v54, %s19400_s22  ;;  %v4648_v34 = vsel %vm1541_vm9, %v8366_v9, %v8360_v38  ;;  %v17871_v59 = vunpack.i.l.bf16 %v14597_v29 }
 0x7ad   : > { %v4737_v50 = vsel %vm1656_vm15, %v8340_v10, %v19422_v3  ;;  %v17872_v62 = vunpack.i.h.bf16 %v14610_v8  ;;  %v8171_v57 = vunpack.i.h.bf16 %v14408_v49  ;;  %v8170_v41 = vunpack.i.l.bf16 %v14408_v49 }
 0x7ae   : > { %5739 = vmatpush1.bf16.msra.mxu1 %v5573_v55  ;;  %8708 = vrot.lane.b32.xlu0 %v8707_v31, %s19400_s22  ;;  %v19423_v40 = vunpack.i.h.bf16 %v14492_v2  ;;  %v14801_v14 = vpop.permute.xlu1 %8463  ;;  %v8742_v25 = vpack.i.bf16 %v4648_v34, %v4694_v11  ;;  %v8205_v9 = vunpack.i.l.bf16 %v14460_v21  ;;  %v4208_v38 = vsel %vm19411_vm5, %v8280_v1, %v8281_v7 }
 0x7af   : > { %v8396_v45 = vunpack.i.h.bf16 %v14608_v6  ;;  %v19424_v54 = vunpack.i.h.bf16 %v14628_v26  ;;  %5740 = vmatprep.subr.bf16.mxu1 %v5560_v47  ;;  %v19426_v55 = vunpack.i.l.bf16 %v14492_v2  ;;  %v8717_v11 = vpack.i.bf16 %v4737_v50, %v14626_v16 }
 0x7b0   : > { %v4151_v58 = vsel %vm898_vm12, %v19423_v40, %v14626_v16  ;;  %v19425_v43 = vmov %v19423_v40  ;;  %v14814_v3 = vpop.permute.xlu0 %8448  ;;  %v5559_v34 = vpack.c.bf16 %v4266_v23, %v4208_v38  ;;  %v19427_v7 = vunpack.i.l.bf16 %v14450_v48  ;;  %8743 = vrot.lane.b32.xlu1 %v8742_v25, %s19400_s22 }
 0x7b1   : > { %v4605_v49 = vsel %vm1484_vm6, %v8390_v12, %v19424_v54  ;;  %v4150_v31 = vsel %vm898_vm12, %v19426_v55, %v19425_v43  ;;  %v19428_v1 = vunpack.i.h.bf16 %v14460_v21  ;;  %vm19429_vm2 = vcmask 867328  }
 0x7b2   : > { %v19430_v47 = vunpack.i.l.bf16 %v14570_v32  ;;  %v19431_v54 = vunpack.i.h.bf16 %v14583_v60  ;;  %v8370_v43 = vunpack.i.l.bf16 %v14602_v17  ;;  %vm19432_vm7 = vcmask 711680   ;;  %8718 = vrot.lane.b32.xlu0 %v8717_v11, %s19400_s22  ;;  %5741 = vmatpush1.bf16.msra.mxu1 %v5559_v34  ;;  %v14840_v55 = vpop.permute.xlu1 %8473  ;;  %vm19436_vm5 = vmmov %vm19429_vm2 }
 0x7b3   : > { %v4092_v40 = vsel %vm19429_vm2, %v19428_v1, %v19427_v7  ;;  %v4562_v16 = vsel %vm19432_vm7, %v17872_v62, %v17871_v59  ;;  %v17878_v50 = vunpack.i.l.bf16 %v14318_v19  ;;  %v8101_v38 = vunpack.i.h.bf16 %v14328_v61 }
 0x7b4   : > { %v4782_v2 = vsel %vm1713_vm4, %v19431_v54, %v19430_v47  ;;  %v5546_v23 = vpack.c.bf16 %v4151_v58, %v4092_v40  ;;  %v19433_v60 = vunpack.i.l.bf16 %v14398_v37  ;;  %vm19434_vm0 = vcmask 875520   ;;  %v14849_v34 = vpop.permute.xlu0 %8458 }
 0x7b5   : > { %v8752_v7 = vpack.i.bf16 %v4605_v49, %v4562_v16  ;;  %v8135_v1 = vunpack.i.l.bf16 %v14379_v35  ;;  %v19435_v47 = vunpack.i.h.bf16 %v14460_v21  ;;  %v17877_v40 = vunpack.i.l.bf16 %v14580_v24  ;;  %vm19440_vm7 = vmmov %vm19434_vm0 }
 0x7b6   : > { %v4034_v25 = vsel %vm19434_vm0, %v8171_v57, %v19433_v60  ;;  %v4604_v54 = vsel %vm1484_vm6, %v8396_v45, %v8390_v12  ;;  %5742 = vmatprep.subr.bf16.mxu1 %v5546_v23  ;;  %v8100_v11 = vunpack.i.l.bf16 %v14328_v61  ;;  %v8727_v59 = vpack.i.bf16 %v8340_v10, %v4782_v2  ;;  %v14868_v2 = vpop.permute.xlu1 %8478 }
 0x7b7   : > { %v4091_v58 = vsel %vm19436_vm5, %v8205_v9, %v19435_v47  ;;  %v19437_v62 = vunpack.i.l.bf16 %v14368_v42  ;;  %v19438_v49 = vunpack.i.h.bf16 %v14379_v35  ;;  %vm19439_vm2 = vcmask 883712   ;;  %8753 = vrot.lane.b32.xlu1 %v8752_v7, %s19400_s22 }
 0x7b8   : > { %v5545_v60 = vpack.c.bf16 %v4150_v31, %v4091_v58  ;;  %v4033_v21 = vsel %vm19440_vm7, %v8170_v41, %v8171_v57  ;;  %v19441_v9 = vunpack.i.h.bf16 %v14602_v17  ;;  %v8380_v61 = vunpack.i.l.bf16 %v14610_v8  ;;  %8728 = vrot.lane.b32.xlu0 %v8727_v59, %s19400_s22  ;;  %vm19444_vm5 = vmmov %vm19439_vm2  ;;  %v14882_v58 = vpop.permute.xlu0 %8468 }
 0x7b9   : > { %v3976_v16 = vsel %vm19439_vm2, %v19438_v49, %v19437_v62  ;;  %v17876_v10 = vunpack.i.l.bf16 %v14235_v53  ;;  %v8031_v31 = vunpack.i.h.bf16 %v14244_v36  ;;  %vm19442_vm0 = vcmask 949248  }
 0x7ba   : > { %v4693_v12 = vsel %vm1599_vm3, %v8370_v43, %v19441_v9  ;;  %v5532_v45 = vpack.c.bf16 %v4034_v25, %v3976_v16  ;;  %5743 = vmatpush1.bf16.msra.mxu1 %v5545_v60  ;;  %v3918_v62 = vsel %vm19442_vm0, %v8101_v38, %v17878_v50  ;;  %v8762_v17 = vpack.i.bf16 %v13924_v28, %v4604_v54  ;;  %vm19449_vm7 = vmmov %vm19442_vm0 }
 0x7bb   : > { %v7996_v41 = vunpack.i.h.bf16 %v14197_v22  ;;  %v8065_v57 = vunpack.i.l.bf16 %v14295_v18  ;;  %v19443_v23 = vmov %v19438_v49  ;;  %v19445_v59 = vunpack.i.h.bf16 %v14591_v30 }
 0x7bc   : > { %v3975_v25 = vsel %vm19444_vm5, %v8135_v1, %v19443_v23  ;;  %5744 = vmatprep.subr.bf16.mxu1 %v5532_v45  ;;  %v8030_v47 = vunpack.i.l.bf16 %v14244_v36  ;;  %v19446_v49 = vunpack.i.l.bf16 %v14286_v39  ;;  %v19447_v16 = vunpack.i.h.bf16 %v14295_v18  ;;  %8763 = vrot.lane.b32.xlu1 %v8762_v17, %s19400_s22  ;;  %v14901_v23 = vpop.permute.xlu1 %8488 }
 0x7bd   : > { %v4650_v7 = vsel %vm1541_vm9, %v19445_v59, %v17877_v40  ;;  %v5531_v60 = vpack.c.bf16 %v4033_v21, %v3975_v25  ;;  %vm19448_vm2 = vcmask 957440   ;;  %v3917_v1 = vsel %vm19449_vm7, %v8100_v11, %v8101_v38 }
 0x7be   : > { %v8737_v54 = vpack.i.bf16 %v4693_v12, %v4650_v7  ;;  %v3860_v35 = vsel %vm19448_vm2, %v19447_v16, %v19446_v49  ;;  %v19450_v30 = vunpack.i.h.bf16 %v14610_v8  ;;  %vm19451_vm0 = vcmask 711680   ;;  %vm19453_vm5 = vmmov %vm19448_vm2  ;;  %v14911_v7 = vpop.permute.xlu0 %8483  ;;  %v19454_v49 = vld [vmem:[#allocation87_spill] sm:$0xff] }
 0x7bf   : > { %v17874_v36 = vunpack.i.l.bf16 %v14608_v6  ;;  %v5518_v45 = vpack.c.bf16 %v3918_v62, %v3860_v35  ;;  %v7960_v12 = vunpack.i.l.bf16 %v14138_v0  ;;  %v7956_v21 = vunpack.i.h.bf16 %v14146_v56  ;;  %5745 = vmatpush1.bf16.msra.mxu1 %v5531_v60 }
 0x7c0   : > { %v4561_v9 = vsel %vm19451_vm0, %v8380_v61, %v19450_v30  ;;  %8738 = vrot.lane.b32.xlu0 %v8737_v54, %s19400_s22  ;;  %v3802_v17 = vsel %vm447_vm1, %v8031_v31, %v17876_v10  ;;  %v8772_v8 = vpack.i.bf16 %v13955_v33, %v14639_v4  ;;  %v7995_v38 = vunpack.i.l.bf16 %v14197_v22 }
 0x7c1   : > { %v19452_v11 = vmov %v19447_v16  ;;  %v8386_v25 = vunpack.i.h.bf16 %v14597_v29  ;;  %5746 = vmatprep.subr.bf16.mxu1 %v5518_v45  ;;  %v7955_v59 = vunpack.i.l.bf16 %v14146_v56  ;;  %v8747_v54 = vpack.i.bf16 %v4561_v9, %v8370_v43  ;;  %v14925_v43 = vpop.permute.xlu1 %8503 }
 0x7c2   : > { %v3859_v62 = vsel %vm19453_vm5, %v8065_v57, %v19452_v11  ;;  %v19455_v16 = vunpack.i.l.bf16 %v19454_v49  ;;  %vm19456_vm2 = vcmask 1031168   ;;  %8773 = vrot.lane.b32.xlu1 %v8772_v8, %s19400_s22  ;;  %v3801_v22 = vsel %vm447_vm1, %v8030_v47, %v8031_v31 }
 0x7c3   : > { %v5517_v60 = vpack.c.bf16 %v3917_v1, %v3859_v62  ;;  %v19457_v18 = vunpack.i.h.bf16 %v14628_v26  ;;  %vm19458_vm7 = vcmask 1039360   ;;  %v19459_v1 = vunpack.i.h.bf16 %v14138_v0  ;;  %vm19461_vm5 = vmmov %vm19456_vm2  ;;  %v19467_v62 = vld [vmem:[#allocation36_spill] sm:$0xff] }
 0x7c4   : > { %v3744_v35 = vsel %vm19456_vm2, %v7996_v41, %v19455_v16  ;;  %8748 = vrot.lane.b32.xlu0 %v8747_v54, %s19400_s22  ;;  %v3686_v56 = vsel %vm19458_vm7, %v7956_v21, %v7960_v12  ;;  %vm19460_vm0 = vmmov %vm19458_vm7  ;;  %v3743_v31 = vsel %vm19461_vm5, %v7995_v38, %v7996_v41  ;;  %vm19462_vm2 = vcmask 711680  }
 0x7c5   : > { %v4606_v57 = vsel %vm1484_vm6, %v19457_v18, %v17874_v36  ;;  %v5504_v30 = vpack.c.bf16 %v3802_v17, %v3744_v35  ;;  %5747 = vmatpush1.bf16.msra.mxu1 %v5517_v60  ;;  %v14930_v9 = vsel %vm19460_vm0, %v7960_v12, %v19459_v1  ;;  %v4560_v47 = vsel %vm19462_vm2, %v8386_v25, %v8380_v61  ;;  %vm19463_vm13 = vmmov %vm19460_vm0  ;;  %v14936_v17 = vpop.permute.xlu0 %8493  ;;  %v14942_v41 = vpop.permute.xlu1 %8513  ;;  %v19465_v61 = vld [vmem:[#allocation27_spill] sm:$0xff]  ;;  %v19487_v36 = vld [vmem:[#allocation66_spill] sm:$0xff] }
 0x7c6   : > { %v3685_v26 = vsel %vm19463_vm13, %v7955_v59, %v7956_v21  ;;  %v8291_v45 = vunpack.i.h.bf16 %v14532_v27  ;;  %v8757_v8 = vpack.i.bf16 %v4560_v47, %v4606_v57  ;;  %v5503_v11 = vpack.c.bf16 %v3801_v22, %v3743_v31  ;;  %4735 = vrot.lane.b32.xlu1 %v14600_v13, %s9192_s14  ;;  %19464 = vst [vmem:[#allocation93_spill] sm:$0xff] %v14942_v41  ;;  %v19466_v21 = vld [vmem:[#allocation152_spill] sm:$0xff]  ;;  %v19468_v59 = vld [vmem:[#allocation9_spill] sm:$0xff]  ;;  %v19472_v18 = vld [vmem:[#allocation139_spill] sm:$0xff] }
 0x7c7   : > { %5748 = vmatprep.subr.bf16.mxu1 %v5504_v30  ;;  %v5490_v0 = vpack.c.bf16 %v3686_v56, %v13955_v33  ;;  %v8416_v12 = vunpack.i.h.bf16 %v19465_v61  ;;  %v8767_v38 = vpack.i.bf16 %v14930_v9, %v19466_v21  ;;  %v5489_v25 = vpack.c.bf16 %v3685_v26, %v19467_v62  ;;  %v19473_v57 = vld [vmem:[#allocation41_spill] sm:$0xff]  ;;  %v19475_v47 = vld [vmem:[#allocation148_spill] sm:$0xff] }
 0x7c8   : > { %8758 = vrot.lane.b32.xlu0 %v8757_v8, %s19400_s22  ;;  %v8411_v54 = vunpack.i.h.bf16 %v19468_v59  ;;  %v19469_v60 = vunpack.i.l.bf16 %v14532_v27  ;;  %vm19470_vm13 = vcmask 531456   ;;  %v17875_v35 = vunpack.i.h.bf16 %v14942_v41  ;;  %v233_v27 = vld [vmem:[%s17279_s1 + $0x8] sm:$0xff] }
 0x7c9   : > { %5749 = vmatpush1.bf16.msra.mxu1 %v5503_v11  ;;  %v14954_v33 = vpop.permute.xlu0 %8498  ;;  %v8515_v22 = vunpack.i.l.bf16 %v14942_v41  ;;  %v17879_v30 = vunpack.i.l.bf16 %v19473_v57  ;;  %v14962_v1 = vpop.permute.xlu1 %8518  ;;  %v8336_v31 = vunpack.i.h.bf16 %v14554_v63  ;;  %v19476_v26 = vunpack.i.h.bf16 %v19475_v47  ;;  %v19503_v41 = vld [vmem:[#allocation63_spill] sm:$0xff] }
 0x7ca   : > { %5750 = vmatprep.subr.bf16.mxu1 %v5490_v0  ;;  %v14952_v16 = vsel %vm19470_vm13, %v19469_v60, %v8291_v45  ;;  %8788 = vrot.lane.b32.xlu1 %v19472_v18, %s9188_s10  ;;  %19474 = vst [vmem:[#allocation178_spill] sm:$0xff] %v14962_v1  ;;  %vm19477_vm7 = vcmask 375808   ;;  %v19478_v0 = vld [vmem:[#allocation105_spill] sm:$0xff]  ;;  %vm19480_vm0 = vcmask 441344   ;;  %v14985_v47 = vcombine.high %v233_v27, %v233_v27 }
 0x7cb   : > { %19471 = vst [vmem:[#allocation125_spill] sm:$0xff] %v14952_v16  ;;  %v4500_v8 = vsel %vm19477_vm7, %v19476_v26, %v8416_v12  ;;  %v8777_v11 = vpack.i.bf16 %v14952_v16, %v3686_v56  ;;  %v19479_v61 = vunpack.i.h.bf16 %v19478_v0  ;;  %vm19481_vm5 = vmmov %vm19477_vm7  ;;  %v19485_v60 = vld [vmem:[#allocation121_spill] sm:$0xff]  ;;  %v14995_v10 = vsel %vm19470_vm13, %v8291_v45, %v17879_v30 }
 0x7cc   : > { %8768 = vrot.lane.b32.xlu0 %v8767_v38, %s19400_s22  ;;  %v14978_v38 = vsel %vm19481_vm5, %v8515_v22, %v17875_v35  ;;  %vm19484_vm2 = vmmov %vm19481_vm5  ;;  %19486 = vst [vmem:[#allocation156_spill] sm:$0xff] %v14985_v47  ;;  %v8431_v27 = vunpack.i.h.bf16 %v14757_v46  ;;  %vm19490_vm7 = vcmask 719872   ;;  %v19491_v50 = vunpack.i.l.bf16 %v14554_v63 }
 0x7cd   : > { %5751 = vmatpush1.bf16.msra.mxu1 %v5489_v25  ;;  %v4442_v62 = vsel %vm19480_vm0, %v19479_v61, %v8411_v54  ;;  %19482 = vst [vmem:[#allocation143_spill] sm:$0xff] %v14978_v38  ;;  %v14980_v25 = vpop.permute.xlu0 %8508  ;;  %v4501_v59 = vsel %vm19484_vm2, %v8416_v12, %v8515_v22  ;;  %v8520_v61 = vunpack.i.l.bf16 %v14962_v1  ;;  %19488 = vst [vmem:[#allocation164_spill] sm:$0xff] %v14995_v10  ;;  %v19489_v12 = vld [vmem:[#allocation183_spill] sm:$0xff]  ;;  %v15000_v40 = vpop.permute.xlu1 %8528  ;;  %6372 = vmatprep.mubr.msk.bf16.mxu1 %vm19490_vm7, %v14985_v47  ;;  %vm19497_vm13 = vcmask 457728  }
 0x7ce   : > { %19483 = vst [vmem:[#allocation167_spill] sm:$0xff] %v14980_v25  ;;  %4646 = vrot.lane.b32.xlu1 %v19485_v60, %s9190_s12  ;;  %v17880_v56 = vunpack.i.h.bf16 %v14980_v25  ;;  %v8510_v26 = vunpack.i.l.bf16 %v14980_v25  ;;  %v8436_v22 = vunpack.i.h.bf16 %v19489_v12  ;;  %v4827_v35 = vsel %vm1770_vm11, %v19491_v50, %v8336_v31  ;;  %vm19493_vm5 = vmmov %vm19480_vm0  ;;  %s6388_s12 = smul.u32 112, %s20133_s16 }
 0x7cf   : > { %vm19494_vm2 = vmmov %vm19490_vm7  ;;  %v5589_v63 = vpack.c.bf16 %v4500_v8, %v4442_v62  ;;  %v19501_v8 = vld [vmem:[#allocation6_spill] sm:$0xff]  ;;  %v19504_v25 = vunpack.i.h.bf16 %v19503_v41 }
 0x7d0   : > { %8778 = vrot.lane.b32.xlu0 %v8777_v11, %s19400_s22  ;;  %v15011_v45 = vsel %vm19480_vm0, %v8510_v26, %v17880_v56  ;;  %v4443_v46 = vsel %vm19493_vm5, %v8411_v54, %v8510_v26  ;;  %6374 = vmatprep.mubr.msk.bf16.mxu0 %vm19494_vm2, %v14985_v47  ;;  %v8326_v11 = vunpack.i.h.bf16 %v14546_v20  ;;  %v19496_v56 = vunpack.i.h.bf16 %v14962_v1  ;;  %vm19499_vm7 = vmmov %vm19497_vm13  ;;  %v19500_v47 = vld [vmem:[#allocation7_spill] sm:$0xff]  ;;  %s17259_s14 = scalar_lea.vmem %s17282_s4, %s6388_s12 }
 0x7d1   : > { %19492 = vst [vmem:[#allocation185_spill] sm:$0xff] %v15011_v45  ;;  %v15017_v12 = vpop.permute.xlu0 %8523  ;;  %v5590_v30 = vpack.c.bf16 %v4501_v59, %v4443_v46  ;;  %v4327_v16 = vsel %vm19499_vm7, %v8431_v27, %v8520_v61  ;;  %v8346_v59 = vunpack.i.h.bf16 %v19500_v47  ;;  %v19502_v62 = vunpack.i.h.bf16 %v19501_v8  ;;  %vm19505_vm0 = vmmov %vm19499_vm7  ;;  %v15040_v45 = vpop.permute.xlu1 %8538 }
 0x7d2   : > { %19495 = vst [vmem:[#allocation13_spill] sm:$0xff] %v15017_v12  ;;  %4558 = vrot.lane.b32.xlu1 %v19485_v60, %s9188_s10  ;;  %v15026_v0 = vsel %vm19497_vm13, %v8520_v61, %v19496_v56  ;;  %v8525_v26 = vunpack.i.l.bf16 %v15017_v12  ;;  %v4326_v50 = vsel %vm19505_vm0, %v19504_v25, %v8431_v27  ;;  %v19506_v56 = vld [vmem:[#allocation69_spill] sm:$0xff]  ;;  %19507 = vst [vmem:[#allocation172_spill] sm:$0xff] %v15040_v45  ;;  %v19508_v61 = vunpack.i.l.bf16 %v14784_v52  ;;  %v19511_v25 = vld [vmem:[#allocation34_spill] sm:$0xff] }
 0x7d3   : > { %19498 = vst [vmem:[#allocation128_spill] sm:$0xff] %v15026_v0  ;;  %v4384_v46 = vsel %vm1198_vm10, %v19502_v62, %v8436_v22  ;;  %5777 = vmatprep.subr.bf16.mxu0 %v5590_v30  ;;  %v8797_v54 = vpack.i.bf16 %v4827_v35, %v14995_v10  ;;  %v19509_v8 = vunpack.i.h.bf16 %v15017_v12  ;;  %v17889_v30 = vunpack.i.l.bf16 %v15040_v45  ;;  %v19533_v45 = vld [vmem:[#allocation68_spill] sm:$0xff] }
 0x7d4   : > { %8783 = vrot.lane.b32.xlu0 %v19506_v56, %s9191_s13  ;;  %v4828_v38 = vsel %vm1770_vm11, %v8336_v31, %v19508_v61  ;;  %5778 = vmatpush1.bf16.msra.mxu0 %v5589_v63  ;;  %v4385_v41 = vsel %vm1198_vm10, %v8436_v22, %v8525_v26  ;;  %v19513_v31 = vunpack.i.h.bf16 %v19487_v36  ;;  %v19514_v61 = vunpack.i.l.bf16 %v19487_v36  ;;  %v19516_v22 = vld [vmem:[#allocation71_spill] sm:$0xff] }
 0x7d5   : > { %v15049_v62 = vsel %vm1198_vm10, %v8525_v26, %v19509_v8  ;;  %v15054_v56 = vpop.permute.xlu0 %8533  ;;  %v5576_v1 = vpack.c.bf16 %v4385_v41, %v4327_v16  ;;  %v5575_v8 = vpack.c.bf16 %v4384_v46, %v4326_v50  ;;  %v4269_v27 = vsel %vm1048_vm8, %v8326_v11, %v17889_v30  ;;  %v15076_v35 = vpop.permute.xlu1 %8548  ;;  %v19520_v26 = vld [vmem:[#allocation75_spill] sm:$0xff] }
 0x7d6   : > { %19510 = vst [vmem:[#allocation186_spill] sm:$0xff] %v15049_v62  ;;  %19512 = vst [vmem:[#allocation12_spill] sm:$0xff] %v15054_v56  ;;  %8798 = vrot.lane.b32.xlu1 %v8797_v54, %s19400_s22  ;;  %v15064_v63 = vsel %vm898_vm12, %v19514_v61, %v19513_v31  ;;  %v19517_v54 = vunpack.i.l.bf16 %v14546_v20  ;;  %v5562_v31 = vpack.c.bf16 %v4269_v27, %v14739_v44  ;;  %v8211_v46 = vunpack.i.h.bf16 %v14450_v48 }
 0x7d7   : > { %19515 = vst [vmem:[#allocation133_spill] sm:$0xff] %v15064_v63  ;;  %5779 = vmatprep.subr.bf16.mxu0 %v5576_v1  ;;  %19518 = vst [vmem:[#allocation2_spill] sm:$0xff] %v15076_v35  ;;  %v8802_v50 = vpack.i.bf16 %v15064_v63, %v4828_v38  ;;  %v8296_v61 = vunpack.i.h.bf16 %v19473_v57  ;;  %v19519_v30 = vunpack.i.l.bf16 %v19500_v47  ;;  %v8176_v16 = vunpack.i.h.bf16 %v14398_v37  ;;  %v19522_v38 = vld [vmem:[#allocation157_spill] sm:$0xff]  ;;  %v19529_v63 = vld [vmem:[#allocation30_spill] sm:$0xff] }
 0x7d8   : > { %v4268_v41 = vsel %vm1048_vm8, %v19517_v54, %v8326_v11  ;;  %4779 = vrot.lane.b32.xlu0 %v14600_v13, %s9193_s17  ;;  %5780 = vmatpush1.bf16.msra.mxu0 %v5575_v8  ;;  %v8071_v54 = vunpack.i.h.bf16 %v14286_v39  ;;  %v19523_v27 = vunpack.i.l.bf16 %v19522_v38  ;;  %v19524_v47 = vunpack.i.h.bf16 %v19454_v49 }
 0x7d9   : > { %v4739_v20 = vsel %vm1656_vm15, %v19519_v30, %v8346_v59  ;;  %v15089_v44 = vpop.permute.xlu0 %8543  ;;  %5781 = vmatprep.subr.bf16.mxu0 %v5562_v31  ;;  %vm19525_vm5 = vcmask 1031168   ;;  %v19526_v8 = vunpack.i.l.bf16 %v19516_v22  ;;  %vm19527_vm2 = vcmask 531456  }
 0x7da   : > { %19521 = vst [vmem:[#allocation101_spill] sm:$0xff] %v15089_v44  ;;  %8803 = vrot.lane.b32.xlu1 %v8802_v50, %s19400_s22  ;;  %v15097_v30 = vsel %vm19525_vm5, %v19524_v47, %v19523_v27  ;;  %v8356_v11 = vunpack.i.h.bf16 %v14570_v32  ;;  %v5561_v0 = vpack.c.bf16 %v4268_v41, %v19529_v63  ;;  %v19530_v31 = vunpack.i.l.bf16 %v19511_v25  ;;  %v15112_v27 = vpop.permute.xlu1 %8568  ;;  %v19532_v47 = vld [vmem:[#allocation161_spill] sm:$0xff] }
 0x7db   : > { %v15102_v1 = vsel %vm19527_vm2, %v8296_v61, %v19526_v8  ;;  %vm19531_vm13 = vcmask 867328   ;;  %v8141_v62 = vunpack.i.h.bf16 %v14368_v42  ;;  %v19534_v12 = vunpack.i.l.bf16 %v19533_v45 }
 0x7dc   : > { %19528 = vst [vmem:[#allocation98_spill] sm:$0xff] %v15102_v1  ;;  %v4094_v50 = vsel %vm19531_vm13, %v8211_v46, %v19530_v31  ;;  %8793 = vrot.lane.b32.xlu0 %v19472_v18, %s9189_s11  ;;  %v8812_v8 = vpack.i.bf16 %v4739_v20, %v15102_v1  ;;  %vm19535_vm7 = vcmask 875520   ;;  %v19536_v63 = vunpack.i.l.bf16 %v14450_v48  ;;  %vm19537_vm0 = vmmov %vm19531_vm13  ;;  %v19538_v31 = vld [vmem:[#allocation123_spill] sm:$0xff]  ;;  %5782 = vmatpush1.bf16.msra.mxu0 %v5561_v0 }
 0x7dd   : > { %v5548_v10 = vpack.c.bf16 %v19532_v47, %v4094_v50  ;;  %v4036_v44 = vsel %vm19535_vm7, %v8176_v16, %v19534_v12  ;;  %v8255_v25 = vunpack.i.l.bf16 %v19538_v31  ;;  %v19539_v35 = vunpack.i.l.bf16 %v19520_v26  ;;  %v15129_v47 = vpop.permute.xlu0 %8553  ;;  %v19541_v12 = vld [vmem:[#allocation175_spill] sm:$0xff]  ;;  %vm19548_vm13 = vmmov %vm19535_vm7 }
 0x7de   : > { %v4093_v41 = vsel %vm19537_vm0, %v19536_v63, %v8211_v46  ;;  %v8106_v50 = vunpack.i.h.bf16 %v14318_v19  ;;  %v8256_v20 = vunpack.i.h.bf16 %v19538_v31  ;;  %19540 = vst [vmem:[#allocation29_spill] sm:$0xff] %v15129_v47  ;;  %8813 = vrot.lane.b32.xlu1 %v8812_v8, %s19400_s22  ;;  %v19542_v46 = vunpack.i.l.bf16 %v19541_v12  ;;  %v19563_v47 = vld [vmem:[#allocation80_spill] sm:$0xff] }
 0x7df   : > { %v4740_v18 = vsel %vm1656_vm15, %v8346_v59, %v19539_v35  ;;  %5783 = vmatprep.subr.bf16.mxu0 %v5548_v10  ;;  %v5547_v48 = vpack.c.bf16 %v14662_v51, %v4093_v41  ;;  %vm19543_vm5 = vcmask 883712   ;;  %v19544_v59 = vunpack.i.l.bf16 %v19473_v57  ;;  %v15151_v41 = vpop.permute.xlu1 %8578 }
 0x7e0   : > { %v3978_v63 = vsel %vm19543_vm5, %v8141_v62, %v19542_v46  ;;  %v19546_v0 = vunpack.i.l.bf16 %v14570_v32  ;;  %v8441_v56 = vunpack.i.h.bf16 %v14784_v52  ;;  %v8450_v10 = vunpack.i.l.bf16 %v14814_v3  ;;  %4691 = vrot.lane.b32.xlu0 %v14600_v13, %s9191_s13  ;;  %v19549_v46 = vld [vmem:[#allocation51_spill] sm:$0xff]  ;;  %vm19556_vm0 = vmmov %vm19543_vm5 }
 0x7e1   : > { %v15139_v35 = vsel %vm19527_vm2, %v19544_v59, %v8296_v61  ;;  %v19547_v8 = vunpack.i.l.bf16 %v14398_v37  ;;  %v5534_v57 = vpack.c.bf16 %v4036_v44, %v3978_v63  ;;  %v19550_v59 = vunpack.i.l.bf16 %v19549_v46  ;;  %5784 = vmatpush1.bf16.msra.mxu0 %v5547_v48 }
 0x7e2   : > { %19545 = vst [vmem:[#allocation115_spill] sm:$0xff] %v15139_v35  ;;  %v4783_v31 = vsel %vm1713_vm4, %v19546_v0, %v8356_v11  ;;  %vm19551_vm7 = vcmask 949248   ;;  %v19552_v0 = vunpack.i.h.bf16 %v19487_v36  ;;  %v19554_v37 = vunpack.i.l.bf16 %v14773_v15 }
 0x7e3   : > { %v4035_v51 = vsel %vm19548_vm13, %v19547_v8, %v8176_v16  ;;  %v8817_v61 = vpack.i.bf16 %v4783_v31, %v4740_v18  ;;  %v3920_v32 = vsel %vm19551_vm7, %v8106_v50, %v19550_v59  ;;  %v8460_v13 = vunpack.i.l.bf16 %v14849_v34  ;;  %v15170_v31 = vpop.permute.xlu0 %8558  ;;  %5785 = vmatprep.subr.bf16.mxu0 %v5534_v57  ;;  %v19557_v59 = vld [vmem:[#allocation46_spill] sm:$0xff]  ;;  %vm19561_vm2 = vmmov %vm19551_vm7  ;;  %v15187_v57 = vpop.permute.xlu1 %8588 }
 0x7e4   : > { %v15159_v1 = vsel %vm898_vm12, %v19552_v0, %v8255_v25  ;;  %v4830_v16 = vsel %vm1770_vm11, %v8441_v56, %v19554_v37  ;;  %v19555_v44 = vunpack.i.l.bf16 %v14368_v42  ;;  %v8376_v63 = vunpack.i.h.bf16 %v14589_v5 }
 0x7e5   : > { %19553 = vst [vmem:[#allocation83_spill] sm:$0xff] %v15159_v1  ;;  %v8807_v36 = vpack.i.bf16 %v15139_v35, %v15159_v1  ;;  %8818 = vrot.lane.b32.xlu1 %v8817_v61, %s19400_s22  ;;  %v19558_v0 = vunpack.i.l.bf16 %v19557_v59  ;;  %vm19559_vm5 = vcmask 957440   ;;  %v19560_v48 = vunpack.i.l.bf16 %v14318_v19 }
 0x7e6   : > { %v3977_v18 = vsel %vm19556_vm0, %v19555_v44, %v8141_v62  ;;  %v15182_v62 = vsel %vm898_vm12, %v8255_v25, %v8256_v20  ;;  %v4784_v44 = vsel %vm1713_vm4, %v8356_v11, %v8450_v10  ;;  %v17911_v12 = vunpack.i.l.bf16 %v19563_v47  ;;  %vm19568_vm13 = vmmov %vm19559_vm5 }
 0x7e7   : > { %v3862_v37 = vsel %vm19559_vm5, %v8071_v54, %v19558_v0  ;;  %v3919_v42 = vsel %vm19561_vm2, %v19560_v48, %v8106_v50  ;;  %19562 = vst [vmem:[#allocation187_spill] sm:$0xff] %v15182_v62  ;;  %v5533_v8 = vpack.c.bf16 %v4035_v51, %v3977_v18  ;;  %8808 = vrot.lane.b32.xlu0 %v8807_v36, %s19400_s22  ;;  %v19564_v0 = vld [vmem:[#allocation136_spill] sm:$0xff]  ;;  %v19566_v19 = vunpack.i.h.bf16 %v14235_v53 }
 0x7e8   : > { %v5520_v61 = vpack.c.bf16 %v3920_v32, %v3862_v37  ;;  %v8827_v35 = vpack.i.bf16 %v15182_v62, %v4830_v16  ;;  %v19565_v1 = vunpack.i.l.bf16 %v19564_v0  ;;  %v19567_v25 = vunpack.i.l.bf16 %v14286_v39  ;;  %v19622_v62 = vld [vmem:[#allocation39_spill] sm:$0xff] }
 0x7e9   : > { %v19569_v51 = vunpack.i.l.bf16 %v14784_v52  ;;  %v19570_v36 = vunpack.i.h.bf16 %v14849_v34  ;;  %v17909_v16 = vunpack.i.l.bf16 %v14882_v58  ;;  %5786 = vmatpush1.bf16.msra.mxu0 %v5533_v8  ;;  %v19571_v37 = vunpack.i.l.bf16 %v14589_v5 }
 0x7ea   : > { %v3804_v50 = vsel %vm447_vm1, %v19566_v19, %v19565_v1  ;;  %v3861_v11 = vsel %vm19568_vm13, %v19567_v25, %v8071_v54  ;;  %v15208_v1 = vpop.permute.xlu0 %8563  ;;  %5787 = vmatprep.subr.bf16.mxu0 %v5520_v61  ;;  %8828 = vrot.lane.b32.xlu1 %v8827_v35, %s19400_s22  ;;  %v8451_v54 = vunpack.i.h.bf16 %v14814_v3  ;;  %v8465_v19 = vunpack.i.l.bf16 %v14801_v14  ;;  %v15228_v3 = vpop.permute.xlu1 %8598 }
 0x7eb   : > { %v4829_v18 = vsel %vm1770_vm11, %v19569_v51, %v8441_v56  ;;  %v4652_v32 = vsel %vm1541_vm9, %v8460_v13, %v19570_v36  ;;  %v4695_v48 = vsel %vm1599_vm3, %v19571_v37, %v8376_v63  ;;  %v5519_v52 = vpack.c.bf16 %v3919_v42, %v3861_v11 }
 0x7ec   : > { %v8822_v39 = vpack.i.bf16 %v4829_v18, %v4784_v44  ;;  %v8446_v56 = vunpack.i.h.bf16 %v19520_v26  ;;  %v19572_v25 = vunpack.i.l.bf16 %v14580_v24  ;;  %v19573_v5 = vunpack.i.h.bf16 %v14235_v53 }
 0x7ed   : > { %v19574_v51 = vunpack.i.l.bf16 %v14235_v53  ;;  %v15225_v35 = vsel %vm898_vm12, %v8256_v20, %v17911_v12  ;;  %v5506_v42 = vpack.c.bf16 %v3804_v50, %v15097_v30  ;;  %v8837_v24 = vpack.i.bf16 %v4695_v48, %v4652_v32  ;;  %5788 = vmatpush1.bf16.msra.mxu0 %v5519_v52 }
 0x7ee   : > { %v4651_v8 = vsel %vm1541_vm9, %v19572_v25, %v8460_v13  ;;  %19575 = vst [vmem:[#allocation112_spill] sm:$0xff] %v15225_v35  ;;  %8823 = vrot.lane.b32.xlu0 %v8822_v39, %s19400_s22  ;;  %v4742_v13 = vsel %vm1656_vm15, %v8446_v56, %v17909_v16  ;;  %v8481_v53 = vunpack.i.h.bf16 %v14868_v2  ;;  %v8480_v61 = vunpack.i.l.bf16 %v14868_v2  ;;  %v15242_v37 = vpop.permute.xlu0 %8573  ;;  %v15253_v25 = vpop.permute.xlu1 %8608 }
 0x7ef   : > { %v3803_v44 = vsel %vm447_vm1, %v19574_v51, %v19573_v5  ;;  %v8485_v11 = vunpack.i.l.bf16 %v14911_v7  ;;  %v19576_v20 = vunpack.i.h.bf16 %v19454_v49  ;;  %v19577_v18 = vunpack.i.l.bf16 %v19454_v49  ;;  %5789 = vmatprep.subr.bf16.mxu0 %v5506_v42  ;;  %8838 = vrot.lane.b32.xlu1 %v8837_v24, %s19400_s22 }
 0x7f0   : > { %vm19578_vm7 = vcmask 1031168   ;;  %v8832_v30 = vpack.i.bf16 %v4651_v8, %v15225_v35  ;;  %v4785_v50 = vsel %vm1713_vm4, %v8450_v10, %v8451_v54  ;;  %v4696_v32 = vsel %vm1599_vm3, %v8376_v63, %v8465_v19 }
 0x7f1   : > { %v3745_v36 = vsel %vm19578_vm7, %v19577_v18, %v19576_v20  ;;  %v19579_v39 = vunpack.i.l.bf16 %v19520_v26  ;;  %v17910_v49 = vunpack.i.l.bf16 %v14840_v55  ;;  %v5492_v8 = vpack.c.bf16 %v14639_v4, %v19466_v21 }
 0x7f2   : > { %v5505_v48 = vpack.c.bf16 %v3803_v44, %v3745_v36  ;;  %8833 = vrot.lane.b32.xlu0 %v8832_v30, %s19400_s22  ;;  %v8847_v5 = vpack.i.bf16 %v4785_v50, %v4742_v13  ;;  %vm19580_vm0 = vcmask 711680   ;;  %v19581_v63 = vunpack.i.l.bf16 %v14608_v6  ;;  %v15265_v44 = vpop.permute.xlu0 %8583  ;;  %v19584_v13 = vld [vmem:[#allocation79_spill] sm:$0xff]  ;;  %v15276_v18 = vpop.permute.xlu1 %8618 }
 0x7f3   : > { %v4741_v52 = vsel %vm1656_vm15, %v19579_v39, %v8446_v56  ;;  %v4564_v10 = vsel %vm19580_vm0, %v8480_v61, %v8481_v53  ;;  %v17907_v56 = vunpack.i.h.bf16 %v14901_v23  ;;  %v8490_v51 = vunpack.i.l.bf16 %v14901_v23  ;;  %vm19583_vm5 = vmmov %vm19580_vm0 }
 0x7f4   : > { %v4607_v26 = vsel %vm1484_vm6, %v19581_v63, %v8485_v11  ;;  %5790 = vmatpush1.bf16.msra.mxu0 %v5505_v48  ;;  %v8842_v42 = vpack.i.bf16 %v4741_v52, %v4696_v32  ;;  %8848 = vrot.lane.b32.xlu1 %v8847_v5, %s19400_s22  ;;  %v8466_v4 = vunpack.i.h.bf16 %v14801_v14  ;;  %v19582_v21 = vunpack.i.l.bf16 %v14597_v29  ;;  %vm19593_vm13 = vmmov %vm19580_vm0 }
 0x7f5   : > { %5791 = vmatprep.subr.bf16.mxu0 %v5492_v8  ;;  %v5491_v6 = vpack.c.bf16 %v14930_v9, %v13924_v28  ;;  %v7966_v20 = vunpack.i.h.bf16 %v19584_v13  ;;  %v8857_v36 = vpack.i.bf16 %v4607_v26, %v4564_v10  ;;  %v4786_v30 = vsel %vm1713_vm4, %v8451_v54, %v17910_v49  ;;  %vm19595_vm7 = vmmov %vm19580_vm0 }
 0x7f6   : > { %v4563_v24 = vsel %vm19583_vm5, %v19582_v21, %v8480_v61  ;;  %8843 = vrot.lane.b32.xlu0 %v8842_v42, %s19400_s22  ;;  %v8486_v14 = vunpack.i.h.bf16 %v14911_v7  ;;  %v4654_v29 = vsel %vm1541_vm9, %v8490_v51, %v17907_v56  ;;  %v15285_v61 = vpop.permute.xlu0 %8593  ;;  %v4697_v9 = vsel %vm1599_vm3, %v8465_v19, %v8466_v4  ;;  %v15299_v39 = vpop.permute.xlu1 %8628  ;;  %v19592_v21 = vld [vmem:[#allocation59_spill] sm:$0xff] }
 0x7f7   : > { %v8852_v28 = vpack.i.bf16 %v4563_v24, %v4786_v30  ;;  %v19585_v50 = vunpack.i.h.bf16 %v14849_v34  ;;  %v17908_v54 = vunpack.i.l.bf16 %v14936_v17  ;;  %v19586_v7 = vunpack.i.l.bf16 %v19584_v13  ;;  %19589 = vst [vmem:[#allocation191_spill] sm:$0xff] %v15299_v39  ;;  %v19643_v39 = vld [vmem:[#allocation24_spill] sm:$0xff] }
 0x7f8   : > { %5792 = vmatpush1.bf16.msra.mxu0 %v5491_v6  ;;  %8858 = vrot.lane.b32.xlu1 %v8857_v36, %s19400_s22  ;;  %vm19587_vm2 = vcmask 1039360   ;;  %v8867_v52 = vpack.i.bf16 %v4697_v9, %v4654_v29  ;;  %v4608_v8 = vsel %vm1484_vm6, %v8485_v11, %v8486_v14  ;;  %v8505_v19 = vunpack.i.l.bf16 %v14925_v43  ;;  %v19591_v11 = vld [vmem:[#allocation97_spill] sm:$0xff] }
 0x7f9   : > { %v4653_v32 = vsel %vm1541_vm9, %v19585_v50, %v8490_v51  ;;  %v15296_v48 = vsel %vm19587_vm2, %v19586_v7, %v7966_v20  ;;  %v17905_v34 = vunpack.i.h.bf16 %v14954_v33  ;;  %v8500_v5 = vunpack.i.l.bf16 %v14954_v33  ;;  %vm19597_vm0 = vmmov %vm19587_vm2 }
 0x7fa   : > { %19588 = vst [vmem:[#allocation166_spill] sm:$0xff] %v15296_v48  ;;  %8853 = vrot.lane.b32.xlu0 %v8852_v28, %s19400_s22  ;;  %v15305_v10 = vpop.permute.xlu0 %8603  ;;  %v8862_v63 = vpack.i.bf16 %v4653_v32, %v4608_v8  ;;  %v4698_v26 = vsel %vm1599_vm3, %v8466_v4, %v17908_v54  ;;  %v15312_v51 = vpop.permute.xlu1 %8638  ;;  %v8877_v42 = vpack.i.bf16 %v15296_v48, %v19591_v11  ;;  %v7971_v24 = vunpack.i.h.bf16 %v19592_v21  ;;  %v19594_v4 = vld [vmem:[#allocation96_spill] sm:$0xff]  ;;  %vm19599_vm5 = vmmov %vm19597_vm0 }
 0x7fb   : > { %19590 = vst [vmem:[#allocation155_spill] sm:$0xff] %v15312_v51  ;;  %v7970_v6 = vunpack.i.l.bf16 %v19592_v21  ;;  %v4609_v13 = vsel %vm1484_vm6, %v8486_v14, %v8505_v19  ;;  %v4566_v36 = vsel %vm19593_vm13, %v8500_v5, %v17905_v34  ;;  %v8872_v29 = vpack.i.bf16 %v19594_v4, %v4698_v26  ;;  %v19603_v26 = vld [vmem:[#allocation86_spill] sm:$0xff]  ;;  %vm19610_vm13 = vmmov %vm19597_vm0 }
 0x7fc   : > { %8868 = vrot.lane.b32.xlu1 %v8867_v52, %s19400_s22  ;;  %v17906_v28 = vunpack.i.h.bf16 %v14925_v43  ;;  %v4565_v9 = vsel %vm19595_vm7, %v8481_v53, %v8500_v5  ;;  %v8887_v14 = vpack.i.bf16 %v4609_v13, %v4566_v36  ;;  %v8301_v2 = vunpack.i.h.bf16 %v19516_v22 }
 0x7fd   : > { %v15334_v32 = vsel %vm19597_vm0, %v7970_v6, %v7971_v24  ;;  %v15337_v7 = vsel %vm19599_vm5, %v7966_v20, %v7970_v6  ;;  %v19605_v6 = vld [vmem:[#allocation129_spill] sm:$0xff]  ;;  %v19606_v36 = vunpack.i.l.bf16 %v19516_v22  ;;  %vm19607_vm2 = vcmask 531456  }
 0x7fe   : > { %8863 = vrot.lane.b32.xlu0 %v8862_v63, %s19400_s22  ;;  %v15322_v30 = vpop.permute.xlu0 %8613  ;;  %v15331_v50 = vpop.permute.xlu1 %8648  ;;  %19598 = vst [vmem:[#allocation142_spill] sm:$0xff] %v15334_v32  ;;  %19600 = vst [vmem:[#allocation132_spill] sm:$0xff] %v15337_v7  ;;  %v8882_v8 = vpack.i.bf16 %v4565_v9, %v15337_v7  ;;  %v4610_v53 = vsel %vm1484_vm6, %v8505_v19, %v17906_v28  ;;  %v19602_v63 = vld [vmem:[#allocation5_spill] sm:$0xff]  ;;  %v19618_v28 = vld [vmem:[#allocation78_spill] sm:$0xff]  ;;  %v19619_v16 = vunpack.i.l.bf16 %v14773_v15  ;;  %v8265_v35 = vunpack.i.l.bf16 %v19622_v62 }
 0x7ff   : > { %19596 = vst [vmem:[#allocation53_spill] sm:$0xff] %v15331_v50  ;;  %v8897_v20 = vpack.i.bf16 %v15334_v32, %v19602_v63  ;;  %v8892_v13 = vpack.i.bf16 %v19605_v6, %v4610_v53  ;;  %v19613_v53 = vld [vmem:[#allocation90_spill] sm:$0xff]  ;;  %vm19623_vm7 = vmmov %vm19607_vm2  ;;  %v8560_v56 = vunpack.i.l.bf16 %v15170_v31  ;;  %v19625_v50 = vld [vmem:[#allocation179_spill] sm:$0xff]  ;;  %v19673_v11 = vunpack.i.h.bf16 %v15228_v3 }
 0x800   : > { %8878 = vrot.lane.b32.xlu1 %v8877_v42, %s19400_s22  ;;  %v7975_v42 = vunpack.i.l.bf16 %v19603_v26  ;;  %vm19629_vm5 = vmmov %vm19607_vm2  ;;  %v19640_v32 = vld [vmem:[#allocation162_spill] sm:$0xff] }
 0x802   : > { %8873 = vrot.lane.b32.xlu0 %v8872_v29, %s19400_s22  ;;  %v15339_v52 = vpop.permute.xlu0 %8623  ;;  %v15348_v5 = vpop.permute.xlu1 %8658  ;;  %v15360_v29 = vsel %vm19607_vm2, %v19606_v36, %v8301_v2  ;;  %v15366_v9 = vsel %vm19610_vm13, %v7971_v24, %v7975_v42  ;;  %v19616_v24 = vld [vmem:[#allocation114_spill] sm:$0xff]  ;;  %vm19633_vm2 = vmmov %vm19597_vm0 }
 0x803   : > { %19601 = vst [vmem:[#allocation49_spill] sm:$0xff] %v15348_v5  ;;  %19608 = vst [vmem:[#allocation38_spill] sm:$0xff] %v15360_v29  ;;  %v8305_v36 = vunpack.i.l.bf16 %v19616_v24  ;;  %v8306_v54 = vunpack.i.h.bf16 %v19616_v24  ;;  %v7976_v24 = vunpack.i.h.bf16 %v19603_v26  ;;  %v19627_v5 = vunpack.i.h.bf16 %v19618_v28 }
 0x804   : > { %8888 = vrot.lane.b32.xlu1 %v8887_v14, %s19400_s22  ;;  %19611 = vst [vmem:[#allocation23_spill] sm:$0xff] %v15366_v9  ;;  %v19635_v26 = vunpack.i.h.bf16 %v19625_v50  ;;  %vm19637_vm13 = vmmov %vm19597_vm0 }
 0x806   : > { %8883 = vrot.lane.b32.xlu0 %v8882_v8, %s19400_s22  ;;  %v15353_v21 = vpop.permute.xlu0 %8633  ;;  %v15363_v19 = vpop.permute.xlu1 %8668  ;;  %v8902_v8 = vpack.i.bf16 %v15360_v29, %v15366_v9  ;;  %v19621_v29 = vld [vmem:[#allocation22_spill] sm:$0xff]  ;;  %v19665_v9 = vld [vmem:[#allocation120_spill] sm:$0xff] }
 0x807   : > { %19604 = vst [vmem:[#allocation124_spill] sm:$0xff] %v15353_v21  ;;  %19609 = vst [vmem:[#allocation47_spill] sm:$0xff] %v15363_v19  ;;  %v15400_v19 = vsel %vm19623_vm7, %v8301_v2, %v8305_v36 }
 0x808   : > { %8898 = vrot.lane.b32.xlu1 %v8897_v20, %s19400_s22  ;;  %v8456_v20 = vunpack.i.h.bf16 %v14773_v15  ;;  %19624 = vst [vmem:[#allocation190_spill] sm:$0xff] %v15400_v19  ;;  %vm19647_vm7 = vmmov %vm19597_vm0 }
 0x80a   : > { %8893 = vrot.lane.b32.xlu0 %v8892_v13, %s19400_s22  ;;  %v15368_v14 = vpop.permute.xlu0 %8643  ;;  %v15375_v22 = vpop.permute.xlu1 %4847  ;;  %v4831_v49 = vsel %vm1770_vm11, %v19619_v16, %v8456_v20 }
 0x80b   : > { %19612 = vst [vmem:[#allocation45_spill] sm:$0xff] %v15368_v14  ;;  %19614 = vst [vmem:[#allocation28_spill] sm:$0xff] %v15375_v22  ;;  %v15417_v14 = vsel %vm19629_vm5, %v8305_v36, %v8306_v54  ;;  %v15432_v36 = vsel %vm19633_vm2, %v7975_v42, %v7976_v24  ;;  %v19641_v42 = vunpack.i.l.bf16 %v19563_v47  ;;  %v19649_v22 = vld [vmem:[#allocation196_spill] sm:$0xff] }
 0x80c   : > { %8908 = vrot.lane.b32.xlu1 %v19613_v53, %s9186_s8  ;;  %19630 = vst [vmem:[#allocation67_spill] sm:$0xff] %v15417_v14  ;;  %19634 = vst [vmem:[#allocation195_spill] sm:$0xff] %v15432_v36 }
 0x80e   : > { %8903 = vrot.lane.b32.xlu0 %v8902_v8, %s19400_s22  ;;  %v15378_v13 = vpop.permute.xlu0 %8653  ;;  %v15385_v34 = vpop.permute.xlu1 %8683  ;;  %v7980_v8 = vunpack.i.l.bf16 %v19618_v28 }
 0x80f   : > { %19615 = vst [vmem:[#allocation153_spill] sm:$0xff] %v15378_v13  ;;  %19617 = vst [vmem:[#allocation62_spill] sm:$0xff] %v15385_v34  ;;  %v8927_v13 = vpack.i.bf16 %v4831_v49, %v15400_v19  ;;  %v8476_v49 = vunpack.i.h.bf16 %v14840_v55  ;;  %v4832_v19 = vsel %vm1770_vm11, %v8456_v20, %v8560_v56  ;;  %v19646_v20 = vunpack.i.l.bf16 %v14882_v58 }
 0x810   : > { %8918 = vrot.lane.b32.xlu1 %v19613_v53, %s19352_s21  ;;  %v15414_v2 = vsel %vm19597_vm0, %v7980_v8, %v19627_v5  ;;  %v8471_v5 = vunpack.i.h.bf16 %v14882_v58  ;;  %vm19651_vm0 = vmmov %vm19629_vm5 }
 0x811   : > { %19628 = vst [vmem:[#allocation33_spill] sm:$0xff] %v15414_v2  ;;  %vm19660_vm5 = vmmov %vm19633_vm2 }
 0x812   : > { %4602 = vrot.lane.b32.xlu0 %v19485_v60, %s9189_s11  ;;  %v15393_v12 = vpop.permute.xlu0 %8663  ;;  %v8261_v60 = vunpack.i.h.bf16 %v19563_v47 }
 0x813   : > { %19620 = vst [vmem:[#allocation74_spill] sm:$0xff] %v15393_v12  ;;  %v15408_v12 = vpop.permute.xlu1 %4823 }
 0x814   : > { %4438 = vrot.lane.b32.xlu1 %v19621_v29, %s9186_s8  ;;  %19626 = vst [vmem:[#allocation11_spill] sm:$0xff] %v15408_v12  ;;  %v15426_v51 = vsel %vm898_vm12, %v8261_v60, %v8265_v35  ;;  %v15452_v21 = vsel %vm898_vm12, %v19641_v42, %v8261_v60  ;;  %v19645_v42 = vunpack.i.l.bf16 %v14840_v55  ;;  %v8570_v12 = vunpack.i.l.bf16 %v15112_v27 }
 0x815   : > { %19632 = vst [vmem:[#allocation10_spill] sm:$0xff] %v15426_v51  ;;  %v8937_v6 = vpack.i.bf16 %v15417_v14, %v15426_v51  ;;  %19642 = vst [vmem:[#allocation65_spill] sm:$0xff] %v15452_v21  ;;  %v8932_v14 = vpack.i.bf16 %v15452_v21, %v4832_v19  ;;  %v8561_v19 = vunpack.i.h.bf16 %v15170_v31  ;;  %v8496_v55 = vunpack.i.h.bf16 %v14936_v17  ;;  %v19656_v51 = vld [vmem:[#allocation89_spill] sm:$0xff] }
 0x816   : > { %8913 = vrot.lane.b32.xlu0 %v19613_v53, %s9187_s9  ;;  %v15420_v15 = vpop.permute.xlu0 %8673 }
 0x817   : > { %19631 = vst [vmem:[#allocation184_spill] sm:$0xff] %v15420_v15  ;;  %v19636_v15 = vunpack.i.l.bf16 %v19625_v50  ;;  %v15443_v16 = vpop.permute.xlu1 %8693  ;;  %v4833_v31 = vsel %vm1770_vm11, %v8560_v56, %v8561_v19 }
 0x818   : > { %8928 = vrot.lane.b32.xlu1 %v8927_v13, %s19400_s22  ;;  %19639 = vst [vmem:[#allocation154_spill] sm:$0xff] %v15443_v16  ;;  %v8266_v16 = vunpack.i.h.bf16 %v19622_v62  ;;  %v4743_v62 = vsel %vm1656_vm15, %v19646_v20, %v8471_v5 }
 0x819   : > { %v15439_v13 = vsel %vm19637_vm13, %v19636_v15, %v19635_v26  ;;  %v19644_v15 = vunpack.i.l.bf16 %v15208_v1  ;;  %vm19670_vm13 = vmmov %vm19633_vm2 }
 0x81a   : > { %19638 = vst [vmem:[#allocation55_spill] sm:$0xff] %v15439_v13  ;;  %8923 = vrot.lane.b32.xlu0 %v19613_v53, %s9185_s7  ;;  %v15460_v34 = vpop.permute.xlu0 %8678 }
 0x81b   : > { %v4744_v26 = vsel %vm1656_vm15, %v8471_v5, %v19644_v15  ;;  %v4787_v15 = vsel %vm1713_vm4, %v19645_v42, %v8476_v49  ;;  %v15480_v47 = vpop.permute.xlu1 %8698  ;;  %v19650_v5 = vunpack.i.l.bf16 %v19643_v39 }
 0x81c   : > { %8938 = vrot.lane.b32.xlu1 %v8937_v6, %s19400_s22  ;;  %v15477_v6 = vsel %vm19647_vm7, %v7976_v24, %v7980_v8  ;;  %v8947_v60 = vpack.i.bf16 %v4787_v15, %v4744_v26  ;;  %v8580_v8 = vunpack.i.l.bf16 %v15151_v41  ;;  %v19654_v26 = vld [vmem:[#allocation106_spill] sm:$0xff]  ;;  %vm19674_vm7 = vcmask 711680  }
 0x81d   : > { %19648 = vst [vmem:[#allocation127_spill] sm:$0xff] %v15477_v6  ;;  %v15489_v20 = vsel %vm19651_vm0, %v8306_v54, %v19650_v5  ;;  %v7986_v42 = vunpack.i.h.bf16 %v19654_v26  ;;  %v7985_v15 = vunpack.i.l.bf16 %v19654_v26  ;;  %v15504_v54 = vsel %vm898_vm12, %v8265_v35, %v8266_v16  ;;  %v19657_v35 = vld [vmem:[#allocation113_spill] sm:$0xff]  ;;  %vm19678_vm0 = vmmov %vm19674_vm7 }
 0x81e   : > { %8933 = vrot.lane.b32.xlu0 %v8932_v14, %s19400_s22  ;;  %19652 = vst [vmem:[#allocation77_spill] sm:$0xff] %v15489_v20  ;;  %v19653_v14 = vunpack.i.l.bf16 %v15242_v37  ;;  %v15499_v58 = vpop.permute.xlu0 %8688  ;;  %v8942_v21 = vpack.i.bf16 %v4743_v62, %v15489_v20  ;;  %19655 = vst [vmem:[#allocation145_spill] sm:$0xff] %v15504_v54  ;;  %v4788_v5 = vsel %vm1713_vm4, %v8476_v49, %v8570_v12  ;;  %v19658_v49 = vunpack.i.h.bf16 %v15151_v41 }
 0x81f   : > { %v15512_v13 = vpop.permute.xlu1 %8713  ;;  %v19659_v26 = vunpack.i.h.bf16 %v19618_v28  ;;  %v19663_v20 = vunpack.i.l.bf16 %v14936_v17 }
 0x820   : > { %v4834_v24 = vsel %vm1770_vm11, %v8561_v19, %v19653_v14  ;;  %8948 = vrot.lane.b32.xlu1 %v8947_v60, %s19400_s22  ;;  %v4656_v56 = vsel %vm1541_vm9, %v8580_v8, %v19658_v49  ;;  %v8701_v14 = vunpack.i.h.bf16 %v15480_v47  ;;  %v15531_v60 = vsel %vm19633_vm2, %v7985_v15, %v7986_v42 }
 0x821   : > { %v8957_v62 = vpack.i.bf16 %v15504_v54, %v4834_v24  ;;  %v15528_v24 = vsel %vm19660_vm5, %v19659_v26, %v7985_v15  ;;  %19662 = vst [vmem:[#allocation56_spill] sm:$0xff] %v15531_v60  ;;  %v4699_v54 = vsel %vm1599_vm3, %v19663_v20, %v8496_v55  ;;  %v8952_v49 = vpack.i.bf16 %v4833_v31, %v4788_v5 }
 0x822   : > { %8943 = vrot.lane.b32.xlu0 %v8942_v21, %s19400_s22  ;;  %v8700_v21 = vunpack.i.l.bf16 %v15480_v47  ;;  %19661 = vst [vmem:[#allocation169_spill] sm:$0xff] %v15528_v24  ;;  %v15536_v63 = vpop.permute.xlu0 %4841  ;;  %v8571_v19 = vunpack.i.h.bf16 %v15112_v27  ;;  %v19664_v47 = vunpack.i.h.bf16 %v14901_v23  ;;  %v8566_v26 = vunpack.i.h.bf16 %v15208_v1 }
 0x823   : > { %v8585_v15 = vunpack.i.l.bf16 %v15265_v44  ;;  %v8600_v20 = vunpack.i.l.bf16 %v15228_v3  ;;  %v15549_v31 = vpop.permute.xlu1 %8723  ;;  %v8967_v5 = vpack.i.bf16 %v4699_v54, %v4656_v56  ;;  %v19666_v27 = vunpack.i.l.bf16 %v19656_v51 }
 0x824   : > { %8958 = vrot.lane.b32.xlu1 %v8957_v62, %s19400_s22  ;;  %v4655_v28 = vsel %vm1541_vm9, %v19664_v47, %v8580_v8  ;;  %v19668_v8 = vunpack.i.l.bf16 %v15187_v57  ;;  %v8605_v47 = vunpack.i.l.bf16 %v15305_v10  ;;  %v5321_v4 = vsel %vm2219_vm14, %v8700_v21, %v8701_v14 }
 0x825   : > { %v15554_v23 = vsel %vm898_vm12, %v8266_v16, %v19666_v27  ;;  %v19669_v16 = vunpack.i.l.bf16 %v19625_v50  ;;  %v4789_v27 = vsel %vm1713_vm4, %v8570_v12, %v8571_v19  ;;  %v4700_v17 = vsel %vm1599_vm3, %v8496_v55, %v8585_v15 }
 0x826   : > { %8953 = vrot.lane.b32.xlu0 %v8952_v49, %s19400_s22  ;;  %19667 = vst [vmem:[#allocation159_spill] sm:$0xff] %v15554_v23  ;;  %v4746_v62 = vsel %vm1656_vm15, %v8566_v26, %v19668_v8  ;;  %v15563_v48 = vpop.permute.xlu0 %8703  ;;  %v8962_v54 = vpack.i.bf16 %v4655_v28, %v15554_v23  ;;  %v19672_v8 = vunpack.i.l.bf16 %v15208_v1  ;;  %v4568_v28 = vsel %vm19674_vm7, %v8600_v20, %v19673_v11  ;;  %vm19691_vm7 = vmmov %vm19678_vm0 }
 0x827   : > { %v15570_v56 = vsel %vm19670_vm13, %v7986_v42, %v19669_v16  ;;  %v17942_v49 = vunpack.i.l.bf16 %v15563_v48  ;;  %v5671_v42 = vpack.c.bf16 %v5321_v4, %v5321_v4  ;;  %v15583_v16 = vpop.permute.xlu1 %8733  ;;  %v8977_v12 = vpack.i.bf16 %v4789_v27, %v4746_v62  ;;  %vm19690_vm13 = vmmov %vm19678_vm0 }
 0x828   : > { %8968 = vrot.lane.b32.xlu1 %v8967_v5, %s19400_s22  ;;  %19671 = vst [vmem:[#allocation189_spill] sm:$0xff] %v15570_v56  ;;  %v4745_v21 = vsel %vm1656_vm15, %v19672_v8, %v8566_v26  ;;  %v8586_v1 = vunpack.i.h.bf16 %v15265_v44  ;;  %v8610_v26 = vunpack.i.l.bf16 %v15253_v25  ;;  %v19675_v55 = vunpack.i.h.bf16 %v14925_v43 }
 0x829   : > { %v5322_v11 = vsel %vm2219_vm14, %v8701_v14, %v17942_v49  ;;  %v19676_v5 = vunpack.i.l.bf16 %v15285_v61  ;;  %v8606_v4 = vunpack.i.h.bf16 %v15305_v10  ;;  %v8972_v62 = vpack.i.bf16 %v4745_v21, %v4700_v17 }
 0x82a   : > { %8963 = vrot.lane.b32.xlu0 %v8962_v54, %s19400_s22  ;;  %v4611_v8 = vsel %vm1484_vm6, %v19675_v55, %v8605_v47  ;;  %v15597_v23 = vpop.permute.xlu0 %8708  ;;  %v5672_v44 = vpack.c.bf16 %v5322_v11, %v5322_v11  ;;  %v8706_v43 = vunpack.i.h.bf16 %v15563_v48  ;;  %v19677_v49 = vunpack.i.h.bf16 %v14954_v33 }
 0x82b   : > { %v4790_v54 = vsel %vm1713_vm4, %v8571_v19, %v19676_v5  ;;  %v8711_v55 = vunpack.i.h.bf16 %v15597_v23  ;;  %v17945_v14 = vunpack.i.l.bf16 %v15597_v23  ;;  %vm19679_vm5 = vcmask 1043456   ;;  %v15610_v17 = vpop.permute.xlu1 %8743 }
 0x82c   : > { %8978 = vrot.lane.b32.xlu1 %v8977_v12, %s19400_s22  ;;  %v4567_v19 = vsel %vm19678_vm0, %v19677_v49, %v8600_v20  ;;  %6371 = vmatprep.subr.msk.bf16.mxu1 %vm19679_vm5, %v5672_v44  ;;  %vm19680_vm2 = vmmov %vm19679_vm5  ;;  %v8987_v21 = vpack.i.bf16 %v4611_v8, %v4568_v28  ;;  %v19682_v11 = vunpack.i.h.bf16 %v15253_v25  ;;  %v8716_v33 = vunpack.i.h.bf16 %v15512_v13 }
 0x82d   : > { %v5695_v10 = vsel %vm19680_vm2, %v5671_v42, 0  ;;  %v5294_v20 = vsel %vm2219_vm14, %v8706_v43, %v17945_v14  ;;  %v19683_v49 = vunpack.i.l.bf16 %v15512_v13  ;;  %v8982_v12 = vpack.i.bf16 %v4567_v19, %v4790_v54 }
 0x82e   : > { %8973 = vrot.lane.b32.xlu0 %v8972_v62, %s19400_s22  ;;  %v4658_v27 = vsel %vm1541_vm9, %v8610_v26, %v19682_v11  ;;  %5757 = vmatpush2.bf16.msra.mxu1 %v5695_v10  ;;  %v19684_v62 = vld [vmem:[#allocation118_spill] sm:$0xff]  ;;  %v8719_v44 = vpop.permute.xlu0 %8718  ;;  %v4701_v11 = vsel %vm1599_vm3, %v8585_v15, %v8586_v1  ;;  %v19685_v10 = vunpack.i.h.bf16 %v15151_v41  ;;  %v4612_v14 = vsel %vm1484_vm6, %v8605_v47, %v8606_v4 }
 0x82f   : > { %v5308_v42 = vsel %vm2219_vm14, %v8711_v55, %v19683_v49  ;;  %v8720_v5 = vunpack.i.l.bf16 %v8719_v44  ;;  %v17946_v49 = vunpack.i.h.bf16 %v15276_v18  ;;  %v8620_v28 = vunpack.i.l.bf16 %v15276_v18  ;;  %v15636_v54 = vpop.permute.xlu1 %8753 }
 0x830   : > { %v5658_v50 = vpack.c.bf16 %v5308_v42, %v5294_v20  ;;  %8988 = vrot.lane.b32.xlu1 %v8987_v21, %s19400_s22  ;;  %v4657_v56 = vsel %vm1541_vm9, %v19685_v10, %v8610_v26  ;;  %v8625_v8 = vunpack.i.l.bf16 %v15339_v52  ;;  %19686 = vst [vmem:[#allocation17_spill] sm:$0xff] %v15636_v54  ;;  %v8997_v19 = vpack.i.bf16 %v4701_v11, %v4658_v27 }
 0x831   : > { %v5293_v15 = vsel %vm2219_vm14, %v8716_v33, %v8706_v43  ;;  %v8721_v41 = vunpack.i.h.bf16 %v8719_v44  ;;  %v5307_v26 = vsel %vm2219_vm14, %v8720_v5, %v8711_v55  ;;  %v8735_v47 = vunpack.i.l.bf16 %v15583_v16  ;;  %v19688_v33 = vld [vmem:[#allocation91_spill] sm:$0xff] }
 0x832   : > { %8983 = vrot.lane.b32.xlu0 %v8982_v12, %s19400_s22  ;;  %5758 = vmatprep.subr.bf16.mxu1 %v5658_v50  ;;  %v8015_v21 = vunpack.i.l.bf16 %v19684_v62  ;;  %v19687_v20 = vunpack.i.l.bf16 %v15322_v30  ;;  %v15645_v10 = vpop.permute.xlu0 %8728  ;;  %v8992_v12 = vpack.i.bf16 %v4657_v56, %v4612_v14  ;;  %v5657_v50 = vpack.c.bf16 %v5307_v26, %v5293_v15 }
 0x833   : > { %v8726_v27 = vunpack.i.h.bf16 %v15549_v31  ;;  %v17947_v43 = vunpack.i.l.bf16 %v15549_v31  ;;  %v8731_v55 = vunpack.i.h.bf16 %v15645_v10  ;;  %v17948_v5 = vunpack.i.l.bf16 %v15645_v10 }
 0x834   : > { %v4702_v42 = vsel %vm1599_vm3, %v8586_v1, %v19687_v20  ;;  %8998 = vrot.lane.b32.xlu1 %v8997_v19, %s19400_s22  ;;  %v17951_v44 = vunpack.i.l.bf16 %v19688_v33  ;;  %v19689_v11 = vunpack.i.h.bf16 %v15228_v3  ;;  %v4570_v56 = vsel %vm19691_vm7, %v8620_v28, %v17946_v49  ;;  %5759 = vmatpush2.bf16.msra.mxu1 %v5657_v50  ;;  %v15661_v19 = vpop.permute.xlu1 %8763 }
 0x835   : > { %v4613_v14 = vsel %vm1484_vm6, %v8606_v4, %v8625_v8  ;;  %v5279_v15 = vsel %vm2219_vm14, %v8735_v47, %v8726_v27  ;;  %v5265_v26 = vsel %vm2219_vm14, %v8731_v55, %v8721_v41  ;;  %v5266_v3 = vsel %vm2219_vm14, %v8721_v41, %v17947_v43 }
 0x836   : > { %v4569_v1 = vsel %vm19690_vm13, %v19689_v11, %v8620_v28  ;;  %8993 = vrot.lane.b32.xlu0 %v8992_v12, %s19400_s22  ;;  %v5280_v20 = vsel %vm2219_vm14, %v8726_v27, %v17948_v5  ;;  %v15672_v4 = vpop.permute.xlu0 %8738  ;;  %v9002_v12 = vpack.i.bf16 %v19657_v35, %v4702_v42  ;;  %v5643_v11 = vpack.c.bf16 %v5279_v15, %v5265_v26  ;;  %v19698_v15 = vld [vmem:[#allocation147_spill] sm:$0xff] }
 0x837   : > { %19692 = vst [vmem:[#allocation180_spill] sm:$0xff] %v15672_v4  ;;  %v5644_v50 = vpack.c.bf16 %v5280_v20, %v5266_v3  ;;  %v19693_v47 = vpack.i.bf16 %v15432_v36, %v19649_v22  ;;  %v8736_v55 = vunpack.i.h.bf16 %v15583_v16  ;;  %v17950_v41 = vunpack.i.l.bf16 %v15610_v17 }
 0x838   : > { %v8741_v49 = vunpack.i.h.bf16 %v15672_v4  ;;  %v17949_v27 = vunpack.i.l.bf16 %v15672_v4  ;;  %v19694_v43 = vunpack.i.h.bf16 %v19665_v9  ;;  %v19695_v5 = vunpack.i.l.bf16 %v19665_v9  ;;  %v15693_v16 = vpop.permute.xlu1 %8773 }
 0x839   : > { %9008 = vrot.lane.b32.xlu1 %v19693_v47, %s19400_s22  ;;  %vm19696_vm0 = vcmask 1031168   ;;  %5760 = vmatprep.subr.bf16.mxu1 %v5644_v50  ;;  %19699 = vst [vmem:[#allocation188_spill] sm:$0xff] %v15693_v16  ;;  %v9017_v20 = vpack.i.bf16 %v4613_v14, %v4570_v56  ;;  %v8746_v47 = vunpack.i.h.bf16 %v15610_v17  ;;  %v19701_v50 = vld [vmem:[#allocation160_spill] sm:$0xff]  ;;  %v19703_v3 = vunpack.i.h.bf16 %v19522_v38 }
 0x83a   : > { %v15688_v42 = vsel %vm19696_vm0, %v19695_v5, %v19694_v43  ;;  %9003 = vrot.lane.b32.xlu0 %v9002_v12, %s19400_s22  ;;  %5761 = vmatpush2.bf16.msra.mxu1 %v5643_v11  ;;  %v5238_v28 = vsel %vm2219_vm14, %v8736_v55, %v17949_v27  ;;  %v5252_v43 = vsel %vm2219_vm14, %v8741_v49, %v17950_v41  ;;  %v19700_v5 = vunpack.i.h.bf16 %v19564_v0  ;;  %v8749_v14 = vpop.permute.xlu0 %8748  ;;  %vm19704_vm5 = vmmov %vm19696_vm0 }
 0x83b   : > { %19697 = vst [vmem:[#allocation35_spill] sm:$0xff] %v15688_v42  ;;  %v9012_v11 = vpack.i.bf16 %v4569_v1, %v15477_v6  ;;  %v5630_v26 = vpack.c.bf16 %v5252_v43, %v5238_v28  ;;  %v19702_v27 = vunpack.i.l.bf16 %v19665_v9  ;;  %v19705_v0 = vunpack.i.h.bf16 %v19684_v62  ;;  %vm19706_vm2 = vmmov %vm19696_vm0  ;;  %v19712_v43 = vld [vmem:[#allocation19_spill] sm:$0xff] }
 0x83c   : > { %v15707_v12 = vsel %vm447_vm1, %v19700_v5, %v17951_v44  ;;  %v19708_v44 = vunpack.i.h.bf16 %v15339_v52  ;;  %v8750_v1 = vunpack.i.l.bf16 %v8749_v14  ;;  %v19709_v28 = vunpack.i.h.bf16 %v19665_v9  ;;  %vm19710_vm13 = vmmov %vm19696_vm0  ;;  %v19722_v6 = vld [vmem:[#allocation163_spill] sm:$0xff] }
 0x83d   : > { %9018 = vrot.lane.b32.xlu1 %v9017_v20, %s19400_s22  ;;  %v15717_v41 = vsel %vm19704_vm5, %v19703_v3, %v19702_v27  ;;  %v15722_v5 = vsel %vm19706_vm2, %v8015_v21, %v19705_v0  ;;  %v19713_v27 = vunpack.i.h.bf16 %v19643_v39  ;;  %v19714_v3 = vunpack.i.l.bf16 %v19643_v39  ;;  %5762 = vmatprep.subr.bf16.mxu1 %v5630_v26  ;;  %v15741_v0 = vpop.permute.xlu1 %4735  ;;  %v19720_v26 = vld [vmem:[#allocation111_spill] sm:$0xff] }
 0x83e   : > { %19707 = vst [vmem:[#allocation16_spill] sm:$0xff] %v15722_v5  ;;  %v4614_v56 = vsel %vm1484_vm6, %v8625_v8, %v19708_v44  ;;  %v15730_v20 = vsel %vm19710_vm13, %v19709_v28, %v8015_v21  ;;  %vm19715_vm7 = vcmask 531456   ;;  %9013 = vrot.lane.b32.xlu0 %v9012_v11, %s19400_s22  ;;  %v19717_v8 = vunpack.i.l.bf16 %v19698_v15  ;;  %v15756_v22 = vpop.permute.xlu0 %8758  ;;  %v19745_v42 = vld [vmem:[#allocation167_spill] sm:$0xff] }
 0x83f   : > { %19711 = vst [vmem:[#allocation135_spill] sm:$0xff] %v15730_v20  ;;  %v15738_v35 = vsel %vm19715_vm7, %v19714_v3, %v19713_v27  ;;  %v19718_v9 = vunpack.i.h.bf16 %v19557_v59  ;;  %vm19719_vm0 = vcmask 957440   ;;  %v5237_v28 = vsel %vm2219_vm14, %v8746_v47, %v8736_v55  ;;  %19721 = vst [vmem:[#allocation85_spill] sm:$0xff] %v15756_v22 }
 0x840   : > { %19716 = vst [vmem:[#allocation137_spill] sm:$0xff] %v15738_v35  ;;  %v8751_v38 = vunpack.i.h.bf16 %v8749_v14  ;;  %v5251_v27 = vsel %vm2219_vm14, %v8750_v1, %v8741_v49  ;;  %v8765_v11 = vunpack.i.l.bf16 %v15661_v19  ;;  %v9022_v59 = vpack.i.bf16 %v19722_v6, %v4614_v56 }
 0x841   : > { %v15748_v21 = vsel %vm19719_vm0, %v19718_v9, %v19717_v8  ;;  %v5629_v36 = vpack.c.bf16 %v5251_v27, %v5237_v28  ;;  %v19723_v8 = vpack.i.bf16 %v15414_v2, %v19640_v32  ;;  %v19724_v9 = vunpack.i.l.bf16 %v19701_v50  ;;  %v19727_v28 = vld [vmem:[#allocation26_spill] sm:$0xff]  ;;  %v19733_v32 = vld [vmem:[#allocation12_spill] sm:$0xff] }
 0x842   : > { %v19725_v55 = vunpack.i.h.bf16 %v19549_v46  ;;  %vm19726_vm5 = vcmask 949248   ;;  %v8756_v47 = vunpack.i.h.bf16 %v15636_v54  ;;  %v8761_v1 = vunpack.i.h.bf16 %v15756_v22  ;;  %9023 = vrot.lane.b32.xlu0 %v9022_v59, %s19400_s22  ;;  %v15798_v6 = vpop.permute.xlu0 %8768 }
 0x843   : > { %9028 = vrot.lane.b32.xlu1 %v19723_v8, %s19400_s22  ;;  %v8315_v27 = vunpack.i.l.bf16 %v19727_v28  ;;  %5763 = vmatpush2.bf16.msra.mxu1 %v5629_v36  ;;  %v9032_v46 = vpack.i.bf16 %v15738_v35, %v15528_v24  ;;  %v15779_v8 = vpop.permute.xlu1 %8788  ;;  %vm19730_vm2 = vcmask 875520   ;;  %v19731_v44 = vunpack.i.l.bf16 %v15636_v54  ;;  %19734 = vst [vmem:[#allocation174_spill] sm:$0xff] %v15798_v6 }
 0x844   : > { %v15768_v49 = vsel %vm19726_vm5, %v19725_v55, %v19724_v9  ;;  %v19728_v9 = vunpack.i.l.bf16 %v19712_v43  ;;  %v19729_v55 = vunpack.i.h.bf16 %v19533_v45  ;;  %v5223_v56 = vsel %vm2219_vm14, %v8765_v11, %v8756_v47 }
 0x845   : > { %v5209_v14 = vsel %vm2219_vm14, %v8761_v1, %v8751_v38  ;;  %v5210_v36 = vsel %vm2219_vm14, %v8751_v38, %v19731_v44  ;;  %v19732_v59 = vunpack.i.l.bf16 %v15756_v22  ;;  %v8766_v11 = vunpack.i.h.bf16 %v15661_v19  ;;  %v19737_v19 = vld [vmem:[#allocation175_spill] sm:$0xff] }
 0x846   : > { %v15786_v3 = vsel %vm19730_vm2, %v19729_v55, %v19728_v9  ;;  %v5615_v45 = vpack.c.bf16 %v5223_v56, %v5209_v14  ;;  %v17963_v1 = vunpack.i.l.bf16 %v15693_v16  ;;  %v8771_v38 = vunpack.i.h.bf16 %v15798_v6  ;;  %9033 = vrot.lane.b32.xlu0 %v9032_v46, %s19400_s22  ;;  %vm19758_vm2 = vmmov %vm19715_vm7 }
 0x847   : > { %v5224_v35 = vsel %vm2219_vm14, %v8756_v47, %v19732_v59  ;;  %9038 = vrot.lane.b32.xlu1 %v19613_v53, %s9183_s5  ;;  %v17962_v44 = vunpack.i.l.bf16 %v15798_v6  ;;  %v19735_v47 = vld [vmem:[#allocation60_spill] sm:$0xff]  ;;  %v8271_v59 = vunpack.i.h.bf16 %v19656_v51  ;;  %v19736_v53 = vunpack.i.l.bf16 %v19720_v26  ;;  %v19760_v6 = vld [vmem:[#allocation101_spill] sm:$0xff] }
 0x848   : > { %v5616_v9 = vpack.c.bf16 %v5224_v35, %v5210_v36  ;;  %v15810_v35 = vpop.permute.xlu1 %4646  ;;  %v19738_v56 = vunpack.i.h.bf16 %v19737_v19  ;;  %vm19739_vm13 = vcmask 883712   ;;  %v19740_v2 = vunpack.i.h.bf16 %v15242_v37  ;;  %v19752_v26 = vld [vmem:[#allocation140_spill] sm:$0xff] }
 0x849   : > { %v19741_v55 = vunpack.i.l.bf16 %v15242_v37  ;;  %v8776_v14 = vunpack.i.h.bf16 %v15693_v16  ;;  %v5182_v46 = vsel %vm2219_vm14, %v8766_v11, %v17962_v44  ;;  %vm19747_vm0 = vcmask 441344  }
 0x84a   : > { %5764 = vmatprep.subr.bf16.mxu1 %v5616_v9  ;;  %v15817_v36 = vsel %vm19739_vm13, %v19738_v56, %v19736_v53  ;;  %v5196_v9 = vsel %vm2219_vm14, %v8771_v38, %v17963_v1  ;;  %v19742_v53 = vunpack.i.h.bf16 %v19643_v39  ;;  %v8779_v56 = vpop.permute.xlu0 %8778  ;;  %v19744_v1 = vunpack.i.l.bf16 %v15000_v40  ;;  %4496 = vrot.lane.b32.xlu0 %v19621_v29, %s9187_s9 }
 0x84b   : > { %v4835_v24 = vsel %vm1770_vm11, %v19741_v55, %v19740_v2  ;;  %5765 = vmatpush2.bf16.msra.mxu1 %v5615_v45  ;;  %v5602_v5 = vpack.c.bf16 %v5196_v9, %v5182_v46  ;;  %4380 = vrot.lane.b32.xlu1 %v19621_v29, %s9185_s7  ;;  %v8781_v55 = vunpack.i.h.bf16 %v8779_v56  ;;  %v8780_v44 = vunpack.i.l.bf16 %v8779_v56  ;;  %v19749_v46 = vld [vmem:[#allocation93_spill] sm:$0xff]  ;;  %v19755_v56 = vld [vmem:[#allocation2_spill] sm:$0xff] }
 0x84c   : > { %v15834_v19 = vsel %vm19715_vm7, %v19742_v53, %v8315_v27  ;;  %v19746_v39 = vunpack.i.h.bf16 %v19745_v42  ;;  %v19748_v20 = vunpack.i.l.bf16 %v19733_v32  ;;  %v19750_v9 = vunpack.i.h.bf16 %v19749_v46  ;;  %v15861_v42 = vpop.permute.xlu1 %4558  ;;  %v19759_v46 = vld [vmem:[#allocation62_spill] sm:$0xff] }
 0x84d   : > { %19743 = vst [vmem:[#allocation103_spill] sm:$0xff] %v15834_v19  ;;  %vm19751_vm5 = vcmask 375808   ;;  %v19753_v2 = vunpack.i.l.bf16 %v19735_v47  ;;  %5766 = vmatprep.subr.bf16.mxu1 %v5602_v5  ;;  %19756 = vst [vmem:[#allocation95_spill] sm:$0xff] %v15861_v42  ;;  %v5181_v50 = vsel %vm2219_vm14, %v8776_v14, %v8766_v11  ;;  %v8596_v11 = vunpack.i.h.bf16 %v15285_v61  ;;  %v19763_v14 = vld [vmem:[#allocation34_spill] sm:$0xff] }
 0x84e   : > { %v4445_v53 = vsel %vm19747_vm0, %v19746_v39, %v19744_v1  ;;  %v4503_v62 = vsel %vm19751_vm5, %v19750_v9, %v19748_v20  ;;  %v9042_v1 = vpack.i.bf16 %v4835_v24, %v15834_v19  ;;  %v19757_v39 = vunpack.i.h.bf16 %v19727_v28  ;;  %v15871_v54 = vpop.permute.xlu0 %8783  ;;  %v9159_v24 = vld [vmem:[%s17279_s1 + $0x8] sm:$0xff]  ;;  %4322 = vrot.lane.b32.xlu0 %v19621_v29, %s19352_s21 }
 0x84f   : > { %v15856_v45 = vsel %vm898_vm12, %v8271_v59, %v19753_v2  ;;  %v5195_v2 = vsel %vm2219_vm14, %v8780_v44, %v8771_v38  ;;  %v5592_v5 = vpack.c.bf16 %v4503_v62, %v4445_v53  ;;  %v15877_v19 = vcombine.low %v9159_v24, %v9159_v24  ;;  %v19764_v53 = vld [vmem:[#allocation29_spill] sm:$0xff] }
 0x850   : > { %19754 = vst [vmem:[#allocation117_spill] sm:$0xff] %v15856_v45  ;;  %v4849_v20 = vsel %vm19758_vm2, %v8315_v27, %v19757_v39  ;;  %v5601_v16 = vpack.c.bf16 %v5195_v2, %v5181_v50  ;;  %9043 = vrot.lane.b32.xlu1 %v9042_v1, %s19400_s22  ;;  %v8591_v27 = vunpack.i.h.bf16 %v15187_v57  ;;  %v19762_v44 = vunpack.i.l.bf16 %v15563_v48  ;;  %v19766_v2 = vld [vmem:[#allocation13_spill] sm:$0xff]  ;;  %v15894_v9 = vpop.permute.xlu1 %8798 }
 0x851   : > { %19761 = vst [vmem:[#allocation100_spill] sm:$0xff] %v15877_v19  ;;  %v8216_v62 = vunpack.i.h.bf16 %v19763_v14  ;;  %v19765_v39 = vunpack.i.l.bf16 %v19755_v56  ;;  %v19767_v24 = vunpack.i.h.bf16 %v19766_v2  ;;  %v9052_v48 = vpack.i.bf16 %v4849_v20, %v15856_v45 }
 0x852   : > { %v5323_v50 = vsel %vm2219_vm14, %v19762_v44, %v8781_v55  ;;  %5767 = vmatpush2.bf16.msra.mxu1 %v5601_v16  ;;  %v19768_v38 = vunpack.i.l.bf16 %v19759_v46  ;;  %v8681_v22 = vunpack.i.h.bf16 %v15460_v34  ;;  %v19769_v42 = vunpack.i.l.bf16 %v19656_v51  ;;  %v15909_v60 = vpop.permute.xlu0 %4779  ;;  %v19773_v44 = vld [vmem:[#allocation178_spill] sm:$0xff]  ;;  %4264 = vrot.lane.b32.xlu0 %v19621_v29, %s9183_s5 }
 0x853   : > { %v4387_v43 = vsel %vm1198_vm10, %v19767_v24, %v19765_v39  ;;  %5818 = vmatprep.subr.bf16.mxu1 %v5592_v5  ;;  %v19771_v39 = vld [vmem:[#allocation172_spill] sm:$0xff]  ;;  %v19772_v20 = vunpack.i.l.bf16 %v19760_v6  ;;  %v19774_v45 = vunpack.i.h.bf16 %v19773_v44  ;;  %vm19775_vm13 = vcmask 457728  }
 0x854   : > { %v4748_v1 = vsel %vm1656_vm15, %v8591_v27, %v19768_v38  ;;  %v15906_v2 = vsel %vm898_vm12, %v19769_v42, %v8271_v59  ;;  %v8541_v24 = vunpack.i.h.bf16 %v19771_v39  ;;  %9053 = vrot.lane.b32.xlu1 %v9052_v48, %s19400_s22  ;;  %v5673_v5 = vpack.c.bf16 %v5323_v50, %v5323_v50  ;;  %v19782_v50 = vld [vmem:[#allocation185_spill] sm:$0xff] }
 0x855   : > { %19770 = vst [vmem:[#allocation92_spill] sm:$0xff] %v15906_v2  ;;  %v4329_v38 = vsel %vm19775_vm13, %v19774_v45, %v19772_v20  ;;  %v19776_v16 = vunpack.i.l.bf16 %v15285_v61  ;;  %v19777_v59 = vunpack.i.l.bf16 %v15460_v34  ;;  %v19778_v42 = vunpack.i.h.bf16 %v15242_v37  ;;  %5769 = vmatmul.mubr.bf16.vlgmr.msra.gmra.mxu1 %v15877_v19  ;;  %v19781_v61 = vld [vmem:[#allocation143_spill] sm:$0xff] }
 0x856   : > { %v5578_v6 = vpack.c.bf16 %v4387_v43, %v4329_v38  ;;  %v19779_v44 = vunpack.i.l.bf16 %v15894_v9  ;;  %v19784_v37 = vunpack.i.l.bf16 %v19764_v53  ;;  %v19785_v38 = vld [vmem:[#allocation11_spill] sm:$0xff]  ;;  %v8690_v29 = vunpack.i.l.bf16 %v15499_v58 }
 0x857   : > { %v4791_v51 = vsel %vm1713_vm4, %v19776_v16, %v8596_v11  ;;  %v4836_v7 = vsel %vm1770_vm11, %v19778_v42, %v19777_v59  ;;  %v19783_v16 = vpack.c.bf16 %v19781_v61, %v19782_v50  ;;  %v15938_v42 = vpop.permute.xlu1 %8803  ;;  %v19787_v61 = vld [vmem:[#allocation156_spill] sm:$0xff]  ;;  %vm19788_vm7 = vcmask 719872  }
 0x858   : > { %v5324_v45 = vsel %vm2219_vm14, %v8781_v55, %v19779_v44  ;;  %v4271_v59 = vsel %vm1048_vm8, %v8541_v24, %v19784_v37  ;;  %v9062_v43 = vpack.i.bf16 %v4791_v51, %v4748_v1  ;;  %v4838_v55 = vsel %vm1770_vm11, %v8681_v22, %v19785_v38  ;;  %v19786_v44 = vld [vmem:[#allocation154_spill] sm:$0xff]  ;;  %6376 = vmatprep.mubr.msk.bf16.mxu1 %vm19788_vm7, %v19787_v61  ;;  %v15952_v1 = vpop.permute.xlu0 %8793 }
 0x859   : > { %5819 = vmatpush1.bf16.msra.mxu1 %v19783_v16  ;;  %v5674_v4 = vpack.c.bf16 %v5324_v45, %v5324_v45  ;;  %v8695_v20 = vunpack.i.l.bf16 %v19786_v44  ;;  %v19789_v45 = vunpack.i.h.bf16 %v19735_v47  ;;  %v19790_v50 = vunpack.i.l.bf16 %v19735_v47 }
 0x85a   : > { %5820 = vmatprep.subr.bf16.mxu1 %v5578_v6  ;;  %v9047_v51 = vpack.i.bf16 %v15906_v2, %v4836_v7  ;;  %9063 = vrot.lane.b32.xlu1 %v9062_v43, %s19400_s22  ;;  %vm19791_vm0 = vcmask 1043456   ;;  %v19793_v6 = vunpack.i.l.bf16 %v19752_v26  ;;  %vm19794_vm2 = vcmask 867328   ;;  %v19799_v43 = vld [vmem:[#allocation164_spill] sm:$0xff] }
 0x85b   : > { %v4843_v16 = vsel %vm898_vm12, %v19790_v50, %v19789_v45  ;;  %6373 = vmatprep.subr.msk.bf16.mxu0 %vm19791_vm0, %v5674_v4  ;;  %vm19792_vm5 = vmmov %vm19791_vm0  ;;  %v19795_v48 = vunpack.i.l.bf16 %v19771_v39  ;;  %v19796_v50 = vld [vmem:[#allocation28_spill] sm:$0xff]  ;;  %v19797_v19 = vunpack.i.h.bf16 %v19727_v28  ;;  %vm19798_vm13 = vcmask 531456   ;;  %v19802_v39 = vld [vmem:[#allocation186_spill] sm:$0xff]  ;;  %v15979_v28 = vpop.permute.xlu1 %8813 }
 0x85c   : > { %v5701_v37 = vsel %vm19792_vm5, %v5673_v5, 0  ;;  %v4096_v38 = vsel %vm19794_vm2, %v8216_v62, %v19793_v6  ;;  %v5564_v2 = vpack.c.bf16 %v4271_v59, %v19799_v43  ;;  %v19800_v5 = vunpack.i.l.bf16 %v19763_v14  ;;  %vm19801_vm7 = vmmov %vm19794_vm2  ;;  %9048 = vrot.lane.b32.xlu0 %v9047_v51, %s19400_s22  ;;  %v19805_v45 = vld [vmem:[#allocation83_spill] sm:$0xff]  ;;  %v19808_v51 = vld [vmem:[#allocation133_spill] sm:$0xff] }
 0x85d   : > { %v4270_v61 = vsel %vm1048_vm8, %v19795_v48, %v8541_v24  ;;  %v4850_v7 = vsel %vm19798_vm13, %v19797_v19, %v19796_v50  ;;  %5798 = vmatpush2.bf16.msra.mxu0 %v5701_v37  ;;  %v19803_v24 = vld [vmem:[#allocation128_spill] sm:$0xff]  ;;  %v5550_v26 = vpack.c.bf16 %v19805_v45, %v4096_v38  ;;  %v9072_v19 = vpack.i.bf16 %v4843_v16, %v4838_v55  ;;  %v19809_v55 = vld [vmem:[#allocation125_spill] sm:$0xff] }
 0x85e   : > { %v4095_v6 = vsel %vm19801_vm7, %v19800_v5, %v8216_v62  ;;  %v19804_v48 = vpack.c.bf16 %v19802_v39, %v19803_v24  ;;  %v19806_v59 = vunpack.i.l.bf16 %v15187_v57  ;;  %v19807_v50 = vunpack.i.h.bf16 %v19786_v44  ;;  %v15991_v39 = vpop.permute.xlu0 %4691  ;;  %v19827_v4 = vld [vmem:[#allocation149_spill] sm:$0xff] }
 0x85f   : > { %v4792_v62 = vsel %vm1713_vm4, %v8596_v11, %v8690_v29  ;;  %v5549_v43 = vpack.c.bf16 %v19808_v51, %v4095_v6  ;;  %v8531_v5 = vunpack.i.h.bf16 %v15000_v40  ;;  %v17990_v38 = vunpack.i.h.bf16 %v19733_v32  ;;  %9073 = vrot.lane.b32.xlu1 %v9072_v19, %s19400_s22 }
 0x860   : > { %5821 = vmatpush1.bf16.msra.mxu1 %v19804_v48  ;;  %v4747_v37 = vsel %vm1656_vm15, %v19806_v59, %v8591_v27  ;;  %v4660_v14 = vsel %vm1541_vm9, %v8695_v20, %v19807_v50  ;;  %v5563_v57 = vpack.c.bf16 %v4270_v61, %v19809_v55  ;;  %v19810_v27 = vunpack.i.h.bf16 %v15322_v30 }
 0x861   : > { %5822 = vmatprep.subr.bf16.mxu1 %v5564_v2  ;;  %v9057_v45 = vpack.i.bf16 %v4747_v37, %v4850_v7  ;;  %v19811_v16 = vunpack.i.l.bf16 %v15322_v30  ;;  %v8686_v2 = vunpack.i.h.bf16 %v19759_v46  ;;  %v19812_v6 = vunpack.i.l.bf16 %v15460_v34  ;;  %v16010_v37 = vpop.permute.xlu1 %8818 }
 0x862   : > { %v8691_v7 = vunpack.i.h.bf16 %v15499_v58  ;;  %v19813_v48 = vunpack.i.h.bf16 %v15253_v25  ;;  %v8806_v19 = vunpack.i.h.bf16 %v15938_v42  ;;  %v19814_v34 = vunpack.i.h.bf16 %v19735_v47  ;;  %v19850_v58 = vld [vmem:[#allocation132_spill] sm:$0xff] }
 0x863   : > { %v4703_v11 = vsel %vm1599_vm3, %v19811_v16, %v19810_v27  ;;  %v4837_v24 = vsel %vm1770_vm11, %v19812_v6, %v8681_v22  ;;  %9058 = vrot.lane.b32.xlu0 %v9057_v45, %s19400_s22  ;;  %v4750_v51 = vsel %vm1656_vm15, %v8686_v2, %v15741_v0  ;;  %v8795_v25 = vunpack.i.l.bf16 %v15952_v1 }
 0x864   : > { %v4659_v61 = vsel %vm1541_vm9, %v19813_v48, %v8695_v20  ;;  %5823 = vmatpush1.bf16.msra.mxu1 %v5563_v57  ;;  %v9067_v59 = vpack.i.bf16 %v4837_v24, %v4792_v62  ;;  %v9082_v50 = vpack.i.bf16 %v4703_v11, %v4660_v14  ;;  %v4844_v22 = vsel %vm898_vm12, %v19814_v34, %v15536_v63  ;;  %v16023_v14 = vpop.permute.xlu0 %8808 }
 0x865   : > { %v8805_v20 = vunpack.i.l.bf16 %v15938_v42  ;;  %5824 = vmatprep.subr.bf16.mxu1 %v5550_v26  ;;  %v8791_v45 = vunpack.i.h.bf16 %v15779_v8  ;;  %v8790_v62 = vunpack.i.l.bf16 %v15779_v8  ;;  %v8801_v55 = vunpack.i.h.bf16 %v15894_v9  ;;  %v16038_v48 = vpop.permute.xlu1 %8828 }
 0x866   : > { %v8821_v47 = vunpack.i.h.bf16 %v16010_v37  ;;  %9083 = vrot.lane.b32.xlu1 %v9082_v50, %s19400_s22  ;;  %v4793_v63 = vsel %vm1713_vm4, %v8690_v29, %v8691_v7  ;;  %v8785_v0 = vunpack.i.l.bf16 %v15871_v54  ;;  %v8810_v26 = vunpack.i.l.bf16 %v16023_v14 }
 0x867   : > { %v8820_v57 = vunpack.i.l.bf16 %v16010_v37  ;;  %v9077_v27 = vpack.i.bf16 %v4659_v61, %v4844_v22  ;;  %v9092_v16 = vpack.i.bf16 %v4793_v63, %v4750_v51  ;;  %v19815_v11 = vunpack.i.l.bf16 %v15512_v13  ;;  %9068 = vrot.lane.b32.xlu0 %v9067_v59, %s19400_s22 }
 0x868   : > { %v8816_v24 = vunpack.i.h.bf16 %v15979_v28  ;;  %5825 = vmatpush1.bf16.msra.mxu1 %v5549_v43  ;;  %v8786_v29 = vunpack.i.h.bf16 %v15871_v54  ;;  %v19816_v50 = vunpack.i.h.bf16 %v15339_v52  ;;  %v19817_v13 = vpack.c.bf16 %v15786_v3, %v15817_v36  ;;  %v16066_v51 = vpop.permute.xlu0 %8823 }
 0x869   : > { %v5309_v6 = vsel %vm2219_vm14, %v19815_v11, %v8806_v19  ;;  %v5296_v34 = vsel %vm2219_vm14, %v8801_v55, %v8805_v20  ;;  %v5310_v43 = vsel %vm2219_vm14, %v8806_v19, %v8810_v26  ;;  %vm19818_vm11 = vcmask 711680  }
 0x86a   : > { %v4615_v61 = vsel %vm1484_vm6, %v19816_v50, %v8795_v25  ;;  %5826 = vmatprep.subr.bf16.mxu1 %v19817_v13  ;;  %v4572_v52 = vsel %vm19818_vm11, %v8790_v62, %v8791_v45  ;;  %v19819_v59 = vunpack.i.l.bf16 %v15597_v23  ;;  %v19820_v3 = vunpack.i.l.bf16 %v15645_v10  ;;  %9093 = vrot.lane.b32.xlu1 %v9092_v16, %s19400_s22 }
 0x86b   : > { %v5660_v63 = vpack.c.bf16 %v5310_v43, %v5296_v34  ;;  %v19821_v19 = vunpack.i.h.bf16 %v15322_v30  ;;  %v8825_v13 = vunpack.i.l.bf16 %v16066_v51  ;;  %v5268_v23 = vsel %vm2219_vm14, %v8816_v24, %v8820_v57  ;;  %9078 = vrot.lane.b32.xlu0 %v9077_v27, %s19400_s22  ;;  %v19825_v43 = vld [vmem:[#allocation70_spill] sm:$0xff] }
 0x86c   : > { %v5295_v22 = vsel %vm2219_vm14, %v19819_v59, %v8801_v55  ;;  %v5281_v36 = vsel %vm2219_vm14, %v19820_v3, %v8821_v47  ;;  %v19822_v55 = vld [vmem:[#allocation131_spill] sm:$0xff]  ;;  %v19823_v59 = vunpack.i.l.bf16 %v19759_v46  ;;  %v9102_v34 = vpack.i.bf16 %v4615_v61, %v4572_v52  ;;  %v19826_v46 = vld [vmem:[#allocation61_spill] sm:$0xff]  ;;  %v16106_v52 = vpop.permute.xlu0 %8833 }
 0x86d   : > { %v4704_v11 = vsel %vm1599_vm3, %v19821_v19, %v8785_v0  ;;  %v5659_v50 = vpack.c.bf16 %v5309_v6, %v5295_v22  ;;  %v19824_v16 = vunpack.i.l.bf16 %v15549_v31  ;;  %5799 = vmatprep.subr.bf16.mxu0 %v5660_v63  ;;  %v16084_v6 = vpop.permute.xlu1 %8838  ;;  %v4705_v19 = vsel %vm1599_vm3, %v8785_v0, %v8786_v29 }
 0x86e   : > { %v4749_v3 = vsel %vm1656_vm15, %v19823_v59, %v8686_v2  ;;  %v19828_v2 = vpack.c.bf16 %v19826_v46, %v19827_v4  ;;  %v5282_v31 = vsel %vm2219_vm14, %v8821_v47, %v8825_v13  ;;  %v19829_v27 = vunpack.i.l.bf16 %v15000_v40  ;;  %9103 = vrot.lane.b32.xlu1 %v9102_v34, %s19400_s22  ;;  %v19837_v46 = vld [vmem:[#allocation181_spill] sm:$0xff] }
 0x86f   : > { %v5267_v30 = vsel %vm2219_vm14, %v19824_v16, %v8816_v24  ;;  %5800 = vmatpush2.bf16.msra.mxu0 %v5659_v50  ;;  %vm19830_vm12 = vcmask 441344   ;;  %v9087_v61 = vpack.i.bf16 %v4749_v3, %v4704_v11  ;;  %v19831_v0 = vpack.c.bf16 %v15768_v49, %v15748_v21 }
 0x870   : > { %v5645_v10 = vpack.c.bf16 %v5281_v36, %v5267_v30  ;;  %5827 = vmatpush1.bf16.msra.mxu1 %v19828_v2  ;;  %v16101_v24 = vsel %vm19830_vm12, %v19829_v27, %v8531_v5  ;;  %v5646_v4 = vpack.c.bf16 %v5282_v31, %v5268_v23  ;;  %v8841_v36 = vunpack.i.h.bf16 %v16084_v6  ;;  %v19838_v2 = vld [vmem:[#allocation4_spill] sm:$0xff]  ;;  %v16148_v22 = vpop.permute.xlu0 %8843  ;;  %vm19871_vm5 = vmmov %vm19830_vm12 }
 0x871   : > { %5828 = vmatprep.subr.bf16.mxu1 %v19831_v0  ;;  %v19832_v47 = vunpack.i.l.bf16 %v19733_v32  ;;  %vm19833_vm15 = vcmask 375808   ;;  %v4794_v21 = vsel %vm1713_vm4, %v8691_v7, %v15909_v60  ;;  %v17986_v49 = vunpack.i.h.bf16 %v15952_v1  ;;  %9088 = vrot.lane.b32.xlu0 %v9087_v61, %s19400_s22  ;;  %v16128_v34 = vpop.permute.xlu1 %8848  ;;  %v19834_v7 = vld [vmem:[#allocation176_spill] sm:$0xff]  ;;  %vm19836_vm4 = vmmov %vm19818_vm11 }
 0x872   : > { %v17989_v11 = vunpack.i.l.bf16 %v16084_v6  ;;  %v9112_v50 = vpack.i.bf16 %v4705_v19, %v15810_v35  ;;  %v17985_v23 = vunpack.i.l.bf16 %v15979_v28  ;;  %v8811_v59 = vunpack.i.h.bf16 %v16023_v14  ;;  %5801 = vmatprep.subr.bf16.mxu0 %v5646_v4  ;;  %vm19879_vm2 = vmmov %vm19833_vm15 }
 0x873   : > { %v16115_v63 = vsel %vm19833_vm15, %v19832_v47, %v17990_v38  ;;  %v8836_v3 = vunpack.i.h.bf16 %v16106_v52  ;;  %v19835_v30 = vunpack.i.h.bf16 %v15276_v18  ;;  %v19839_v31 = vpack.c.bf16 %v19837_v46, %v19838_v2  ;;  %5802 = vmatpush2.bf16.msra.mxu0 %v5645_v10  ;;  %vm19892_vm11 = vmmov %vm19879_vm2 }
 0x874   : > { %v8551_v27 = vunpack.i.h.bf16 %v19755_v56  ;;  %v19840_v0 = vpack.c.bf16 %v15707_v12, %v15717_v41  ;;  %v19841_v4 = vunpack.i.l.bf16 %v15610_v17  ;;  %9113 = vrot.lane.b32.xlu1 %v9112_v50, %s19400_s22  ;;  %v4616_v17 = vsel %vm1484_vm6, %v8795_v25, %v17986_v49  ;;  %v19843_v50 = vld [vmem:[#allocation180_spill] sm:$0xff]  ;;  %vm19897_vm15 = vmmov %vm19871_vm5 }
 0x875   : > { %v4571_v19 = vsel %vm19836_vm4, %v19835_v30, %v8790_v62  ;;  %5829 = vmatpush1.bf16.msra.mxu1 %v19839_v31  ;;  %v19842_v62 = vunpack.i.h.bf16 %v19786_v44  ;;  %v8845_v41 = vunpack.i.l.bf16 %v16148_v22  ;;  %v5240_v12 = vsel %vm2219_vm14, %v8836_v3, %v17989_v11 }
 0x876   : > { %v9097_v61 = vpack.i.bf16 %v4571_v19, %v4794_v21  ;;  %5830 = vmatprep.subr.bf16.mxu1 %v19840_v0  ;;  %v5253_v47 = vsel %vm2219_vm14, %v19841_v4, %v8841_v36  ;;  %v5326_v21 = vsel %vm2219_vm14, %v8811_v59, %v17985_v23  ;;  %v8831_v44 = vunpack.i.h.bf16 %v16038_v48  ;;  %v16174_v19 = vpop.permute.xlu1 %8858  ;;  %v19846_v4 = vld [vmem:[#allocation32_spill] sm:$0xff] }
 0x877   : > { %v4661_v10 = vsel %vm1541_vm9, %v19842_v62, %v15810_v35  ;;  %v19844_v35 = vunpack.i.l.bf16 %v19843_v50  ;;  %v19845_v25 = vunpack.i.l.bf16 %v15894_v9  ;;  %v17987_v2 = vunpack.i.l.bf16 %v16038_v48  ;;  %v19847_v62 = vld [vmem:[#allocation8_spill] sm:$0xff]  ;;  %v19851_v9 = vld [vmem:[#allocation97_spill] sm:$0xff]  ;;  %vm19857_vm9 = vmmov %vm19836_vm4 }
 0x878   : > { %9098 = vrot.lane.b32.xlu0 %v9097_v61, %s19400_s22  ;;  %v17988_v31 = vunpack.i.l.bf16 %v16106_v52  ;;  %v19848_v23 = vpack.c.bf16 %v19846_v4, %v19847_v62  ;;  %v19849_v61 = vld [vmem:[#allocation191_spill] sm:$0xff]  ;;  %v19852_v60 = vpack.c.bf16 %v19850_v58, %v19851_v9  ;;  %v19854_v4 = vld [vmem:[#allocation146_spill] sm:$0xff]  ;;  %v17991_v58 = vunpack.i.l.bf16 %v16174_v19  ;;  %vm19898_vm4 = vmmov %vm19879_vm2 }
 0x879   : > { %v5239_v30 = vsel %vm2219_vm14, %v19844_v35, %v8836_v3  ;;  %v5325_v46 = vsel %vm2219_vm14, %v19845_v25, %v8811_v59  ;;  %v5254_v3 = vsel %vm2219_vm14, %v8841_v36, %v8845_v41  ;;  %v17996_v50 = vunpack.i.l.bf16 %v19849_v61  ;;  %v16191_v59 = vpop.permute.xlu0 %8853 }
 0x87a   : > { %v5631_v0 = vpack.c.bf16 %v5253_v47, %v5239_v30  ;;  %5831 = vmatpush1.bf16.msra.mxu1 %v19848_v23  ;;  %v9107_v35 = vpack.i.bf16 %v4661_v10, %v4616_v17  ;;  %v5632_v25 = vpack.c.bf16 %v5254_v3, %v5240_v12  ;;  %v8861_v47 = vunpack.i.h.bf16 %v16174_v19  ;;  %v19853_v30 = vld [vmem:[#allocation56_spill] sm:$0xff]  ;;  %v19856_v17 = vld [vmem:[#allocation95_spill] sm:$0xff]  ;;  %v16211_v54 = vpop.permute.xlu1 %8868 }
 0x87b   : > { %5832 = vmatprep.subr.bf16.mxu1 %v19852_v60  ;;  %v19855_v23 = vpack.i.bf16 %v19853_v30, %v19854_v4  ;;  %v4706_v36 = vsel %vm1599_vm3, %v8786_v29, %v15991_v39  ;;  %v8826_v10 = vunpack.i.h.bf16 %v16066_v51  ;;  %v5675_v60 = vpack.c.bf16 %v5325_v46, %v5325_v46  ;;  %v19858_v46 = vld [vmem:[#allocation166_spill] sm:$0xff]  ;;  %vm19862_vm3 = vmmov %vm19791_vm0 }
 0x87c   : > { %v4573_v12 = vsel %vm19857_vm9, %v8791_v45, %v19856_v17  ;;  %v5676_v62 = vpack.c.bf16 %v5326_v21, %v5326_v21  ;;  %v17992_v3 = vunpack.i.l.bf16 %v16128_v34  ;;  %v8856_v9 = vunpack.i.h.bf16 %v16191_v59  ;;  %9108 = vrot.lane.b32.xlu0 %v9107_v35, %s19400_s22  ;;  %5803 = vmatprep.subr.bf16.mxu0 %v5632_v25  ;;  %v19861_v21 = vld [vmem:[#allocation138_spill] sm:$0xff] }
 0x87d   : > { %9123 = vrot.lane.b32.xlu1 %v19855_v23, %s19400_s22  ;;  %v8851_v39 = vunpack.i.h.bf16 %v16128_v34  ;;  %v17995_v29 = vunpack.i.l.bf16 %v16191_v59  ;;  %v19859_v23 = vld [vmem:[#allocation96_spill] sm:$0xff]  ;;  %5804 = vmatpush2.bf16.msra.mxu0 %v5631_v0  ;;  %v5298_v8 = vsel %vm2219_vm14, %v8826_v10, %v17987_v2  ;;  %v5312_v45 = vsel %vm2219_vm14, %v8831_v44, %v17988_v31 }
 0x87e   : > { %v19860_v16 = vpack.c.bf16 %v19858_v46, %v19859_v23  ;;  %v9117_v35 = vpack.i.bf16 %v19861_v21, %v4706_v36  ;;  %v5311_v25 = vsel %vm2219_vm14, %v8810_v26, %v8831_v44  ;;  %v8846_v49 = vunpack.i.h.bf16 %v16148_v22  ;;  %v16233_v23 = vpop.permute.xlu0 %8863  ;;  %v19865_v26 = vld [vmem:[#allocation17_spill] sm:$0xff] }
 0x87f   : > { %v8865_v2 = vunpack.i.l.bf16 %v16233_v23  ;;  %v5707_v31 = vsel %vm19791_vm0, %v5675_v60, 0  ;;  %v17993_v36 = vunpack.i.l.bf16 %v16211_v54  ;;  %v5212_v14 = vsel %vm2219_vm14, %v8856_v9, %v17991_v58  ;;  %v16249_v60 = vpop.permute.xlu1 %8878 }
 0x880   : > { %5833 = vmatpush1.bf16.msra.mxu1 %v19860_v16  ;;  %v19863_v16 = vld [vmem:[#allocation85_spill] sm:$0xff]  ;;  %v19866_v44 = vunpack.i.l.bf16 %v19865_v26  ;;  %9118 = vrot.lane.b32.xlu0 %v9117_v35, %s19400_s22  ;;  %v5270_v18 = vsel %vm2219_vm14, %v8846_v49, %v17992_v3  ;;  %v8866_v38 = vunpack.i.h.bf16 %v16233_v23  ;;  %v5283_v42 = vsel %vm2219_vm14, %v8825_v13, %v8851_v39 }
 0x881   : > { %6375 = vmatprep.subr.msk.bf16.mxu1 %vm19862_vm3, %v5676_v62  ;;  %v19864_v0 = vunpack.i.l.bf16 %v19863_v16  ;;  %v5662_v16 = vpack.c.bf16 %v5312_v45, %v5298_v8  ;;  %v5226_v58 = vsel %vm2219_vm14, %v8861_v47, %v8865_v2  ;;  %v19867_v35 = vld [vmem:[#allocation189_spill] sm:$0xff]  ;;  %v5297_v45 = vsel %vm2219_vm14, %v8805_v20, %v8826_v10 }
 0x882   : > { %v5211_v62 = vsel %vm2219_vm14, %v19866_v44, %v8856_v9  ;;  %v5284_v9 = vsel %vm2219_vm14, %v8851_v39, %v17995_v29  ;;  %v9127_v8 = vpack.i.bf16 %v4573_v12, %v19867_v35  ;;  %v16260_v26 = vpop.permute.xlu0 %8873  ;;  %v5618_v44 = vpack.c.bf16 %v5226_v58, %v5212_v14  ;;  %v19868_v12 = vld [vmem:[#allocation101_spill] sm:$0xff]  ;;  %v19872_v39 = vld [vmem:[#allocation188_spill] sm:$0xff] }
 0x883   : > { %v5225_v46 = vsel %vm2219_vm14, %v19864_v0, %v8861_v47  ;;  %v8871_v0 = vunpack.i.h.bf16 %v16211_v54  ;;  %v5661_v23 = vpack.c.bf16 %v5311_v25, %v5297_v45  ;;  %v8880_v47 = vunpack.i.l.bf16 %v16249_v60  ;;  %v16274_v58 = vpop.permute.xlu1 %8888 }
 0x884   : > { %v5617_v11 = vpack.c.bf16 %v5225_v46, %v5211_v62  ;;  %5839 = vmatpush2.bf16.msra.mxu1 %v5707_v31  ;;  %v8881_v46 = vunpack.i.h.bf16 %v16249_v60  ;;  %v17994_v31 = vunpack.i.l.bf16 %v16260_v26  ;;  %v5242_v62 = vsel %vm2219_vm14, %v8866_v38, %v17993_v36  ;;  %9128 = vrot.lane.b32.xlu0 %v9127_v8, %s19400_s22 }
 0x885   : > { %5840 = vmatprep.subr.bf16.mxu1 %v5662_v16  ;;  %v8546_v3 = vunpack.i.h.bf16 %v19868_v12  ;;  %v8876_v20 = vunpack.i.h.bf16 %v16260_v26  ;;  %5805 = vmatprep.subr.bf16.mxu0 %v5618_v44  ;;  %v5648_v10 = vpack.c.bf16 %v5284_v9, %v5270_v18  ;;  %v19869_v25 = vunpack.i.l.bf16 %v19755_v56  ;;  %v19870_v16 = vld [vmem:[#allocation124_spill] sm:$0xff] }
 0x886   : > { %v8635_v45 = vunpack.i.l.bf16 %v19870_v16  ;;  %5806 = vmatpush2.bf16.msra.mxu0 %v5617_v11  ;;  %v5256_v51 = vsel %vm2219_vm14, %v8871_v0, %v17994_v31  ;;  %v4447_v13 = vsel %vm19871_vm5, %v8531_v5, %v17996_v50  ;;  %v5269_v18 = vsel %vm2219_vm14, %v8820_v57, %v8846_v49  ;;  %v8884_v11 = vpop.permute.xlu0 %8883  ;;  %v19874_v5 = vld [vmem:[#allocation155_spill] sm:$0xff]  ;;  %v19875_v49 = vld [vmem:[#allocation174_spill] sm:$0xff] }
 0x887   : > { %v16281_v14 = vsel %vm1198_vm10, %v19869_v25, %v8551_v27  ;;  %v19873_v9 = vunpack.i.l.bf16 %v19872_v39  ;;  %v5634_v44 = vpack.c.bf16 %v5256_v51, %v5242_v62  ;;  %v5647_v25 = vpack.c.bf16 %v5283_v42, %v5269_v18  ;;  %v16310_v39 = vpop.permute.xlu1 %8898  ;;  %v19877_v42 = vld [vmem:[#allocation45_spill] sm:$0xff] }
 0x888   : > { %5841 = vmatpush2.bf16.msra.mxu1 %v5661_v23  ;;  %v8891_v23 = vunpack.i.h.bf16 %v16274_v58  ;;  %v8885_v36 = vunpack.i.l.bf16 %v8884_v11  ;;  %v17997_v31 = vunpack.i.l.bf16 %v16274_v58  ;;  %v5184_v40 = vsel %vm2219_vm14, %v8876_v20, %v8880_v47 }
 0x889   : > { %5842 = vmatprep.subr.bf16.mxu1 %v5648_v10  ;;  %v5197_v8 = vsel %vm2219_vm14, %v19873_v9, %v8881_v46  ;;  %v18004_v37 = vunpack.i.l.bf16 %v19874_v5  ;;  %v5255_v57 = vsel %vm2219_vm14, %v8845_v41, %v8871_v0  ;;  %v19876_v10 = vunpack.i.l.bf16 %v19875_v49 }
 0x88a   : > { %v8886_v51 = vunpack.i.h.bf16 %v8884_v11  ;;  %v8645_v18 = vunpack.i.l.bf16 %v19877_v42  ;;  %v5198_v29 = vsel %vm2219_vm14, %v8881_v46, %v8885_v36  ;;  %v19878_v50 = vunpack.i.h.bf16 %v19733_v32  ;;  %v16323_v11 = vpop.permute.xlu0 %8893 }
 0x88b   : > { %v5183_v62 = vsel %vm2219_vm14, %v19876_v10, %v8876_v20  ;;  %v19880_v41 = vunpack.i.l.bf16 %v16084_v6  ;;  %v5227_v20 = vsel %vm2219_vm14, %v8865_v2, %v8891_v23  ;;  %v5604_v49 = vpack.c.bf16 %v5198_v29, %v5184_v40  ;;  %v16340_v40 = vpop.permute.xlu1 %8908 }
 0x88c   : > { %v5603_v9 = vpack.c.bf16 %v5197_v8, %v5183_v62  ;;  %5843 = vmatpush2.bf16.msra.mxu1 %v5647_v25  ;;  %v4505_v22 = vsel %vm19879_vm2, %v19878_v50, %v8635_v45  ;;  %v8901_v8 = vunpack.i.h.bf16 %v16310_v39  ;;  %v17999_v46 = vunpack.i.l.bf16 %v16323_v11 }
 0x88d   : > { %v5241_v0 = vsel %vm2219_vm14, %v19880_v41, %v8866_v38  ;;  %5844 = vmatprep.subr.bf16.mxu1 %v5634_v44  ;;  %v17998_v10 = vunpack.i.l.bf16 %v16310_v39  ;;  %v5214_v32 = vsel %vm2219_vm14, %v8886_v51, %v17997_v31  ;;  %v19881_v38 = vunpack.i.l.bf16 %v19868_v12  ;;  %5807 = vmatprep.subr.bf16.mxu0 %v5604_v49 }
 0x88e   : > { %v5633_v25 = vpack.c.bf16 %v5255_v57, %v5241_v0  ;;  %vm19882_vm13 = vcmask 457728   ;;  %v19883_v2 = vunpack.i.l.bf16 %v16174_v19  ;;  %v8896_v29 = vunpack.i.h.bf16 %v16323_v11  ;;  %v19884_v57 = vld [vmem:[#allocation107_spill] sm:$0xff]  ;;  %5808 = vmatpush2.bf16.msra.mxu0 %v5603_v9 }
 0x88f   : > { %v4330_v6 = vsel %vm19882_vm13, %v19881_v38, %v8546_v3  ;;  %v5594_v44 = vpack.c.bf16 %v4505_v22, %v4447_v13  ;;  %v18006_v62 = vunpack.i.l.bf16 %v19884_v57  ;;  %v5228_v0 = vsel %vm2219_vm14, %v8891_v23, %v17999_v46  ;;  %v19886_v13 = vld [vmem:[#allocation153_spill] sm:$0xff]  ;;  %vm19888_vm7 = vmmov %vm19882_vm13  ;;  %v16372_v31 = vpop.permute.xlu1 %8918 }
 0x890   : > { %v5213_v50 = vsel %vm2219_vm14, %v19883_v2, %v8886_v51  ;;  %5845 = vmatpush2.bf16.msra.mxu1 %v5633_v25  ;;  %v4389_v19 = vsel %vm1198_vm10, %v8551_v27, %v8645_v18  ;;  %v19885_v51 = vld [vmem:[#allocation49_spill] sm:$0xff]  ;;  %v18001_v22 = vunpack.i.l.bf16 %v19886_v13  ;;  %v5199_v38 = vsel %vm2219_vm14, %v8885_v36, %v8901_v8  ;;  %v16354_v2 = vpop.permute.xlu0 %8903  ;;  %vm19907_vm9 = vmmov %vm19888_vm7 }
 0x891   : > { %v5619_v41 = vpack.c.bf16 %v5227_v20, %v5213_v50  ;;  %v18003_v49 = vunpack.i.l.bf16 %v19885_v51  ;;  %5859 = vmatprep.subr.bf16.mxu0 %v5594_v44  ;;  %v5620_v9 = vpack.c.bf16 %v5228_v0, %v5214_v32  ;;  %v19887_v20 = vld [vmem:[#allocation53_spill] sm:$0xff]  ;;  %v18000_v23 = vunpack.i.l.bf16 %v16354_v2  ;;  %v19889_v44 = vld [vmem:[#allocation100_spill] sm:$0xff]  ;;  %vm19920_vm0 = vmmov %vm19888_vm7 }
 0x892   : > { %v18002_v25 = vunpack.i.l.bf16 %v19887_v20  ;;  %v4331_v56 = vsel %vm19888_vm7, %v8546_v3, %v18004_v37  ;;  %v5186_v27 = vsel %vm2219_vm14, %v8896_v29, %v17998_v10  ;;  %v8556_v36 = vunpack.i.h.bf16 %v19764_v53  ;;  %5810 = vmatmul.mubr.bf16.vlgmr.msra.gmra.mxu0 %v19889_v44  ;;  %v19904_v37 = vld [vmem:[#allocation140_spill] sm:$0xff] }
 0x893   : > { %v8636_v50 = vunpack.i.h.bf16 %v19870_v16  ;;  %v5185_v32 = vsel %vm2219_vm14, %v8880_v47, %v8896_v29  ;;  %5846 = vmatprep.subr.bf16.mxu1 %v5620_v9  ;;  %v5580_v0 = vpack.c.bf16 %v4389_v19, %v4331_v56  ;;  %v8631_v3 = vunpack.i.h.bf16 %v19849_v61  ;;  %v19891_v29 = vld [vmem:[#allocation74_spill] sm:$0xff] }
 0x894   : > { %v5605_v12 = vpack.c.bf16 %v5199_v38, %v5185_v32  ;;  %5847 = vmatpush2.bf16.msra.mxu1 %v5619_v41  ;;  %v19890_v10 = vpack.c.bf16 %v16115_v63, %v16101_v24  ;;  %v5200_v60 = vsel %vm2219_vm14, %v8901_v8, %v18000_v23  ;;  %v5579_v47 = vpack.c.bf16 %v16281_v14, %v4330_v6  ;;  %v4603_v9 = vpop.permute.xlu0 %4602  ;;  %v19893_v63 = vld [vmem:[#allocation156_spill] sm:$0xff]  ;;  %v19902_v16 = vld [vmem:[#allocation98_spill] sm:$0xff] }
 0x895   : > { %v18005_v46 = vunpack.i.l.bf16 %v19891_v29  ;;  %v5606_v19 = vpack.c.bf16 %v5200_v60, %v5186_v27  ;;  %v4273_v38 = vsel %vm1048_vm8, %v8556_v36, %v18003_v49  ;;  %v4507_v24 = vsel %vm19892_vm11, %v8636_v50, %v18001_v22 }
 0x896   : > { %5860 = vmatpush1.bf16.msra.mxu0 %v19890_v10  ;;  %vm19894_vm12 = vcmask 719872   ;;  %v8641_v8 = vunpack.i.h.bf16 %v19874_v5  ;;  %v19895_v10 = vld [vmem:[#allocation110_spill] sm:$0xff]  ;;  %v19896_v6 = vunpack.i.h.bf16 %v15952_v1  ;;  %v4449_v56 = vsel %vm19897_vm15, %v8631_v3, %v18002_v25 }
 0x897   : > { %5861 = vmatprep.subr.bf16.mxu0 %v5580_v0  ;;  %6378 = vmatprep.mubr.msk.bf16.mxu0 %vm19894_vm12, %v19893_v63  ;;  %v9137_v14 = vpack.i.bf16 %v19895_v10, %v4603_v9  ;;  %v4506_v27 = vsel %vm19898_vm4, %v8635_v45, %v8636_v50  ;;  %v8646_v32 = vunpack.i.h.bf16 %v19877_v42  ;;  %v19899_v0 = vld [vmem:[#allocation47_spill] sm:$0xff]  ;;  %v16405_v10 = vpop.permute.xlu1 %4438  ;;  %v19900_v1 = vunpack.i.l.bf16 %v19764_v53  ;;  %v19903_v25 = vld [vmem:[#allocation58_spill] sm:$0xff]  ;;  %vm19934_vm7 = vmmov %vm19894_vm12 }
 0x898   : > { %v4617_v41 = vsel %vm1484_vm6, %v19896_v6, %v4603_v9  ;;  %5848 = vmatprep.subr.bf16.mxu1 %v5606_v19  ;;  %v19901_v6 = vld [vmem:[#allocation184_spill] sm:$0xff]  ;;  %v5566_v45 = vpack.c.bf16 %v4273_v38, %v19902_v16  ;;  %v5596_v50 = vpack.c.bf16 %v4507_v24, %v4449_v56  ;;  %v8221_v60 = vunpack.i.h.bf16 %v19904_v37  ;;  %vm19906_vm6 = vmmov %vm19871_vm5  ;;  %v16418_v53 = vpop.permute.xlu0 %8913  ;;  %v19909_v24 = vld [vmem:[#allocation19_spill] sm:$0xff] }
 0x899   : > { %v9132_v23 = vpack.i.bf16 %v4617_v41, %v19856_v17  ;;  %v4272_v9 = vsel %vm1048_vm8, %v19900_v1, %v8556_v36  ;;  %v18007_v22 = vunpack.i.l.bf16 %v19901_v6  ;;  %9138 = vrot.lane.b32.xlu0 %v9137_v14, %s19400_s22  ;;  %5849 = vmatpush2.bf16.msra.mxu1 %v5605_v12  ;;  %v19905_v17 = vunpack.i.l.bf16 %v19849_v61  ;;  %v19908_v12 = vld [vmem:[#allocation104_spill] sm:$0xff]  ;;  %v19914_v42 = vld [vmem:[#allocation179_spill] sm:$0xff] }
 0x89a   : > { %5862 = vmatpush1.bf16.msra.mxu0 %v5579_v47  ;;  %v4333_v36 = vsel %vm19907_vm9, %v8641_v8, %v18005_v46  ;;  %v8186_v14 = vunpack.i.h.bf16 %v19909_v24  ;;  %v8661_v41 = vunpack.i.h.bf16 %v19885_v51  ;;  %5900 = vmatprep.subr.bf16.mxu1 %v5596_v50  ;;  %vm19911_vm3 = vcmask 867328   ;;  %v19917_v46 = vld [vmem:[#allocation3_spill] sm:$0xff] }
 0x89b   : > { %v4448_v19 = vsel %vm19906_vm6, %v19905_v17, %v8631_v3  ;;  %9133 = vrot.lane.b32.xlu1 %v9132_v23, %s19400_s22  ;;  %5863 = vmatprep.subr.bf16.mxu0 %v5566_v45  ;;  %v4390_v3 = vsel %vm1198_vm10, %v8645_v18, %v8646_v32  ;;  %v19910_v23 = vld [vmem:[#allocation115_spill] sm:$0xff]  ;;  %v4098_v56 = vsel %vm19911_vm3, %v8221_v60, %v18006_v62  ;;  %v19912_v1 = vunpack.i.l.bf16 %v19899_v0  ;;  %v16438_v17 = vpop.permute.xlu1 %8928  ;;  %v19913_v45 = vld [vmem:[#allocation160_spill] sm:$0xff]  ;;  %vm19927_vm2 = vmmov %vm19911_vm3 }
 0x89c   : > { %v5595_v61 = vpack.c.bf16 %v4506_v27, %v4448_v19  ;;  %5851 = vmatmul.mubr.bf16.vlgmr.msra.gmra.mxu1 %v19889_v44  ;;  %v5565_v47 = vpack.c.bf16 %v4272_v9, %v19910_v23  ;;  %v8116_v27 = vunpack.i.h.bf16 %v19913_v45  ;;  %v19915_v50 = vunpack.i.h.bf16 %v19914_v42  ;;  %v19916_v18 = vld [vmem:[#allocation112_spill] sm:$0xff]  ;;  %v19918_v38 = vld [vmem:[#allocation111_spill] sm:$0xff]  ;;  %v16453_v35 = vpop.permute.xlu0 %8923  ;;  %v19922_v42 = vld [vmem:[#allocation22_spill] sm:$0xff] }
 0x89d   : > { %v4391_v16 = vsel %vm1198_vm10, %v8646_v32, %v19912_v1  ;;  %v5552_v19 = vpack.c.bf16 %v19916_v18, %v4098_v56  ;;  %v4275_v23 = vsel %vm1048_vm8, %v8661_v41, %v18007_v22  ;;  %v8151_v32 = vunpack.i.h.bf16 %v19918_v38  ;;  %v19928_v22 = vld [vmem:[#allocation130_spill] sm:$0xff]  ;;  %6380 = vmatprep.mubr.msk.bf16.mxu1 %vm19934_vm7, %v19893_v63  ;;  %vm19945_vm4 = vmmov %vm19927_vm2 }
 0x89e   : > { %4909 = vrot.lane.b32.xlu0 %v19915_v50, %s19400_s22  ;;  %5901 = vmatpush1.bf16.msra.mxu1 %v5595_v61  ;;  %v5582_v9 = vpack.c.bf16 %v4391_v16, %v4333_v36  ;;  %v19919_v1 = vunpack.i.l.bf16 %v19874_v5  ;;  %v19921_v61 = vld [vmem:[#allocation55_spill] sm:$0xff]  ;;  %v19924_v36 = vunpack.i.l.bf16 %v19903_v25  ;;  %vm19925_vm5 = vcmask 875520  }
 0x89f   : > { %5864 = vmatpush1.bf16.msra.mxu0 %v5565_v47  ;;  %v19923_v56 = vpack.i.bf16 %v19921_v61, %v19922_v42  ;;  %v19926_v50 = vunpack.i.l.bf16 %v19904_v37  ;;  %v18008_v5 = vunpack.i.l.bf16 %v19928_v22  ;;  %v19930_v42 = vld [vmem:[#allocation187_spill] sm:$0xff]  ;;  %v19931_v62 = vunpack.i.l.bf16 %v19908_v12  ;;  %v19933_v37 = vld [vmem:[#allocation190_spill] sm:$0xff]  ;;  %vm19936_vm11 = vmmov %vm19925_vm5 }
 0x8a0   : > { %v4332_v49 = vsel %vm19920_vm0, %v19919_v1, %v8641_v8  ;;  %v4040_v16 = vsel %vm19925_vm5, %v8186_v14, %v19924_v36  ;;  %v8226_v8 = vunpack.i.h.bf16 %v19884_v57  ;;  %5865 = vmatprep.subr.bf16.mxu0 %v5552_v19  ;;  %5902 = vmatprep.subr.bf16.mxu1 %v5582_v9  ;;  %v19929_v1 = vunpack.i.l.bf16 %v19885_v51  ;;  %v19937_v51 = vld [vmem:[#allocation72_spill] sm:$0xff]  ;;  %vm19954_vm3 = vmmov %vm19925_vm5 }
 0x8a1   : > { %9143 = vrot.lane.b32.xlu1 %v19923_v56, %s19400_s22  ;;  %v4097_v18 = vsel %vm19927_vm2, %v19926_v50, %v8221_v60  ;;  %v5581_v47 = vpack.c.bf16 %v4390_v3, %v4332_v49  ;;  %vm19932_vm13 = vcmask 883712   ;;  %v5568_v4 = vpack.c.bf16 %v4275_v23, %v19933_v37  ;;  %v16475_v60 = vpop.permute.xlu1 %8938  ;;  %v19938_v50 = vld [vmem:[#allocation165_spill] sm:$0xff]  ;;  %vm19956_vm0 = vmmov %vm19927_vm2 }
 0x8a2   : > { %v4274_v61 = vsel %vm1048_vm8, %v19929_v1, %v8661_v41  ;;  %v5551_v56 = vpack.c.bf16 %v19930_v42, %v4097_v18  ;;  %v3982_v36 = vsel %vm19932_vm13, %v8151_v32, %v19931_v62  ;;  %v19935_v19 = vunpack.i.l.bf16 %v19909_v24  ;;  %vm19940_vm12 = vmmov %vm19932_vm13  ;;  %v16489_v42 = vpop.permute.xlu0 %8933  ;;  %v19943_v37 = vld [vmem:[#allocation81_spill] sm:$0xff] }
 0x8a3   : > { %v8191_v41 = vunpack.i.h.bf16 %v19903_v25  ;;  %5903 = vmatpush1.bf16.msra.mxu1 %v5581_v47  ;;  %v5538_v9 = vpack.c.bf16 %v4040_v16, %v3982_v36  ;;  %v8086_v62 = vunpack.i.h.bf16 %v19834_v7  ;;  %v19939_v23 = vunpack.i.l.bf16 %v19918_v38  ;;  %v19944_v47 = vld [vmem:[#allocation38_spill] sm:$0xff]  ;;  %vm19971_vm13 = vmmov %vm19940_vm12 }
 0x8a4   : > { %v4039_v49 = vsel %vm19936_vm11, %v19935_v19, %v8186_v14  ;;  %5866 = vmatpush1.bf16.msra.mxu0 %v5551_v56  ;;  %5904 = vmatprep.subr.bf16.mxu1 %v5568_v4  ;;  %v19941_v24 = vunpack.i.l.bf16 %v19917_v46  ;;  %vm19942_vm15 = vcmask 949248   ;;  %v8156_v16 = vunpack.i.h.bf16 %v19908_v12  ;;  %v19951_v19 = vld [vmem:[#allocation10_spill] sm:$0xff]  ;;  %vm19975_vm7 = vmmov %vm19954_vm3 }
 0x8a5   : > { %v3981_v1 = vsel %vm19940_vm12, %v19939_v23, %v8151_v32  ;;  %5867 = vmatprep.subr.bf16.mxu0 %v5538_v9  ;;  %v5567_v36 = vpack.c.bf16 %v4274_v61, %v19944_v47  ;;  %v4100_v38 = vsel %vm19945_vm4, %v8226_v8, %v18008_v5  ;;  %v19946_v32 = vunpack.i.l.bf16 %v19913_v45  ;;  %vm19947_vm6 = vmmov %vm19942_vm15  ;;  %v16509_v9 = vpop.permute.xlu1 %8948  ;;  %v19952_v61 = vld [vmem:[#allocation48_spill] sm:$0xff] }
 0x8a6   : > { %v3924_v14 = vsel %vm19942_vm15, %v8116_v27, %v19941_v24  ;;  %v5537_v4 = vpack.c.bf16 %v4039_v49, %v3981_v1  ;;  %v19948_v23 = vunpack.i.l.bf16 %v19834_v7  ;;  %v19949_v24 = vunpack.i.h.bf16 %v19698_v15  ;;  %vm19980_vm12 = vmmov %vm19947_vm6 }
 0x8a7   : > { %v3923_v56 = vsel %vm19947_vm6, %v19946_v32, %v8116_v27  ;;  %vm19950_vm9 = vcmask 957440   ;;  %v5554_v3 = vpack.c.bf16 %v19951_v19, %v4100_v38  ;;  %v8121_v30 = vunpack.i.h.bf16 %v19917_v46  ;;  %5905 = vmatpush1.bf16.msra.mxu1 %v5567_v36  ;;  %v16520_v19 = vpop.permute.xlu0 %8943  ;;  %vm19984_vm15 = vmmov %vm19947_vm6 }
 0x8a8   : > { %v3866_v18 = vsel %vm19950_vm9, %v19949_v24, %v19948_v23  ;;  %v19953_v45 = vunpack.i.l.bf16 %v19937_v51  ;;  %v19955_v49 = vunpack.i.l.bf16 %v19884_v57  ;;  %v8906_v32 = vunpack.i.h.bf16 %v16354_v2  ;;  %5868 = vmatpush1.bf16.msra.mxu0 %v5537_v4  ;;  %v19961_v24 = vld [vmem:[#allocation118_spill] sm:$0xff]  ;;  %vm19968_vm2 = vmmov %vm19950_vm9 }
 0x8a9   : > { %v5524_v5 = vpack.c.bf16 %v3924_v14, %v3866_v18  ;;  %5906 = vmatprep.subr.bf16.mxu1 %v5554_v3  ;;  %v19957_v38 = vunpack.i.l.bf16 %v19825_v43  ;;  %v19958_v23 = vunpack.i.h.bf16 %v19688_v33  ;;  %v19959_v14 = vld [vmem:[#allocation173_spill] sm:$0xff]  ;;  %vm19963_vm5 = vcmask 1031168   ;;  %vm19978_vm11 = vmmov %vm19968_vm2 }
 0x8aa   : > { %v4042_v27 = vsel %vm19954_vm3, %v8191_v41, %v19953_v45  ;;  %v4099_v1 = vsel %vm19956_vm0, %v19955_v49, %v8226_v8  ;;  %v19960_v36 = vunpack.i.l.bf16 %v19959_v14  ;;  %v19962_v45 = vunpack.i.h.bf16 %v19961_v24  ;;  %vm19986_vm4 = vmmov %vm19971_vm13 }
 0x8ab   : > { %v3808_v18 = vsel %vm447_vm1, %v19958_v23, %v19957_v38  ;;  %v19964_v8 = vmov %v19958_v23  ;;  %v19965_v4 = vunpack.i.l.bf16 %v19688_v33  ;;  %v19966_v3 = vunpack.i.h.bf16 %v19698_v15  ;;  %5869 = vmatprep.subr.bf16.mxu0 %v5524_v5  ;;  %v19969_v38 = vld [vmem:[#allocation65_spill] sm:$0xff]  ;;  %v16558_v5 = vpop.permute.xlu1 %8958  ;;  %vm19989_vm6 = vmmov %vm19968_vm2 }
 0x8ac   : > { %v16532_v57 = vsel %vm19963_vm5, %v19962_v45, %v19960_v36  ;;  %v19967_v47 = vunpack.i.l.bf16 %v19698_v15  ;;  %v5553_v23 = vpack.c.bf16 %v19969_v38, %v4099_v1  ;;  %v19970_v24 = vunpack.i.l.bf16 %v19943_v37  ;;  %v19976_v1 = vld [vmem:[#allocation135_spill] sm:$0xff] }
 0x8ad   : > { %v3807_v49 = vsel %vm447_vm1, %v19965_v4, %v19964_v8  ;;  %v19972_v45 = vunpack.i.h.bf16 %v19825_v43  ;;  %v19973_v14 = vunpack.i.l.bf16 %v19825_v43  ;;  %v19974_v8 = vunpack.i.l.bf16 %v19903_v25 }
 0x8ae   : > { %v3865_v21 = vsel %vm19968_vm2, %v19967_v47, %v19966_v3  ;;  %v3984_v36 = vsel %vm19971_vm13, %v8156_v16, %v19970_v24  ;;  %5907 = vmatpush1.bf16.msra.mxu1 %v5553_v23  ;;  %v5510_v3 = vpack.c.bf16 %v3808_v18, %v19976_v1  ;;  %v19977_v38 = vunpack.i.l.bf16 %v19938_v50 }
 0x8af   : > { %v16553_v33 = vsel %vm447_vm1, %v19973_v14, %v19972_v45  ;;  %v4041_v15 = vsel %vm19975_vm7, %v19974_v8, %v8191_v41  ;;  %v5523_v4 = vpack.c.bf16 %v3923_v56, %v3865_v21  ;;  %v5540_v47 = vpack.c.bf16 %v4042_v27, %v3984_v36  ;;  %v16579_v36 = vpop.permute.xlu0 %8953 }
 0x8b0   : > { %v3868_v24 = vsel %vm19978_vm11, %v8086_v62, %v19977_v38  ;;  %v19979_v37 = vunpack.i.l.bf16 %v19952_v61  ;;  %v19981_v45 = vunpack.i.l.bf16 %v19822_v55  ;;  %v19982_v25 = vunpack.i.h.bf16 %v19825_v43  ;;  %v19990_v38 = vld [vmem:[#allocation35_spill] sm:$0xff] }
 0x8b1   : > { %v19983_v41 = vunpack.i.l.bf16 %v19917_v46  ;;  %v19985_v27 = vunpack.i.l.bf16 %v19908_v12  ;;  %v8930_v23 = vunpack.i.l.bf16 %v16438_v17  ;;  %5870 = vmatpush1.bf16.msra.mxu0 %v5523_v4  ;;  %5908 = vmatprep.subr.bf16.mxu1 %v5540_v47  ;;  %v18010_v8 = vunpack.i.h.bf16 %v19887_v20 }
 0x8b2   : > { %v3926_v14 = vsel %vm19980_vm12, %v8121_v30, %v19979_v37  ;;  %v3810_v21 = vsel %vm447_vm1, %v19982_v25, %v19981_v45  ;;  %v19987_v37 = vunpack.i.l.bf16 %v15979_v28  ;;  %v18011_v46 = vunpack.i.h.bf16 %v19886_v13  ;;  %5871 = vmatprep.subr.bf16.mxu0 %v5510_v3  ;;  %v16592_v28 = vpop.permute.xlu1 %8968 }
 0x8b3   : > { %v3925_v56 = vsel %vm19984_vm15, %v19983_v41, %v8121_v30  ;;  %v3983_v18 = vsel %vm19986_vm4, %v19985_v27, %v8156_v16  ;;  %v8941_v30 = vunpack.i.h.bf16 %v16475_v60  ;;  %v19988_v16 = vunpack.i.l.bf16 %v19834_v7 }
 0x8b4   : > { %v5327_v43 = vsel %vm2219_vm14, %v19987_v37, %v8906_v32  ;;  %v5539_v12 = vpack.c.bf16 %v4041_v15, %v3983_v18  ;;  %v18012_v4 = vunpack.i.l.bf16 %v16475_v60  ;;  %v5509_v47 = vpack.c.bf16 %v3807_v49, %v19990_v38  ;;  %v19991_v37 = vld [vmem:[#allocation16_spill] sm:$0xff]  ;;  %v16601_v49 = vpop.permute.xlu0 %8963 }
 0x8b5   : > { %v3867_v1 = vsel %vm19989_vm6, %v19988_v16, %v8086_v62  ;;  %v5526_v45 = vpack.c.bf16 %v3926_v14, %v3868_v24  ;;  %v5512_v41 = vpack.c.bf16 %v3810_v21, %v16532_v57  ;;  %v5677_v27 = vpack.c.bf16 %v5327_v43, %v5327_v43  ;;  %v19996_v14 = vld [vmem:[#allocation23_spill] sm:$0xff]  ;;  %v19997_v21 = vld [vmem:[#allocation5_spill] sm:$0xff] }
 0x8b6   : > { %5909 = vmatpush1.bf16.msra.mxu1 %v5539_v12  ;;  %v5525_v25 = vpack.c.bf16 %v3925_v56, %v3867_v1  ;;  %v5511_v3 = vpack.c.bf16 %v16553_v33, %v19991_v37  ;;  %v8931_v15 = vunpack.i.h.bf16 %v16438_v17  ;;  %v5328_v7 = vsel %vm2219_vm14, %v8906_v32, %v8930_v23  ;;  %5872 = vmatpush1.bf16.msra.mxu0 %v5509_v47  ;;  %v16625_v38 = vpop.permute.xlu1 %8978 }
 0x8b7   : > { %v8936_v62 = vunpack.i.h.bf16 %v16489_v42  ;;  %v18015_v18 = vunpack.i.l.bf16 %v16489_v42  ;;  %5910 = vmatprep.subr.bf16.mxu1 %v5526_v45  ;;  %v19992_v57 = vunpack.i.l.bf16 %v19887_v20  ;;  %vm19993_vm9 = vcmask 441344  }
 0x8b8   : > { %v19994_v17 = vunpack.i.l.bf16 %v19886_v13  ;;  %vm19995_vm3 = vcmask 375808   ;;  %v19998_v56 = vpack.c.bf16 %v19996_v14, %v19997_v21  ;;  %v5329_v43 = vsel %vm2219_vm14, %v8930_v23, %v8941_v30  ;;  %v19999_v14 = vld [vmem:[#allocation142_spill] sm:$0xff]  ;;  %v20000_v21 = vld [vmem:[#allocation129_spill] sm:$0xff]  ;;  %v16637_v12 = vpop.permute.xlu0 %8973  ;;  %vm20035_vm11 = vmmov %vm19993_vm9 }
 0x8b9   : > { %v16608_v24 = vsel %vm19993_vm9, %v19992_v57, %v18010_v8  ;;  %v18013_v16 = vunpack.i.l.bf16 %v16520_v19  ;;  %v18014_v1 = vunpack.i.l.bf16 %v16509_v9  ;;  %v5314_v47 = vsel %vm2219_vm14, %v8936_v62, %v18012_v4  ;;  %vm20027_vm7 = vmmov %vm19995_vm3 }
 0x8ba   : > { %v16616_v32 = vsel %vm19995_vm3, %v19994_v17, %v18011_v46  ;;  %5873 = vmatprep.subr.bf16.mxu0 %v19998_v56  ;;  %v5678_v37 = vpack.c.bf16 %v5328_v7, %v5328_v7  ;;  %v8951_v57 = vunpack.i.h.bf16 %v16509_v9  ;;  %v18016_v17 = vunpack.i.l.bf16 %v16579_v36  ;;  %5911 = vmatpush1.bf16.msra.mxu1 %v5525_v25  ;;  %vm20046_vm6 = vmmov %vm19993_vm9 }
 0x8bb   : > { %v8946_v23 = vunpack.i.h.bf16 %v16520_v19  ;;  %v20001_v56 = vpack.c.bf16 %v19999_v14, %v20000_v21  ;;  %5912 = vmatprep.subr.bf16.mxu1 %v5512_v41  ;;  %vm20002_vm0 = vcmask 1043456   ;;  %v5300_v7 = vsel %vm2219_vm14, %v8931_v15, %v18015_v18  ;;  %vm20047_vm9 = vmmov %vm19995_vm3 }
 0x8bc   : > { %v5713_v33 = vsel %vm20002_vm0, %v5677_v27, 0  ;;  %v5679_v8 = vpack.c.bf16 %v5329_v43, %v5329_v43  ;;  %v20003_v45 = vunpack.i.l.bf16 %v16038_v48  ;;  %v20004_v46 = vunpack.i.l.bf16 %v16106_v52  ;;  %vm20005_vm5 = vmmov %vm20002_vm0  ;;  %v16656_v48 = vpop.permute.xlu1 %8988 }
 0x8bd   : > { %5874 = vmatpush1.bf16.msra.mxu0 %v20001_v56  ;;  %v8961_v14 = vunpack.i.h.bf16 %v16558_v5  ;;  %v5664_v41 = vpack.c.bf16 %v5314_v47, %v5300_v7  ;;  %v5330_v27 = vsel %vm2219_vm14, %v8941_v30, %v18013_v16  ;;  %v18017_v21 = vunpack.i.l.bf16 %v16558_v5  ;;  %v16671_v7 = vpop.permute.xlu0 %8983  ;;  %v20007_v16 = vld [vmem:[#allocation127_spill] sm:$0xff]  ;;  %vm20010_vm2 = vmmov %vm20002_vm0 }
 0x8be   : > { %v5299_v25 = vsel %vm2219_vm14, %v20003_v45, %v8931_v15  ;;  %v5313_v4 = vsel %vm2219_vm14, %v20004_v46, %v8936_v62  ;;  %6377 = vmatprep.subr.msk.bf16.mxu0 %vm20005_vm5, %v5678_v37  ;;  %v8971_v43 = vunpack.i.h.bf16 %v16592_v28  ;;  %v5272_v52 = vsel %vm2219_vm14, %v8946_v23, %v18014_v1  ;;  %5913 = vmatpush1.bf16.msra.mxu1 %v5511_v3  ;;  %v20008_v1 = vld [vmem:[#allocation196_spill] sm:$0xff]  ;;  %vm20018_vm13 = vmmov %vm20002_vm0 }
 0x8bf   : > { %v18018_v15 = vunpack.i.l.bf16 %v16592_v28  ;;  %v18019_v62 = vunpack.i.l.bf16 %v16637_v12  ;;  %v5286_v30 = vsel %vm2219_vm14, %v8951_v57, %v18016_v17  ;;  %v5663_v47 = vpack.c.bf16 %v5313_v4, %v5299_v25  ;;  %vm20053_vm0 = vmmov %vm20046_vm6 }
 0x8c0   : > { %v20006_v45 = vunpack.i.l.bf16 %v16191_v59  ;;  %v8956_v56 = vunpack.i.h.bf16 %v16579_v36  ;;  %v20009_v18 = vpack.c.bf16 %v20007_v16, %v20008_v1  ;;  %v5719_v3 = vsel %vm20010_vm2, %v5679_v8, 0  ;;  %v20013_v1 = vld [vmem:[#allocation195_spill] sm:$0xff] }
 0x8c1   : > { %5880 = vmatpush2.bf16.msra.mxu0 %v5713_v33  ;;  %v20011_v46 = vunpack.i.l.bf16 %v16128_v34  ;;  %v5680_v4 = vpack.c.bf16 %v5330_v27, %v5330_v27  ;;  %v20012_v59 = vunpack.i.l.bf16 %v16475_v60  ;;  %v8966_v25 = vunpack.i.h.bf16 %v16601_v49  ;;  %v20014_v60 = vld [vmem:[#allocation113_spill] sm:$0xff] }
 0x8c2   : > { %v5285_v37 = vsel %vm2219_vm14, %v20006_v45, %v8951_v57  ;;  %5914 = vmatprep.subr.bf16.mxu1 %v20009_v18  ;;  %5881 = vmatprep.subr.bf16.mxu0 %v5664_v41  ;;  %v8981_v33 = vunpack.i.h.bf16 %v16625_v38  ;;  %v18020_v45 = vunpack.i.l.bf16 %v16625_v38  ;;  %v5650_v16 = vpack.c.bf16 %v5286_v30, %v5272_v52  ;;  %v16686_v18 = vpop.permute.xlu1 %8998 }
 0x8c3   : > { %v5271_v17 = vsel %vm2219_vm14, %v20011_v46, %v8946_v23  ;;  %v5315_v57 = vsel %vm2219_vm14, %v20012_v59, %v8961_v14  ;;  %v5302_v34 = vsel %vm2219_vm14, %v8956_v56, %v18017_v21  ;;  %v20015_v23 = vpack.c.bf16 %v20013_v1, %v20014_v60 }
 0x8c4   : > { %v5244_v41 = vsel %vm2219_vm14, %v8966_v25, %v18018_v15  ;;  %v5258_v27 = vsel %vm2219_vm14, %v8971_v43, %v18019_v62  ;;  %v20016_v52 = vunpack.i.l.bf16 %v16601_v49  ;;  %v5649_v30 = vpack.c.bf16 %v5285_v37, %v5271_v17 }
 0x8c5   : > { %5915 = vmatpush1.bf16.msra.mxu1 %v20015_v23  ;;  %v20017_v59 = vunpack.i.l.bf16 %v16489_v42  ;;  %5882 = vmatpush2.bf16.msra.mxu0 %v5663_v47  ;;  %v8991_v1 = vunpack.i.h.bf16 %v16656_v48  ;;  %v18021_v60 = vunpack.i.l.bf16 %v16656_v48  ;;  %v16709_v23 = vpop.permute.xlu0 %8993  ;;  %v20019_v62 = vunpack.i.l.bf16 %v16260_v26 }
 0x8c6   : > { %v5316_v46 = vsel %vm2219_vm14, %v8961_v14, %v20016_v52  ;;  %6379 = vmatprep.subr.msk.bf16.mxu1 %vm20018_vm13, %v5680_v4  ;;  %v8976_v17 = vunpack.i.h.bf16 %v16637_v12  ;;  %v8995_v42 = vunpack.i.l.bf16 %v16709_v23  ;;  %5883 = vmatprep.subr.bf16.mxu0 %v5650_v16  ;;  %v20020_v14 = vunpack.i.l.bf16 %v16211_v54 }
 0x8c7   : > { %v5301_v21 = vsel %vm2219_vm14, %v20017_v59, %v8956_v56  ;;  %v5257_v8 = vsel %vm2219_vm14, %v20019_v62, %v8971_v43  ;;  %v8986_v37 = vunpack.i.h.bf16 %v16671_v7  ;;  %v5636_v56 = vpack.c.bf16 %v5258_v27, %v5244_v41  ;;  %v16721_v59 = vpop.permute.xlu1 %9008 }
 0x8c8   : > { %v5665_v15 = vpack.c.bf16 %v5315_v57, %v5301_v21  ;;  %v5243_v47 = vsel %vm2219_vm14, %v20020_v14, %v8966_v25  ;;  %v5666_v52 = vpack.c.bf16 %v5316_v46, %v5302_v34  ;;  %v9001_v26 = vunpack.i.h.bf16 %v16686_v18 }
 0x8c9   : > { %5921 = vmatpush2.bf16.msra.mxu1 %v5719_v3  ;;  %v18026_v21 = vunpack.i.l.bf16 %v16686_v18  ;;  %v5274_v43 = vsel %vm2219_vm14, %v8976_v17, %v18020_v45  ;;  %v20021_v62 = vunpack.i.l.bf16 %v16671_v7  ;;  %v8915_v4 = vunpack.i.l.bf16 %v16418_v53  ;;  %5884 = vmatpush2.bf16.msra.mxu0 %v5649_v30  ;;  %v16735_v3 = vpop.permute.xlu0 %9003 }
 0x8ca   : > { %v20022_v57 = vunpack.i.l.bf16 %v16579_v36  ;;  %5922 = vmatprep.subr.bf16.mxu1 %v5666_v52  ;;  %v5216_v16 = vsel %vm2219_vm14, %v8986_v37, %v18021_v60  ;;  %v5230_v34 = vsel %vm2219_vm14, %v8991_v1, %v8995_v42  ;;  %v8996_v41 = vunpack.i.h.bf16 %v16709_v23  ;;  %5885 = vmatprep.subr.bf16.mxu0 %v5636_v56 }
 0x8cb   : > { %v5288_v54 = vsel %vm2219_vm14, %v8981_v33, %v20021_v62  ;;  %v18027_v27 = vunpack.i.l.bf16 %v16735_v3  ;;  %v9011_v46 = vunpack.i.h.bf16 %v16721_v59  ;;  %v9010_v36 = vunpack.i.l.bf16 %v16721_v59  ;;  %v16751_v45 = vpop.permute.xlu1 %9018 }
 0x8cc   : > { %v5287_v25 = vsel %vm2219_vm14, %v20022_v57, %v8981_v33  ;;  %v5635_v33 = vpack.c.bf16 %v5257_v8, %v5243_v47  ;;  %v20023_v30 = vunpack.i.l.bf16 %v16509_v9  ;;  %v20024_v52 = vunpack.i.l.bf16 %v16323_v11 }
 0x8cd   : > { %v5652_v57 = vpack.c.bf16 %v5288_v54, %v5274_v43  ;;  %v9006_v23 = vunpack.i.h.bf16 %v16735_v3  ;;  %5923 = vmatpush2.bf16.msra.mxu1 %v5665_v15  ;;  %v5622_v56 = vpack.c.bf16 %v5230_v34, %v5216_v16  ;;  %v5246_v60 = vsel %vm2219_vm14, %v8996_v41, %v18026_v21 }
 0x8ce   : > { %v5273_v14 = vsel %vm2219_vm14, %v20023_v30, %v8976_v17  ;;  %v5229_v62 = vsel %vm2219_vm14, %v20024_v52, %v8991_v1  ;;  %v5260_v9 = vsel %vm2219_vm14, %v9001_v26, %v18027_v27  ;;  %v20025_v11 = vunpack.i.l.bf16 %v16274_v58  ;;  %5886 = vmatpush2.bf16.msra.mxu0 %v5635_v33  ;;  %v9014_v17 = vpop.permute.xlu0 %9013 }
 0x8cf   : > { %v5651_v8 = vpack.c.bf16 %v5287_v25, %v5273_v14  ;;  %5924 = vmatprep.subr.bf16.mxu1 %v5652_v57  ;;  %v9021_v47 = vunpack.i.h.bf16 %v16751_v45  ;;  %v20026_v15 = vunpack.i.h.bf16 %v19886_v13  ;;  %v20028_v54 = vunpack.i.l.bf16 %v16354_v2  ;;  %5887 = vmatprep.subr.bf16.mxu0 %v5622_v56  ;;  %v16779_v52 = vpop.permute.xlu1 %9028 }
 0x8d0   : > { %v5215_v1 = vsel %vm2219_vm14, %v20025_v11, %v8986_v37  ;;  %v9015_v25 = vunpack.i.l.bf16 %v9014_v17  ;;  %v18024_v58 = vunpack.i.l.bf16 %v16751_v45  ;;  %v5188_v37 = vsel %vm2219_vm14, %v9006_v23, %v9010_v36 }
 0x8d1   : > { %v4509_v43 = vsel %vm20027_vm7, %v20026_v15, %v8915_v4  ;;  %v5201_v16 = vsel %vm2219_vm14, %v20028_v54, %v9011_v46  ;;  %v5621_v34 = vpack.c.bf16 %v5229_v62, %v5215_v1  ;;  %v20029_v33 = vunpack.i.l.bf16 %v16637_v12  ;;  %5925 = vmatpush2.bf16.msra.mxu1 %v5651_v8 }
 0x8d2   : > { %v9016_v13 = vunpack.i.h.bf16 %v9014_v17  ;;  %v5638_v14 = vpack.c.bf16 %v5260_v9, %v5246_v60  ;;  %v8925_v2 = vunpack.i.l.bf16 %v16453_v35  ;;  %v20030_v57 = vunpack.i.l.bf16 %v16592_v28  ;;  %v16790_v60 = vpop.permute.xlu0 %9023 }
 0x8d3   : > { %v5259_v30 = vsel %vm2219_vm14, %v20029_v33, %v9001_v26  ;;  %v20031_v11 = vunpack.i.l.bf16 %v16310_v39  ;;  %v5202_v62 = vsel %vm2219_vm14, %v9011_v46, %v9015_v25  ;;  %5888 = vmatpush2.bf16.msra.mxu0 %v5621_v34  ;;  %v5231_v26 = vsel %vm2219_vm14, %v8995_v42, %v9021_v47  ;;  %v16808_v34 = vpop.permute.xlu1 %9038 }
 0x8d4   : > { %v5245_v56 = vsel %vm2219_vm14, %v20030_v57, %v8996_v41  ;;  %5926 = vmatprep.subr.bf16.mxu1 %v5638_v14  ;;  %v5608_v9 = vpack.c.bf16 %v5202_v62, %v5188_v37  ;;  %v9031_v1 = vunpack.i.h.bf16 %v16779_v52  ;;  %v18025_v41 = vunpack.i.l.bf16 %v16790_v60 }
 0x8d5   : > { %v5187_v15 = vsel %vm2219_vm14, %v20031_v11, %v9006_v23  ;;  %v5637_v28 = vpack.c.bf16 %v5259_v30, %v5245_v56  ;;  %v18022_v39 = vunpack.i.l.bf16 %v16779_v52  ;;  %v5218_v23 = vsel %vm2219_vm14, %v9016_v13, %v18024_v58 }
 0x8d6   : > { %v5607_v12 = vpack.c.bf16 %v5201_v16, %v5187_v15  ;;  %v8920_v46 = vunpack.i.l.bf16 %v16372_v31  ;;  %v20032_v8 = vunpack.i.l.bf16 %v16656_v48  ;;  %v9026_v17 = vunpack.i.h.bf16 %v16790_v60  ;;  %5889 = vmatprep.subr.bf16.mxu0 %v5608_v9  ;;  %v16816_v56 = vpop.permute.xlu0 %9033 }
 0x8d7   : > { %v20033_v54 = vunpack.i.l.bf16 %v16340_v40  ;;  %v20034_v16 = vunpack.i.h.bf16 %v19887_v20  ;;  %5927 = vmatpush2.bf16.msra.mxu1 %v5637_v28  ;;  %v5232_v48 = vsel %vm2219_vm14, %v9021_v47, %v18025_v41  ;;  %v8676_v14 = vunpack.i.h.bf16 %v19901_v6  ;;  %v20085_v41 = vld [vmem:[#allocation117_spill] sm:$0xff] }
 0x8d8   : > { %v5217_v42 = vsel %vm2219_vm14, %v20032_v8, %v9016_v13  ;;  %v9040_v13 = vunpack.i.l.bf16 %v16808_v34  ;;  %5890 = vmatpush2.bf16.msra.mxu0 %v5607_v12  ;;  %v5203_v57 = vsel %vm2219_vm14, %v9015_v25, %v9031_v1  ;;  %v5624_v20 = vpack.c.bf16 %v5232_v48, %v5218_v23 }
 0x8d9   : > { %v4451_v37 = vsel %vm20035_vm11, %v20034_v16, %v20033_v54  ;;  %v5623_v33 = vpack.c.bf16 %v5231_v26, %v5217_v42  ;;  %v20036_v11 = vunpack.i.h.bf16 %v19899_v0  ;;  %v20037_v15 = vunpack.i.h.bf16 %v19891_v29  ;;  %v4381_v42 = vpop.permute.xlu1 %4380 }
 0x8da   : > { %v5598_v30 = vpack.c.bf16 %v4509_v43, %v4451_v37  ;;  %v20038_v47 = vunpack.i.l.bf16 %v19891_v29  ;;  %vm20039_vm12 = vcmask 457728   ;;  %v18023_v26 = vunpack.i.l.bf16 %v16816_v56  ;;  %5928 = vmatprep.subr.bf16.mxu1 %v5624_v20  ;;  %v4497_v48 = vpop.permute.xlu0 %4496 }
 0x8db   : > { %v4393_v43 = vsel %vm1198_vm10, %v20036_v11, %v8925_v2  ;;  %v5597_v25 = vpack.c.bf16 %v16616_v32, %v16608_v24  ;;  %v5190_v12 = vsel %vm2219_vm14, %v9026_v17, %v18022_v39  ;;  %v8916_v9 = vunpack.i.h.bf16 %v16418_v53  ;;  %vm20041_vm15 = vmmov %vm20039_vm12  ;;  %5892 = vmatmul.mubr.bf16.vlgmr.msra.gmra.mxu0 %v19889_v44  ;;  %5929 = vmatpush2.bf16.msra.mxu1 %v5623_v33 }
 0x8dc   : > { %v4334_v62 = vsel %vm20039_vm12, %v20038_v47, %v20037_v15  ;;  %5941 = vmatprep.subr.bf16.mxu0 %v5598_v30  ;;  %v5189_v28 = vsel %vm2219_vm14, %v9010_v36, %v9026_v17  ;;  %v20040_v23 = vmov %v20037_v15  ;;  %v4277_v24 = vsel %vm1048_vm8, %v8676_v14, %v9040_v13  ;;  %v20042_v17 = vld [vmem:[#allocation122_spill] sm:$0xff]  ;;  %vm20056_vm5 = vmmov %vm20039_vm12 }
 0x8dd   : > { %v4335_v8 = vsel %vm20041_vm15, %v20040_v23, %v8920_v46  ;;  %v8911_v32 = vunpack.i.h.bf16 %v16340_v40  ;;  %v5609_v54 = vpack.c.bf16 %v5203_v57, %v5189_v28  ;;  %v5204_v36 = vsel %vm2219_vm14, %v9031_v1, %v18023_v26  ;;  %5942 = vmatpush1.bf16.msra.mxu0 %v5597_v25  ;;  %v16867_v25 = vpop.permute.xlu1 %9043  ;;  %vm20066_vm13 = vmmov %vm20056_vm5 }
 0x8de   : > { %v5584_v59 = vpack.c.bf16 %v4393_v43, %v4335_v8  ;;  %v8235_v29 = vunpack.i.l.bf16 %v20042_v17  ;;  %v20043_v16 = vmov %v20036_v11  ;;  %v20044_v37 = vunpack.i.l.bf16 %v19899_v0  ;;  %v20048_v11 = vld [vmem:[#allocation77_spill] sm:$0xff] }
 0x8df   : > { %v5610_v20 = vpack.c.bf16 %v5204_v36, %v5190_v12  ;;  %vm20045_vm4 = vcmask 719872   ;;  %v4453_v33 = vsel %vm20046_vm6, %v8911_v32, %v16405_v10  ;;  %v8926_v57 = vunpack.i.h.bf16 %v16453_v35  ;;  %v4323_v36 = vpop.permute.xlu0 %4322  ;;  %v20062_v35 = vld [vmem:[#allocation169_spill] sm:$0xff] }
 0x8e0   : > { %v4392_v30 = vsel %vm1198_vm10, %v20044_v37, %v20043_v16  ;;  %6382 = vmatprep.mubr.msk.bf16.mxu0 %vm20045_vm4, %v19893_v63  ;;  %v4511_v1 = vsel %vm20047_vm9, %v8916_v9, %v4497_v48  ;;  %5943 = vmatprep.subr.bf16.mxu0 %v5584_v59  ;;  %v5570_v43 = vpack.c.bf16 %v4277_v24, %v20048_v11  ;;  %v8231_v12 = vunpack.i.h.bf16 %v19928_v22  ;;  %v20050_v24 = vld [vmem:[#allocation151_spill] sm:$0xff]  ;;  %v20051_v59 = vld [vmem:[#allocation50_spill] sm:$0xff] }
 0x8e1   : > { %v4510_v0 = vsel %vm19995_vm3, %v8915_v4, %v8916_v9  ;;  %v5600_v15 = vpack.c.bf16 %v4511_v1, %v4453_v33  ;;  %5930 = vmatprep.subr.bf16.mxu1 %v5610_v20  ;;  %v5583_v47 = vpack.c.bf16 %v4392_v30, %v4334_v62  ;;  %v20049_v10 = vunpack.i.l.bf16 %v19901_v6  ;;  %v20054_v16 = vld [vmem:[#allocation163_spill] sm:$0xff]  ;;  %v20055_v6 = vld [vmem:[#allocation33_spill] sm:$0xff]  ;;  %v16893_v1 = vpop.permute.xlu1 %9053  ;;  %v20059_v11 = vld [vmem:[#allocation150_spill] sm:$0xff] }
 0x8e2   : > { %v8921_v23 = vunpack.i.h.bf16 %v16372_v31  ;;  %5931 = vmatpush2.bf16.msra.mxu1 %v5609_v54  ;;  %v4395_v8 = vsel %vm1198_vm10, %v8926_v57, %v4381_v42  ;;  %v8165_v53 = vunpack.i.l.bf16 %v20050_v24  ;;  %v8200_v4 = vunpack.i.l.bf16 %v20051_v59  ;;  %v20058_v20 = vld [vmem:[#allocation67_spill] sm:$0xff] }
 0x8e3   : > { %v4276_v28 = vsel %vm1048_vm8, %v20049_v10, %v8676_v14  ;;  %v20052_v9 = vunpack.i.l.bf16 %v16340_v40  ;;  %5944 = vmatpush1.bf16.msra.mxu0 %v5583_v47  ;;  %5982 = vmatprep.subr.bf16.mxu1 %v5600_v15  ;;  %v5499_v37 = vpack.c.bf16 %v20055_v6, %v20054_v16  ;;  %v8196_v14 = vunpack.i.h.bf16 %v19937_v51  ;;  %v20060_v15 = vld [vmem:[#allocation159_spill] sm:$0xff]  ;;  %v20061_v10 = vld [vmem:[#allocation162_spill] sm:$0xff] }
 0x8e4   : > { %v4337_v54 = vsel %vm20056_vm5, %v8921_v23, %v4323_v36  ;;  %5945 = vmatprep.subr.bf16.mxu0 %v5570_v43  ;;  %vm20057_vm2 = vcmask 867328   ;;  %v4394_v40 = vsel %vm1198_vm10, %v8925_v2, %v8926_v57  ;;  %v5569_v33 = vpack.c.bf16 %v4276_v28, %v20058_v20  ;;  %vm20063_vm10 = vmmov %vm20045_vm4  ;;  %v20064_v2 = vld [vmem:[#allocation99_spill] sm:$0xff]  ;;  %v4265_v36 = vpop.permute.xlu0 %4264 }
 0x8e5   : > { %v4452_v62 = vsel %vm20053_vm0, %v20052_v9, %v8911_v32  ;;  %v4102_v42 = vsel %vm20057_vm2, %v8231_v12, %v8235_v29  ;;  %v9041_v32 = vunpack.i.h.bf16 %v16808_v34  ;;  %v5586_v48 = vpack.c.bf16 %v4395_v8, %v4337_v54  ;;  %5933 = vmatmul.mubr.bf16.vlgmr.msra.gmra.mxu1 %v19889_v44  ;;  %v20065_v8 = vld [vmem:[#allocation81_spill] sm:$0xff]  ;;  %vm20069_vm11 = vmmov %vm20057_vm2  ;;  %v16923_v39 = vpop.permute.xlu1 %9063 }
 0x8e6   : > { %v5599_v30 = vpack.c.bf16 %v4510_v0, %v4452_v62  ;;  %v8095_v0 = vunpack.i.l.bf16 %v20059_v11  ;;  %v8126_v43 = vunpack.i.h.bf16 %v19952_v61  ;;  %v5556_v47 = vpack.c.bf16 %v20060_v15, %v4102_v42  ;;  %6384 = vmatprep.mubr.msk.bf16.mxu1 %vm20063_vm10, %v19893_v63  ;;  %vm20083_vm6 = vmmov %vm20057_vm2 }
 0x8e7   : > { %v5500_v9 = vpack.c.bf16 %v20062_v35, %v20061_v10  ;;  %v8130_v57 = vunpack.i.l.bf16 %v20064_v2  ;;  %v8161_v62 = vunpack.i.h.bf16 %v20065_v8  ;;  %v4336_v28 = vsel %vm20066_vm13, %v8920_v46, %v8921_v23  ;;  %5946 = vmatpush1.bf16.msra.mxu0 %v5569_v33  ;;  %v20070_v46 = vld [vmem:[#allocation103_spill] sm:$0xff]  ;;  %vm20090_vm5 = vmmov %vm20057_vm2 }
 0x8e8   : > { %5983 = vmatpush1.bf16.msra.mxu1 %v5599_v30  ;;  %vm20067_vm7 = vcmask 875520   ;;  %v20068_v54 = vunpack.i.l.bf16 %v19928_v22  ;;  %v8236_v63 = vunpack.i.h.bf16 %v20042_v17  ;;  %v5585_v20 = vpack.c.bf16 %v4394_v40, %v4336_v28  ;;  %5947 = vmatprep.subr.bf16.mxu0 %v5556_v47 }
 0x8e9   : > { %5984 = vmatprep.subr.bf16.mxu1 %v5586_v48  ;;  %v4044_v30 = vsel %vm20067_vm7, %v8196_v14, %v8200_v4  ;;  %v4279_v15 = vsel %vm1048_vm8, %v9041_v32, %v4265_v36  ;;  %v4278_v31 = vsel %vm1048_vm8, %v9040_v13, %v9041_v32  ;;  %v20071_v48 = vld [vmem:[#allocation145_spill] sm:$0xff]  ;;  %vm20072_vm12 = vcmask 883712   ;;  %vm20075_vm15 = vmmov %vm20067_vm7  ;;  %v20076_v32 = vld [vmem:[#allocation88_spill] sm:$0xff] }
 0x8ea   : > { %v4101_v42 = vsel %vm20069_vm11, %v20068_v54, %v8231_v12  ;;  %v5572_v23 = vpack.c.bf16 %v4279_v15, %v20070_v46  ;;  %v3986_v22 = vsel %vm20072_vm12, %v8161_v62, %v8165_v53  ;;  %v20073_v12 = vld [vmem:[#allocation173_spill] sm:$0xff]  ;;  %v20074_v40 = vunpack.i.l.bf16 %v19937_v51  ;;  %v16933_v46 = vpop.permute.xlu0 %9048  ;;  %vm20080_vm4 = vmmov %vm20072_vm12 }
 0x8eb   : > { %v5555_v33 = vpack.c.bf16 %v20071_v48, %v4101_v42  ;;  %v8021_v54 = vunpack.i.h.bf16 %v20073_v12  ;;  %v8201_v34 = vunpack.i.h.bf16 %v20051_v59  ;;  %v5542_v13 = vpack.c.bf16 %v4044_v30, %v3986_v22  ;;  %v20077_v36 = vld [vmem:[#allocation73_spill] sm:$0xff]  ;;  %vm20089_vm0 = vmmov %vm20067_vm7 }
 0x8ec   : > { %v4043_v47 = vsel %vm20075_vm15, %v20074_v40, %v8196_v14  ;;  %5985 = vmatpush1.bf16.msra.mxu1 %v5585_v20  ;;  %v8025_v28 = vunpack.i.l.bf16 %v20076_v32  ;;  %v8060_v42 = vunpack.i.l.bf16 %v20077_v36  ;;  %v8091_v15 = vunpack.i.h.bf16 %v19938_v50  ;;  %v20081_v20 = vld [vmem:[#allocation137_spill] sm:$0xff]  ;;  %vm20096_vm13 = vmmov %vm20080_vm4 }
 0x8ed   : > { %5948 = vmatpush1.bf16.msra.mxu0 %v5555_v33  ;;  %5986 = vmatprep.subr.bf16.mxu1 %v5572_v23  ;;  %vm20078_vm8 = vcmask 949248   ;;  %v20079_v14 = vunpack.i.l.bf16 %v20065_v8  ;;  %v8166_v30 = vunpack.i.h.bf16 %v20050_v24  ;;  %v5571_v22 = vpack.c.bf16 %v4278_v31, %v20081_v20  ;;  %v20082_v40 = vld [vmem:[#allocation25_spill] sm:$0xff]  ;;  %v16950_v8 = vpop.permute.xlu1 %9073  ;;  %v20088_v20 = vld [vmem:[#allocation182_spill] sm:$0xff]  ;;  %vm20097_vm7 = vmmov %vm20089_vm0 }
 0x8ee   : > { %v3928_v51 = vsel %vm20078_vm8, %v8126_v43, %v8130_v57  ;;  %5949 = vmatprep.subr.bf16.mxu0 %v5542_v13  ;;  %v4104_v26 = vsel %vm20083_vm6, %v8236_v63, %v20082_v40  ;;  %v8056_v33 = vunpack.i.h.bf16 %v19822_v55  ;;  %vm20084_vm9 = vcmask 957440   ;;  %vm20087_vm3 = vmmov %vm20078_vm8 }
 0x8ef   : > { %v3985_v48 = vsel %vm20080_vm4, %v20079_v14, %v8161_v62  ;;  %v3870_v23 = vsel %vm20084_vm9, %v8091_v15, %v8095_v0  ;;  %v5558_v21 = vpack.c.bf16 %v20085_v41, %v4104_v26  ;;  %v20086_v62 = vunpack.i.l.bf16 %v19952_v61  ;;  %v16962_v41 = vpop.permute.xlu0 %9058  ;;  %vm20093_vm10 = vmmov %vm20084_vm9 }
 0x8f0   : > { %v5541_v58 = vpack.c.bf16 %v4043_v47, %v3985_v48  ;;  %v8131_v31 = vunpack.i.h.bf16 %v20064_v2  ;;  %5987 = vmatpush1.bf16.msra.mxu1 %v5571_v22  ;;  %v5528_v13 = vpack.c.bf16 %v3928_v51, %v3870_v23  ;;  %v4046_v40 = vsel %vm20089_vm0, %v8201_v34, %v20088_v20  ;;  %v20095_v22 = vld [vmem:[#allocation177_spill] sm:$0xff]  ;;  %vm20100_vm11 = vmmov %vm20087_vm3 }
 0x8f1   : > { %v3927_v14 = vsel %vm20087_vm3, %v20086_v62, %v8126_v43  ;;  %v4103_v47 = vsel %vm20090_vm5, %v8235_v29, %v8236_v63  ;;  %v9036_v48 = vunpack.i.h.bf16 %v16816_v56  ;;  %5988 = vmatprep.subr.bf16.mxu1 %v5558_v21  ;;  %vm20091_vm2 = vcmask 1031168   ;;  %v20094_v29 = vld [vmem:[#allocation92_spill] sm:$0xff]  ;;  %v16979_v27 = vpop.permute.xlu1 %9083  ;;  %vm20101_vm12 = vmmov %vm20080_vm4 }
 0x8f2   : > { %5950 = vmatpush1.bf16.msra.mxu0 %v5541_v58  ;;  %v3754_v61 = vsel %vm20091_vm2, %v8021_v54, %v8025_v28  ;;  %v3812_v26 = vsel %vm447_vm1, %v8056_v33, %v8060_v42  ;;  %v20092_v43 = vunpack.i.l.bf16 %v19938_v50  ;;  %v8096_v17 = vunpack.i.h.bf16 %v20059_v11  ;;  %vm20106_vm15 = vmmov %vm20091_vm2 }
 0x8f3   : > { %5951 = vmatprep.subr.bf16.mxu0 %v5528_v13  ;;  %v5557_v63 = vpack.c.bf16 %v20094_v29, %v4103_v47  ;;  %v3988_v58 = vsel %vm20096_vm13, %v8166_v30, %v20095_v22  ;;  %v8061_v21 = vunpack.i.h.bf16 %v20077_v36  ;;  %v4045_v23 = vsel %vm20097_vm7, %v8200_v4, %v8201_v34  ;;  %v16991_v34 = vpop.permute.xlu0 %9068  ;;  %vm20108_vm8 = vmmov %vm20084_vm9 }
 0x8f4   : > { %v3869_v51 = vsel %vm20093_vm10, %v20092_v43, %v8091_v15  ;;  %v5544_v20 = vpack.c.bf16 %v4046_v40, %v3988_v58  ;;  %v20098_v50 = vunpack.i.l.bf16 %v19822_v55  ;;  %v9045_v13 = vunpack.i.l.bf16 %v16867_v25  ;;  %v20099_v43 = vld [vmem:[#allocation108_spill] sm:$0xff]  ;;  %vm20109_vm4 = vmmov %vm20087_vm3 }
 0x8f5   : > { %v5527_v62 = vpack.c.bf16 %v3927_v14, %v3869_v51  ;;  %5989 = vmatpush1.bf16.msra.mxu1 %v5557_v63  ;;  %v5514_v47 = vpack.c.bf16 %v3812_v26, %v3754_v61  ;;  %v3930_v29 = vsel %vm20100_vm11, %v8131_v31, %v20099_v43  ;;  %v3987_v59 = vsel %vm20101_vm12, %v8165_v53, %v8166_v30  ;;  %v20104_v14 = vld [vmem:[#allocation56_spill] sm:$0xff]  ;;  %v20107_v30 = vld [vmem:[#allocation170_spill] sm:$0xff]  ;;  %vm20110_vm6 = vmmov %vm20108_vm8 }
 0x8f6   : > { %v3811_v15 = vsel %vm447_vm1, %v20098_v50, %v8056_v33  ;;  %v9056_v4 = vunpack.i.h.bf16 %v16893_v1  ;;  %5990 = vmatprep.subr.bf16.mxu1 %v5544_v20  ;;  %v20102_v55 = vunpack.i.l.bf16 %v16520_v19  ;;  %v20103_v33 = vld [vmem:[#allocation138_spill] sm:$0xff]  ;;  %v20105_v61 = vunpack.i.l.bf16 %v20073_v12  ;;  %v20116_v43 = vld [vmem:[#allocation189_spill] sm:$0xff] }
 0x8f7   : > { %5952 = vmatpush1.bf16.msra.mxu0 %v5527_v62  ;;  %v5501_v40 = vpack.c.bf16 %v20104_v14, %v20103_v33  ;;  %v8026_v24 = vunpack.i.h.bf16 %v20076_v32  ;;  %v5543_v53 = vpack.c.bf16 %v4045_v23, %v3987_v59  ;;  %v3872_v51 = vsel %vm20108_vm8, %v8096_v17, %v20107_v30  ;;  %v17008_v62 = vpop.permute.xlu1 %9093  ;;  %v20111_v23 = vld [vmem:[#allocation141_spill] sm:$0xff] }
 0x8f8   : > { %v5331_v36 = vsel %vm2219_vm14, %v20102_v55, %v9036_v48  ;;  %v3753_v26 = vsel %vm20106_vm15, %v20105_v61, %v8021_v54  ;;  %5953 = vmatprep.subr.bf16.mxu0 %v5514_v47  ;;  %v3813_v63 = vsel %vm447_vm1, %v8060_v42, %v8061_v21  ;;  %v3929_v19 = vsel %vm20109_vm4, %v8130_v57, %v8131_v31  ;;  %v17019_v31 = vpop.permute.xlu0 %9078 }
 0x8f9   : > { %v5513_v22 = vpack.c.bf16 %v3811_v15, %v3753_v26  ;;  %v5530_v58 = vpack.c.bf16 %v3930_v29, %v3872_v51  ;;  %v3871_v12 = vsel %vm20110_vm6, %v8095_v0, %v8096_v17  ;;  %v5332_v54 = vsel %vm2219_vm14, %v9036_v48, %v9045_v13  ;;  %5991 = vmatpush1.bf16.msra.mxu1 %v5543_v53 }
 0x8fa   : > { %v3814_v20 = vsel %vm447_vm1, %v8061_v21, %v20111_v23  ;;  %v5681_v50 = vpack.c.bf16 %v5331_v36, %v5331_v36  ;;  %v9055_v42 = vunpack.i.l.bf16 %v16893_v1  ;;  %v9051_v2 = vunpack.i.h.bf16 %v16933_v46  ;;  %v20112_v1 = vld [vmem:[#allocation18_spill] sm:$0xff]  ;;  %vm20113_vm1 = vmmov %vm20091_vm2 }
 0x8fb   : > { %v9050_v57 = vunpack.i.l.bf16 %v16933_v46  ;;  %5954 = vmatpush1.bf16.msra.mxu0 %v5513_v22  ;;  %5992 = vmatprep.subr.bf16.mxu1 %v5530_v58  ;;  %v5333_v11 = vsel %vm2219_vm14, %v9045_v13, %v9056_v4  ;;  %v9046_v0 = vunpack.i.h.bf16 %v16867_v25  ;;  %v9066_v48 = vunpack.i.h.bf16 %v16923_v39  ;;  %vm20114_vm9 = vmmov %vm20113_vm1  ;;  %v20115_v13 = vld [vmem:[#allocation146_spill] sm:$0xff]  ;;  %v17036_v35 = vpop.permute.xlu1 %9103 }
 0x8fc   : > { %5955 = vmatprep.subr.bf16.mxu0 %v5500_v9  ;;  %v5529_v17 = vpack.c.bf16 %v3929_v19, %v3871_v12  ;;  %v3756_v21 = vsel %vm20113_vm1, %v8026_v24, %v20112_v1  ;;  %v3755_v46 = vsel %vm20114_vm9, %v8025_v28, %v8026_v24  ;;  %v9061_v15 = vunpack.i.h.bf16 %v16962_v41  ;;  %v17042_v32 = vpop.permute.xlu0 %9088 }
 0x8fd   : > { %v5516_v47 = vpack.c.bf16 %v3814_v20, %v3756_v21  ;;  %v5502_v25 = vpack.c.bf16 %v20116_v43, %v20115_v13  ;;  %v5682_v29 = vpack.c.bf16 %v5332_v54, %v5332_v54  ;;  %v9060_v59 = vunpack.i.l.bf16 %v16962_v41 }
 0x8fe   : > { %5993 = vmatpush1.bf16.msra.mxu1 %v5529_v17  ;;  %v5515_v10 = vpack.c.bf16 %v3813_v63, %v3755_v46  ;;  %v5683_v9 = vpack.c.bf16 %v5333_v11, %v5333_v11  ;;  %v9070_v55 = vunpack.i.l.bf16 %v16991_v34  ;;  %vm20117_vm3 = vcmask 1043456  }
 0x8ff   : > { %5956 = vmatpush1.bf16.msra.mxu0 %v5499_v37  ;;  %5994 = vmatprep.subr.bf16.mxu1 %v5516_v47  ;;  %v5725_v28 = vsel %vm20117_vm3, %v5681_v50, 0  ;;  %v5304_v36 = vsel %vm2219_vm14, %v9046_v0, %v9050_v57  ;;  %v5318_v41 = vsel %vm2219_vm14, %v9051_v2, %v9055_v42  ;;  %v20118_v61 = vunpack.i.l.bf16 %v16558_v5  ;;  %vm20120_vm0 = vmmov %vm20117_vm3 }
 0x900   : > { %v9065_v24 = vunpack.i.l.bf16 %v16923_v39  ;;  %v20119_v53 = vunpack.i.l.bf16 %v16671_v7  ;;  %v9076_v6 = vunpack.i.h.bf16 %v16950_v8  ;;  %6381 = vmatprep.subr.msk.bf16.mxu0 %vm20120_vm0, %v5682_v29  ;;  %v20121_v37 = vunpack.i.l.bf16 %v16601_v49  ;;  %vm20123_vm5 = vmmov %vm20120_vm0  ;;  %v9099_v54 = vpop.permute.xlu0 %9098 }
 0x901   : > { %v5303_v26 = vsel %vm2219_vm14, %v20118_v61, %v9046_v0  ;;  %v20122_v51 = vunpack.i.l.bf16 %v16625_v38  ;;  %v9071_v63 = vunpack.i.h.bf16 %v16991_v34  ;;  %v9086_v39 = vunpack.i.h.bf16 %v16979_v27  ;;  %vm20126_vm2 = vmmov %vm20120_vm0 }
 0x902   : > { %v5289_v16 = vsel %vm2219_vm14, %v20119_v53, %v9066_v48  ;;  %v5317_v30 = vsel %vm2219_vm14, %v20121_v37, %v9051_v2  ;;  %v5334_v7 = vsel %vm2219_vm14, %v9056_v4, %v9060_v59  ;;  %v9080_v19 = vunpack.i.l.bf16 %v17019_v31  ;;  %5995 = vmatpush1.bf16.msra.mxu1 %v5515_v10  ;;  %v17073_v2 = vpop.permute.xlu1 %9113 }
 0x903   : > { %v5275_v5 = vsel %vm2219_vm14, %v20122_v51, %v9061_v15  ;;  %v5668_v22 = vpack.c.bf16 %v5318_v41, %v5304_v36  ;;  %v5731_v58 = vsel %vm20123_vm5, %v5683_v9, 0  ;;  %v9075_v49 = vunpack.i.l.bf16 %v16950_v8  ;;  %5962 = vmatpush2.bf16.msra.mxu0 %v5725_v28  ;;  %5996 = vmatprep.subr.bf16.mxu1 %v5502_v25 }
 0x904   : > { %v9081_v12 = vunpack.i.h.bf16 %v17019_v31  ;;  %v9090_v38 = vunpack.i.l.bf16 %v17042_v32  ;;  %v5290_v34 = vsel %vm2219_vm14, %v9066_v48, %v9070_v55  ;;  %v5667_v23 = vpack.c.bf16 %v5317_v30, %v5303_v26 }
 0x905   : > { %v5653_v20 = vpack.c.bf16 %v5289_v16, %v5275_v5  ;;  %v5319_v4 = vsel %vm2219_vm14, %v9055_v42, %v9076_v6  ;;  %v9085_v50 = vunpack.i.l.bf16 %v16979_v27  ;;  %5963 = vmatprep.subr.bf16.mxu0 %v5668_v22  ;;  %v5684_v11 = vpack.c.bf16 %v5334_v7, %v5334_v7 }
 0x906   : > { %v5305_v8 = vsel %vm2219_vm14, %v9050_v57, %v9071_v63  ;;  %v20124_v31 = vunpack.i.l.bf16 %v16735_v3  ;;  %v5276_v17 = vsel %vm2219_vm14, %v9061_v15, %v9065_v24  ;;  %v9096_v48 = vunpack.i.h.bf16 %v17008_v62  ;;  %5997 = vmatpush1.bf16.msra.mxu1 %v5501_v40  ;;  %v17090_v15 = vpop.permute.xlu0 %9108  ;;  %v17104_v28 = vpop.permute.xlu1 %9123 }
 0x907   : > { %v9100_v1 = vunpack.i.l.bf16 %v9099_v54  ;;  %v5654_v42 = vpack.c.bf16 %v5290_v34, %v5276_v17  ;;  %v5320_v21 = vsel %vm2219_vm14, %v9076_v6, %v9080_v19  ;;  %v20125_v46 = vunpack.i.l.bf16 %v16686_v18  ;;  %5964 = vmatpush2.bf16.msra.mxu0 %v5667_v23  ;;  %6383 = vmatprep.subr.msk.bf16.mxu1 %vm20126_vm2, %v5684_v11 }
 0x908   : > { %v5261_v0 = vsel %vm2219_vm14, %v20124_v31, %v9086_v39  ;;  %v9091_v3 = vunpack.i.h.bf16 %v17042_v32  ;;  %v9106_v47 = vunpack.i.h.bf16 %v17036_v35  ;;  %v5262_v33 = vsel %vm2219_vm14, %v9086_v39, %v9090_v38 }
 0x909   : > { %v5247_v57 = vsel %vm2219_vm14, %v20125_v46, %v9081_v12  ;;  %v5669_v14 = vpack.c.bf16 %v5319_v4, %v5305_v8  ;;  %v9095_v40 = vunpack.i.l.bf16 %v17008_v62  ;;  %v9110_v18 = vunpack.i.l.bf16 %v17090_v15  ;;  %5965 = vmatprep.subr.bf16.mxu0 %v5654_v42 }
 0x90a   : > { %v5306_v13 = vsel %vm2219_vm14, %v9071_v63, %v9075_v49  ;;  %v9105_v43 = vunpack.i.l.bf16 %v17036_v35  ;;  %v9101_v25 = vunpack.i.h.bf16 %v9099_v54  ;;  %v5248_v29 = vsel %vm2219_vm14, %v9081_v12, %v9085_v50  ;;  %6003 = vmatpush2.bf16.msra.mxu1 %v5731_v58  ;;  %v9119_v16 = vpop.permute.xlu0 %9118 }
 0x90b   : > { %v5670_v59 = vpack.c.bf16 %v5320_v21, %v5306_v13  ;;  %v5639_v10 = vpack.c.bf16 %v5261_v0, %v5247_v57  ;;  %v5291_v9 = vsel %vm2219_vm14, %v9070_v55, %v9096_v48  ;;  %v5640_v62 = vpack.c.bf16 %v5262_v33, %v5248_v29  ;;  %5966 = vmatpush2.bf16.msra.mxu0 %v5653_v20 }
 0x90c   : > { %v5292_v36 = vsel %vm2219_vm14, %v9096_v48, %v9100_v1  ;;  %v5277_v41 = vsel %vm2219_vm14, %v9065_v24, %v9091_v3  ;;  %v20127_v61 = vunpack.i.l.bf16 %v16790_v60  ;;  %v9116_v53 = vunpack.i.h.bf16 %v17073_v2 }
 0x90d   : > { %6004 = vmatprep.subr.bf16.mxu1 %v5670_v59  ;;  %v5234_v55 = vsel %vm2219_vm14, %v9106_v47, %v9110_v18  ;;  %v9115_v6 = vunpack.i.l.bf16 %v17073_v2  ;;  %v9111_v37 = vunpack.i.h.bf16 %v17090_v15  ;;  %v9120_v30 = vunpack.i.l.bf16 %v9119_v16  ;;  %5967 = vmatprep.subr.bf16.mxu0 %v5640_v62  ;;  %v9134_v48 = vpop.permute.xlu1 %9133 }
 0x90e   : > { %v5233_v26 = vsel %vm2219_vm14, %v20127_v61, %v9106_v47  ;;  %v5278_v24 = vsel %vm2219_vm14, %v9091_v3, %v9095_v40  ;;  %v20128_v60 = vunpack.i.l.bf16 %v16751_v45  ;;  %v9126_v5 = vunpack.i.h.bf16 %v17104_v28  ;;  %6005 = vmatpush2.bf16.msra.mxu1 %v5669_v14  ;;  %v9129_v49 = vpop.permute.xlu0 %9128 }
 0x90f   : > { %v5220_v63 = vsel %vm2219_vm14, %v9101_v25, %v9105_v43  ;;  %v5656_v39 = vpack.c.bf16 %v5292_v36, %v5278_v24  ;;  %v9125_v7 = vunpack.i.l.bf16 %v17104_v28  ;;  %v9121_v19 = vunpack.i.h.bf16 %v9119_v16  ;;  %5968 = vmatpush2.bf16.msra.mxu0 %v5639_v10 }
 0x910   : > { %v5219_v51 = vsel %vm2219_vm14, %v20128_v60, %v9101_v25  ;;  %v5626_v22 = vpack.c.bf16 %v5234_v55, %v5220_v63  ;;  %v5264_v58 = vsel %vm2219_vm14, %v9116_v53, %v9120_v30  ;;  %v5655_v45 = vpack.c.bf16 %v5291_v9, %v5277_v41 }
 0x911   : > { %6006 = vmatprep.subr.bf16.mxu1 %v5656_v39  ;;  %v9130_v12 = vunpack.i.l.bf16 %v9129_v49  ;;  %v5250_v54 = vsel %vm2219_vm14, %v9111_v37, %v9115_v6  ;;  %v5625_v34 = vpack.c.bf16 %v5233_v26, %v5219_v51  ;;  %v5263_v23 = vsel %vm2219_vm14, %v9090_v38, %v9116_v53 }
 0x912   : > { %5969 = vmatprep.subr.bf16.mxu0 %v5626_v22  ;;  %v5249_v20 = vsel %vm2219_vm14, %v9085_v50, %v9111_v37  ;;  %v5642_v4 = vpack.c.bf16 %v5264_v58, %v5250_v54  ;;  %v20129_v2 = vunpack.i.l.bf16 %v16816_v56  ;;  %v20130_v8 = vunpack.i.l.bf16 %v16779_v52  ;;  %6007 = vmatpush2.bf16.msra.mxu1 %v5655_v45  ;;  %v9139_v50 = vpop.permute.xlu0 %9138 }
 0x913   : > { %v5192_v0 = vsel %vm2219_vm14, %v9121_v19, %v9125_v7  ;;  %v5206_v32 = vsel %vm2219_vm14, %v9126_v5, %v9130_v12  ;;  %5970 = vmatpush2.bf16.msra.mxu0 %v5625_v34  ;;  %v5641_v27 = vpack.c.bf16 %v5263_v23, %v5249_v20  ;;  %v9131_v56 = vunpack.i.h.bf16 %v9129_v49  ;;  %v9144_v14 = vpop.permute.xlu1 %9143  ;;  %v9160_v49 = vld [vmem:[%s17281_s3] sm:$0xff] }
 0x914   : > { %v5205_v11 = vsel %vm2219_vm14, %v20129_v2, %v9126_v5  ;;  %v5191_v31 = vsel %vm2219_vm14, %v20130_v8, %v9121_v19  ;;  %6008 = vmatprep.subr.bf16.mxu1 %v5642_v4  ;;  %v5612_v38 = vpack.c.bf16 %v5206_v32, %v5192_v0  ;;  %v9140_v52 = vunpack.i.l.bf16 %v9139_v50 }
 0x915   : > { %v5611_v17 = vpack.c.bf16 %v5205_v11, %v5191_v31  ;;  %v9136_v1 = vunpack.i.h.bf16 %v9134_v48  ;;  %v9135_v42 = vunpack.i.l.bf16 %v9134_v48  ;;  %v5221_v21 = vsel %vm2219_vm14, %v9105_v43, %v9131_v56  ;;  %v17156_v9 = vpop.f32.mrf.mxu1  ;;  %v9161_v31 = vld [vmem:[%s17281_s3 + $0x8] sm:$0xff] }
 0x916   : > { %5971 = vmatprep.subr.bf16.mxu0 %v5612_v38  ;;  %6009 = vmatpush2.bf16.msra.mxu1 %v5641_v27  ;;  %v9141_v46 = vunpack.i.h.bf16 %v9139_v50  ;;  %v9146_v13 = vunpack.i.h.bf16 %v9144_v14  ;;  %v9145_v25 = vunpack.i.l.bf16 %v9144_v14  ;;  %v4910_v29 = vpop.permute.xlu0 %4909 }
 0x917   : > { %5972 = vmatpush2.bf16.msra.mxu0 %v5611_v17  ;;  %v5235_v57 = vsel %vm2219_vm14, %v9110_v18, %v9136_v1  ;;  %v5222_v3 = vsel %vm2219_vm14, %v9131_v56, %v9135_v42  ;;  %v5236_v47 = vsel %vm2219_vm14, %v9136_v1, %v9140_v52  ;;  %v17158_v28 = vpop.f32.mrf.mxu1 }
 0x918   : > { %v5627_v33 = vpack.c.bf16 %v5235_v57, %v5221_v21  ;;  %v5628_v40 = vpack.c.bf16 %v5236_v47, %v5222_v3  ;;  %v5193_v35 = vsel %vm2219_vm14, %v9125_v7, %v9141_v46  ;;  %v5207_v43 = vsel %vm2219_vm14, %v9130_v12, %v9146_v13  ;;  %v20131_v7 = vld [vmem:[#allocation171_spill] sm:$0xff] }
 0x919   : > { %v5194_v15 = vsel %vm2219_vm14, %v9141_v46, %v9145_v25  ;;  %v5208_v18 = vsel %vm2219_vm14, %v9146_v13, %v4910_v29  ;;  %v5613_v59 = vpack.c.bf16 %v5207_v43, %v5193_v35  ;;  %v5774_v62 = vpop.f32.mrf.mxu1  ;;  %v17177_v19 = vsub.s32 1, %v20131_v7  ;;  %v9162_v35 = vld [vmem:[%s17281_s3 + $0x10] sm:$0xff] }
 0x91a   : > { %5974 = vmatmul.mubr.bf16.vlgmr.msra.gmra.mxu0 %v19889_v44  ;;  %6010 = vmatprep.subr.bf16.mxu1 %v5628_v40  ;;  %v5614_v10 = vpack.c.bf16 %v5208_v18, %v5194_v15  ;;  %v17180_v22 = vsub.s32 3, %v20131_v7  ;;  %v6033_v58 = vsub.s32 5, %v20131_v7  ;;  %v17189_v34 = vsub.s32 7, %v20131_v7 }
 0x91b   : > { %6011 = vmatpush2.bf16.msra.mxu1 %v5627_v33  ;;  %v5775_v36 = vpop.f32.mrf.mxu1  ;;  %v6026_v45 = vrot.slane %v9160_v49, %v17177_v19  ;;  %v6042_v0 = vrot.slane %v9161_v31, %v17177_v19  ;;  %v6058_v43 = vrot.slane %v9162_v35, %v17177_v19 }
 0x91c   : > { %6012 = vmatprep.subr.bf16.mxu1 %v5614_v10  ;;  %v6030_v12 = vrot.slane %v9160_v49, %v17180_v22  ;;  %v6034_v54 = vrot.slane %v9160_v49, %v6033_v58  ;;  %v6038_v2 = vrot.slane %v9160_v49, %v17189_v34  ;;  %v6046_v50 = vrot.slane %v9161_v31, %v17180_v22 }
 0x91d   : > { %v6096_v23 = vrot.slane %v6026_v45, %v17177_v19  ;;  %v6112_v56 = vrot.slane %v6042_v0, %v17177_v19  ;;  %v6050_v42 = vrot.slane %v9161_v31, %v6033_v58  ;;  %v6054_v40 = vrot.slane %v9161_v31, %v17189_v34 }
 0x91e   : > { %v6100_v20 = vrot.slane %v6030_v12, %v17177_v19  ;;  %v6104_v4 = vrot.slane %v6034_v54, %v17177_v19  ;;  %v6108_v38 = vrot.slane %v6038_v2, %v17177_v19  ;;  %v6116_v3 = vrot.slane %v6046_v50, %v17177_v19  ;;  %v9163_v50 = vld [vmem:[%s17281_s3 + $0x18] sm:$0xff] }
 0x91f   : > { %6013 = vmatpush2.bf16.msra.mxu1 %v5613_v59  ;;  %v6149_v11 = vmul.f32 %v6096_v23, %v17156_v9  ;;  %v6120_v14 = vrot.slane %v6050_v42, %v17177_v19  ;;  %v6124_v10 = vrot.slane %v6054_v40, %v17177_v19  ;;  %v6078_v42 = vrot.slane %v9163_v50, %v17180_v22 }
 0x920   : > { %v6150_v8 = vmul.f32 %v6100_v20, %v17158_v28 }
 0x921   : > { %v6178_v27 = vmul.f32 %v6149_v11, %v6149_v11 }
 0x922   : > { %6015 = vmatmul.mubr.bf16.vlgmr.msra.gmra.mxu1 %v19889_v44  ;;  %v6179_v17 = vmul.f32 %v6150_v8, %v6150_v8  ;;  %v6163_v52 = vadd.f32 %v6150_v8, %v6149_v11  ;;  %v6070_v11 = vrot.slane %v9162_v35, %v17189_v34 }
 0x924   : > { %v6192_v21 = vadd.f32 %v6179_v17, %v6178_v27  ;;  %v6140_v27 = vrot.slane %v6070_v11, %v17177_v19 }
 0x952   : > { %v17160_v41 = vpop.f32.mrf.mxu0 }
 0x953   : > { %v6151_v32 = vmul.f32 %v6104_v4, %v17160_v41 }
 0x954   : > { %v17162_v61 = vpop.f32.mrf.mxu0 }
 0x955   : > { %v6180_v48 = vmul.f32 %v6151_v32, %v6151_v32  ;;  %v6152_v1 = vmul.f32 %v6108_v38, %v17162_v61  ;;  %v6164_v46 = vadd.f32 %v6163_v52, %v6151_v32  ;;  %v6074_v52 = vrot.slane %v9163_v50, %v17177_v19 }
 0x956   : > { %v5815_v26 = vpop.f32.mrf.mxu0 }
 0x957   : > { %v6193_v47 = vadd.f32 %v6192_v21, %v6180_v48  ;;  %v6181_v33 = vmul.f32 %v6152_v1, %v6152_v1  ;;  %v6165_v13 = vadd.f32 %v6164_v46, %v6152_v1 }
 0x958   : > { %v5816_v53 = vpop.f32.mrf.mxu0 }
 0x959   : > { %v6194_v15 = vadd.f32 %v6193_v47, %v6181_v33  ;;  %v6128_v53 = vrot.slane %v6058_v43, %v17177_v19  ;;  %v6148_v33 = vrot.slane %v6078_v42, %v17177_v19 }
 0x95c   : > { %v17164_v16 = vpop.f32.mrf.mxu1 }
 0x95d   : > { %v6153_v57 = vmul.f32 %v6112_v56, %v17164_v16 }
 0x95e   : > { %v17166_v55 = vpop.f32.mrf.mxu1 }
 0x95f   : > { %v6182_v25 = vmul.f32 %v6153_v57, %v6153_v57  ;;  %v6154_v29 = vmul.f32 %v6116_v3, %v17166_v55  ;;  %v6166_v18 = vadd.f32 %v6165_v13, %v6153_v57  ;;  %v6144_v57 = vrot.slane %v6074_v52, %v17177_v19 }
 0x960   : > { %v5856_v6 = vpop.f32.mrf.mxu1 }
 0x961   : > { %v6195_v36 = vadd.f32 %v6194_v15, %v6182_v25  ;;  %v6183_v26 = vmul.f32 %v6154_v29, %v6154_v29  ;;  %v6062_v6 = vrot.slane %v9162_v35, %v17180_v22 }
 0x962   : > { %v5857_v37 = vpop.f32.mrf.mxu1 }
 0x963   : > { %v6196_v49 = vadd.f32 %v6195_v36, %v6183_v26  ;;  %v6132_v54 = vrot.slane %v6062_v6, %v17177_v19 }
 0x99b   : > { %v17168_v30 = vpop.f32.mrf.mxu0 }
 0x99c   : > { %v6155_v59 = vmul.f32 %v6120_v14, %v17168_v30 }
 0x99d   : > { %v17170_v44 = vpop.f32.mrf.mxu0 }
 0x99f   : > { %v5897_v24 = vpop.f32.mrf.mxu0 }
 0x9a0   : > { %v6167_v24 = vadd.f32 %v6166_v18, %v6154_v29 }
 0x9a1   : > { %v5898_v60 = vpop.f32.mrf.mxu0 }
 0x9a2   : > { %v6184_v60 = vmul.f32 %v6155_v59, %v6155_v59  ;;  %v6168_v45 = vadd.f32 %v6167_v24, %v6155_v59 }
 0x9a4   : > { %v6197_v20 = vadd.f32 %v6196_v49, %v6184_v60 }
 0x9a5   : > { %v17172_v51 = vpop.f32.mrf.mxu1 }
 0x9a6   : > { %v6157_v12 = vmul.f32 %v6128_v53, %v17172_v51  ;;  %v9199_v53 = vmov 4  }
 0x9a7   : > { %v17174_v5 = vpop.f32.mrf.mxu1  ;;  %9147 = vset.pattern.permute.xlu1 %v9199_v53 }
 0x9a8   : > { %v6186_v31 = vmul.f32 %v6157_v12, %v6157_v12  ;;  %v6158_v0 = vmul.f32 %v6132_v54, %v17174_v5  ;;  %v9164_v54 = vld [vmem:[%s17280_s2] sm:$0xff] }
 0x9a9   : > { %v5938_v63 = vpop.f32.mrf.mxu1 }
 0x9aa   : > { %v6156_v63 = vmul.f32 %v6124_v10, %v17170_v44  ;;  %v6187_v56 = vmul.f32 %v6158_v0, %v6158_v0 }
 0x9ab   : > { %v5939_v39 = vpop.f32.mrf.mxu1 }
 0x9ac   : > { %v6066_v39 = vrot.slane %v9162_v35, %v6033_v58  ;;  %v6185_v4 = vmul.f32 %v6156_v63, %v6156_v63  ;;  %v6169_v8 = vadd.f32 %v6168_v45, %v6156_v63  ;;  %v9200_v45 = vmov 5  }
 0x9ad   : > { %9149 = vset.pattern.permute.xlu0 %v9200_v45 }
 0x9ae   : > { %v6136_v2 = vrot.slane %v6066_v39, %v17177_v19  ;;  %v6198_v32 = vadd.f32 %v6197_v20, %v6185_v4  ;;  %v6170_v58 = vadd.f32 %v6169_v8, %v6157_v12 }
 0x9b0   : > { %v6199_v17 = vadd.f32 %v6198_v32, %v6186_v31  ;;  %v6171_v48 = vadd.f32 %v6170_v58, %v6158_v0 }
 0x9b2   : > { %v6200_v21 = vadd.f32 %v6199_v17, %v6187_v56 }
 0x9da   : > { %v17217_v62 = vpop.f32.mrf.mxu0 }
 0x9db   : > { %v6159_v38 = vmul.f32 %v6136_v2, %v17217_v62 }
 0x9dc   : > { %v17221_v37 = vpop.f32.mrf.mxu0 }
 0x9dd   : > { %v6188_v34 = vmul.f32 %v6159_v38, %v6159_v38  ;;  %v6160_v1 = vmul.f32 %v6140_v27, %v17221_v37  ;;  %v6172_v46 = vadd.f32 %v6171_v48, %v6159_v38 }
 0x9de   : > { %v5979_v7 = vpop.f32.mrf.mxu0 }
 0x9df   : > { %v6201_v3 = vadd.f32 %v6200_v21, %v6188_v34  ;;  %v6189_v47 = vmul.f32 %v6160_v1, %v6160_v1  ;;  %v6173_v40 = vadd.f32 %v6172_v46, %v6160_v1 }
 0x9e0   : > { %v5980_v23 = vpop.f32.mrf.mxu0 }
 0x9e1   : > { %v6202_v29 = vadd.f32 %v6201_v3, %v6189_v47 }
 0x9e2   : > { %v6016_v14 = vpop.f32.mrf.mxu1 }
 0x9e3   : > { %v6161_v13 = vmul.f32 %v6144_v57, %v6016_v14 }
 0x9e4   : > { %v6018_v25 = vpop.f32.mrf.mxu1 }
 0x9e5   : > { %v6174_v35 = vadd.f32 %v6173_v40, %v6161_v13  ;;  %v6190_v43 = vmul.f32 %v6161_v13, %v6161_v13  ;;  %v6162_v15 = vmul.f32 %v6148_v33, %v6018_v25 }
 0x9e6   : > { %v6020_v18 = vpop.f32.mrf.mxu1 }
 0x9e7   : > { %v6203_v59 = vadd.f32 %v6202_v29, %v6190_v43  ;;  %v6175_v10 = vadd.f32 %v6174_v35, %v6162_v15  ;;  %v6191_v22 = vmul.f32 %v6162_v15, %v6162_v15 }
 0x9e8   : > { %v6021_v36 = vpop.f32.mrf.mxu1 }
 0x9e9   : > { %6176 = vadd.xlane.f32.xlu1 %v6175_v10  ;;  %v6204_v26 = vadd.f32 %v6203_v59, %v6191_v22 }
 0x9eb   : > { %6205 = vadd.xlane.f32.xlu0 %v6204_v26 }
 0xa72   : > { %v6177_v6 = vpop.xlane.xlu1 %6176 }
 0xa73   : > { %v6207_v19 = vmul.f32 0.0008169935, %v6177_v6 }
 0xa74   : > { %v6206_v24 = vpop.xlane.xlu0 %6205 }
 0xa75   : > { %v6209_v60 = vmul.f32 %v6207_v19, %v6207_v19  ;;  %v6208_v63 = vmul.f32 0.0008169935, %v6206_v24 }
 0xa77   : > { %v6210_v39 = vsub.f32 %v6208_v63, %v6209_v60 }
 0xa79   : > { %v6211_v7 = vmax.f32 %v6210_v39, 0.0 }
 0xa7b   : > { %v6212_v49 = vadd.f32 1e-05, %v6211_v7 }
 0xa7d   : > { %9156 = vrsqrt.f32 %v6212_v49 }
 0xa8a   : > { %v9157_v12 = vpop.eup %9156 }
 0xa8b   : > { %v6214_v23 = vmul.f32 %v9164_v54, %v9157_v12 }
 0xa8d   : > { %6223 = vperm.xlu1 %9147, %v6214_v23   ;;  %v6215_v20 = vmul.f32 %v6214_v23, %v6207_v19 }
 0xa8f   : > { %6217 = vrot.lane.b32.xlu0 %v6215_v20, %s9197_s19 }
 0xa91   : > { %9148 = vset.pattern.permute.xlu1 %v9200_v45 }
 0xb01   : > { %v6218_v4 = vpop.permute.xlu0 %6217 }
 0xb02   : > { %v6220_v2 = vsub.f32 %v9164_v54, %v6218_v4 }
 0xb04   : > { %6242 = vperm.xlu1 %9148, %v6220_v2  }
 0xb08   : > { %v6224_v11 = vpop.permute.xlu1 %6223 }
 0xb09   : > { %v6226_v8 = vmul.f32 %v6224_v11, %v17156_v9  ;;  %v6227_v31 = vmul.f32 %v6224_v11, %v17158_v28  ;;  %v6228_v0 = vmul.f32 %v6224_v11, %v17160_v41  ;;  %v6229_v32 = vmul.f32 %v6224_v11, %v17162_v61 }
 0xb0a   : > { %v6230_v58 = vmul.f32 %v6224_v11, %v17164_v16  ;;  %v6231_v38 = vmul.f32 %v6224_v11, %v17166_v55  ;;  %v6232_v27 = vmul.f32 %v6224_v11, %v17168_v30  ;;  %v6233_v17 = vmul.f32 %v6224_v11, %v17170_v44 }
 0xb0b   : > { %v6234_v56 = vmul.f32 %v6224_v11, %v17172_v51  ;;  %v6235_v50 = vmul.f32 %v6224_v11, %v17174_v5  ;;  %v6236_v9 = vmul.f32 %v6224_v11, %v17217_v62  ;;  %v6237_v28 = vmul.f32 %v6224_v11, %v17221_v37 }
 0xb0c   : > { %v6238_v41 = vmul.f32 %v6224_v11, %v6016_v14  ;;  %v6239_v52 = vmul.f32 %v6224_v11, %v6018_v25 }
 0xb7f   : > { %v6243_v61 = vpop.permute.xlu1 %6242 }
 0xb80   : > { %v6245_v48 = vadd.f32 %v6243_v61, %v6226_v8  ;;  %v6246_v16 = vadd.f32 %v6243_v61, %v6227_v31  ;;  %v6247_v34 = vadd.f32 %v6243_v61, %v6228_v0  ;;  %v6248_v55 = vadd.f32 %v6243_v61, %v6229_v32 }
 0xb81   : > { %v6249_v1 = vadd.f32 %v6243_v61, %v6230_v58  ;;  %v6250_v42 = vadd.f32 %v6243_v61, %v6231_v38  ;;  %v6251_v30 = vadd.f32 %v6243_v61, %v6232_v27  ;;  %v6252_v21 = vadd.f32 %v6243_v61, %v6233_v17 }
 0xb82   : > { %v6253_v44 = vadd.f32 %v6243_v61, %v6234_v56  ;;  %v6254_v51 = vadd.f32 %v6243_v61, %v6235_v50  ;;  %v6255_v5 = vadd.f32 %v6243_v61, %v6236_v9  ;;  %v6256_v62 = vadd.f32 %v6243_v61, %v6237_v28 }
 0xb83   : > { %v6257_v37 = vadd.f32 %v6243_v61, %v6238_v41  ;;  %v6258_v46 = vadd.f32 %v6243_v61, %v6239_v52  ;;  %v6259_v57 = vmax.f32 %v6245_v48, 0.0  ;;  %v6260_v3 = vmax.f32 %v6246_v16, 0.0 }
 0xb84   : > { %v6261_v47 = vmax.f32 %v6247_v34, 0.0  ;;  %v6262_v33 = vmax.f32 %v6248_v55, 0.0  ;;  %v6263_v14 = vmax.f32 %v6249_v1, 0.0  ;;  %v6264_v40 = vmax.f32 %v6250_v42, 0.0 }
 0xb85   : > { %v6265_v13 = vmax.f32 %v6251_v30, 0.0  ;;  %v6266_v25 = vmax.f32 %v6252_v21, 0.0  ;;  %v6267_v29 = vmax.f32 %v6253_v44, 0.0  ;;  %v6268_v35 = vmax.f32 %v6254_v51, 0.0  ;;  %6273 = vst [vmem:[%s17259_s14] sm:$0xff] %v6259_v57  ;;  %6274 = vst [vmem:[%s17259_s14 + $0x8] sm:$0xff] %v6260_v3 }
 0xb86   : > { %v6269_v43 = vmax.f32 %v6255_v5, 0.0  ;;  %v6270_v15 = vmax.f32 %v6256_v62, 0.0  ;;  %v6271_v18 = vmax.f32 %v6257_v37, 0.0  ;;  %v6272_v59 = vmax.f32 %v6258_v46, 0.0  ;;  %6275 = vst [vmem:[%s17259_s14 + $0x10] sm:$0xff] %v6261_v47  ;;  %6276 = vst [vmem:[%s17259_s14 + $0x18] sm:$0xff] %v6262_v33 }
 0xb87   : > { %6277 = vst [vmem:[%s17259_s14 + $0x20] sm:$0xff] %v6263_v14  ;;  %6278 = vst [vmem:[%s17259_s14 + $0x28] sm:$0xff] %v6264_v40 }
 0xb88   : > { %6279 = vst [vmem:[%s17259_s14 + $0x30] sm:$0xff] %v6265_v13  ;;  %6280 = vst [vmem:[%s17259_s14 + $0x38] sm:$0xff] %v6266_v25 }
 0xb89   : > { %6281 = vst [vmem:[%s17259_s14 + $0x40] sm:$0xff] %v6267_v29  ;;  %6282 = vst [vmem:[%s17259_s14 + $0x48] sm:$0xff] %v6268_v35 }
 0xb8a   : > { %6283 = vst [vmem:[%s17259_s14 + $0x50] sm:$0xff] %v6269_v43  ;;  %6284 = vst [vmem:[%s17259_s14 + $0x58] sm:$0xff] %v6270_v15 }
 0xb8b   : > { %6285 = vst [vmem:[%s17259_s14 + $0x60] sm:$0xff] %v6271_v18  ;;  %6286 = vst [vmem:[%s17259_s14 + $0x68] sm:$0xff] %v6272_v59 }
 0xb8c PF: > { %s14_s15 = sadd.s32 1, %s9171_s15  }
 0xb8d   : > { %p11_p4 = scmp.ge.s32.totalorder %s14_s15, 4  }
 0xb8f   :  { %13 = sbr.rel (!%p11_p4) target bundleno = 1 (0x1), region = 66 }

</bundles_post_ra>
